<compile_context>
chip_gen: v7x
topology: tpu7x:2x2x1
jax: 0.10.0
libtpu: 0.0.40
codegen_flags: <defaults>
</compile_context>

<pallas_src>
import functools

import jax
import jax.numpy as jnp
from jax import lax
from jax.experimental import pallas as pl
from jax.experimental.pallas import tpu as pltpu

ACTIONS = 2
_VMEM_LIMIT = 32 * 1024 * 1024


# ---------------------------------------------------------------------------
# Pallas kernels
# ---------------------------------------------------------------------------
def _matmul_bias_act_kernel(x_ref, w_ref, b_ref, o_ref, *, apply_relu,
                            compute_dtype):
    x = x_ref[...]
    w = w_ref[...]
    if compute_dtype is not None:              # bf16 MXU operands on v6e/v7x
        x = x.astype(compute_dtype)
        w = w.astype(compute_dtype)
    acc = jnp.dot(x, w, preferred_element_type=jnp.float32)
    acc = acc + b_ref[...]                     # (1, N) broadcasts over rows (f32)
    if apply_relu:
        acc = jnp.maximum(acc, 0.0)
    o_ref[...] = acc.astype(o_ref.dtype)


def _mlp_head_kernel(x_ref, w4_ref, b4_ref, w5_ref, b5_ref, o_ref, *,
                     compute_dtype):
    # Fused fc4 (+ReLU) -> fc5; the (B, 512) hidden stays in VMEM/vregs.
    x = x_ref[...]
    w4 = w4_ref[...]
    if compute_dtype is not None:
        x = x.astype(compute_dtype)
        w4 = w4.astype(compute_dtype)
    h = jnp.dot(x, w4, preferred_element_type=jnp.float32) + b4_ref[...]
    h = jnp.maximum(h, 0.0)
    w5 = w5_ref[...]
    if compute_dtype is not None:
        h = h.astype(compute_dtype)
        w5 = w5.astype(compute_dtype)
    out = jnp.dot(h, w5, preferred_element_type=jnp.float32) + b5_ref[...]
    o_ref[...] = out.astype(o_ref.dtype)


# ---------------------------------------------------------------------------
# Pallas wrappers
# ---------------------------------------------------------------------------
def _pick_m_tile(m, cap=512):
    """Largest multiple-of-8 divisor of m that is <= cap; else the full m
    (a block equal to the full array dim is always legal)."""
    if m <= cap:
        return m
    for t in range(cap, 7, -8):
        if m % t == 0:
            return t
    return m


def pallas_matmul_bias_act(x, w, b, *, apply_relu, compute_dtype=None):
    """x: (M, K), w: (K, N), b: (1, N) -> relu?(x @ w + b), M-tiled grid."""
    M, K = x.shape
    N = w.shape[1]
    tm = _pick_m_tile(M)
    kernel = functools.partial(_matmul_bias_act_kernel,
                               apply_relu=apply_relu,
                               compute_dtype=compute_dtype)
    return pl.pallas_call(
        kernel,
        out_shape=jax.ShapeDtypeStruct((M, N), jnp.float32),
        grid=(M // tm,),
        in_specs=[
            pl.BlockSpec((tm, K), lambda m: (m, 0)),
            pl.BlockSpec((K, N), lambda m: (0, 0)),
            pl.BlockSpec((1, N), lambda m: (0, 0)),
        ],
        out_specs=pl.BlockSpec((tm, N), lambda m: (m, 0)),
        compiler_params=pltpu.CompilerParams(
            dimension_semantics=("parallel",),        # v7x: 2 TCs split M tiles
            vmem_limit_bytes=_VMEM_LIMIT),
    )(x, w, b)


def pallas_mlp_head(x, w4, b4, w5, b5, compute_dtype=None):
    """Fused fc4(ReLU)+fc5: x (B, 3136) -> (B, ACTIONS), one pallas_call."""
    B, K4 = x.shape
    H = w4.shape[1]
    N = w5.shape[1]
    kernel = functools.partial(_mlp_head_kernel, compute_dtype=compute_dtype)
    return pl.pallas_call(
        kernel,
        out_shape=jax.ShapeDtypeStruct((B, N), jnp.float32),
        grid=(1,),
        in_specs=[
            pl.BlockSpec((B, K4), lambda i: (0, 0)),
            pl.BlockSpec((K4, H), lambda i: (0, 0)),
            pl.BlockSpec((1, H), lambda i: (0, 0)),
            pl.BlockSpec((H, N), lambda i: (0, 0)),
            pl.BlockSpec((1, N), lambda i: (0, 0)),
        ],
        out_specs=pl.BlockSpec((B, N), lambda i: (0, 0)),
        compiler_params=pltpu.CompilerParams(
            dimension_semantics=("arbitrary",),
            vmem_limit_bytes=_VMEM_LIMIT),
    )(x, w4, b4, w5, b5)


# ---------------------------------------------------------------------------
# im2col glue (NHWC, transpose-free: slices concatenated along channels)
# ---------------------------------------------------------------------------
def im2col_nhwc(x, kh, kw, stride):
    """x: (B, H, W, C) -> (B*Ho*Wo, kh*kw*C) with K ordered (kh, kw, C)."""
    B, H, W, C = x.shape
    Ho = (H - kh) // stride + 1
    Wo = (W - kw) // stride + 1
    patches = []
    for i in range(kh):
        for j in range(kw):
            patches.append(
                x[:, i:i + stride * (Ho - 1) + 1:stride,
                  j:j + stride * (Wo - 1) + 1:stride, :])     # (B, Ho, Wo, C)
    cols = jnp.concatenate(patches, axis=-1)                  # (B, Ho, Wo, kh*kw*C)
    return cols.reshape(B * Ho * Wo, kh * kw * C), Ho, Wo


def conv2d_relu_pallas(x_nhwc, w_mat, b_row, kh, kw, stride, compute_dtype=None):
    """x: (B, H, W, Cin) NHWC, w_mat: (kh*kw*Cin, Cout), b_row: (1, Cout)."""
    B = x_nhwc.shape[0]
    Cout = w_mat.shape[1]
    cols, Ho, Wo = im2col_nhwc(x_nhwc, kh, kw, stride)
    out = pallas_matmul_bias_act(cols, w_mat, b_row, apply_relu=True,
                                 compute_dtype=compute_dtype)
    return out.reshape(B, Ho, Wo, Cout)                       # NHWC, no transpose


# ---------------------------------------------------------------------------
# Parameter init (PyTorch layout) + one-time kernel-layout preparation
# ---------------------------------------------------------------------------
def _uniform(key, shape, fan_in):
    bound = 1.0 / jnp.sqrt(jnp.float32(fan_in))
    return jax.random.uniform(key, shape, jnp.float32, -bound, bound)


def init_params(key):
    ks = jax.random.split(key, 10)
    p = {}
    p["w1"] = _uniform(ks[0], (32, 4, 8, 8), 4 * 8 * 8)
    p["b1"] = _uniform(ks[1], (32,), 4 * 8 * 8)
    p["w2"] = _uniform(ks[2], (64, 32, 4, 4), 32 * 4 * 4)
    p["b2"] = _uniform(ks[3], (64,), 32 * 4 * 4)
    p["w3"] = _uniform(ks[4], (64, 64, 3, 3), 64 * 3 * 3)
    p["b3"] = _uniform(ks[5], (64,), 64 * 3 * 3)
    p["w4"] = _uniform(ks[6], (512, 7 * 7 * 64), 7 * 7 * 64)   # (out, in) like nn.Linear
    p["b4"] = _uniform(ks[7], (512,), 7 * 7 * 64)
    p["w5"] = _uniform(ks[8], (ACTIONS, 512), 512)
    p["b5"] = _uniform(ks[9], (ACTIONS,), 512)
    return p


def prepare_params(p):
    """One-time weight re-layout: nothing is transposed/reshaped at inference."""
    kp = {}
    # conv weights (Cout, Cin, kh, kw) -> (kh, kw, Cin, Cout) -> (K, Cout)
    kp["w1"] = p["w1"].transpose(2, 3, 1, 0).reshape(8 * 8 * 4, 32)
    kp["b1"] = p["b1"].reshape(1, 32)
    kp["w2"] = p["w2"].transpose(2, 3, 1, 0).reshape(4 * 4 * 32, 64)
    kp["b2"] = p["b2"].reshape(1, 64)
    kp["w3"] = p["w3"].transpose(2, 3, 1, 0).reshape(3 * 3 * 64, 64)
    kp["b3"] = p["b3"].reshape(1, 64)
    # fc4: PyTorch flattens NCHW (c*49 + h*7 + w); our activations flatten as
    # NHWC ((h*7+w)*64 + c).  Fold that permutation into the weight rows.
    kp["w4"] = (p["w4"].reshape(512, 64, 7, 7)
                .transpose(2, 3, 1, 0).reshape(7 * 7 * 64, 512))
    kp["b4"] = p["b4"].reshape(1, 512)
    kp["w5"] = p["w5"].T                                       # (512, ACTIONS)
    kp["b5"] = p["b5"].reshape(1, ACTIONS)
    return kp


# ---------------------------------------------------------------------------
# Forward pass (Pallas kernels for all conv / matmul hot paths)
# ---------------------------------------------------------------------------
def dqn_forward(kp, x, compute_dtype=None):
    # x: (B, 4, 84, 84) NCHW float32 -> NHWC once; NHWC end-to-end afterwards.
    x = jnp.transpose(x, (0, 2, 3, 1))                                  # (B,84,84,4)
    x = conv2d_relu_pallas(x, kp["w1"], kp["b1"], 8, 8, 4, compute_dtype)  # (B,20,20,32)
    x = conv2d_relu_pallas(x, kp["w2"], kp["b2"], 4, 4, 2, compute_dtype)  # (B,9,9,64)
    x = conv2d_relu_pallas(x, kp["w3"], kp["b3"], 3, 3, 1, compute_dtype)  # (B,7,7,64)
    B = x.shape[0]
    x = x.reshape(B, -1)                  # (B, 3136) NHWC flatten (row-major, free)
    return pallas_mlp_head(x, kp["w4"], kp["b4"], kp["w5"], kp["b5"],
                           compute_dtype)                               # (B, ACTIONS)


# ---------------------------------------------------------------------------
# Pure-JAX reference (numerical sanity check, PyTorch-layout params)
# ---------------------------------------------------------------------------
def _conv_ref(x, w, b, stride):
    y = lax.conv_general_dilated(
        x, w, window_strides=(stride, stride), padding="VALID",
        dimension_numbers=("NCHW", "OIHW", "NCHW"))
    return jax.nn.relu(y + b.reshape(1, -1, 1, 1))


def dqn_ref(params, x):
    x = _conv_ref(x, params["w1"], params["b1"], 4)
    x = _conv_ref(x, params["w2"], params["b2"], 2)
    x = _conv_ref(x, params["w3"], params["b3"], 1)
    x = x.reshape(x.shape[0], -1)
    x = jax.nn.relu(x @ params["w4"].T + params["b4"])
    return x @ params["w5"].T + params["b5"]


if __name__ == "__main__":
    key = jax.random.PRNGKey(0)
    k_param, k_x = jax.random.split(key)
    params = init_params(k_param)          # PyTorch-layout (used by reference)
    kparams = prepare_params(params)       # kernel-layout, prepared once at init
    # Spatial size 84 is forced by fc4 expecting 7*7*64 features; batch kept small.
    x = jax.random.normal(k_x, (2, 4, 84, 84), jnp.float32)

    out = jax.block_until_ready(jax.jit(dqn_forward)(kparams, x))
    assert out.shape == (2, ACTIONS) and out.dtype == jnp.float32

    ref = jax.block_until_ready(jax.jit(dqn_ref)(params, x))
    assert jnp.allclose(out, ref, atol=1e-2, rtol=1e-2), (out, ref)

    # bf16 MXU-operand path (f32 accumulation) recommended for large batches
    # on v6e/v7x; checked loosely against the f32 reference.
    fwd_bf16 = jax.jit(functools.partial(dqn_forward, compute_dtype=jnp.bfloat16))
    out_bf16 = jax.block_until_ready(fwd_bf16(kparams, x))
    assert out_bf16.shape == (2, ACTIONS)
    assert jnp.allclose(out_bf16, ref, atol=0.25, rtol=0.25)

    print("KERNEL_OK")
</pallas_src>

<mosaic_0001>
module attributes {stable_mosaic.version = 11 : i64} {
  func.func @_matmul_bias_act_kernel(%arg0: i32, %arg1: memref<400x256xf32, #tpu.memory_space<vmem>>, %arg2: memref<256x32xf32, #tpu.memory_space<vmem>>, %arg3: memref<1x32xf32, #tpu.memory_space<vmem>>, %arg4: memref<400x32xf32, #tpu.memory_space<vmem>>) attributes {dimension_semantics = [#tpu.dimension_semantics<parallel>], iteration_bounds = array<i64: 2>, scalar_prefetch = 0 : i64, scratch_operands = 0 : i64, tpu.core_type = #tpu.core_type<tc>, window_params = [{transform_indices = @transform_0, window_bounds = array<i64: 400, 256>}, {pipeline_mode = #tpu.pipeline_mode<synchronous>, transform_indices = @transform_1, window_bounds = array<i64: 256, 32>}, {pipeline_mode = #tpu.pipeline_mode<synchronous>, transform_indices = @transform_2, window_bounds = array<i64: 1, 32>}, {transform_indices = @transform_3, window_bounds = array<i64: 400, 32>}]} {
    %c0 = arith.constant 0 : index
    %c0_0 = arith.constant 0 : index
    %0 = vector.load %arg1[%c0, %c0_0] : memref<400x256xf32, #tpu.memory_space<vmem>>, vector<400x256xf32>
    %c0_1 = arith.constant 0 : index
    %c0_2 = arith.constant 0 : index
    %1 = vector.load %arg2[%c0_1, %c0_2] : memref<256x32xf32, #tpu.memory_space<vmem>>, vector<256x32xf32>
    %cst = arith.constant dense<0.000000e+00> : vector<400x32xf32>
    %2 = tpu.matmul %0, %1, %cst {dimension_numbers = #tpu.dot_dimension_numbers<[1], [0], [0], [1], [0, 0, 1, 1], [], []>} : vector<400x256xf32>, vector<256x32xf32>, vector<400x32xf32> -> vector<400x32xf32>
    %c0_3 = arith.constant 0 : index
    %c0_4 = arith.constant 0 : index
    %3 = vector.load %arg3[%c0_3, %c0_4] : memref<1x32xf32, #tpu.memory_space<vmem>>, vector<1x32xf32>
    %4 = vector.broadcast %3 : vector<1x32xf32> to vector<400x32xf32>
    %5 = arith.addf %2, %4 : vector<400x32xf32>
    %cst_5 = arith.constant 0.000000e+00 : f32
    %6 = vector.broadcast %cst_5 : f32 to vector<400x32xf32>
    %7 = arith.maximumf %5, %6 : vector<400x32xf32>
    %c0_6 = arith.constant 0 : index
    %c0_7 = arith.constant 0 : index
    %8 = vector.load %arg4[%c0_6, %c0_7] : memref<400x32xf32, #tpu.memory_space<vmem>>, vector<400x32xf32>
    tpu.vector_store %arg4[%c0_6, %c0_7], %7 {strides = array<i32>} : memref<400x32xf32, #tpu.memory_space<vmem>>, vector<400x32xf32>,
    return
  }
  func.func @transform_0(%arg0: i32) -> (i32, i32) {
    %c0_i32 = arith.constant 0 : i32
    %c0_i32_0 = arith.constant 0 : i32
    return %arg0, %c0_i32 : i32, i32
  }
  func.func @transform_1(%arg0: i32) -> (i32, i32) {
    %c0_i32 = arith.constant 0 : i32
    %c0_i32_0 = arith.constant 0 : i32
    %c0_i32_1 = arith.constant 0 : i32
    return %c0_i32, %c0_i32_0 : i32, i32
  }
  func.func @transform_2(%arg0: i32) -> (i32, i32) {
    %c0_i32 = arith.constant 0 : i32
    %c0_i32_0 = arith.constant 0 : i32
    %c0_i32_1 = arith.constant 0 : i32
    return %c0_i32, %c0_i32_0 : i32, i32
  }
  func.func @transform_3(%arg0: i32) -> (i32, i32) {
    %c0_i32 = arith.constant 0 : i32
    %c0_i32_0 = arith.constant 0 : i32
    return %arg0, %c0_i32 : i32, i32
  }
}

module attributes {stable_mosaic.version = 11 : i64} {
  func.func @_matmul_bias_act_kernel(%arg0: i32, %arg1: memref<162x512xf32, #tpu.memory_space<vmem>>, %arg2: memref<512x64xf32, #tpu.memory_space<vmem>>, %arg3: memref<1x64xf32, #tpu.memory_space<vmem>>, %arg4: memref<162x64xf32, #tpu.memory_space<vmem>>) attributes {dimension_semantics = [#tpu.dimension_semantics<parallel>], iteration_bounds = array<i64: 1>, scalar_prefetch = 0 : i64, scratch_operands = 0 : i64, tpu.core_type = #tpu.core_type<tc>, window_params = [{transform_indices = @transform_0, window_bounds = array<i64: 162, 512>}, {pipeline_mode = #tpu.pipeline_mode<synchronous>, transform_indices = @transform_1, window_bounds = array<i64: 512, 64>}, {pipeline_mode = #tpu.pipeline_mode<synchronous>, transform_indices = @transform_2, window_bounds = array<i64: 1, 64>}, {transform_indices = @transform_3, window_bounds = array<i64: 162, 64>}]} {
    %c0 = arith.constant 0 : index
    %c0_0 = arith.constant 0 : index
    %0 = vector.load %arg1[%c0, %c0_0] : memref<162x512xf32, #tpu.memory_space<vmem>>, vector<162x512xf32>
    %c0_1 = arith.constant 0 : index
    %c0_2 = arith.constant 0 : index
    %1 = vector.load %arg2[%c0_1, %c0_2] : memref<512x64xf32, #tpu.memory_space<vmem>>, vector<512x64xf32>
    %cst = arith.constant dense<0.000000e+00> : vector<162x64xf32>
    %2 = tpu.matmul %0, %1, %cst {dimension_numbers = #tpu.dot_dimension_numbers<[1], [0], [0], [1], [0, 0, 1, 1], [], []>} : vector<162x512xf32>, vector<512x64xf32>, vector<162x64xf32> -> vector<162x64xf32>
    %c0_3 = arith.constant 0 : index
    %c0_4 = arith.constant 0 : index
    %3 = vector.load %arg3[%c0_3, %c0_4] : memref<1x64xf32, #tpu.memory_space<vmem>>, vector<1x64xf32>
    %4 = vector.broadcast %3 : vector<1x64xf32> to vector<162x64xf32>
    %5 = arith.addf %2, %4 : vector<162x64xf32>
    %cst_5 = arith.constant 0.000000e+00 : f32
    %6 = vector.broadcast %cst_5 : f32 to vector<162x64xf32>
    %7 = arith.maximumf %5, %6 : vector<162x64xf32>
    %c0_6 = arith.constant 0 : index
    %c0_7 = arith.constant 0 : index
    %8 = vector.load %arg4[%c0_6, %c0_7] : memref<162x64xf32, #tpu.memory_space<vmem>>, vector<162x64xf32>
    tpu.vector_store %arg4[%c0_6, %c0_7], %7 {strides = array<i32>} : memref<162x64xf32, #tpu.memory_space<vmem>>, vector<162x64xf32>,
    return
  }
  func.func @transform_0(%arg0: i32) -> (i32, i32) {
    %c0_i32 = arith.constant 0 : i32
    %c0_i32_0 = arith.constant 0 : i32
    return %arg0, %c0_i32 : i32, i32
  }
  func.func @transform_1(%arg0: i32) -> (i32, i32) {
    %c0_i32 = arith.constant 0 : i32
    %c0_i32_0 = arith.constant 0 : i32
    %c0_i32_1 = arith.constant 0 : i32
    return %c0_i32, %c0_i32_0 : i32, i32
  }
  func.func @transform_2(%arg0: i32) -> (i32, i32) {
    %c0_i32 = arith.constant 0 : i32
    %c0_i32_0 = arith.constant 0 : i32
    %c0_i32_1 = arith.constant 0 : i32
    return %c0_i32, %c0_i32_0 : i32, i32
  }
  func.func @transform_3(%arg0: i32) -> (i32, i32) {
    %c0_i32 = arith.constant 0 : i32
    %c0_i32_0 = arith.constant 0 : i32
    return %arg0, %c0_i32 : i32, i32
  }
}

module attributes {stable_mosaic.version = 11 : i64} {
  func.func @_mlp_head_kernel(%arg0: i32, %arg1: memref<2x3136xf32, #tpu.memory_space<vmem>>, %arg2: memref<3136x512xf32, #tpu.memory_space<vmem>>, %arg3: memref<1x512xf32, #tpu.memory_space<vmem>>, %arg4: memref<512x2xf32, #tpu.memory_space<vmem>>, %arg5: memref<1x2xf32, #tpu.memory_space<vmem>>, %arg6: memref<2x2xf32, #tpu.memory_space<vmem>>) attributes {dimension_semantics = [#tpu.dimension_semantics<arbitrary>], iteration_bounds = array<i64: 1>, scalar_prefetch = 0 : i64, scratch_operands = 0 : i64, tpu.core_type = #tpu.core_type<tc>, window_params = [{pipeline_mode = #tpu.pipeline_mode<synchronous>, transform_indices = @transform_0, window_bounds = array<i64: 2, 3136>}, {pipeline_mode = #tpu.pipeline_mode<synchronous>, transform_indices = @transform_1, window_bounds = array<i64: 3136, 512>}, {pipeline_mode = #tpu.pipeline_mode<synchronous>, transform_indices = @transform_2, window_bounds = array<i64: 1, 512>}, {pipeline_mode = #tpu.pipeline_mode<synchronous>, transform_indices = @transform_3, window_bounds = array<i64: 512, 2>}, {pipeline_mode = #tpu.pipeline_mode<synchronous>, transform_indices = @transform_4, window_bounds = array<i64: 1, 2>}, {pipeline_mode = #tpu.pipeline_mode<synchronous>, transform_indices = @transform_5, window_bounds = array<i64: 2, 2>}]} {
    %c0 = arith.constant 0 : index
    %c0_0 = arith.constant 0 : index
    %0 = vector.load %arg1[%c0, %c0_0] : memref<2x3136xf32, #tpu.memory_space<vmem>>, vector<2x3136xf32>
    %c0_1 = arith.constant 0 : index
    %c0_2 = arith.constant 0 : index
    %1 = vector.load %arg2[%c0_1, %c0_2] : memref<3136x512xf32, #tpu.memory_space<vmem>>, vector<3136x512xf32>
    %cst = arith.constant dense<0.000000e+00> : vector<2x512xf32>
    %2 = tpu.matmul %0, %1, %cst {dimension_numbers = #tpu.dot_dimension_numbers<[1], [0], [0], [1], [0, 0, 1, 1], [], []>} : vector<2x3136xf32>, vector<3136x512xf32>, vector<2x512xf32> -> vector<2x512xf32>
    %c0_3 = arith.constant 0 : index
    %c0_4 = arith.constant 0 : index
    %3 = vector.load %arg3[%c0_3, %c0_4] : memref<1x512xf32, #tpu.memory_space<vmem>>, vector<1x512xf32>
    %4 = vector.broadcast %3 : vector<1x512xf32> to vector<2x512xf32>
    %5 = arith.addf %2, %4 : vector<2x512xf32>
    %cst_5 = arith.constant 0.000000e+00 : f32
    %6 = vector.broadcast %cst_5 : f32 to vector<2x512xf32>
    %7 = arith.maximumf %5, %6 : vector<2x512xf32>
    %c0_6 = arith.constant 0 : index
    %c0_7 = arith.constant 0 : index
    %8 = vector.load %arg4[%c0_6, %c0_7] : memref<512x2xf32, #tpu.memory_space<vmem>>, vector<512x2xf32>
    %cst_8 = arith.constant dense<0.000000e+00> : vector<2x2xf32>
    %9 = tpu.matmul %7, %8, %cst_8 {dimension_numbers = #tpu.dot_dimension_numbers<[1], [0], [0], [1], [0, 0, 1, 1], [], []>} : vector<2x512xf32>, vector<512x2xf32>, vector<2x2xf32> -> vector<2x2xf32>
    %c0_9 = arith.constant 0 : index
    %c0_10 = arith.constant 0 : index
    %10 = vector.load %arg5[%c0_9, %c0_10] : memref<1x2xf32, #tpu.memory_space<vmem>>, vector<1x2xf32>
    %11 = vector.broadcast %10 : vector<1x2xf32> to vector<2x2xf32>
    %12 = arith.addf %9, %11 : vector<2x2xf32>
    %c0_11 = arith.constant 0 : index
    %c0_12 = arith.constant 0 : index
    %13 = vector.load %arg6[%c0_11, %c0_12] : memref<2x2xf32, #tpu.memory_space<vmem>>, vector<2x2xf32>
    tpu.vector_store %arg6[%c0_11, %c0_12], %12 {strides = array<i32>} : memref<2x2xf32, #tpu.memory_space<vmem>>, vector<2x2xf32>,
    return
  }
  func.func @transform_0(%arg0: i32) -> (i32, i32) {
    %c0_i32 = arith.constant 0 : i32
    %c0_i32_0 = arith.constant 0 : i32
    %c0_i32_1 = arith.constant 0 : i32
    return %c0_i32, %c0_i32_0 : i32, i32
  }
  func.func @transform_1(%arg0: i32) -> (i32, i32) {
    %c0_i32 = arith.constant 0 : i32
    %c0_i32_0 = arith.constant 0 : i32
    %c0_i32_1 = arith.constant 0 : i32
    return %c0_i32, %c0_i32_0 : i32, i32
  }
  func.func @transform_2(%arg0: i32) -> (i32, i32) {
    %c0_i32 = arith.constant 0 : i32
    %c0_i32_0 = arith.constant 0 : i32
    %c0_i32_1 = arith.constant 0 : i32
    return %c0_i32, %c0_i32_0 : i32, i32
  }
  func.func @transform_3(%arg0: i32) -> (i32, i32) {
    %c0_i32 = arith.constant 0 : i32
    %c0_i32_0 = arith.constant 0 : i32
    %c0_i32_1 = arith.constant 0 : i32
    return %c0_i32, %c0_i32_0 : i32, i32
  }
  func.func @transform_4(%arg0: i32) -> (i32, i32) {
    %c0_i32 = arith.constant 0 : i32
    %c0_i32_0 = arith.constant 0 : i32
    %c0_i32_1 = arith.constant 0 : i32
    return %c0_i32, %c0_i32_0 : i32, i32
  }
  func.func @transform_5(%arg0: i32) -> (i32, i32) {
    %c0_i32 = arith.constant 0 : i32
    %c0_i32_0 = arith.constant 0 : i32
    %c0_i32_1 = arith.constant 0 : i32
    return %c0_i32, %c0_i32_0 : i32, i32
  }
}

module attributes {stable_mosaic.version = 11 : i64} {
  func.func @_matmul_bias_act_kernel(%arg0: i32, %arg1: memref<98x576xf32, #tpu.memory_space<vmem>>, %arg2: memref<576x64xf32, #tpu.memory_space<vmem>>, %arg3: memref<1x64xf32, #tpu.memory_space<vmem>>, %arg4: memref<98x64xf32, #tpu.memory_space<vmem>>) attributes {dimension_semantics = [#tpu.dimension_semantics<parallel>], iteration_bounds = array<i64: 1>, scalar_prefetch = 0 : i64, scratch_operands = 0 : i64, tpu.core_type = #tpu.core_type<tc>, window_params = [{transform_indices = @transform_0, window_bounds = array<i64: 98, 576>}, {pipeline_mode = #tpu.pipeline_mode<synchronous>, transform_indices = @transform_1, window_bounds = array<i64: 576, 64>}, {pipeline_mode = #tpu.pipeline_mode<synchronous>, transform_indices = @transform_2, window_bounds = array<i64: 1, 64>}, {transform_indices = @transform_3, window_bounds = array<i64: 98, 64>}]} {
    %c0 = arith.constant 0 : index
    %c0_0 = arith.constant 0 : index
    %0 = vector.load %arg1[%c0, %c0_0] : memref<98x576xf32, #tpu.memory_space<vmem>>, vector<98x576xf32>
    %c0_1 = arith.constant 0 : index
    %c0_2 = arith.constant 0 : index
    %1 = vector.load %arg2[%c0_1, %c0_2] : memref<576x64xf32, #tpu.memory_space<vmem>>, vector<576x64xf32>
    %cst = arith.constant dense<0.000000e+00> : vector<98x64xf32>
    %2 = tpu.matmul %0, %1, %cst {dimension_numbers = #tpu.dot_dimension_numbers<[1], [0], [0], [1], [0, 0, 1, 1], [], []>} : vector<98x576xf32>, vector<576x64xf32>, vector<98x64xf32> -> vector<98x64xf32>
    %c0_3 = arith.constant 0 : index
    %c0_4 = arith.constant 0 : index
    %3 = vector.load %arg3[%c0_3, %c0_4] : memref<1x64xf32, #tpu.memory_space<vmem>>, vector<1x64xf32>
    %4 = vector.broadcast %3 : vector<1x64xf32> to vector<98x64xf32>
    %5 = arith.addf %2, %4 : vector<98x64xf32>
    %cst_5 = arith.constant 0.000000e+00 : f32
    %6 = vector.broadcast %cst_5 : f32 to vector<98x64xf32>
    %7 = arith.maximumf %5, %6 : vector<98x64xf32>
    %c0_6 = arith.constant 0 : index
    %c0_7 = arith.constant 0 : index
    %8 = vector.load %arg4[%c0_6, %c0_7] : memref<98x64xf32, #tpu.memory_space<vmem>>, vector<98x64xf32>
    tpu.vector_store %arg4[%c0_6, %c0_7], %7 {strides = array<i32>} : memref<98x64xf32, #tpu.memory_space<vmem>>, vector<98x64xf32>,
    return
  }
  func.func @transform_0(%arg0: i32) -> (i32, i32) {
    %c0_i32 = arith.constant 0 : i32
    %c0_i32_0 = arith.constant 0 : i32
    return %arg0, %c0_i32 : i32, i32
  }
  func.func @transform_1(%arg0: i32) -> (i32, i32) {
    %c0_i32 = arith.constant 0 : i32
    %c0_i32_0 = arith.constant 0 : i32
    %c0_i32_1 = arith.constant 0 : i32
    return %c0_i32, %c0_i32_0 : i32, i32
  }
  func.func @transform_2(%arg0: i32) -> (i32, i32) {
    %c0_i32 = arith.constant 0 : i32
    %c0_i32_0 = arith.constant 0 : i32
    %c0_i32_1 = arith.constant 0 : i32
    return %c0_i32, %c0_i32_0 : i32, i32
  }
  func.func @transform_3(%arg0: i32) -> (i32, i32) {
    %c0_i32 = arith.constant 0 : i32
    %c0_i32_0 = arith.constant 0 : i32
    return %arg0, %c0_i32 : i32, i32
  }
}

</mosaic_0001>

<bundles_post_ra>
// kernel: dqn_forward.4
= control target key start
LH: loop header
LB: loop body
LE: loop exit
PB: predicated region body
PF: predicated region fallthrough
CT: control target
= control target key end

     0   :  { %s918_s12 = smov 0   ;;  %s1326_s0 = inlined_call_operand.vmem [shape: f32[800,256], index: 0, kind: input, shape index: {}]   ;;  %s1327_s1 = inlined_call_operand.vmem [shape: f32[256,32], index: 1, kind: input, shape index: {}]   ;;  %s1328_s2 = inlined_call_operand.vmem [shape: f32[1,32], index: 2, kind: input, shape index: {}]   ;;  %s1329_s3 = inlined_call_operand.vmem [shape: f32[800,32], index: 3, kind: output, shape index: {}]  }
   0x1 LB: > { %s788_s13 = sadd.s32 4294967295, %s895_s12   ;;  %p792_p0 = scmp.ge.s32.totalorder %s895_s12, 1  ;;  %s895_s12 = sphi %s918_s12, %s13_s12  }
   0x2   : > { %p139_p1 = scmp.lt.s32.totalorder %s895_s12, 3 }
   0x4   : > { %p140_p2 = pnand %p792_p0, %p139_p1 }
   0x5   : > { %v277_v0 = vld [vmem:[%s1327_s1] sm:$0xff] (!%p140_p2)  ;;  %v278_v1 = vld [vmem:[%s1327_s1 + $0x8] sm:$0xff] (!%p140_p2)  ;;  %v279_v2 = vld [vmem:[%s1327_s1 + $0x10] sm:$0xff] (!%p140_p2)  ;;  %s164_s20 = smul.u32 (!%p140_p2), 50, %s788_s13  ;;  %v897_v3 = vmov (!%p140_p2), 0.0|0.0   ;;  %vm681_vm0 = vcmask (!%p140_p2), 261120  }
   0x6   : > { %143 = sbr.rel (%p140_p2) target bundleno = 384 (0x180), region = 32  ;;  %800 = vmatprep.subr.bf16.mxu0 (!%p140_p2), %v897_v3  ;;  %848 = vmatprep.subr.bf16.mxu1 (!%p140_p2), %v897_v3  ;;  %v801_v4 = vpack.c.bf16 (!%p140_p2), %v278_v1, %v277_v0  ;;  %v280_v5 = vld [vmem:[%s1327_s1 + $0x18] sm:$0xff] (!%p140_p2)  ;;  %v281_v7 = vld [vmem:[%s1327_s1 + $0x20] sm:$0xff] (!%p140_p2)  ;;  %v282_v8 = vld [vmem:[%s1327_s1 + $0x28] sm:$0xff] (!%p140_p2) }
   0x7   : > { %p165_p3 = scmp.lt.s32.totalorder (!%p140_p2), %s164_s20, 99  ;;  %v804_v6 = vpack.c.bf16 (!%p140_p2), %v280_v5, %v279_v2  ;;  %v807_v9 = vpack.c.bf16 (!%p140_p2), %v282_v8, %v281_v7  ;;  %v283_v10 = vld [vmem:[%s1327_s1 + $0x30] sm:$0xff] (!%p140_p2)  ;;  %v284_v11 = vld [vmem:[%s1327_s1 + $0x38] sm:$0xff] (!%p140_p2)  ;;  %v285_v15 = vld [vmem:[%s1327_s1 + $0x40] sm:$0xff] (!%p140_p2) }
   0x8   : > { %802 = vmatpush1.bf16.msra.mxu0 (!%p140_p2), %v801_v4  ;;  %864 = vmatpush1.bf16.msra.mxu1 (!%p140_p2), %v801_v4  ;;  %v810_v13 = vpack.c.bf16 (!%p140_p2), %v284_v11, %v283_v10  ;;  %v286_v16 = vld [vmem:[%s1327_s1 + $0x48] sm:$0xff] (!%p140_p2)  ;;  %v287_v18 = vld [vmem:[%s1327_s1 + $0x50] sm:$0xff] (!%p140_p2)  ;;  %v288_v19 = vld [vmem:[%s1327_s1 + $0x58] sm:$0xff] (!%p140_p2) }
   0x9   : > { %803 = vmatprep.subr.bf16.mxu0 (!%p140_p2), %v897_v3  ;;  %849 = vmatprep.subr.bf16.mxu1 (!%p140_p2), %v897_v3  ;;  %v813_v17 = vpack.c.bf16 (!%p140_p2), %v286_v16, %v285_v15  ;;  %v816_v20 = vpack.c.bf16 (!%p140_p2), %v288_v19, %v287_v18  ;;  %v289_v21 = vld [vmem:[%s1327_s1 + $0x60] sm:$0xff] (!%p140_p2)  ;;  %v290_v22 = vld [vmem:[%s1327_s1 + $0x68] sm:$0xff] (!%p140_p2)  ;;  %v291_v24 = vld [vmem:[%s1327_s1 + $0x70] sm:$0xff] (!%p140_p2) }
   0xa   : > { %v819_v23 = vpack.c.bf16 (!%p140_p2), %v290_v22, %v289_v21  ;;  %v292_v25 = vld [vmem:[%s1327_s1 + $0x78] sm:$0xff] (!%p140_p2)  ;;  %v293_v27 = vld [vmem:[%s1327_s1 + $0x80] sm:$0xff] (!%p140_p2)  ;;  %v294_v28 = vld [vmem:[%s1327_s1 + $0x88] sm:$0xff] (!%p140_p2) }
   0xb   : > { %v822_v26 = vpack.c.bf16 (!%p140_p2), %v292_v25, %v291_v24  ;;  %v825_v29 = vpack.c.bf16 (!%p140_p2), %v294_v28, %v293_v27  ;;  %v295_v30 = vld [vmem:[%s1327_s1 + $0x90] sm:$0xff] (!%p140_p2)  ;;  %v296_v31 = vld [vmem:[%s1327_s1 + $0x98] sm:$0xff] (!%p140_p2)  ;;  %v297_v33 = vld [vmem:[%s1327_s1 + $0xa0] sm:$0xff] (!%p140_p2) }
   0xc   : > { %805 = vmatpush1.bf16.msra.mxu0 (!%p140_p2), %v804_v6  ;;  %865 = vmatpush1.bf16.msra.mxu1 (!%p140_p2), %v804_v6  ;;  %v828_v32 = vpack.c.bf16 (!%p140_p2), %v296_v31, %v295_v30  ;;  %v298_v34 = vld [vmem:[%s1327_s1 + $0xa8] sm:$0xff] (!%p140_p2)  ;;  %v299_v36 = vld [vmem:[%s1327_s1 + $0xb0] sm:$0xff] (!%p140_p2)  ;;  %v300_v37 = vld [vmem:[%s1327_s1 + $0xb8] sm:$0xff] (!%p140_p2) }
   0xd   : > { %s1331_s20 = smov (!%p165_p3, %s164_s20), 99  ;;  %806 = vmatprep.subr.bf16.mxu0 %v897_v3  ;;  %850 = vmatprep.subr.bf16.mxu1 %v897_v3  ;;  %v831_v35 = vpack.c.bf16 %v298_v34, %v297_v33  ;;  %v834_v38 = vpack.c.bf16 %v300_v37, %v299_v36  ;;  %v301_v39 = vld [vmem:[%s1327_s1 + $0xc0] sm:$0xff]  ;;  %v302_v40 = vld [vmem:[%s1327_s1 + $0xc8] sm:$0xff]  ;;  %v303_v42 = vld [vmem:[%s1327_s1 + $0xd0] sm:$0xff] }
   0xe   : > { %s799_s27 = sshll.u32 %s1331_s20, 4  ;;  %v837_v41 = vpack.c.bf16 %v302_v40, %v301_v39  ;;  %v304_v43 = vld [vmem:[%s1327_s1 + $0xd8] sm:$0xff]  ;;  %v305_v45 = vld [vmem:[%s1327_s1 + $0xe0] sm:$0xff]  ;;  %v306_v46 = vld [vmem:[%s1327_s1 + $0xe8] sm:$0xff]  ;;  %s795_s10 = sshll.u32 %s1331_s20, 3 }
   0xf   : > { %s954_s30 = scalar_lea.vmem %s1326_s0, %s799_s27  ;;  %v840_v44 = vpack.c.bf16 %v304_v43, %v303_v42  ;;  %v843_v47 = vpack.c.bf16 %v306_v46, %v305_v45  ;;  %v307_v48 = vld [vmem:[%s1327_s1 + $0xf0] sm:$0xff]  ;;  %v308_v49 = vld [vmem:[%s1327_s1 + $0xf8] sm:$0xff] }
  0x10   : > { %v178_v12 = vld [vmem:[%s954_s30 + $0x8] sm:$0xff]  ;;  %808 = vmatpush1.bf16.msra.mxu0 %v807_v9  ;;  %866 = vmatpush1.bf16.msra.mxu1 %v807_v9  ;;  %v228_v14 = vld [vmem:[%s954_s30 + $0x198] sm:$0xff]  ;;  %v846_v50 = vpack.c.bf16 %v308_v49, %v307_v48  ;;  %v177_v51 = vld [vmem:[%s954_s30] sm:$0xff] }
  0x11   : > { %809 = vmatprep.subr.bf16.mxu0 %v897_v3  ;;  %851 = vmatprep.subr.bf16.mxu1 %v897_v3  ;;  %v227_v52 = vld [vmem:[%s954_s30 + $0x190] sm:$0xff]  ;;  %v180_v53 = vld [vmem:[%s954_s30 + $0x18] sm:$0xff]  ;;  %v230_v54 = vld [vmem:[%s954_s30 + $0x1a8] sm:$0xff] }
  0x12   : > { %380 = vmatprep.mubr.f32.mxu0 %v178_v12  ;;  %505 = vmatprep.mubr.f32.mxu1 %v228_v14  ;;  %v179_v55 = vld [vmem:[%s954_s30 + $0x10] sm:$0xff]  ;;  %v229_v56 = vld [vmem:[%s954_s30 + $0x1a0] sm:$0xff]  ;;  %v182_v57 = vld [vmem:[%s954_s30 + $0x28] sm:$0xff] }
  0x13   : > { %v232_v58 = vld [vmem:[%s954_s30 + $0x1b8] sm:$0xff]  ;;  %v181_v59 = vld [vmem:[%s954_s30 + $0x20] sm:$0xff]  ;;  %v231_v60 = vld [vmem:[%s954_s30 + $0x1b0] sm:$0xff] }
  0x14   : > { %811 = vmatpush1.bf16.msra.mxu0 %v810_v13  ;;  %867 = vmatpush1.bf16.msra.mxu1 %v810_v13  ;;  %v184_v61 = vld [vmem:[%s954_s30 + $0x38] sm:$0xff]  ;;  %v234_v62 = vld [vmem:[%s954_s30 + $0x1c8] sm:$0xff]  ;;  %v183_v63 = vld [vmem:[%s954_s30 + $0x30] sm:$0xff] }
  0x15   : > { %812 = vmatprep.subr.bf16.mxu0 %v897_v3  ;;  %852 = vmatprep.subr.bf16.mxu1 %v897_v3  ;;  %v233_v0 = vld [vmem:[%s954_s30 + $0x1c0] sm:$0xff]  ;;  %v186_v1 = vld [vmem:[%s954_s30 + $0x48] sm:$0xff]  ;;  %v236_v2 = vld [vmem:[%s954_s30 + $0x1d8] sm:$0xff] }
  0x16   : > { %v235_v4 = vld [vmem:[%s954_s30 + $0x1d0] sm:$0xff]  ;;  %v188_v5 = vld [vmem:[%s954_s30 + $0x58] sm:$0xff]  ;;  %v238_v6 = vld [vmem:[%s954_s30 + $0x1e8] sm:$0xff] }
  0x17   : > { %v187_v7 = vld [vmem:[%s954_s30 + $0x50] sm:$0xff]  ;;  %v237_v8 = vld [vmem:[%s954_s30 + $0x1e0] sm:$0xff]  ;;  %v190_v9 = vld [vmem:[%s954_s30 + $0x68] sm:$0xff] }
  0x18   : > { %814 = vmatpush1.bf16.msra.mxu0 %v813_v17  ;;  %868 = vmatpush1.bf16.msra.mxu1 %v813_v17  ;;  %v240_v10 = vld [vmem:[%s954_s30 + $0x1f8] sm:$0xff]  ;;  %v189_v11 = vld [vmem:[%s954_s30 + $0x60] sm:$0xff]  ;;  %v239_v12 = vld [vmem:[%s954_s30 + $0x1f0] sm:$0xff] }
  0x19   : > { %815 = vmatprep.subr.bf16.mxu0 %v897_v3  ;;  %853 = vmatprep.subr.bf16.mxu1 %v897_v3  ;;  %v192_v13 = vld [vmem:[%s954_s30 + $0x78] sm:$0xff]  ;;  %v242_v14 = vld [vmem:[%s954_s30 + $0x208] sm:$0xff]  ;;  %v191_v15 = vld [vmem:[%s954_s30 + $0x70] sm:$0xff] }
  0x1a   : > { %v241_v16 = vld [vmem:[%s954_s30 + $0x200] sm:$0xff]  ;;  %v194_v17 = vld [vmem:[%s954_s30 + $0x88] sm:$0xff]  ;;  %v244_v18 = vld [vmem:[%s954_s30 + $0x218] sm:$0xff] }
  0x1b   : > { %v193_v19 = vld [vmem:[%s954_s30 + $0x80] sm:$0xff]  ;;  %v196_v21 = vld [vmem:[%s954_s30 + $0x98] sm:$0xff]  ;;  %v246_v22 = vld [vmem:[%s954_s30 + $0x228] sm:$0xff] }
  0x1c   : > { %817 = vmatpush1.bf16.msra.mxu0 %v816_v20  ;;  %869 = vmatpush1.bf16.msra.mxu1 %v816_v20  ;;  %v243_v20 = vld [vmem:[%s954_s30 + $0x210] sm:$0xff]  ;;  %v245_v24 = vld [vmem:[%s954_s30 + $0x220] sm:$0xff]  ;;  %v198_v25 = vld [vmem:[%s954_s30 + $0xa8] sm:$0xff] }
  0x1d   : > { %818 = vmatprep.subr.bf16.mxu0 %v897_v3  ;;  %854 = vmatprep.subr.bf16.mxu1 %v897_v3  ;;  %v197_v27 = vld [vmem:[%s954_s30 + $0xa0] sm:$0xff]  ;;  %v247_v28 = vld [vmem:[%s954_s30 + $0x230] sm:$0xff]  ;;  %v250_v30 = vld [vmem:[%s954_s30 + $0x248] sm:$0xff] }
  0x1e   : > { %v199_v31 = vld [vmem:[%s954_s30 + $0xb0] sm:$0xff]  ;;  %v202_v33 = vld [vmem:[%s954_s30 + $0xc8] sm:$0xff]  ;;  %v252_v34 = vld [vmem:[%s954_s30 + $0x258] sm:$0xff] }
  0x1f   : > { %v251_v36 = vld [vmem:[%s954_s30 + $0x250] sm:$0xff]  ;;  %v204_v37 = vld [vmem:[%s954_s30 + $0xd8] sm:$0xff]  ;;  %v253_v40 = vld [vmem:[%s954_s30 + $0x260] sm:$0xff] }
  0x20   : > { %820 = vmatpush1.bf16.msra.mxu0 %v819_v23  ;;  %870 = vmatpush1.bf16.msra.mxu1 %v819_v23  ;;  %v195_v23 = vld [vmem:[%s954_s30 + $0x90] sm:$0xff]  ;;  %v256_v42 = vld [vmem:[%s954_s30 + $0x278] sm:$0xff]  ;;  %v205_v43 = vld [vmem:[%s954_s30 + $0xe0] sm:$0xff] }
  0x21   : > { %821 = vmatprep.subr.bf16.mxu0 %v897_v3  ;;  %855 = vmatprep.subr.bf16.mxu1 %v897_v3  ;;  %v203_v39 = vld [vmem:[%s954_s30 + $0xd0] sm:$0xff]  ;;  %v208_v45 = vld [vmem:[%s954_s30 + $0xf8] sm:$0xff]  ;;  %v258_v46 = vld [vmem:[%s954_s30 + $0x288] sm:$0xff] }
  0x22   : > { %v257_v48 = vld [vmem:[%s954_s30 + $0x280] sm:$0xff]  ;;  %v210_v49 = vld [vmem:[%s954_s30 + $0x108] sm:$0xff] }
  0x24   : > { %823 = vmatpush1.bf16.msra.mxu0 %v822_v26  ;;  %871 = vmatpush1.bf16.msra.mxu1 %v822_v26  ;;  %v248_v26 = vld [vmem:[%s954_s30 + $0x238] sm:$0xff] }
  0x25   : > { %824 = vmatprep.subr.bf16.mxu0 %v897_v3  ;;  %856 = vmatprep.subr.bf16.mxu1 %v897_v3 }
  0x28   : > { %826 = vmatpush1.bf16.msra.mxu0 %v825_v29  ;;  %872 = vmatpush1.bf16.msra.mxu1 %v825_v29  ;;  %v200_v29 = vld [vmem:[%s954_s30 + $0xb8] sm:$0xff] }
  0x29   : > { %827 = vmatprep.subr.bf16.mxu0 %v897_v3  ;;  %857 = vmatprep.subr.bf16.mxu1 %v897_v3 }
  0x2c   : > { %829 = vmatpush1.bf16.msra.mxu0 %v828_v32  ;;  %873 = vmatpush1.bf16.msra.mxu1 %v828_v32  ;;  %v249_v32 = vld [vmem:[%s954_s30 + $0x240] sm:$0xff] }
  0x2d   : > { %830 = vmatprep.subr.bf16.mxu0 %v897_v3  ;;  %858 = vmatprep.subr.bf16.mxu1 %v897_v3 }
  0x30   : > { %832 = vmatpush1.bf16.msra.mxu0 %v831_v35  ;;  %874 = vmatpush1.bf16.msra.mxu1 %v831_v35  ;;  %v201_v35 = vld [vmem:[%s954_s30 + $0xc0] sm:$0xff] }
  0x31   : > { %833 = vmatprep.subr.bf16.mxu0 %v897_v3  ;;  %859 = vmatprep.subr.bf16.mxu1 %v897_v3 }
  0x34   : > { %835 = vmatpush1.bf16.msra.mxu0 %v834_v38  ;;  %875 = vmatpush1.bf16.msra.mxu1 %v834_v38  ;;  %v254_v38 = vld [vmem:[%s954_s30 + $0x268] sm:$0xff] }
  0x35   : > { %836 = vmatprep.subr.bf16.mxu0 %v897_v3  ;;  %860 = vmatprep.subr.bf16.mxu1 %v897_v3 }
  0x38   : > { %838 = vmatpush1.bf16.msra.mxu0 %v837_v41  ;;  %876 = vmatpush1.bf16.msra.mxu1 %v837_v41  ;;  %v206_v41 = vld [vmem:[%s954_s30 + $0xe8] sm:$0xff] }
  0x39   : > { %839 = vmatprep.subr.bf16.mxu0 %v897_v3  ;;  %861 = vmatprep.subr.bf16.mxu1 %v897_v3 }
  0x3c   : > { %841 = vmatpush1.bf16.msra.mxu0 %v840_v44  ;;  %877 = vmatpush1.bf16.msra.mxu1 %v840_v44  ;;  %v255_v44 = vld [vmem:[%s954_s30 + $0x270] sm:$0xff] }
  0x3d   : > { %842 = vmatprep.subr.bf16.mxu0 %v897_v3  ;;  %862 = vmatprep.subr.bf16.mxu1 %v897_v3 }
  0x40   : > { %844 = vmatpush1.bf16.msra.mxu0 %v843_v47  ;;  %878 = vmatpush1.bf16.msra.mxu1 %v843_v47  ;;  %v207_v47 = vld [vmem:[%s954_s30 + $0xf0] sm:$0xff] }
  0x41   : > { %845 = vmatprep.subr.bf16.mxu0 %v897_v3  ;;  %863 = vmatprep.subr.bf16.mxu1 %v897_v3  ;;  %v185_v3 = vld [vmem:[%s954_s30 + $0x40] sm:$0xff] }
  0x44   : > { %847 = vmatpush1.bf16.msra.mxu0 %v846_v50  ;;  %879 = vmatpush1.bf16.msra.mxu1 %v846_v50  ;;  %v260_v50 = vld [vmem:[%s954_s30 + $0x298] sm:$0xff] }
  0x47   : > { %381 = vmatmul.mubr.f32.vlgmr.msra.gmra.mrb[0].mxu0 %v177_v51  ;;  %506 = vmatmul.mubr.f32.vlgmr.msra.gmra.mrb[0].mxu1 %v227_v52  ;;  %v209_v51 = vld [vmem:[%s954_s30 + $0x100] sm:$0xff]  ;;  %v259_v52 = vld [vmem:[%s954_s30 + $0x290] sm:$0xff] }
  0x48   : > { %385 = vmatprep.mubr.f32.mxu0 %v180_v53  ;;  %510 = vmatprep.mubr.f32.mxu1 %v230_v54  ;;  %v212_v53 = vld [vmem:[%s954_s30 + $0x118] sm:$0xff]  ;;  %v262_v54 = vld [vmem:[%s954_s30 + $0x2a8] sm:$0xff] }
  0x4b   : > { %386 = vmatmul.mubr.f32.gmra.mrb[2].mxu0 %v179_v55  ;;  %511 = vmatmul.mubr.f32.gmra.mrb[2].mxu1 %v229_v56  ;;  %v211_v55 = vld [vmem:[%s954_s30 + $0x110] sm:$0xff]  ;;  %v261_v56 = vld [vmem:[%s954_s30 + $0x2a0] sm:$0xff] }
  0x4c   : > { %390 = vmatprep.mubr.f32.mxu0 %v182_v57  ;;  %515 = vmatprep.mubr.f32.mxu1 %v232_v58  ;;  %v214_v57 = vld [vmem:[%s954_s30 + $0x128] sm:$0xff]  ;;  %v264_v58 = vld [vmem:[%s954_s30 + $0x2b8] sm:$0xff] }
  0x4f   : > { %391 = vmatmul.mubr.f32.gmra.mrb[4].mxu0 %v181_v59  ;;  %516 = vmatmul.mubr.f32.gmra.mrb[4].mxu1 %v231_v60  ;;  %v213_v59 = vld [vmem:[%s954_s30 + $0x120] sm:$0xff]  ;;  %v263_v60 = vld [vmem:[%s954_s30 + $0x2b0] sm:$0xff] }
  0x50   : > { %395 = vmatprep.mubr.f32.mxu0 %v184_v61  ;;  %520 = vmatprep.mubr.f32.mxu1 %v234_v62  ;;  %v216_v61 = vld [vmem:[%s954_s30 + $0x138] sm:$0xff]  ;;  %v266_v62 = vld [vmem:[%s954_s30 + $0x2c8] sm:$0xff] }
  0x53   : > { %396 = vmatmul.mubr.f32.gmra.mrb[6].mxu0 %v183_v63  ;;  %521 = vmatmul.mubr.f32.gmra.mrb[6].mxu1 %v233_v0  ;;  %v215_v63 = vld [vmem:[%s954_s30 + $0x130] sm:$0xff]  ;;  %v265_v0 = vld [vmem:[%s954_s30 + $0x2c0] sm:$0xff] }
  0x54   : > { %400 = vmatprep.mubr.f32.mxu0 %v186_v1  ;;  %525 = vmatprep.mubr.f32.mxu1 %v236_v2  ;;  %v218_v1 = vld [vmem:[%s954_s30 + $0x148] sm:$0xff]  ;;  %v268_v2 = vld [vmem:[%s954_s30 + $0x2d8] sm:$0xff] }
  0x57   : > { %401 = vmatmul.mubr.f32.gmra.mrb[8].mxu0 %v185_v3  ;;  %526 = vmatmul.mubr.f32.gmra.mrb[8].mxu1 %v235_v4  ;;  %v217_v3 = vld [vmem:[%s954_s30 + $0x140] sm:$0xff]  ;;  %v267_v4 = vld [vmem:[%s954_s30 + $0x2d0] sm:$0xff] }
  0x58   : > { %405 = vmatprep.mubr.f32.mxu0 %v188_v5  ;;  %530 = vmatprep.mubr.f32.mxu1 %v238_v6  ;;  %v220_v5 = vld [vmem:[%s954_s30 + $0x158] sm:$0xff]  ;;  %v270_v6 = vld [vmem:[%s954_s30 + $0x2e8] sm:$0xff] }
  0x5b   : > { %406 = vmatmul.mubr.f32.gmra.mrb[10].mxu0 %v187_v7  ;;  %531 = vmatmul.mubr.f32.gmra.mrb[10].mxu1 %v237_v8  ;;  %v219_v7 = vld [vmem:[%s954_s30 + $0x150] sm:$0xff]  ;;  %v269_v8 = vld [vmem:[%s954_s30 + $0x2e0] sm:$0xff] }
  0x5c   : > { %410 = vmatprep.mubr.f32.mxu0 %v190_v9  ;;  %535 = vmatprep.mubr.f32.mxu1 %v240_v10  ;;  %v222_v9 = vld [vmem:[%s954_s30 + $0x168] sm:$0xff]  ;;  %v272_v10 = vld [vmem:[%s954_s30 + $0x2f8] sm:$0xff] }
  0x5f   : > { %411 = vmatmul.mubr.f32.gmra.mrb[12].mxu0 %v189_v11  ;;  %536 = vmatmul.mubr.f32.gmra.mrb[12].mxu1 %v239_v12  ;;  %v221_v11 = vld [vmem:[%s954_s30 + $0x160] sm:$0xff]  ;;  %v271_v12 = vld [vmem:[%s954_s30 + $0x2f0] sm:$0xff] }
  0x60   : > { %415 = vmatprep.mubr.f32.mxu0 %v192_v13  ;;  %540 = vmatprep.mubr.f32.mxu1 %v242_v14  ;;  %v224_v13 = vld [vmem:[%s954_s30 + $0x178] sm:$0xff]  ;;  %v274_v14 = vld [vmem:[%s954_s30 + $0x308] sm:$0xff] }
  0x63   : > { %416 = vmatmul.mubr.f32.gmra.mrb[14].mxu0 %v191_v15  ;;  %541 = vmatmul.mubr.f32.gmra.mrb[14].mxu1 %v241_v16  ;;  %v223_v15 = vld [vmem:[%s954_s30 + $0x170] sm:$0xff]  ;;  %v273_v16 = vld [vmem:[%s954_s30 + $0x300] sm:$0xff] }
  0x64   : > { %420 = vmatprep.mubr.f32.mxu0 %v194_v17  ;;  %545 = vmatprep.mubr.f32.mxu1 %v244_v18  ;;  %v226_v17 = vld [vmem:[%s954_s30 + $0x188] sm:$0xff]  ;;  %v276_v18 = vld [vmem:[%s954_s30 + $0x318] sm:$0xff] }
  0x67   : > { %421 = vmatmul.mubr.f32.gmra.mrb[16].mxu0 %v193_v19  ;;  %546 = vmatmul.mubr.f32.gmra.mrb[16].mxu1 %v243_v20  ;;  %v225_v19 = vld [vmem:[%s954_s30 + $0x180] sm:$0xff]  ;;  %v275_v20 = vld [vmem:[%s954_s30 + $0x310] sm:$0xff]  ;;  %s1173_s30 = scalar_lea.vmem %s1329_s3, %s795_s10 }
  0x68   : > { %425 = vmatprep.mubr.f32.mxu0 %v196_v21  ;;  %550 = vmatprep.mubr.f32.mxu1 %v246_v22  ;;  %v1165_v21 = vld [vmem:[%s1328_s2] ss:$0 sm:$0xff] }
  0x6b   : > { %426 = vmatmul.mubr.f32.gmra.mrb[18].mxu0 %v195_v23  ;;  %551 = vmatmul.mubr.f32.gmra.mrb[18].mxu1 %v245_v24 }
  0x6c   : > { %430 = vmatprep.mubr.f32.mxu0 %v198_v25  ;;  %555 = vmatprep.mubr.f32.mxu1 %v248_v26 }
  0x6f   : > { %431 = vmatmul.mubr.f32.gmra.mrb[20].mxu0 %v197_v27  ;;  %556 = vmatmul.mubr.f32.gmra.mrb[20].mxu1 %v247_v28 }
  0x70   : > { %435 = vmatprep.mubr.f32.mxu0 %v200_v29  ;;  %560 = vmatprep.mubr.f32.mxu1 %v250_v30 }
  0x73   : > { %436 = vmatmul.mubr.f32.gmra.mrb[22].mxu0 %v199_v31  ;;  %561 = vmatmul.mubr.f32.gmra.mrb[22].mxu1 %v249_v32 }
  0x74   : > { %440 = vmatprep.mubr.f32.mxu0 %v202_v33  ;;  %565 = vmatprep.mubr.f32.mxu1 %v252_v34 }
  0x77   : > { %441 = vmatmul.mubr.f32.gmra.mrb[24].mxu0 %v201_v35  ;;  %566 = vmatmul.mubr.f32.gmra.mrb[24].mxu1 %v251_v36 }
  0x78   : > { %445 = vmatprep.mubr.f32.mxu0 %v204_v37  ;;  %570 = vmatprep.mubr.f32.mxu1 %v254_v38 }
  0x7b   : > { %446 = vmatmul.mubr.f32.gmra.mrb[26].mxu0 %v203_v39  ;;  %571 = vmatmul.mubr.f32.gmra.mrb[26].mxu1 %v253_v40 }
  0x7c   : > { %450 = vmatprep.mubr.f32.mxu0 %v206_v41  ;;  %575 = vmatprep.mubr.f32.mxu1 %v256_v42 }
  0x7f   : > { %451 = vmatmul.mubr.f32.gmra.mrb[28].mxu0 %v205_v43  ;;  %576 = vmatmul.mubr.f32.gmra.mrb[28].mxu1 %v255_v44 }
  0x80   : > { %455 = vmatprep.mubr.f32.mxu0 %v208_v45  ;;  %580 = vmatprep.mubr.f32.mxu1 %v258_v46 }
  0x83   : > { %456 = vmatmul.mubr.f32.gmra.mrb[30].mxu0 %v207_v47  ;;  %581 = vmatmul.mubr.f32.gmra.mrb[30].mxu1 %v257_v48 }
  0x84   : > { %460 = vmatprep.mubr.f32.mxu0 %v210_v49  ;;  %585 = vmatprep.mubr.f32.mxu1 %v260_v50 }
  0x87   : > { %461 = vmatmul.mubr.f32.gmra.mrb[32].mxu0 %v209_v51  ;;  %586 = vmatmul.mubr.f32.gmra.mrb[32].mxu1 %v259_v52 }
  0x88   : > { %465 = vmatprep.mubr.f32.mxu0 %v212_v53  ;;  %590 = vmatprep.mubr.f32.mxu1 %v262_v54 }
  0x8b   : > { %466 = vmatmul.mubr.f32.gmra.mrb[34].mxu0 %v211_v55  ;;  %591 = vmatmul.mubr.f32.gmra.mrb[34].mxu1 %v261_v56 }
  0x8c   : > { %470 = vmatprep.mubr.f32.mxu0 %v214_v57  ;;  %595 = vmatprep.mubr.f32.mxu1 %v264_v58 }
  0x8f   : > { %471 = vmatmul.mubr.f32.gmra.mrb[36].mxu0 %v213_v59  ;;  %596 = vmatmul.mubr.f32.gmra.mrb[36].mxu1 %v263_v60 }
  0x90   : > { %475 = vmatprep.mubr.f32.mxu0 %v216_v61  ;;  %600 = vmatprep.mubr.f32.mxu1 %v266_v62 }
  0x93   : > { %476 = vmatmul.mubr.f32.gmra.mrb[38].mxu0 %v215_v63  ;;  %601 = vmatmul.mubr.f32.gmra.mrb[38].mxu1 %v265_v0 }
  0x94   : > { %480 = vmatprep.mubr.f32.mxu0 %v218_v1  ;;  %605 = vmatprep.mubr.f32.mxu1 %v268_v2 }
  0x97   : > { %481 = vmatmul.mubr.f32.gmra.mrb[40].mxu0 %v217_v3  ;;  %606 = vmatmul.mubr.f32.gmra.mrb[40].mxu1 %v267_v4 }
  0x98   : > { %485 = vmatprep.mubr.f32.mxu0 %v220_v5  ;;  %610 = vmatprep.mubr.f32.mxu1 %v270_v6 }
  0x9b   : > { %486 = vmatmul.mubr.f32.gmra.mrb[42].mxu0 %v219_v7  ;;  %611 = vmatmul.mubr.f32.gmra.mrb[42].mxu1 %v269_v8 }
  0x9c   : > { %490 = vmatprep.mubr.f32.mxu0 %v222_v9  ;;  %615 = vmatprep.mubr.f32.mxu1 %v272_v10 }
  0x9f   : > { %491 = vmatmul.mubr.f32.gmra.mrb[44].mxu0 %v221_v11  ;;  %616 = vmatmul.mubr.f32.gmra.mrb[44].mxu1 %v271_v12 }
  0xa0   : > { %495 = vmatprep.mubr.f32.mxu0 %v224_v13  ;;  %620 = vmatprep.mubr.f32.mxu1 %v274_v14 }
  0xa3   : > { %496 = vmatmul.mubr.f32.gmra.mrb[46].mxu0 %v223_v15  ;;  %621 = vmatmul.mubr.f32.gmra.mrb[46].mxu1 %v273_v16 }
  0xa4   : > { %500 = vmatprep.mubr.f32.mxu0 %v226_v17  ;;  %625 = vmatprep.mubr.f32.mxu1 %v276_v18 }
  0xa7   : > { %501 = vmatmul.mubr.f32.gmra.mrb[48].mxu0 %v225_v19  ;;  %626 = vmatmul.mubr.f32.gmra.mrb[48].mxu1 %v275_v20 }
 0x11a   : > { %v382_v22 = vpop.f32.mrb[0].mxu0  ;;  %v507_v23 = vpop.f32.mrb[0].mxu1 }
 0x11b   : > { %v383_v24 = vadd.f32 %v1165_v21, %v382_v22  ;;  %v508_v25 = vadd.f32 %v1165_v21, %v507_v23  ;;  %v384_v26 = vpop.f32.mrb[1].mxu0  ;;  %v509_v27 = vpop.f32.mrb[1].mxu1 }
 0x11d   : > { %v631_v28 = vmax.f32 %v383_v24, 0.0  ;;  %v656_v29 = vmax.f32 %v508_v25, 0.0 }
 0x11e   : > { %v387_v30 = vpop.f32.mrb[2].mxu0  ;;  %v512_v31 = vpop.f32.mrb[2].mxu1 }
 0x11f   : > { %682 = vst.msk [vmem:[%s1173_s30] sm:$0xff] %vm681_vm0, %v631_v28  ;;  %707 = vst.msk [vmem:[%s1173_s30 + $0xc8] sm:$0xff] %vm681_vm0, %v656_v29  ;;  %v388_v32 = vadd.f32 %v1165_v21, %v387_v30  ;;  %v513_v33 = vadd.f32 %v1165_v21, %v512_v31  ;;  %v389_v34 = vpop.f32.mrb[3].mxu0  ;;  %v514_v35 = vpop.f32.mrb[3].mxu1 }
 0x121   : > { %v632_v36 = vmax.f32 %v388_v32, 0.0  ;;  %v657_v37 = vmax.f32 %v513_v33, 0.0 }
 0x122   : > { %v392_v38 = vpop.f32.mrb[4].mxu0  ;;  %v517_v39 = vpop.f32.mrb[4].mxu1 }
 0x123   : > { %683 = vst.msk [vmem:[%s1173_s30 + $0x8] sm:$0xff] %vm681_vm0, %v632_v36  ;;  %708 = vst.msk [vmem:[%s1173_s30 + $0xd0] sm:$0xff] %vm681_vm0, %v657_v37  ;;  %v393_v40 = vadd.f32 %v1165_v21, %v392_v38  ;;  %v518_v41 = vadd.f32 %v1165_v21, %v517_v39  ;;  %v394_v42 = vpop.f32.mrb[5].mxu0  ;;  %v519_v43 = vpop.f32.mrb[5].mxu1 }
 0x125   : > { %v633_v44 = vmax.f32 %v393_v40, 0.0  ;;  %v658_v45 = vmax.f32 %v518_v41, 0.0 }
 0x126   : > { %v397_v46 = vpop.f32.mrb[6].mxu0  ;;  %v522_v47 = vpop.f32.mrb[6].mxu1 }
 0x127   : > { %684 = vst.msk [vmem:[%s1173_s30 + $0x10] sm:$0xff] %vm681_vm0, %v633_v44  ;;  %709 = vst.msk [vmem:[%s1173_s30 + $0xd8] sm:$0xff] %vm681_vm0, %v658_v45  ;;  %v398_v48 = vadd.f32 %v1165_v21, %v397_v46  ;;  %v523_v49 = vadd.f32 %v1165_v21, %v522_v47  ;;  %v399_v50 = vpop.f32.mrb[7].mxu0  ;;  %v524_v51 = vpop.f32.mrb[7].mxu1 }
 0x129   : > { %v634_v52 = vmax.f32 %v398_v48, 0.0  ;;  %v659_v53 = vmax.f32 %v523_v49, 0.0 }
 0x12a   : > { %v402_v54 = vpop.f32.mrb[8].mxu0  ;;  %v527_v55 = vpop.f32.mrb[8].mxu1 }
 0x12b   : > { %685 = vst.msk [vmem:[%s1173_s30 + $0x18] sm:$0xff] %vm681_vm0, %v634_v52  ;;  %710 = vst.msk [vmem:[%s1173_s30 + $0xe0] sm:$0xff] %vm681_vm0, %v659_v53  ;;  %v403_v56 = vadd.f32 %v1165_v21, %v402_v54  ;;  %v528_v57 = vadd.f32 %v1165_v21, %v527_v55  ;;  %v404_v58 = vpop.f32.mrb[9].mxu0  ;;  %v529_v59 = vpop.f32.mrb[9].mxu1 }
 0x12d   : > { %v635_v60 = vmax.f32 %v403_v56, 0.0  ;;  %v660_v61 = vmax.f32 %v528_v57, 0.0 }
 0x12e   : > { %v407_v62 = vpop.f32.mrb[10].mxu0  ;;  %v532_v63 = vpop.f32.mrb[10].mxu1 }
 0x12f   : > { %686 = vst.msk [vmem:[%s1173_s30 + $0x20] sm:$0xff] %vm681_vm0, %v635_v60  ;;  %711 = vst.msk [vmem:[%s1173_s30 + $0xe8] sm:$0xff] %vm681_vm0, %v660_v61  ;;  %v408_v0 = vadd.f32 %v1165_v21, %v407_v62  ;;  %v533_v1 = vadd.f32 %v1165_v21, %v532_v63  ;;  %v409_v2 = vpop.f32.mrb[11].mxu0  ;;  %v534_v3 = vpop.f32.mrb[11].mxu1 }
 0x131   : > { %v636_v4 = vmax.f32 %v408_v0, 0.0  ;;  %v661_v5 = vmax.f32 %v533_v1, 0.0 }
 0x132   : > { %v412_v6 = vpop.f32.mrb[12].mxu0  ;;  %v537_v7 = vpop.f32.mrb[12].mxu1 }
 0x133   : > { %687 = vst.msk [vmem:[%s1173_s30 + $0x28] sm:$0xff] %vm681_vm0, %v636_v4  ;;  %712 = vst.msk [vmem:[%s1173_s30 + $0xf0] sm:$0xff] %vm681_vm0, %v661_v5  ;;  %v413_v8 = vadd.f32 %v1165_v21, %v412_v6  ;;  %v538_v9 = vadd.f32 %v1165_v21, %v537_v7  ;;  %v414_v10 = vpop.f32.mrb[13].mxu0  ;;  %v539_v11 = vpop.f32.mrb[13].mxu1 }
 0x135   : > { %v637_v12 = vmax.f32 %v413_v8, 0.0  ;;  %v662_v13 = vmax.f32 %v538_v9, 0.0 }
 0x136   : > { %v417_v14 = vpop.f32.mrb[14].mxu0  ;;  %v542_v15 = vpop.f32.mrb[14].mxu1 }
 0x137   : > { %688 = vst.msk [vmem:[%s1173_s30 + $0x30] sm:$0xff] %vm681_vm0, %v637_v12  ;;  %713 = vst.msk [vmem:[%s1173_s30 + $0xf8] sm:$0xff] %vm681_vm0, %v662_v13  ;;  %v418_v16 = vadd.f32 %v1165_v21, %v417_v14  ;;  %v543_v17 = vadd.f32 %v1165_v21, %v542_v15  ;;  %v419_v18 = vpop.f32.mrb[15].mxu0  ;;  %v544_v19 = vpop.f32.mrb[15].mxu1 }
 0x139   : > { %v638_v20 = vmax.f32 %v418_v16, 0.0  ;;  %v663_v22 = vmax.f32 %v543_v17, 0.0 }
 0x13a   : > { %v422_v23 = vpop.f32.mrb[16].mxu0  ;;  %v547_v24 = vpop.f32.mrb[16].mxu1 }
 0x13b   : > { %689 = vst.msk [vmem:[%s1173_s30 + $0x38] sm:$0xff] %vm681_vm0, %v638_v20  ;;  %714 = vst.msk [vmem:[%s1173_s30 + $0x100] sm:$0xff] %vm681_vm0, %v663_v22  ;;  %v423_v25 = vadd.f32 %v1165_v21, %v422_v23  ;;  %v548_v26 = vadd.f32 %v1165_v21, %v547_v24  ;;  %v424_v27 = vpop.f32.mrb[17].mxu0  ;;  %v549_v28 = vpop.f32.mrb[17].mxu1 }
 0x13d   : > { %v639_v29 = vmax.f32 %v423_v25, 0.0  ;;  %v664_v30 = vmax.f32 %v548_v26, 0.0 }
 0x13e   : > { %v427_v31 = vpop.f32.mrb[18].mxu0  ;;  %v552_v32 = vpop.f32.mrb[18].mxu1 }
 0x13f   : > { %690 = vst.msk [vmem:[%s1173_s30 + $0x40] sm:$0xff] %vm681_vm0, %v639_v29  ;;  %715 = vst.msk [vmem:[%s1173_s30 + $0x108] sm:$0xff] %vm681_vm0, %v664_v30  ;;  %v428_v33 = vadd.f32 %v1165_v21, %v427_v31  ;;  %v553_v34 = vadd.f32 %v1165_v21, %v552_v32  ;;  %v429_v35 = vpop.f32.mrb[19].mxu0  ;;  %v554_v36 = vpop.f32.mrb[19].mxu1 }
 0x141   : > { %v640_v37 = vmax.f32 %v428_v33, 0.0  ;;  %v665_v38 = vmax.f32 %v553_v34, 0.0 }
 0x142   : > { %v432_v39 = vpop.f32.mrb[20].mxu0  ;;  %v557_v40 = vpop.f32.mrb[20].mxu1 }
 0x143   : > { %691 = vst.msk [vmem:[%s1173_s30 + $0x48] sm:$0xff] %vm681_vm0, %v640_v37  ;;  %716 = vst.msk [vmem:[%s1173_s30 + $0x110] sm:$0xff] %vm681_vm0, %v665_v38  ;;  %v433_v41 = vadd.f32 %v1165_v21, %v432_v39  ;;  %v558_v42 = vadd.f32 %v1165_v21, %v557_v40  ;;  %v434_v43 = vpop.f32.mrb[21].mxu0  ;;  %v559_v44 = vpop.f32.mrb[21].mxu1 }
 0x145   : > { %v641_v45 = vmax.f32 %v433_v41, 0.0  ;;  %v666_v46 = vmax.f32 %v558_v42, 0.0 }
 0x146   : > { %v437_v47 = vpop.f32.mrb[22].mxu0  ;;  %v562_v48 = vpop.f32.mrb[22].mxu1 }
 0x147   : > { %692 = vst.msk [vmem:[%s1173_s30 + $0x50] sm:$0xff] %vm681_vm0, %v641_v45  ;;  %717 = vst.msk [vmem:[%s1173_s30 + $0x118] sm:$0xff] %vm681_vm0, %v666_v46  ;;  %v438_v49 = vadd.f32 %v1165_v21, %v437_v47  ;;  %v563_v50 = vadd.f32 %v1165_v21, %v562_v48  ;;  %v439_v51 = vpop.f32.mrb[23].mxu0  ;;  %v564_v52 = vpop.f32.mrb[23].mxu1 }
 0x149   : > { %v642_v53 = vmax.f32 %v438_v49, 0.0  ;;  %v667_v54 = vmax.f32 %v563_v50, 0.0 }
 0x14a   : > { %v442_v55 = vpop.f32.mrb[24].mxu0  ;;  %v567_v56 = vpop.f32.mrb[24].mxu1 }
 0x14b   : > { %693 = vst.msk [vmem:[%s1173_s30 + $0x58] sm:$0xff] %vm681_vm0, %v642_v53  ;;  %718 = vst.msk [vmem:[%s1173_s30 + $0x120] sm:$0xff] %vm681_vm0, %v667_v54  ;;  %v443_v57 = vadd.f32 %v1165_v21, %v442_v55  ;;  %v568_v58 = vadd.f32 %v1165_v21, %v567_v56  ;;  %v444_v59 = vpop.f32.mrb[25].mxu0  ;;  %v569_v60 = vpop.f32.mrb[25].mxu1 }
 0x14d   : > { %v643_v61 = vmax.f32 %v443_v57, 0.0  ;;  %v668_v62 = vmax.f32 %v568_v58, 0.0 }
 0x14e   : > { %v447_v63 = vpop.f32.mrb[26].mxu0  ;;  %v572_v0 = vpop.f32.mrb[26].mxu1 }
 0x14f   : > { %694 = vst.msk [vmem:[%s1173_s30 + $0x60] sm:$0xff] %vm681_vm0, %v643_v61  ;;  %719 = vst.msk [vmem:[%s1173_s30 + $0x128] sm:$0xff] %vm681_vm0, %v668_v62  ;;  %v448_v1 = vadd.f32 %v1165_v21, %v447_v63  ;;  %v573_v2 = vadd.f32 %v1165_v21, %v572_v0  ;;  %v449_v3 = vpop.f32.mrb[27].mxu0  ;;  %v574_v4 = vpop.f32.mrb[27].mxu1 }
 0x151   : > { %v644_v5 = vmax.f32 %v448_v1, 0.0  ;;  %v669_v6 = vmax.f32 %v573_v2, 0.0 }
 0x152   : > { %v452_v7 = vpop.f32.mrb[28].mxu0  ;;  %v577_v8 = vpop.f32.mrb[28].mxu1 }
 0x153   : > { %695 = vst.msk [vmem:[%s1173_s30 + $0x68] sm:$0xff] %vm681_vm0, %v644_v5  ;;  %720 = vst.msk [vmem:[%s1173_s30 + $0x130] sm:$0xff] %vm681_vm0, %v669_v6  ;;  %v453_v9 = vadd.f32 %v1165_v21, %v452_v7  ;;  %v578_v10 = vadd.f32 %v1165_v21, %v577_v8  ;;  %v454_v11 = vpop.f32.mrb[29].mxu0  ;;  %v579_v12 = vpop.f32.mrb[29].mxu1 }
 0x155   : > { %v645_v13 = vmax.f32 %v453_v9, 0.0  ;;  %v670_v14 = vmax.f32 %v578_v10, 0.0 }
 0x156   : > { %v457_v15 = vpop.f32.mrb[30].mxu0  ;;  %v582_v16 = vpop.f32.mrb[30].mxu1 }
 0x157   : > { %696 = vst.msk [vmem:[%s1173_s30 + $0x70] sm:$0xff] %vm681_vm0, %v645_v13  ;;  %721 = vst.msk [vmem:[%s1173_s30 + $0x138] sm:$0xff] %vm681_vm0, %v670_v14  ;;  %v458_v17 = vadd.f32 %v1165_v21, %v457_v15  ;;  %v583_v18 = vadd.f32 %v1165_v21, %v582_v16  ;;  %v459_v19 = vpop.f32.mrb[31].mxu0  ;;  %v584_v20 = vpop.f32.mrb[31].mxu1 }
 0x159   : > { %v646_v22 = vmax.f32 %v458_v17, 0.0  ;;  %v671_v23 = vmax.f32 %v583_v18, 0.0 }
 0x15a   : > { %v462_v24 = vpop.f32.mrb[32].mxu0  ;;  %v587_v25 = vpop.f32.mrb[32].mxu1 }
 0x15b   : > { %697 = vst.msk [vmem:[%s1173_s30 + $0x78] sm:$0xff] %vm681_vm0, %v646_v22  ;;  %722 = vst.msk [vmem:[%s1173_s30 + $0x140] sm:$0xff] %vm681_vm0, %v671_v23  ;;  %v463_v26 = vadd.f32 %v1165_v21, %v462_v24  ;;  %v588_v27 = vadd.f32 %v1165_v21, %v587_v25  ;;  %v464_v28 = vpop.f32.mrb[33].mxu0  ;;  %v589_v29 = vpop.f32.mrb[33].mxu1 }
 0x15d   : > { %v647_v30 = vmax.f32 %v463_v26, 0.0  ;;  %v672_v31 = vmax.f32 %v588_v27, 0.0 }
 0x15e   : > { %v467_v32 = vpop.f32.mrb[34].mxu0  ;;  %v592_v33 = vpop.f32.mrb[34].mxu1 }
 0x15f   : > { %698 = vst.msk [vmem:[%s1173_s30 + $0x80] sm:$0xff] %vm681_vm0, %v647_v30  ;;  %723 = vst.msk [vmem:[%s1173_s30 + $0x148] sm:$0xff] %vm681_vm0, %v672_v31  ;;  %v468_v34 = vadd.f32 %v1165_v21, %v467_v32  ;;  %v593_v35 = vadd.f32 %v1165_v21, %v592_v33  ;;  %v469_v36 = vpop.f32.mrb[35].mxu0  ;;  %v594_v37 = vpop.f32.mrb[35].mxu1 }
 0x161   : > { %v648_v38 = vmax.f32 %v468_v34, 0.0  ;;  %v673_v39 = vmax.f32 %v593_v35, 0.0 }
 0x162   : > { %v472_v40 = vpop.f32.mrb[36].mxu0  ;;  %v597_v41 = vpop.f32.mrb[36].mxu1 }
 0x163   : > { %699 = vst.msk [vmem:[%s1173_s30 + $0x88] sm:$0xff] %vm681_vm0, %v648_v38  ;;  %724 = vst.msk [vmem:[%s1173_s30 + $0x150] sm:$0xff] %vm681_vm0, %v673_v39  ;;  %v473_v42 = vadd.f32 %v1165_v21, %v472_v40  ;;  %v598_v43 = vadd.f32 %v1165_v21, %v597_v41  ;;  %v474_v44 = vpop.f32.mrb[37].mxu0  ;;  %v599_v45 = vpop.f32.mrb[37].mxu1 }
 0x165   : > { %v649_v46 = vmax.f32 %v473_v42, 0.0  ;;  %v674_v47 = vmax.f32 %v598_v43, 0.0 }
 0x166   : > { %v477_v48 = vpop.f32.mrb[38].mxu0  ;;  %v602_v49 = vpop.f32.mrb[38].mxu1 }
 0x167   : > { %700 = vst.msk [vmem:[%s1173_s30 + $0x90] sm:$0xff] %vm681_vm0, %v649_v46  ;;  %725 = vst.msk [vmem:[%s1173_s30 + $0x158] sm:$0xff] %vm681_vm0, %v674_v47  ;;  %v478_v50 = vadd.f32 %v1165_v21, %v477_v48  ;;  %v603_v51 = vadd.f32 %v1165_v21, %v602_v49  ;;  %v479_v52 = vpop.f32.mrb[39].mxu0  ;;  %v604_v53 = vpop.f32.mrb[39].mxu1 }
 0x169   : > { %v650_v54 = vmax.f32 %v478_v50, 0.0  ;;  %v675_v55 = vmax.f32 %v603_v51, 0.0 }
 0x16a   : > { %v482_v56 = vpop.f32.mrb[40].mxu0  ;;  %v607_v57 = vpop.f32.mrb[40].mxu1 }
 0x16b   : > { %701 = vst.msk [vmem:[%s1173_s30 + $0x98] sm:$0xff] %vm681_vm0, %v650_v54  ;;  %726 = vst.msk [vmem:[%s1173_s30 + $0x160] sm:$0xff] %vm681_vm0, %v675_v55  ;;  %v483_v58 = vadd.f32 %v1165_v21, %v482_v56  ;;  %v608_v59 = vadd.f32 %v1165_v21, %v607_v57  ;;  %v484_v60 = vpop.f32.mrb[41].mxu0  ;;  %v609_v61 = vpop.f32.mrb[41].mxu1 }
 0x16d   : > { %v651_v62 = vmax.f32 %v483_v58, 0.0  ;;  %v676_v63 = vmax.f32 %v608_v59, 0.0 }
 0x16e   : > { %v487_v0 = vpop.f32.mrb[42].mxu0  ;;  %v612_v1 = vpop.f32.mrb[42].mxu1 }
 0x16f   : > { %702 = vst.msk [vmem:[%s1173_s30 + $0xa0] sm:$0xff] %vm681_vm0, %v651_v62  ;;  %727 = vst.msk [vmem:[%s1173_s30 + $0x168] sm:$0xff] %vm681_vm0, %v676_v63  ;;  %v488_v2 = vadd.f32 %v1165_v21, %v487_v0  ;;  %v613_v3 = vadd.f32 %v1165_v21, %v612_v1  ;;  %v489_v4 = vpop.f32.mrb[43].mxu0  ;;  %v614_v5 = vpop.f32.mrb[43].mxu1 }
 0x171   : > { %v652_v6 = vmax.f32 %v488_v2, 0.0  ;;  %v677_v7 = vmax.f32 %v613_v3, 0.0 }
 0x172   : > { %v492_v8 = vpop.f32.mrb[44].mxu0  ;;  %v617_v9 = vpop.f32.mrb[44].mxu1 }
 0x173   : > { %703 = vst.msk [vmem:[%s1173_s30 + $0xa8] sm:$0xff] %vm681_vm0, %v652_v6  ;;  %728 = vst.msk [vmem:[%s1173_s30 + $0x170] sm:$0xff] %vm681_vm0, %v677_v7  ;;  %v493_v10 = vadd.f32 %v1165_v21, %v492_v8  ;;  %v618_v11 = vadd.f32 %v1165_v21, %v617_v9  ;;  %v494_v12 = vpop.f32.mrb[45].mxu0  ;;  %v619_v13 = vpop.f32.mrb[45].mxu1 }
 0x175   : > { %v653_v14 = vmax.f32 %v493_v10, 0.0  ;;  %v678_v15 = vmax.f32 %v618_v11, 0.0 }
 0x176   : > { %v497_v16 = vpop.f32.mrb[46].mxu0  ;;  %v622_v17 = vpop.f32.mrb[46].mxu1 }
 0x177   : > { %704 = vst.msk [vmem:[%s1173_s30 + $0xb0] sm:$0xff] %vm681_vm0, %v653_v14  ;;  %729 = vst.msk [vmem:[%s1173_s30 + $0x178] sm:$0xff] %vm681_vm0, %v678_v15  ;;  %v498_v18 = vadd.f32 %v1165_v21, %v497_v16  ;;  %v623_v19 = vadd.f32 %v1165_v21, %v622_v17  ;;  %v499_v20 = vpop.f32.mrb[47].mxu0  ;;  %v624_v22 = vpop.f32.mrb[47].mxu1 }
 0x179   : > { %v654_v23 = vmax.f32 %v498_v18, 0.0  ;;  %v679_v24 = vmax.f32 %v623_v19, 0.0 }
 0x17a   : > { %v502_v25 = vpop.f32.mrb[48].mxu0  ;;  %v627_v26 = vpop.f32.mrb[48].mxu1 }
 0x17b   : > { %705 = vst.msk [vmem:[%s1173_s30 + $0xb8] sm:$0xff] %vm681_vm0, %v654_v23  ;;  %730 = vst.msk [vmem:[%s1173_s30 + $0x180] sm:$0xff] %vm681_vm0, %v679_v24  ;;  %v503_v27 = vadd.f32 %v1165_v21, %v502_v25  ;;  %v628_v28 = vadd.f32 %v1165_v21, %v627_v26  ;;  %v504_v29 = vpop.f32.mrb[49].mxu0  ;;  %v629_v30 = vpop.f32.mrb[49].mxu1 }
 0x17d   : > { %v655_v31 = vmax.f32 %v503_v27, 0.0  ;;  %v680_v32 = vmax.f32 %v628_v28, 0.0 }
 0x17f   : > { %706 = vst.msk [vmem:[%s1173_s30 + $0xc0] sm:$0xff] %vm681_vm0, %v655_v31  ;;  %731 = vst.msk [vmem:[%s1173_s30 + $0x188] sm:$0xff] %vm681_vm0, %v680_v32 }
 0x180 PF: > { %s13_s12 = sadd.s32 1, %s895_s12  }
 0x181   : > { %p10_p4 = scmp.ge.s32.totalorder %s13_s12, 4  }
 0x183   :  { %12 = sbr.rel (!%p10_p4) target bundleno = 1 (0x1), region = 62 }

// kernel: dqn_forward.5
= control target key start
LH: loop header
LB: loop body
LE: loop exit
PB: predicated region body
PF: predicated region fallthrough
CT: control target
= control target key end

     0   :  { %v697_v0 = vmov 0.0|0.0   ;;  %vm530_vm0 = vcmask 523264   ;;  %vm551_vm1 = vcmask 517120   ;;  %s1303_s1 = inlined_call_operand.vmem [shape: f32[512,64], index: 1, kind: input, shape index: {}]   ;;  %s1304_s0 = inlined_call_operand.vmem [shape: f32[162,512], index: 0, kind: input, shape index: {}]   ;;  %s1305_s2 = inlined_call_operand.vmem [shape: f32[1,64], index: 2, kind: input, shape index: {}]   ;;  %s1306_s3 = inlined_call_operand.vmem [shape: f32[162,64], index: 3, kind: output, shape index: {}]  }
   0x1   :  { %558 = vmatprep.subr.bf16.mxu1 %v697_v0  ;;  %v98_v1 = vld [vmem:[%s1303_s1] sm:$0xff]  ;;  %v99_v2 = vld [vmem:[%s1303_s1 + $0x8] sm:$0xff]  ;;  %606 = vmatprep.subr.bf16.mxu0 %v697_v0  ;;  %v100_v6 = vld [vmem:[%s1303_s1 + $0x10] sm:$0xff] }
   0x2   :  { %v130_v3 = vld [vmem:[%s1303_s1 + $0x100] sm:$0xff]  ;;  %v559_v4 = vpack.c.bf16 %v99_v2, %v98_v1  ;;  %v131_v5 = vld [vmem:[%s1303_s1 + $0x108] sm:$0xff]  ;;  %v101_v7 = vld [vmem:[%s1303_s1 + $0x18] sm:$0xff] }
   0x3   :  { %v607_v8 = vpack.c.bf16 %v131_v5, %v130_v3  ;;  %v132_v9 = vld [vmem:[%s1303_s1 + $0x110] sm:$0xff]  ;;  %v133_v10 = vld [vmem:[%s1303_s1 + $0x118] sm:$0xff]  ;;  %v562_v11 = vpack.c.bf16 %v101_v7, %v100_v6  ;;  %v102_v13 = vld [vmem:[%s1303_s1 + $0x20] sm:$0xff] }
   0x4   :  { %560 = vmatpush1.bf16.msra.mxu1 %v559_v4  ;;  %v610_v12 = vpack.c.bf16 %v133_v10, %v132_v9  ;;  %v103_v14 = vld [vmem:[%s1303_s1 + $0x28] sm:$0xff]  ;;  %v134_v15 = vld [vmem:[%s1303_s1 + $0x120] sm:$0xff]  ;;  %v104_v19 = vld [vmem:[%s1303_s1 + $0x30] sm:$0xff] }
   0x5   :  { %608 = vmatpush1.bf16.msra.mxu0 %v607_v8  ;;  %561 = vmatprep.subr.bf16.mxu1 %v697_v0  ;;  %v135_v16 = vld [vmem:[%s1303_s1 + $0x128] sm:$0xff]  ;;  %v565_v17 = vpack.c.bf16 %v103_v14, %v102_v13  ;;  %v105_v20 = vld [vmem:[%s1303_s1 + $0x38] sm:$0xff]  ;;  %v136_v21 = vld [vmem:[%s1303_s1 + $0x130] sm:$0xff] }
   0x6   :  { %609 = vmatprep.subr.bf16.mxu0 %v697_v0  ;;  %v613_v18 = vpack.c.bf16 %v135_v16, %v134_v15  ;;  %v137_v22 = vld [vmem:[%s1303_s1 + $0x138] sm:$0xff]  ;;  %v568_v23 = vpack.c.bf16 %v105_v20, %v104_v19  ;;  %v106_v25 = vld [vmem:[%s1303_s1 + $0x40] sm:$0xff]  ;;  %v107_v26 = vld [vmem:[%s1303_s1 + $0x48] sm:$0xff] }
   0x7   :  { %v616_v24 = vpack.c.bf16 %v137_v22, %v136_v21  ;;  %v138_v27 = vld [vmem:[%s1303_s1 + $0x140] sm:$0xff]  ;;  %v139_v28 = vld [vmem:[%s1303_s1 + $0x148] sm:$0xff]  ;;  %v571_v29 = vpack.c.bf16 %v107_v26, %v106_v25  ;;  %v108_v31 = vld [vmem:[%s1303_s1 + $0x50] sm:$0xff] }
   0x8   :  { %563 = vmatpush1.bf16.msra.mxu1 %v562_v11  ;;  %v619_v30 = vpack.c.bf16 %v139_v28, %v138_v27  ;;  %v109_v32 = vld [vmem:[%s1303_s1 + $0x58] sm:$0xff]  ;;  %v140_v33 = vld [vmem:[%s1303_s1 + $0x150] sm:$0xff]  ;;  %v110_v37 = vld [vmem:[%s1303_s1 + $0x60] sm:$0xff] }
   0x9   :  { %611 = vmatpush1.bf16.msra.mxu0 %v610_v12  ;;  %564 = vmatprep.subr.bf16.mxu1 %v697_v0  ;;  %v141_v34 = vld [vmem:[%s1303_s1 + $0x158] sm:$0xff]  ;;  %v574_v35 = vpack.c.bf16 %v109_v32, %v108_v31  ;;  %v111_v38 = vld [vmem:[%s1303_s1 + $0x68] sm:$0xff]  ;;  %v142_v39 = vld [vmem:[%s1303_s1 + $0x160] sm:$0xff] }
   0xa   :  { %612 = vmatprep.subr.bf16.mxu0 %v697_v0  ;;  %v622_v36 = vpack.c.bf16 %v141_v34, %v140_v33  ;;  %v143_v40 = vld [vmem:[%s1303_s1 + $0x168] sm:$0xff]  ;;  %v17_v42 = vld [vmem:[%s1304_s0 + $0x18] sm:$0xff]  ;;  %v577_v43 = vpack.c.bf16 %v111_v38, %v110_v37  ;;  %v112_v45 = vld [vmem:[%s1303_s1 + $0x70] sm:$0xff] }
   0xb   :  { %v15_v41 = vld [vmem:[%s1304_s0 + $0x8] sm:$0xff]  ;;  %403 = vmatprep.mubr.f32.mxu0 %v17_v42  ;;  %v625_v44 = vpack.c.bf16 %v143_v40, %v142_v39  ;;  %v113_v46 = vld [vmem:[%s1303_s1 + $0x78] sm:$0xff]  ;;  %v144_v47 = vld [vmem:[%s1303_s1 + $0x170] sm:$0xff] }
   0xc   :  { %566 = vmatpush1.bf16.msra.mxu1 %v565_v17  ;;  %233 = vmatprep.mubr.f32.mxu1 %v15_v41  ;;  %v145_v48 = vld [vmem:[%s1303_s1 + $0x178] sm:$0xff]  ;;  %v580_v49 = vpack.c.bf16 %v113_v46, %v112_v45  ;;  %v114_v51 = vld [vmem:[%s1303_s1 + $0x80] sm:$0xff]  ;;  %v115_v52 = vld [vmem:[%s1303_s1 + $0x88] sm:$0xff] }
   0xd   :  { %614 = vmatpush1.bf16.msra.mxu0 %v613_v18  ;;  %567 = vmatprep.subr.bf16.mxu1 %v697_v0  ;;  %v628_v50 = vpack.c.bf16 %v145_v48, %v144_v47  ;;  %v146_v53 = vld [vmem:[%s1303_s1 + $0x180] sm:$0xff]  ;;  %v147_v54 = vld [vmem:[%s1303_s1 + $0x188] sm:$0xff]  ;;  %v583_v55 = vpack.c.bf16 %v115_v52, %v114_v51  ;;  %v116_v57 = vld [vmem:[%s1303_s1 + $0x90] sm:$0xff] }
   0xe   :  { %615 = vmatprep.subr.bf16.mxu0 %v697_v0  ;;  %v631_v56 = vpack.c.bf16 %v147_v54, %v146_v53  ;;  %v117_v58 = vld [vmem:[%s1303_s1 + $0x98] sm:$0xff]  ;;  %v148_v59 = vld [vmem:[%s1303_s1 + $0x190] sm:$0xff]  ;;  %v118_v63 = vld [vmem:[%s1303_s1 + $0xa0] sm:$0xff] }
   0xf   :  { %v149_v60 = vld [vmem:[%s1303_s1 + $0x198] sm:$0xff]  ;;  %v586_v61 = vpack.c.bf16 %v117_v58, %v116_v57  ;;  %v119_v1 = vld [vmem:[%s1303_s1 + $0xa8] sm:$0xff]  ;;  %v150_v2 = vld [vmem:[%s1303_s1 + $0x1a0] sm:$0xff] }
  0x10   :  { %569 = vmatpush1.bf16.msra.mxu1 %v568_v23  ;;  %v634_v62 = vpack.c.bf16 %v149_v60, %v148_v59  ;;  %v151_v3 = vld [vmem:[%s1303_s1 + $0x1a8] sm:$0xff]  ;;  %v589_v4 = vpack.c.bf16 %v119_v1, %v118_v63  ;;  %v120_v6 = vld [vmem:[%s1303_s1 + $0xb0] sm:$0xff]  ;;  %v121_v7 = vld [vmem:[%s1303_s1 + $0xb8] sm:$0xff] }
  0x11   :  { %617 = vmatpush1.bf16.msra.mxu0 %v616_v24  ;;  %570 = vmatprep.subr.bf16.mxu1 %v697_v0  ;;  %v637_v5 = vpack.c.bf16 %v151_v3, %v150_v2  ;;  %v152_v8 = vld [vmem:[%s1303_s1 + $0x1b0] sm:$0xff]  ;;  %v153_v9 = vld [vmem:[%s1303_s1 + $0x1b8] sm:$0xff]  ;;  %v592_v10 = vpack.c.bf16 %v121_v7, %v120_v6  ;;  %v122_v12 = vld [vmem:[%s1303_s1 + $0xc0] sm:$0xff] }
  0x12   :  { %618 = vmatprep.subr.bf16.mxu0 %v697_v0  ;;  %v640_v11 = vpack.c.bf16 %v153_v9, %v152_v8  ;;  %v123_v13 = vld [vmem:[%s1303_s1 + $0xc8] sm:$0xff]  ;;  %v154_v14 = vld [vmem:[%s1303_s1 + $0x1c0] sm:$0xff]  ;;  %v124_v18 = vld [vmem:[%s1303_s1 + $0xd0] sm:$0xff] }
  0x13   :  { %v155_v15 = vld [vmem:[%s1303_s1 + $0x1c8] sm:$0xff]  ;;  %v595_v16 = vpack.c.bf16 %v123_v13, %v122_v12  ;;  %v125_v19 = vld [vmem:[%s1303_s1 + $0xd8] sm:$0xff]  ;;  %v156_v20 = vld [vmem:[%s1303_s1 + $0x1d0] sm:$0xff] }
  0x14   :  { %572 = vmatpush1.bf16.msra.mxu1 %v571_v29  ;;  %v643_v17 = vpack.c.bf16 %v155_v15, %v154_v14  ;;  %v157_v21 = vld [vmem:[%s1303_s1 + $0x1d8] sm:$0xff]  ;;  %v598_v22 = vpack.c.bf16 %v125_v19, %v124_v18  ;;  %v126_v24 = vld [vmem:[%s1303_s1 + $0xe0] sm:$0xff]  ;;  %v127_v25 = vld [vmem:[%s1303_s1 + $0xe8] sm:$0xff] }
  0x15   :  { %620 = vmatpush1.bf16.msra.mxu0 %v619_v30  ;;  %573 = vmatprep.subr.bf16.mxu1 %v697_v0  ;;  %v646_v23 = vpack.c.bf16 %v157_v21, %v156_v20  ;;  %v158_v26 = vld [vmem:[%s1303_s1 + $0x1e0] sm:$0xff]  ;;  %v159_v27 = vld [vmem:[%s1303_s1 + $0x1e8] sm:$0xff]  ;;  %v601_v28 = vpack.c.bf16 %v127_v25, %v126_v24  ;;  %v128_v30 = vld [vmem:[%s1303_s1 + $0xf0] sm:$0xff] }
  0x16   :  { %621 = vmatprep.subr.bf16.mxu0 %v697_v0  ;;  %v649_v29 = vpack.c.bf16 %v159_v27, %v158_v26  ;;  %v129_v31 = vld [vmem:[%s1303_s1 + $0xf8] sm:$0xff]  ;;  %v160_v32 = vld [vmem:[%s1303_s1 + $0x1f0] sm:$0xff]  ;;  %v19_v38 = vld [vmem:[%s1304_s0 + $0x28] sm:$0xff] }
  0x17   :  { %v161_v33 = vld [vmem:[%s1303_s1 + $0x1f8] sm:$0xff]  ;;  %v604_v34 = vpack.c.bf16 %v129_v31, %v128_v30  ;;  %v16_v37 = vld [vmem:[%s1304_s0 + $0x10] sm:$0xff]  ;;  %v23_v41 = vld [vmem:[%s1304_s0 + $0x48] sm:$0xff] }
  0x18   :  { %575 = vmatpush1.bf16.msra.mxu1 %v574_v35  ;;  %v652_v35 = vpack.c.bf16 %v161_v33, %v160_v32  ;;  %v21_v39 = vld [vmem:[%s1304_s0 + $0x38] sm:$0xff]  ;;  %v20_v40 = vld [vmem:[%s1304_s0 + $0x30] sm:$0xff]  ;;  %v27_v45 = vld [vmem:[%s1304_s0 + $0x68] sm:$0xff] }
  0x19   :  { %623 = vmatpush1.bf16.msra.mxu0 %v622_v36  ;;  %576 = vmatprep.subr.bf16.mxu1 %v697_v0  ;;  %v14_v36 = vld [vmem:[%s1304_s0] sm:$0xff]  ;;  %v25_v42 = vld [vmem:[%s1304_s0 + $0x58] sm:$0xff]  ;;  %v28_v48 = vld [vmem:[%s1304_s0 + $0x70] sm:$0xff] }
  0x1a   :  { %624 = vmatprep.subr.bf16.mxu0 %v697_v0  ;;  %v29_v46 = vld [vmem:[%s1304_s0 + $0x78] sm:$0xff]  ;;  %v26_v47 = vld [vmem:[%s1304_s0 + $0x60] sm:$0xff]  ;;  %v32_v52 = vld [vmem:[%s1304_s0 + $0x90] sm:$0xff] }
  0x1b   :  { %v30_v51 = vld [vmem:[%s1304_s0 + $0x80] sm:$0xff]  ;;  %v35_v53 = vld [vmem:[%s1304_s0 + $0xa8] sm:$0xff]  ;;  %v37_v54 = vld [vmem:[%s1304_s0 + $0xb8] sm:$0xff] }
  0x1c   :  { %578 = vmatpush1.bf16.msra.mxu1 %v577_v43  ;;  %v22_v43 = vld [vmem:[%s1304_s0 + $0x40] sm:$0xff]  ;;  %v39_v57 = vld [vmem:[%s1304_s0 + $0xc8] sm:$0xff]  ;;  %v41_v58 = vld [vmem:[%s1304_s0 + $0xd8] sm:$0xff] }
  0x1d   :  { %626 = vmatpush1.bf16.msra.mxu0 %v625_v44  ;;  %579 = vmatprep.subr.bf16.mxu1 %v697_v0  ;;  %v24_v44 = vld [vmem:[%s1304_s0 + $0x50] sm:$0xff]  ;;  %v38_v59 = vld [vmem:[%s1304_s0 + $0xc0] sm:$0xff]  ;;  %v47_v2 = vld [vmem:[%s1304_s0 + $0x108] sm:$0xff] }
  0x1e   :  { %627 = vmatprep.subr.bf16.mxu0 %v697_v0  ;;  %v40_v60 = vld [vmem:[%s1304_s0 + $0xd0] sm:$0xff]  ;;  %v42_v63 = vld [vmem:[%s1304_s0 + $0xe0] sm:$0xff]  ;;  %v49_v3 = vld [vmem:[%s1304_s0 + $0x118] sm:$0xff] }
  0x1f   :  { %v44_v1 = vld [vmem:[%s1304_s0 + $0xf0] sm:$0xff]  ;;  %v51_v6 = vld [vmem:[%s1304_s0 + $0x128] sm:$0xff]  ;;  %v53_v7 = vld [vmem:[%s1304_s0 + $0x138] sm:$0xff] }
  0x20   :  { %581 = vmatpush1.bf16.msra.mxu1 %v580_v49  ;;  %v31_v49 = vld [vmem:[%s1304_s0 + $0x88] sm:$0xff]  ;;  %v50_v8 = vld [vmem:[%s1304_s0 + $0x120] sm:$0xff]  ;;  %v52_v9 = vld [vmem:[%s1304_s0 + $0x130] sm:$0xff] }
  0x21   :  { %629 = vmatpush1.bf16.msra.mxu0 %v628_v50  ;;  %582 = vmatprep.subr.bf16.mxu1 %v697_v0  ;;  %v33_v50 = vld [vmem:[%s1304_s0 + $0x98] sm:$0xff]  ;;  %v54_v12 = vld [vmem:[%s1304_s0 + $0x140] sm:$0xff]  ;;  %v56_v13 = vld [vmem:[%s1304_s0 + $0x150] sm:$0xff] }
  0x22   :  { %630 = vmatprep.subr.bf16.mxu0 %v697_v0  ;;  %v59_v14 = vld [vmem:[%s1304_s0 + $0x168] sm:$0xff]  ;;  %v61_v15 = vld [vmem:[%s1304_s0 + $0x178] sm:$0xff]  ;;  %v62_v20 = vld [vmem:[%s1304_s0 + $0x180] sm:$0xff] }
  0x23   :  { %v63_v18 = vld [vmem:[%s1304_s0 + $0x188] sm:$0xff]  ;;  %v65_v19 = vld [vmem:[%s1304_s0 + $0x198] sm:$0xff]  ;;  %v64_v21 = vld [vmem:[%s1304_s0 + $0x190] sm:$0xff] }
  0x24   :  { %584 = vmatpush1.bf16.msra.mxu1 %v583_v55  ;;  %v34_v55 = vld [vmem:[%s1304_s0 + $0xa0] sm:$0xff]  ;;  %v68_v25 = vld [vmem:[%s1304_s0 + $0x1b0] sm:$0xff]  ;;  %v71_v26 = vld [vmem:[%s1304_s0 + $0x1c8] sm:$0xff] }
  0x25   :  { %632 = vmatpush1.bf16.msra.mxu0 %v631_v56  ;;  %585 = vmatprep.subr.bf16.mxu1 %v697_v0  ;;  %v36_v56 = vld [vmem:[%s1304_s0 + $0xb0] sm:$0xff]  ;;  %v66_v24 = vld [vmem:[%s1304_s0 + $0x1a0] sm:$0xff]  ;;  %v73_v27 = vld [vmem:[%s1304_s0 + $0x1d8] sm:$0xff] }
  0x26   :  { %633 = vmatprep.subr.bf16.mxu0 %v697_v0  ;;  %v75_v30 = vld [vmem:[%s1304_s0 + $0x1e8] sm:$0xff]  ;;  %v77_v31 = vld [vmem:[%s1304_s0 + $0x1f8] sm:$0xff]  ;;  %v74_v32 = vld [vmem:[%s1304_s0 + $0x1e0] sm:$0xff] }
  0x27   :  { %v76_v33 = vld [vmem:[%s1304_s0 + $0x1f0] sm:$0xff] }
  0x28   :  { %587 = vmatpush1.bf16.msra.mxu1 %v586_v61  ;;  %v43_v61 = vld [vmem:[%s1304_s0 + $0xe8] sm:$0xff] }
  0x29   :  { %635 = vmatpush1.bf16.msra.mxu0 %v634_v62  ;;  %588 = vmatprep.subr.bf16.mxu1 %v697_v0  ;;  %v45_v62 = vld [vmem:[%s1304_s0 + $0xf8] sm:$0xff] }
  0x2a   :  { %636 = vmatprep.subr.bf16.mxu0 %v697_v0 }
  0x2c   :  { %590 = vmatpush1.bf16.msra.mxu1 %v589_v4  ;;  %v46_v4 = vld [vmem:[%s1304_s0 + $0x100] sm:$0xff] }
  0x2d   :  { %638 = vmatpush1.bf16.msra.mxu0 %v637_v5  ;;  %591 = vmatprep.subr.bf16.mxu1 %v697_v0  ;;  %v48_v5 = vld [vmem:[%s1304_s0 + $0x110] sm:$0xff] }
  0x2e   :  { %639 = vmatprep.subr.bf16.mxu0 %v697_v0 }
  0x30   :  { %593 = vmatpush1.bf16.msra.mxu1 %v592_v10  ;;  %v55_v10 = vld [vmem:[%s1304_s0 + $0x148] sm:$0xff] }
  0x31   :  { %641 = vmatpush1.bf16.msra.mxu0 %v640_v11  ;;  %594 = vmatprep.subr.bf16.mxu1 %v697_v0  ;;  %v57_v11 = vld [vmem:[%s1304_s0 + $0x158] sm:$0xff] }
  0x32   :  { %642 = vmatprep.subr.bf16.mxu0 %v697_v0 }
  0x34   :  { %596 = vmatpush1.bf16.msra.mxu1 %v595_v16  ;;  %v58_v16 = vld [vmem:[%s1304_s0 + $0x160] sm:$0xff] }
  0x35   :  { %644 = vmatpush1.bf16.msra.mxu0 %v643_v17  ;;  %597 = vmatprep.subr.bf16.mxu1 %v697_v0  ;;  %v60_v17 = vld [vmem:[%s1304_s0 + $0x170] sm:$0xff] }
  0x36   :  { %645 = vmatprep.subr.bf16.mxu0 %v697_v0 }
  0x38   :  { %599 = vmatpush1.bf16.msra.mxu1 %v598_v22  ;;  %v67_v22 = vld [vmem:[%s1304_s0 + $0x1a8] sm:$0xff] }
  0x39   :  { %647 = vmatpush1.bf16.msra.mxu0 %v646_v23  ;;  %600 = vmatprep.subr.bf16.mxu1 %v697_v0  ;;  %v69_v23 = vld [vmem:[%s1304_s0 + $0x1b8] sm:$0xff] }
  0x3a   :  { %648 = vmatprep.subr.bf16.mxu0 %v697_v0 }
  0x3c   :  { %602 = vmatpush1.bf16.msra.mxu1 %v601_v28  ;;  %v70_v28 = vld [vmem:[%s1304_s0 + $0x1c0] sm:$0xff] }
  0x3d   :  { %650 = vmatpush1.bf16.msra.mxu0 %v649_v29  ;;  %603 = vmatprep.subr.bf16.mxu1 %v697_v0  ;;  %v72_v29 = vld [vmem:[%s1304_s0 + $0x1d0] sm:$0xff] }
  0x3e   :  { %651 = vmatprep.subr.bf16.mxu0 %v697_v0  ;;  %v18_v0 = vld [vmem:[%s1304_s0 + $0x20] sm:$0xff] }
  0x40   :  { %605 = vmatpush1.bf16.msra.mxu1 %v604_v34  ;;  %v79_v34 = vld [vmem:[%s1304_s0 + $0x208] sm:$0xff] }
  0x41   :  { %653 = vmatpush1.bf16.msra.mxu0 %v652_v35  ;;  %v81_v35 = vld [vmem:[%s1304_s0 + $0x218] sm:$0xff] }
  0x43   :  { %234 = vmatmul.mubr.f32.vlgmr.msra.gmra.mrb[0].mxu1 %v14_v36  ;;  %v78_v36 = vld [vmem:[%s1304_s0 + $0x200] sm:$0xff] }
  0x44   :  { %404 = vmatmul.mubr.f32.vlgmr.msra.gmra.mrb[0].mxu0 %v16_v37  ;;  %238 = vmatprep.mubr.f32.mxu1 %v19_v38  ;;  %v80_v37 = vld [vmem:[%s1304_s0 + $0x210] sm:$0xff]  ;;  %v83_v38 = vld [vmem:[%s1304_s0 + $0x228] sm:$0xff] }
  0x45   :  { %408 = vmatprep.mubr.f32.mxu0 %v21_v39  ;;  %v85_v39 = vld [vmem:[%s1304_s0 + $0x238] sm:$0xff] }
  0x47   :  { %239 = vmatmul.mubr.f32.gmra.mrb[2].mxu1 %v18_v0  ;;  %v82_v0 = vld [vmem:[%s1304_s0 + $0x220] sm:$0xff] }
  0x48   :  { %409 = vmatmul.mubr.f32.gmra.mrb[2].mxu0 %v20_v40  ;;  %243 = vmatprep.mubr.f32.mxu1 %v23_v41  ;;  %v84_v40 = vld [vmem:[%s1304_s0 + $0x230] sm:$0xff]  ;;  %v87_v41 = vld [vmem:[%s1304_s0 + $0x248] sm:$0xff] }
  0x49   :  { %413 = vmatprep.mubr.f32.mxu0 %v25_v42  ;;  %v89_v42 = vld [vmem:[%s1304_s0 + $0x258] sm:$0xff] }
  0x4b   :  { %244 = vmatmul.mubr.f32.gmra.mrb[4].mxu1 %v22_v43  ;;  %v86_v43 = vld [vmem:[%s1304_s0 + $0x240] sm:$0xff] }
  0x4c   :  { %414 = vmatmul.mubr.f32.gmra.mrb[4].mxu0 %v24_v44  ;;  %248 = vmatprep.mubr.f32.mxu1 %v27_v45  ;;  %v88_v44 = vld [vmem:[%s1304_s0 + $0x250] sm:$0xff]  ;;  %v91_v45 = vld [vmem:[%s1304_s0 + $0x268] sm:$0xff] }
  0x4d   :  { %418 = vmatprep.mubr.f32.mxu0 %v29_v46  ;;  %v93_v46 = vld [vmem:[%s1304_s0 + $0x278] sm:$0xff] }
  0x4f   :  { %249 = vmatmul.mubr.f32.gmra.mrb[6].mxu1 %v26_v47  ;;  %v90_v47 = vld [vmem:[%s1304_s0 + $0x260] sm:$0xff] }
  0x50   :  { %419 = vmatmul.mubr.f32.gmra.mrb[6].mxu0 %v28_v48  ;;  %253 = vmatprep.mubr.f32.mxu1 %v31_v49  ;;  %v92_v48 = vld [vmem:[%s1304_s0 + $0x270] sm:$0xff]  ;;  %v95_v49 = vld [vmem:[%s1304_s0 + $0x288] sm:$0x3] }
  0x51   :  { %423 = vmatprep.mubr.f32.mxu0 %v33_v50  ;;  %v97_v50 = vld [vmem:[%s1304_s0 + $0x298] sm:$0x3] }
  0x53   :  { %254 = vmatmul.mubr.f32.gmra.mrb[8].mxu1 %v30_v51  ;;  %v94_v51 = vld [vmem:[%s1304_s0 + $0x280] sm:$0x3] }
  0x54   :  { %424 = vmatmul.mubr.f32.gmra.mrb[8].mxu0 %v32_v52  ;;  %258 = vmatprep.mubr.f32.mxu1 %v35_v53  ;;  %v96_v52 = vld [vmem:[%s1304_s0 + $0x290] sm:$0x3]  ;;  %v1197_v53 = vld [vmem:[%s1305_s2] ss:$0 sm:$0xff] }
  0x55   :  { %428 = vmatprep.mubr.f32.mxu0 %v37_v54 }
  0x57   :  { %259 = vmatmul.mubr.f32.gmra.mrb[10].mxu1 %v34_v55 }
  0x58   :  { %429 = vmatmul.mubr.f32.gmra.mrb[10].mxu0 %v36_v56  ;;  %263 = vmatprep.mubr.f32.mxu1 %v39_v57 }
  0x59   :  { %433 = vmatprep.mubr.f32.mxu0 %v41_v58 }
  0x5b   :  { %264 = vmatmul.mubr.f32.gmra.mrb[12].mxu1 %v38_v59 }
  0x5c   :  { %434 = vmatmul.mubr.f32.gmra.mrb[12].mxu0 %v40_v60  ;;  %268 = vmatprep.mubr.f32.mxu1 %v43_v61 }
  0x5d   :  { %438 = vmatprep.mubr.f32.mxu0 %v45_v62 }
  0x5f   :  { %269 = vmatmul.mubr.f32.gmra.mrb[14].mxu1 %v42_v63 }
  0x60   :  { %439 = vmatmul.mubr.f32.gmra.mrb[14].mxu0 %v44_v1  ;;  %273 = vmatprep.mubr.f32.mxu1 %v47_v2 }
  0x61   :  { %443 = vmatprep.mubr.f32.mxu0 %v49_v3 }
  0x63   :  { %274 = vmatmul.mubr.f32.gmra.mrb[16].mxu1 %v46_v4 }
  0x64   :  { %444 = vmatmul.mubr.f32.gmra.mrb[16].mxu0 %v48_v5  ;;  %278 = vmatprep.mubr.f32.mxu1 %v51_v6 }
  0x65   :  { %448 = vmatprep.mubr.f32.mxu0 %v53_v7 }
  0x67   :  { %279 = vmatmul.mubr.f32.gmra.mrb[18].mxu1 %v50_v8 }
  0x68   :  { %449 = vmatmul.mubr.f32.gmra.mrb[18].mxu0 %v52_v9  ;;  %283 = vmatprep.mubr.f32.mxu1 %v55_v10 }
  0x69   :  { %453 = vmatprep.mubr.f32.mxu0 %v57_v11 }
  0x6b   :  { %284 = vmatmul.mubr.f32.gmra.mrb[20].mxu1 %v54_v12 }
  0x6c   :  { %454 = vmatmul.mubr.f32.gmra.mrb[20].mxu0 %v56_v13  ;;  %288 = vmatprep.mubr.f32.mxu1 %v59_v14 }
  0x6d   :  { %458 = vmatprep.mubr.f32.mxu0 %v61_v15 }
  0x6f   :  { %289 = vmatmul.mubr.f32.gmra.mrb[22].mxu1 %v58_v16 }
  0x70   :  { %459 = vmatmul.mubr.f32.gmra.mrb[22].mxu0 %v60_v17  ;;  %293 = vmatprep.mubr.f32.mxu1 %v63_v18 }
  0x71   :  { %463 = vmatprep.mubr.f32.mxu0 %v65_v19 }
  0x73   :  { %294 = vmatmul.mubr.f32.gmra.mrb[24].mxu1 %v62_v20 }
  0x74   :  { %464 = vmatmul.mubr.f32.gmra.mrb[24].mxu0 %v64_v21  ;;  %298 = vmatprep.mubr.f32.mxu1 %v67_v22 }
  0x75   :  { %468 = vmatprep.mubr.f32.mxu0 %v69_v23 }
  0x77   :  { %299 = vmatmul.mubr.f32.gmra.mrb[26].mxu1 %v66_v24 }
  0x78   :  { %469 = vmatmul.mubr.f32.gmra.mrb[26].mxu0 %v68_v25  ;;  %303 = vmatprep.mubr.f32.mxu1 %v71_v26 }
  0x79   :  { %473 = vmatprep.mubr.f32.mxu0 %v73_v27 }
  0x7b   :  { %304 = vmatmul.mubr.f32.gmra.mrb[28].mxu1 %v70_v28 }
  0x7c   :  { %474 = vmatmul.mubr.f32.gmra.mrb[28].mxu0 %v72_v29  ;;  %308 = vmatprep.mubr.f32.mxu1 %v75_v30 }
  0x7d   :  { %478 = vmatprep.mubr.f32.mxu0 %v77_v31 }
  0x7f   :  { %309 = vmatmul.mubr.f32.gmra.mrb[30].mxu1 %v74_v32 }
  0x80   :  { %479 = vmatmul.mubr.f32.gmra.mrb[30].mxu0 %v76_v33  ;;  %313 = vmatprep.mubr.f32.mxu1 %v79_v34 }
  0x81   :  { %483 = vmatprep.mubr.f32.mxu0 %v81_v35 }
  0x83   :  { %314 = vmatmul.mubr.f32.gmra.mrb[32].mxu1 %v78_v36 }
  0x84   :  { %484 = vmatmul.mubr.f32.gmra.mrb[32].mxu0 %v80_v37  ;;  %318 = vmatprep.mubr.f32.mxu1 %v83_v38 }
  0x85   :  { %488 = vmatprep.mubr.f32.mxu0 %v85_v39 }
  0x87   :  { %319 = vmatmul.mubr.f32.gmra.mrb[34].mxu1 %v82_v0 }
  0x88   :  { %489 = vmatmul.mubr.f32.gmra.mrb[34].mxu0 %v84_v40  ;;  %323 = vmatprep.mubr.f32.mxu1 %v87_v41 }
  0x89   :  { %493 = vmatprep.mubr.f32.mxu0 %v89_v42 }
  0x8b   :  { %324 = vmatmul.mubr.f32.gmra.mrb[36].mxu1 %v86_v43 }
  0x8c   :  { %494 = vmatmul.mubr.f32.gmra.mrb[36].mxu0 %v88_v44  ;;  %328 = vmatprep.mubr.f32.mxu1 %v91_v45 }
  0x8d   :  { %498 = vmatprep.mubr.f32.mxu0 %v93_v46 }
  0x8f   :  { %329 = vmatmul.mubr.f32.gmra.mrb[38].mxu1 %v90_v47 }
  0x90   :  { %499 = vmatmul.mubr.f32.gmra.mrb[38].mxu0 %v92_v48  ;;  %333 = vmatprep.mubr.f32.mxu1 %v95_v49 }
  0x91   :  { %503 = vmatprep.mubr.f32.mxu0 %v97_v50 }
  0x93   :  { %334 = vmatmul.mubr.f32.gmra.mrb[40].mxu1 %v94_v51 }
  0x94   :  { %504 = vmatmul.mubr.f32.gmra.mrb[40].mxu0 %v96_v52 }
 0x116   :  { %v235_v54 = vpop.f32.mrb[0].mxu1 }
 0x117   :  { %v236_v55 = vadd.f32 %v1197_v53, %v235_v54  ;;  %v237_v56 = vpop.f32.mrb[1].mxu1  ;;  %v405_v57 = vpop.f32.mrb[0].mxu0 }
 0x118   :  { %v407_v58 = vpop.f32.mrb[1].mxu0 }
 0x119   :  { %v406_v59 = vadd.f32 %v405_v57, %v236_v55 }
 0x11a   :  { %v240_v60 = vpop.f32.mrb[2].mxu1 }
 0x11b   :  { %v509_v61 = vmax.f32 %v406_v59, 0.0  ;;  %v241_v62 = vadd.f32 %v1197_v53, %v240_v60  ;;  %v242_v63 = vpop.f32.mrb[3].mxu1  ;;  %v410_v1 = vpop.f32.mrb[2].mxu0 }
 0x11c   :  { %v412_v2 = vpop.f32.mrb[3].mxu0 }
 0x11d   :  { %531 = vst.msk [vmem:[%s1306_s3] sm:$0xff] %vm530_vm0, %v509_v61  ;;  %v411_v3 = vadd.f32 %v410_v1, %v241_v62 }
 0x11e   :  { %v245_v4 = vpop.f32.mrb[4].mxu1 }
 0x11f   :  { %v510_v5 = vmax.f32 %v411_v3, 0.0  ;;  %v246_v6 = vadd.f32 %v1197_v53, %v245_v4  ;;  %v247_v7 = vpop.f32.mrb[5].mxu1  ;;  %v415_v8 = vpop.f32.mrb[4].mxu0 }
 0x120   :  { %v417_v9 = vpop.f32.mrb[5].mxu0 }
 0x121   :  { %532 = vst.msk [vmem:[%s1306_s3 + $0x8] sm:$0xff] %vm530_vm0, %v510_v5  ;;  %v416_v10 = vadd.f32 %v415_v8, %v246_v6 }
 0x122   :  { %v250_v11 = vpop.f32.mrb[6].mxu1 }
 0x123   :  { %v511_v12 = vmax.f32 %v416_v10, 0.0  ;;  %v251_v13 = vadd.f32 %v1197_v53, %v250_v11  ;;  %v252_v14 = vpop.f32.mrb[7].mxu1  ;;  %v420_v15 = vpop.f32.mrb[6].mxu0 }
 0x124   :  { %v422_v16 = vpop.f32.mrb[7].mxu0 }
 0x125   :  { %533 = vst.msk [vmem:[%s1306_s3 + $0x10] sm:$0xff] %vm530_vm0, %v511_v12  ;;  %v421_v17 = vadd.f32 %v420_v15, %v251_v13 }
 0x126   :  { %v255_v18 = vpop.f32.mrb[8].mxu1 }
 0x127   :  { %v512_v19 = vmax.f32 %v421_v17, 0.0  ;;  %v256_v20 = vadd.f32 %v1197_v53, %v255_v18  ;;  %v257_v21 = vpop.f32.mrb[9].mxu1  ;;  %v425_v22 = vpop.f32.mrb[8].mxu0 }
 0x128   :  { %v427_v23 = vpop.f32.mrb[9].mxu0 }
 0x129   :  { %534 = vst.msk [vmem:[%s1306_s3 + $0x18] sm:$0xff] %vm530_vm0, %v512_v19  ;;  %v426_v24 = vadd.f32 %v425_v22, %v256_v20 }
 0x12a   :  { %v260_v25 = vpop.f32.mrb[10].mxu1 }
 0x12b   :  { %v513_v26 = vmax.f32 %v426_v24, 0.0  ;;  %v261_v27 = vadd.f32 %v1197_v53, %v260_v25  ;;  %v262_v28 = vpop.f32.mrb[11].mxu1  ;;  %v430_v29 = vpop.f32.mrb[10].mxu0 }
 0x12c   :  { %v432_v30 = vpop.f32.mrb[11].mxu0 }
 0x12d   :  { %535 = vst.msk [vmem:[%s1306_s3 + $0x20] sm:$0xff] %vm530_vm0, %v513_v26  ;;  %v431_v31 = vadd.f32 %v430_v29, %v261_v27 }
 0x12e   :  { %v265_v32 = vpop.f32.mrb[12].mxu1 }
 0x12f   :  { %v514_v33 = vmax.f32 %v431_v31, 0.0  ;;  %v266_v34 = vadd.f32 %v1197_v53, %v265_v32  ;;  %v267_v35 = vpop.f32.mrb[13].mxu1  ;;  %v435_v36 = vpop.f32.mrb[12].mxu0 }
 0x130   :  { %v437_v37 = vpop.f32.mrb[13].mxu0 }
 0x131   :  { %536 = vst.msk [vmem:[%s1306_s3 + $0x28] sm:$0xff] %vm530_vm0, %v514_v33  ;;  %v436_v38 = vadd.f32 %v435_v36, %v266_v34 }
 0x132   :  { %v270_v39 = vpop.f32.mrb[14].mxu1 }
 0x133   :  { %v515_v0 = vmax.f32 %v436_v38, 0.0  ;;  %v271_v40 = vadd.f32 %v1197_v53, %v270_v39  ;;  %v272_v41 = vpop.f32.mrb[15].mxu1  ;;  %v440_v42 = vpop.f32.mrb[14].mxu0 }
 0x134   :  { %v442_v43 = vpop.f32.mrb[15].mxu0 }
 0x135   :  { %537 = vst.msk [vmem:[%s1306_s3 + $0x30] sm:$0xff] %vm530_vm0, %v515_v0  ;;  %v441_v44 = vadd.f32 %v440_v42, %v271_v40 }
 0x136   :  { %v275_v45 = vpop.f32.mrb[16].mxu1 }
 0x137   :  { %v516_v46 = vmax.f32 %v441_v44, 0.0  ;;  %v276_v47 = vadd.f32 %v1197_v53, %v275_v45  ;;  %v277_v48 = vpop.f32.mrb[17].mxu1  ;;  %v445_v49 = vpop.f32.mrb[16].mxu0 }
 0x138   :  { %v447_v50 = vpop.f32.mrb[17].mxu0 }
 0x139   :  { %538 = vst.msk [vmem:[%s1306_s3 + $0x38] sm:$0xff] %vm530_vm0, %v516_v46  ;;  %v446_v51 = vadd.f32 %v445_v49, %v276_v47 }
 0x13a   :  { %v280_v52 = vpop.f32.mrb[18].mxu1 }
 0x13b   :  { %v517_v54 = vmax.f32 %v446_v51, 0.0  ;;  %v281_v55 = vadd.f32 %v1197_v53, %v280_v52  ;;  %v282_v56 = vpop.f32.mrb[19].mxu1  ;;  %v450_v57 = vpop.f32.mrb[18].mxu0 }
 0x13c   :  { %v452_v58 = vpop.f32.mrb[19].mxu0 }
 0x13d   :  { %539 = vst.msk [vmem:[%s1306_s3 + $0x40] sm:$0xff] %vm530_vm0, %v517_v54  ;;  %v451_v59 = vadd.f32 %v450_v57, %v281_v55 }
 0x13e   :  { %v285_v60 = vpop.f32.mrb[20].mxu1 }
 0x13f   :  { %v518_v61 = vmax.f32 %v451_v59, 0.0  ;;  %v286_v62 = vadd.f32 %v1197_v53, %v285_v60  ;;  %v287_v63 = vpop.f32.mrb[21].mxu1  ;;  %v455_v1 = vpop.f32.mrb[20].mxu0 }
 0x140   :  { %v457_v2 = vpop.f32.mrb[21].mxu0 }
 0x141   :  { %540 = vst.msk [vmem:[%s1306_s3 + $0x48] sm:$0xff] %vm530_vm0, %v518_v61  ;;  %v456_v3 = vadd.f32 %v455_v1, %v286_v62 }
 0x142   :  { %v290_v4 = vpop.f32.mrb[22].mxu1 }
 0x143   :  { %v519_v5 = vmax.f32 %v456_v3, 0.0  ;;  %v291_v6 = vadd.f32 %v1197_v53, %v290_v4  ;;  %v292_v7 = vpop.f32.mrb[23].mxu1  ;;  %v460_v8 = vpop.f32.mrb[22].mxu0 }
 0x144   :  { %v462_v9 = vpop.f32.mrb[23].mxu0 }
 0x145   :  { %541 = vst.msk [vmem:[%s1306_s3 + $0x50] sm:$0xff] %vm530_vm0, %v519_v5  ;;  %v461_v10 = vadd.f32 %v460_v8, %v291_v6 }
 0x146   :  { %v295_v11 = vpop.f32.mrb[24].mxu1 }
 0x147   :  { %v520_v12 = vmax.f32 %v461_v10, 0.0  ;;  %v296_v13 = vadd.f32 %v1197_v53, %v295_v11  ;;  %v297_v14 = vpop.f32.mrb[25].mxu1  ;;  %v465_v15 = vpop.f32.mrb[24].mxu0 }
 0x148   :  { %v467_v16 = vpop.f32.mrb[25].mxu0 }
 0x149   :  { %542 = vst.msk [vmem:[%s1306_s3 + $0x58] sm:$0xff] %vm530_vm0, %v520_v12  ;;  %v466_v17 = vadd.f32 %v465_v15, %v296_v13 }
 0x14a   :  { %v300_v18 = vpop.f32.mrb[26].mxu1 }
 0x14b   :  { %v521_v19 = vmax.f32 %v466_v17, 0.0  ;;  %v301_v20 = vadd.f32 %v1197_v53, %v300_v18  ;;  %v302_v21 = vpop.f32.mrb[27].mxu1  ;;  %v470_v22 = vpop.f32.mrb[26].mxu0 }
 0x14c   :  { %v472_v23 = vpop.f32.mrb[27].mxu0 }
 0x14d   :  { %543 = vst.msk [vmem:[%s1306_s3 + $0x60] sm:$0xff] %vm530_vm0, %v521_v19  ;;  %v471_v24 = vadd.f32 %v470_v22, %v301_v20 }
 0x14e   :  { %v305_v25 = vpop.f32.mrb[28].mxu1 }
 0x14f   :  { %v522_v26 = vmax.f32 %v471_v24, 0.0  ;;  %v306_v27 = vadd.f32 %v1197_v53, %v305_v25  ;;  %v307_v28 = vpop.f32.mrb[29].mxu1  ;;  %v475_v29 = vpop.f32.mrb[28].mxu0 }
 0x150   :  { %v477_v30 = vpop.f32.mrb[29].mxu0 }
 0x151   :  { %544 = vst.msk [vmem:[%s1306_s3 + $0x68] sm:$0xff] %vm530_vm0, %v522_v26  ;;  %v476_v31 = vadd.f32 %v475_v29, %v306_v27 }
 0x152   :  { %v310_v32 = vpop.f32.mrb[30].mxu1 }
 0x153   :  { %v523_v33 = vmax.f32 %v476_v31, 0.0  ;;  %v311_v34 = vadd.f32 %v1197_v53, %v310_v32  ;;  %v312_v35 = vpop.f32.mrb[31].mxu1  ;;  %v480_v36 = vpop.f32.mrb[30].mxu0 }
 0x154   :  { %v482_v37 = vpop.f32.mrb[31].mxu0 }
 0x155   :  { %545 = vst.msk [vmem:[%s1306_s3 + $0x70] sm:$0xff] %vm530_vm0, %v523_v33  ;;  %v481_v38 = vadd.f32 %v480_v36, %v311_v34 }
 0x156   :  { %v315_v39 = vpop.f32.mrb[32].mxu1 }
 0x157   :  { %v524_v0 = vmax.f32 %v481_v38, 0.0  ;;  %v316_v40 = vadd.f32 %v1197_v53, %v315_v39  ;;  %v317_v41 = vpop.f32.mrb[33].mxu1  ;;  %v485_v42 = vpop.f32.mrb[32].mxu0 }
 0x158   :  { %v487_v43 = vpop.f32.mrb[33].mxu0 }
 0x159   :  { %546 = vst.msk [vmem:[%s1306_s3 + $0x78] sm:$0xff] %vm530_vm0, %v524_v0  ;;  %v486_v44 = vadd.f32 %v485_v42, %v316_v40 }
 0x15a   :  { %v320_v45 = vpop.f32.mrb[34].mxu1 }
 0x15b   :  { %v525_v46 = vmax.f32 %v486_v44, 0.0  ;;  %v321_v47 = vadd.f32 %v1197_v53, %v320_v45  ;;  %v322_v48 = vpop.f32.mrb[35].mxu1  ;;  %v490_v49 = vpop.f32.mrb[34].mxu0 }
 0x15c   :  { %v492_v50 = vpop.f32.mrb[35].mxu0 }
 0x15d   :  { %547 = vst.msk [vmem:[%s1306_s3 + $0x80] sm:$0xff] %vm530_vm0, %v525_v46  ;;  %v491_v51 = vadd.f32 %v490_v49, %v321_v47 }
 0x15e   :  { %v325_v52 = vpop.f32.mrb[36].mxu1 }
 0x15f   :  { %v526_v54 = vmax.f32 %v491_v51, 0.0  ;;  %v326_v55 = vadd.f32 %v1197_v53, %v325_v52  ;;  %v327_v56 = vpop.f32.mrb[37].mxu1  ;;  %v495_v57 = vpop.f32.mrb[36].mxu0 }
 0x160   :  { %v497_v58 = vpop.f32.mrb[37].mxu0 }
 0x161   :  { %548 = vst.msk [vmem:[%s1306_s3 + $0x88] sm:$0xff] %vm530_vm0, %v526_v54  ;;  %v496_v59 = vadd.f32 %v495_v57, %v326_v55 }
 0x162   :  { %v330_v60 = vpop.f32.mrb[38].mxu1 }
 0x163   :  { %v527_v61 = vmax.f32 %v496_v59, 0.0  ;;  %v331_v62 = vadd.f32 %v1197_v53, %v330_v60  ;;  %v332_v63 = vpop.f32.mrb[39].mxu1  ;;  %v500_v1 = vpop.f32.mrb[38].mxu0 }
 0x164   :  { %v502_v2 = vpop.f32.mrb[39].mxu0 }
 0x165   :  { %549 = vst.msk [vmem:[%s1306_s3 + $0x90] sm:$0xff] %vm530_vm0, %v527_v61  ;;  %v501_v3 = vadd.f32 %v500_v1, %v331_v62 }
 0x166   :  { %v335_v4 = vpop.f32.mrb[40].mxu1 }
 0x167   :  { %v528_v5 = vmax.f32 %v501_v3, 0.0  ;;  %v336_v6 = vadd.f32 %v1197_v53, %v335_v4  ;;  %v337_v7 = vpop.f32.mrb[41].mxu1  ;;  %v505_v8 = vpop.f32.mrb[40].mxu0 }
 0x168   :  { %v507_v9 = vpop.f32.mrb[41].mxu0 }
 0x169   :  { %550 = vst.msk [vmem:[%s1306_s3 + $0x98] sm:$0xff] %vm530_vm0, %v528_v5  ;;  %v506_v10 = vadd.f32 %v505_v8, %v336_v6 }
 0x16b   :  { %v529_v11 = vmax.f32 %v506_v10, 0.0 }
 0x16d   :  { %552 = vst.msk [vmem:[%s1306_s3 + $0xa0] sm:$0x3] %vm551_vm1, %v529_v11 }

// kernel: dqn_forward.6
= control target key start
LH: loop header
LB: loop body
LE: loop exit
PB: predicated region body
PF: predicated region fallthrough
CT: control target
= control target key end

     0   :  { %vm939_vm0 = vmmov 0   ;;  %vm158_vm1 = vcmask 523264   ;;  %vm613_vm2 = vcmask 517120   ;;  %s1488_s1 = inlined_call_operand.vmem [shape: f32[576,64], index: 1, kind: input, shape index: {}]   ;;  %s1489_s0 = inlined_call_operand.vmem [shape: f32[98,576], index: 0, kind: input, shape index: {}]   ;;  %s1490_s2 = inlined_call_operand.vmem [shape: f32[1,64], index: 2, kind: input, shape index: {}]   ;;  %s1491_s3 = inlined_call_operand.vmem [shape: f32[98,64], index: 3, kind: output, shape index: {}]  }
   0x1   :  { %v95_v0 = vld [vmem:[%s1488_s1 + $0x80] sm:$0xff]  ;;  %v96_v1 = vld [vmem:[%s1488_s1 + $0x88] sm:$0xff]  ;;  %v97_v11 = vld [vmem:[%s1488_s1 + $0x90] sm:$0xff] }
   0x2   :  { %v127_v2 = vld [vmem:[%s1488_s1 + $0x180] sm:$0xff]  ;;  %v851_v3 = vpack.c.bf16 %v96_v1, %v95_v0  ;;  %v128_v4 = vld [vmem:[%s1488_s1 + $0x188] sm:$0xff]  ;;  %v98_v13 = vld [vmem:[%s1488_s1 + $0x98] sm:$0xff] }
   0x3   :  { %v79_v5 = vld [vmem:[%s1488_s1] sm:$0xff]  ;;  %v80_v6 = vld [vmem:[%s1488_s1 + $0x8] sm:$0xff]  ;;  %v883_v7 = vpack.c.bf16 %v128_v4, %v127_v2  ;;  %v129_v14 = vld [vmem:[%s1488_s1 + $0x190] sm:$0xff]  ;;  %v855_v16 = vpack.c.bf16 %v98_v13, %v97_v11 }
   0x4   :  { %v853_v8 = vpack.c.bf16 %v80_v6, %v79_v5  ;;  %v111_v9 = vld [vmem:[%s1488_s1 + $0x100] sm:$0xff]  ;;  %v112_v10 = vld [vmem:[%s1488_s1 + $0x108] sm:$0xff]  ;;  %852 = vmatprep.subr.bf16.mxu0 %v851_v3  ;;  %v130_v15 = vld [vmem:[%s1488_s1 + $0x198] sm:$0xff] }
   0x5   :  { %v885_v12 = vpack.c.bf16 %v112_v10, %v111_v9  ;;  %884 = vmatprep.subr.bf16.mxu1 %v883_v7  ;;  %v887_v17 = vpack.c.bf16 %v130_v15, %v129_v14  ;;  %v81_v18 = vld [vmem:[%s1488_s1 + $0x10] sm:$0xff]  ;;  %v82_v19 = vld [vmem:[%s1488_s1 + $0x18] sm:$0xff]  ;;  %v99_v23 = vld [vmem:[%s1488_s1 + $0xa0] sm:$0xff] }
   0x6   :  { %854 = vmatpush3.bf16.msra.mxu0 %v853_v8  ;;  %v113_v20 = vld [vmem:[%s1488_s1 + $0x110] sm:$0xff]  ;;  %v857_v21 = vpack.c.bf16 %v82_v19, %v81_v18  ;;  %v114_v22 = vld [vmem:[%s1488_s1 + $0x118] sm:$0xff]  ;;  %v100_v24 = vld [vmem:[%s1488_s1 + $0xa8] sm:$0xff] }
   0x7   :  { %886 = vmatpush3.bf16.msra.mxu1 %v885_v12  ;;  %856 = vmatprep.subr.bf16.mxu0 %v855_v16  ;;  %v889_v25 = vpack.c.bf16 %v114_v22, %v113_v20  ;;  %v859_v26 = vpack.c.bf16 %v100_v24, %v99_v23  ;;  %v131_v27 = vld [vmem:[%s1488_s1 + $0x1a0] sm:$0xff]  ;;  %v132_v28 = vld [vmem:[%s1488_s1 + $0x1a8] sm:$0xff]  ;;  %v101_v35 = vld [vmem:[%s1488_s1 + $0xb0] sm:$0xff] }
   0x8   :  { %888 = vmatprep.subr.bf16.mxu1 %v887_v17  ;;  %v83_v29 = vld [vmem:[%s1488_s1 + $0x20] sm:$0xff]  ;;  %v891_v30 = vpack.c.bf16 %v132_v28, %v131_v27  ;;  %v84_v31 = vld [vmem:[%s1488_s1 + $0x28] sm:$0xff]  ;;  %v102_v36 = vld [vmem:[%s1488_s1 + $0xb8] sm:$0xff] }
   0x9   :  { %v115_v32 = vld [vmem:[%s1488_s1 + $0x120] sm:$0xff]  ;;  %v116_v33 = vld [vmem:[%s1488_s1 + $0x128] sm:$0xff]  ;;  %v861_v34 = vpack.c.bf16 %v84_v31, %v83_v29  ;;  %v133_v37 = vld [vmem:[%s1488_s1 + $0x1b0] sm:$0xff]  ;;  %v863_v39 = vpack.c.bf16 %v102_v36, %v101_v35 }
   0xa   :  { %858 = vmatpush3.bf16.msra.mxu0 %v857_v21  ;;  %v893_v38 = vpack.c.bf16 %v116_v33, %v115_v32  ;;  %v134_v40 = vld [vmem:[%s1488_s1 + $0x1b8] sm:$0xff]  ;;  %v85_v41 = vld [vmem:[%s1488_s1 + $0x30] sm:$0xff]  ;;  %v103_v46 = vld [vmem:[%s1488_s1 + $0xc0] sm:$0xff] }
   0xb   :  { %890 = vmatpush3.bf16.msra.mxu1 %v889_v25  ;;  %860 = vmatprep.subr.bf16.mxu0 %v859_v26  ;;  %v86_v42 = vld [vmem:[%s1488_s1 + $0x38] sm:$0xff]  ;;  %v895_v43 = vpack.c.bf16 %v134_v40, %v133_v37  ;;  %v117_v44 = vld [vmem:[%s1488_s1 + $0x130] sm:$0xff]  ;;  %v104_v47 = vld [vmem:[%s1488_s1 + $0xc8] sm:$0xff] }
   0xc   :  { %892 = vmatprep.subr.bf16.mxu1 %v891_v30  ;;  %v118_v45 = vld [vmem:[%s1488_s1 + $0x138] sm:$0xff]  ;;  %v135_v48 = vld [vmem:[%s1488_s1 + $0x1c0] sm:$0xff]  ;;  %v136_v49 = vld [vmem:[%s1488_s1 + $0x1c8] sm:$0xff]  ;;  %v865_v50 = vpack.c.bf16 %v86_v42, %v85_v41  ;;  %v867_v52 = vpack.c.bf16 %v104_v47, %v103_v46 }
   0xd   :  { %v897_v51 = vpack.c.bf16 %v118_v45, %v117_v44  ;;  %v87_v53 = vld [vmem:[%s1488_s1 + $0x40] sm:$0xff]  ;;  %v88_v54 = vld [vmem:[%s1488_s1 + $0x48] sm:$0xff]  ;;  %v899_v56 = vpack.c.bf16 %v136_v49, %v135_v48  ;;  %v105_v58 = vld [vmem:[%s1488_s1 + $0xd0] sm:$0xff] }
   0xe   :  { %862 = vmatpush3.bf16.msra.mxu0 %v861_v34  ;;  %v119_v55 = vld [vmem:[%s1488_s1 + $0x140] sm:$0xff]  ;;  %v120_v57 = vld [vmem:[%s1488_s1 + $0x148] sm:$0xff]  ;;  %v106_v59 = vld [vmem:[%s1488_s1 + $0xd8] sm:$0xff]  ;;  %v869_v62 = vpack.c.bf16 %v88_v54, %v87_v53 }
   0xf   :  { %894 = vmatpush3.bf16.msra.mxu1 %v893_v38  ;;  %864 = vmatprep.subr.bf16.mxu0 %v863_v39  ;;  %v137_v60 = vld [vmem:[%s1488_s1 + $0x1d0] sm:$0xff]  ;;  %v138_v61 = vld [vmem:[%s1488_s1 + $0x1d8] sm:$0xff]  ;;  %v901_v63 = vpack.c.bf16 %v120_v57, %v119_v55  ;;  %v871_v0 = vpack.c.bf16 %v106_v59, %v105_v58  ;;  %v107_v6 = vld [vmem:[%s1488_s1 + $0xe0] sm:$0xff]  ;;  %v938_v39 = vmov 0.0|0.0  }
  0x10   :  { %896 = vmatprep.subr.bf16.mxu1 %v895_v43  ;;  %v89_v1 = vld [vmem:[%s1488_s1 + $0x50] sm:$0xff]  ;;  %v90_v2 = vld [vmem:[%s1488_s1 + $0x58] sm:$0xff]  ;;  %v903_v4 = vpack.c.bf16 %v138_v61, %v137_v60  ;;  %v108_v7 = vld [vmem:[%s1488_s1 + $0xe8] sm:$0xff] }
  0x11   :  { %v121_v3 = vld [vmem:[%s1488_s1 + $0x150] sm:$0xff]  ;;  %v122_v5 = vld [vmem:[%s1488_s1 + $0x158] sm:$0xff]  ;;  %v139_v8 = vld [vmem:[%s1488_s1 + $0x1e0] sm:$0xff]  ;;  %v873_v10 = vpack.c.bf16 %v90_v2, %v89_v1  ;;  %v875_v14 = vpack.c.bf16 %v108_v7, %v107_v6 }
  0x12   :  { %866 = vmatpush3.bf16.msra.mxu0 %v865_v50  ;;  %v140_v9 = vld [vmem:[%s1488_s1 + $0x1e8] sm:$0xff]  ;;  %v91_v11 = vld [vmem:[%s1488_s1 + $0x60] sm:$0xff]  ;;  %v905_v13 = vpack.c.bf16 %v122_v5, %v121_v3  ;;  %v17_v17 = vld [vmem:[%s1489_s0 + $0x18] sm:$0xff] }
  0x13   :  { %898 = vmatpush3.bf16.msra.mxu1 %v897_v51  ;;  %868 = vmatprep.subr.bf16.mxu0 %v867_v52  ;;  %v92_v12 = vld [vmem:[%s1488_s1 + $0x68] sm:$0xff]  ;;  %v123_v15 = vld [vmem:[%s1488_s1 + $0x160] sm:$0xff]  ;;  %v907_v18 = vpack.c.bf16 %v140_v9, %v139_v8  ;;  %v109_v20 = vld [vmem:[%s1488_s1 + $0xf0] sm:$0xff] }
  0x14   :  { %900 = vmatprep.subr.bf16.mxu1 %v899_v56  ;;  %v15_v16 = vld [vmem:[%s1489_s0 + $0x8] sm:$0xff]  ;;  %v110_v21 = vld [vmem:[%s1488_s1 + $0xf8] sm:$0xff]  ;;  %v141_v22 = vld [vmem:[%s1488_s1 + $0x1f0] sm:$0xff]  ;;  %392 = vmatprep.mubr.f32.mxu1 %v17_v17  ;;  %v877_v24 = vpack.c.bf16 %v92_v12, %v91_v11 }
  0x15   :  { %v124_v19 = vld [vmem:[%s1488_s1 + $0x168] sm:$0xff]  ;;  %262 = vmatprep.mubr.f32.mxu0 %v15_v16  ;;  %v142_v23 = vld [vmem:[%s1488_s1 + $0x1f8] sm:$0xff]  ;;  %v879_v26 = vpack.c.bf16 %v110_v21, %v109_v20  ;;  %v93_v27 = vld [vmem:[%s1488_s1 + $0x70] sm:$0xff] }
  0x16   :  { %870 = vmatpush3.bf16.msra.mxu0 %v869_v62  ;;  %v909_v25 = vpack.c.bf16 %v124_v19, %v123_v15  ;;  %v94_v28 = vld [vmem:[%s1488_s1 + $0x78] sm:$0xff]  ;;  %v911_v29 = vpack.c.bf16 %v142_v23, %v141_v22  ;;  %v125_v30 = vld [vmem:[%s1488_s1 + $0x170] sm:$0xff]  ;;  %v143_v34 = vld [vmem:[%s1488_s1 + $0x200] sm:$0xff] }
  0x17   :  { %902 = vmatpush3.bf16.msra.mxu1 %v901_v63  ;;  %872 = vmatprep.subr.bf16.mxu0 %v871_v0  ;;  %v126_v31 = vld [vmem:[%s1488_s1 + $0x178] sm:$0xff]  ;;  %v881_v32 = vpack.c.bf16 %v94_v28, %v93_v27  ;;  %v144_v35 = vld [vmem:[%s1488_s1 + $0x208] sm:$0xff]  ;;  %v14_v36 = vld [vmem:[%s1489_s0] sm:$0xff] }
  0x18   :  { %904 = vmatprep.subr.bf16.mxu1 %v903_v4  ;;  %v913_v33 = vpack.c.bf16 %v126_v31, %v125_v30  ;;  %v916_v37 = vpack.c.bf16 %v144_v35, %v143_v34  ;;  %v16_v38 = vld [vmem:[%s1489_s0 + $0x10] sm:$0xff]  ;;  %v22_v41 = vld [vmem:[%s1489_s0 + $0x40] sm:$0xff]  ;;  %v146_v43 = vld [vmem:[%s1488_s1 + $0x218] sm:$0xff] }
  0x19   :  { %v20_v40 = vld [vmem:[%s1489_s0 + $0x30] sm:$0xff]  ;;  %v19_v44 = vld [vmem:[%s1489_s0 + $0x28] sm:$0xff]  ;;  %v21_v45 = vld [vmem:[%s1489_s0 + $0x38] sm:$0xff] }
  0x1a   :  { %874 = vmatpush3.bf16.msra.mxu0 %v873_v10  ;;  %v145_v42 = vld [vmem:[%s1488_s1 + $0x210] sm:$0xff]  ;;  %v25_v46 = vld [vmem:[%s1489_s0 + $0x58] sm:$0xff]  ;;  %v27_v48 = vld [vmem:[%s1489_s0 + $0x68] sm:$0xff] }
  0x1b   :  { %906 = vmatpush3.bf16.msra.mxu1 %v905_v13  ;;  %876 = vmatprep.subr.bf16.mxu0 %v875_v14  ;;  %v919_v47 = vpack.c.bf16 %v146_v43, %v145_v42  ;;  %v147_v49 = vld [vmem:[%s1488_s1 + $0x220] sm:$0xff]  ;;  %v148_v50 = vld [vmem:[%s1488_s1 + $0x228] sm:$0xff]  ;;  %v24_v51 = vld [vmem:[%s1489_s0 + $0x50] sm:$0xff] }
  0x1c   :  { %908 = vmatprep.subr.bf16.mxu1 %v907_v18  ;;  %v26_v52 = vld [vmem:[%s1489_s0 + $0x60] sm:$0xff]  ;;  %v922_v54 = vpack.c.bf16 %v148_v50, %v147_v49  ;;  %v32_v55 = vld [vmem:[%s1489_s0 + $0x90] sm:$0xff]  ;;  %v150_v57 = vld [vmem:[%s1488_s1 + $0x238] sm:$0xff] }
  0x1d   :  { %v30_v53 = vld [vmem:[%s1489_s0 + $0x80] sm:$0xff]  ;;  %v149_v56 = vld [vmem:[%s1488_s1 + $0x230] sm:$0xff]  ;;  %v29_v58 = vld [vmem:[%s1489_s0 + $0x78] sm:$0xff] }
  0x1e   :  { %878 = vmatpush3.bf16.msra.mxu0 %v877_v24  ;;  %v31_v59 = vld [vmem:[%s1489_s0 + $0x88] sm:$0xff]  ;;  %v925_v61 = vpack.c.bf16 %v150_v57, %v149_v56  ;;  %v37_v62 = vld [vmem:[%s1489_s0 + $0xb8] sm:$0xff]  ;;  %v34_v63 = vld [vmem:[%s1489_s0 + $0xa0] sm:$0xff] }
  0x1f   :  { %910 = vmatpush3.bf16.msra.mxu1 %v909_v25  ;;  %880 = vmatprep.subr.bf16.mxu0 %v879_v26  ;;  %v35_v60 = vld [vmem:[%s1489_s0 + $0xa8] sm:$0xff]  ;;  %v36_v0 = vld [vmem:[%s1489_s0 + $0xb0] sm:$0xff]  ;;  %v42_v2 = vld [vmem:[%s1489_s0 + $0xe0] sm:$0xff] }
  0x20   :  { %912 = vmatprep.subr.bf16.mxu1 %v911_v29  ;;  %v40_v1 = vld [vmem:[%s1489_s0 + $0xd0] sm:$0xff]  ;;  %v39_v3 = vld [vmem:[%s1489_s0 + $0xc8] sm:$0xff]  ;;  %v41_v4 = vld [vmem:[%s1489_s0 + $0xd8] sm:$0xff] }
  0x21   :  { %v45_v5 = vld [vmem:[%s1489_s0 + $0xf8] sm:$0xff]  ;;  %v47_v6 = vld [vmem:[%s1489_s0 + $0x108] sm:$0xff]  ;;  %v44_v7 = vld [vmem:[%s1489_s0 + $0xf0] sm:$0xff] }
  0x22   :  { %882 = vmatpush3.bf16.msra.mxu0 %v881_v32  ;;  %v46_v8 = vld [vmem:[%s1489_s0 + $0x100] sm:$0xff]  ;;  %v52_v10 = vld [vmem:[%s1489_s0 + $0x130] sm:$0xff]  ;;  %v49_v11 = vld [vmem:[%s1489_s0 + $0x118] sm:$0xff] }
  0x23   :  { %914 = vmatpush3.bf16.msra.mxu1 %v913_v33  ;;  %915 = vmatprep.subr.bf16.mxu0 %v938_v39  ;;  %v50_v9 = vld [vmem:[%s1489_s0 + $0x120] sm:$0xff]  ;;  %v51_v12 = vld [vmem:[%s1489_s0 + $0x128] sm:$0xff]  ;;  %v57_v14 = vld [vmem:[%s1489_s0 + $0x158] sm:$0xff]  ;;  %v940_v33 = vmov 0.0  }
  0x24   :  { %927 = vmatprep.subr.bf16.mxu1 %v938_v39  ;;  %v55_v13 = vld [vmem:[%s1489_s0 + $0x148] sm:$0xff]  ;;  %v54_v15 = vld [vmem:[%s1489_s0 + $0x140] sm:$0xff]  ;;  %v56_v16 = vld [vmem:[%s1489_s0 + $0x150] sm:$0xff] }
  0x25   :  { %263 = vmatmul.mubr.f32.vlgmr.msra.gmra.mrb[0].mxu0 %v14_v36  ;;  %v60_v17 = vld [vmem:[%s1489_s0 + $0x170] sm:$0xff]  ;;  %v62_v18 = vld [vmem:[%s1489_s0 + $0x180] sm:$0xff]  ;;  %v59_v19 = vld [vmem:[%s1489_s0 + $0x168] sm:$0xff] }
  0x26   :  { %393 = vmatmul.mubr.f32.vlgmr.msra.gmra.mrb[0].mxu1 %v16_v38  ;;  %917 = vmatpush3.bf16.msra.mxu0 %v916_v37  ;;  %v61_v20 = vld [vmem:[%s1489_s0 + $0x178] sm:$0xff]  ;;  %v67_v22 = vld [vmem:[%s1489_s0 + $0x1a8] sm:$0xff]  ;;  %v64_v23 = vld [vmem:[%s1489_s0 + $0x190] sm:$0xff] }
  0x27   :  { %267 = vmatprep.mubr.f32.mxu0 %v20_v40  ;;  %397 = vmatprep.mubr.f32.mxu1 %v22_v41  ;;  %v65_v21 = vld [vmem:[%s1489_s0 + $0x198] sm:$0xff]  ;;  %v66_v24 = vld [vmem:[%s1489_s0 + $0x1a0] sm:$0xff]  ;;  %v72_v26 = vld [vmem:[%s1489_s0 + $0x1d0] sm:$0xff] }
  0x28   :  { %931 = vmatpush3.bf16.msra.mxu1 %v916_v37  ;;  %918 = vmatprep.subr.bf16.mxu0 %v938_v39  ;;  %v70_v25 = vld [vmem:[%s1489_s0 + $0x1c0] sm:$0xff]  ;;  %v69_v27 = vld [vmem:[%s1489_s0 + $0x1b8] sm:$0xff]  ;;  %v71_v28 = vld [vmem:[%s1489_s0 + $0x1c8] sm:$0xff] }
  0x29   :  { %268 = vmatmul.mubr.f32.gmra.mrb[2].mxu0 %v19_v44  ;;  %928 = vmatprep.subr.bf16.mxu1 %v938_v39  ;;  %v75_v29 = vld [vmem:[%s1489_s0 + $0x1e8] sm:$0x3]  ;;  %v77_v30 = vld [vmem:[%s1489_s0 + $0x1f8] sm:$0x3]  ;;  %v74_v31 = vld [vmem:[%s1489_s0 + $0x1e0] sm:$0x3] }
  0x2a   :  { %398 = vmatmul.mubr.f32.gmra.mrb[2].mxu1 %v21_v45  ;;  %272 = vmatprep.mubr.f32.mxu0 %v25_v46  ;;  %v76_v32 = vld [vmem:[%s1489_s0 + $0x1f0] sm:$0x3]  ;;  %v18_v34 = vld [vmem:[%s1489_s0 + $0x20] sm:$0xff]  ;;  %v53_v35 = vld [vmem:[%s1489_s0 + $0x138] sm:$0xff] }
  0x2b   :  { %402 = vmatprep.mubr.f32.mxu1 %v27_v48  ;;  %920 = vmatpush3.bf16.msra.mxu0 %v919_v47  ;;  %v23_v36 = vld [vmem:[%s1489_s0 + $0x48] sm:$0xff]  ;;  %v58_v37 = vld [vmem:[%s1489_s0 + $0x160] sm:$0xff]  ;;  %v28_v38 = vld [vmem:[%s1489_s0 + $0x70] sm:$0xff] }
  0x2c   :  { %932 = vmatpush3.bf16.msra.mxu1 %v919_v47  ;;  %921 = vmatprep.subr.bf16.mxu0 %v938_v39  ;;  %v33_v40 = vld [vmem:[%s1489_s0 + $0x98] sm:$0xff]  ;;  %v68_v41 = vld [vmem:[%s1489_s0 + $0x1b0] sm:$0xff]  ;;  %v38_v42 = vld [vmem:[%s1489_s0 + $0xc0] sm:$0xff] }
  0x2d   :  { %273 = vmatmul.mubr.f32.gmra.mrb[4].mxu0 %v24_v51  ;;  %929 = vmatprep.subr.bf16.mxu1 %v938_v39  ;;  %v73_v43 = vld [vmem:[%s1489_s0 + $0x1d8] sm:$0xff]  ;;  %v43_v44 = vld [vmem:[%s1489_s0 + $0xe8] sm:$0xff]  ;;  %v78_v45 = vld [vmem:[%s1489_s0 + $0x200] sm:$0x3] }
  0x2e   :  { %403 = vmatmul.mubr.f32.gmra.mrb[4].mxu1 %v26_v52  ;;  %277 = vmatprep.mubr.f32.mxu0 %v30_v53  ;;  %v48_v46 = vld [vmem:[%s1489_s0 + $0x110] sm:$0xff]  ;;  %v1401_v48 = vld [vmem:[%s1490_s2] ss:$0 sm:$0xff] }
  0x2f   :  { %407 = vmatprep.mubr.f32.mxu1 %v32_v55  ;;  %923 = vmatpush3.bf16.msra.mxu0 %v922_v54 }
  0x30   :  { %933 = vmatpush3.bf16.msra.mxu1 %v922_v54  ;;  %924 = vmatprep.subr.bf16.mxu0 %v938_v39 }
  0x31   :  { %278 = vmatmul.mubr.f32.gmra.mrb[6].mxu0 %v29_v58  ;;  %930 = vmatprep.subr.bf16.mxu1 %v938_v39  ;;  %v63_v39 = vld [vmem:[%s1489_s0 + $0x188] sm:$0xff] }
  0x32   :  { %408 = vmatmul.mubr.f32.gmra.mrb[6].mxu1 %v31_v59  ;;  %282 = vmatprep.mubr.f32.mxu0 %v35_v60 }
  0x33   :  { %412 = vmatprep.mubr.f32.mxu1 %v37_v62  ;;  %926 = vmatpush3.bf16.msra.mxu0 %v925_v61 }
  0x34   :  { %934 = vmatpush3.bf16.msra.mxu1 %v925_v61 }
  0x35   :  { %283 = vmatmul.mubr.f32.gmra.mrb[8].mxu0 %v34_v63 }
  0x36   :  { %413 = vmatmul.mubr.f32.gmra.mrb[8].mxu1 %v36_v0  ;;  %287 = vmatprep.mubr.f32.mxu0 %v40_v1 }
  0x37   :  { %417 = vmatprep.mubr.f32.mxu1 %v42_v2 }
  0x39   :  { %288 = vmatmul.mubr.f32.gmra.mrb[10].mxu0 %v39_v3 }
  0x3a   :  { %418 = vmatmul.mubr.f32.gmra.mrb[10].mxu1 %v41_v4  ;;  %292 = vmatprep.mubr.f32.mxu0 %v45_v5 }
  0x3b   :  { %422 = vmatprep.mubr.f32.mxu1 %v47_v6 }
  0x3d   :  { %293 = vmatmul.mubr.f32.gmra.mrb[12].mxu0 %v44_v7 }
  0x3e   :  { %423 = vmatmul.mubr.f32.gmra.mrb[12].mxu1 %v46_v8  ;;  %297 = vmatprep.mubr.f32.mxu0 %v50_v9 }
  0x3f   :  { %427 = vmatprep.mubr.f32.mxu1 %v52_v10 }
  0x41   :  { %298 = vmatmul.mubr.f32.gmra.mrb[14].mxu0 %v49_v11 }
  0x42   :  { %428 = vmatmul.mubr.f32.gmra.mrb[14].mxu1 %v51_v12  ;;  %302 = vmatprep.mubr.f32.mxu0 %v55_v13 }
  0x43   :  { %432 = vmatprep.mubr.f32.mxu1 %v57_v14 }
  0x45   :  { %303 = vmatmul.mubr.f32.gmra.mrb[16].mxu0 %v54_v15 }
  0x46   :  { %433 = vmatmul.mubr.f32.gmra.mrb[16].mxu1 %v56_v16  ;;  %307 = vmatprep.mubr.f32.mxu0 %v60_v17 }
  0x47   :  { %437 = vmatprep.mubr.f32.mxu1 %v62_v18 }
  0x49   :  { %308 = vmatmul.mubr.f32.gmra.mrb[18].mxu0 %v59_v19 }
  0x4a   :  { %438 = vmatmul.mubr.f32.gmra.mrb[18].mxu1 %v61_v20  ;;  %312 = vmatprep.mubr.f32.mxu0 %v65_v21 }
  0x4b   :  { %442 = vmatprep.mubr.f32.mxu1 %v67_v22 }
  0x4d   :  { %313 = vmatmul.mubr.f32.gmra.mrb[20].mxu0 %v64_v23 }
  0x4e   :  { %443 = vmatmul.mubr.f32.gmra.mrb[20].mxu1 %v66_v24  ;;  %317 = vmatprep.mubr.f32.mxu0 %v70_v25 }
  0x4f   :  { %447 = vmatprep.mubr.f32.mxu1 %v72_v26 }
  0x51   :  { %318 = vmatmul.mubr.f32.gmra.mrb[22].mxu0 %v69_v27 }
  0x52   :  { %448 = vmatmul.mubr.f32.gmra.mrb[22].mxu1 %v71_v28  ;;  %322 = vmatprep.mubr.f32.mxu0 %v75_v29 }
  0x53   :  { %452 = vmatprep.mubr.f32.mxu1 %v77_v30 }
  0x55   :  { %323 = vmatmul.mubr.f32.gmra.mrb[24].mxu0 %v74_v31 }
  0x56   :  { %453 = vmatmul.mubr.f32.gmra.mrb[24].mxu1 %v76_v32  ;;  %812 = vmatprep.mubr.msk.f32.mxu0 %vm939_vm0, %v940_v33 }
  0x57   :  { %833 = vmatprep.mubr.msk.f32.mxu1 %vm939_vm0, %v940_v33 }
  0x59   :  { %813 = vmatmul.mubr.msk.f32.vlgmr.msra.gmra.mrb[26].mxu0 %vm158_vm1, %v18_v34 }
  0x5a   :  { %834 = vmatmul.mubr.msk.f32.vlgmr.msra.gmra.mrb[26].mxu1 %vm158_vm1, %v53_v35  ;;  %815 = vmatprep.mubr.msk.f32.mxu0 %vm939_vm0, %v940_v33 }
  0x5b   :  { %836 = vmatprep.mubr.msk.f32.mxu1 %vm939_vm0, %v940_v33 }
  0x5d   :  { %816 = vmatmul.mubr.msk.f32.gmra.mrb[28].mxu0 %vm158_vm1, %v23_v36 }
  0x5e   :  { %837 = vmatmul.mubr.msk.f32.gmra.mrb[28].mxu1 %vm158_vm1, %v58_v37  ;;  %818 = vmatprep.mubr.msk.f32.mxu0 %vm939_vm0, %v940_v33 }
  0x5f   :  { %839 = vmatprep.mubr.msk.f32.mxu1 %vm939_vm0, %v940_v33 }
  0x61   :  { %819 = vmatmul.mubr.msk.f32.gmra.mrb[30].mxu0 %vm158_vm1, %v28_v38 }
  0x62   :  { %840 = vmatmul.mubr.msk.f32.gmra.mrb[30].mxu1 %vm158_vm1, %v63_v39  ;;  %821 = vmatprep.mubr.msk.f32.mxu0 %vm939_vm0, %v940_v33 }
  0x63   :  { %842 = vmatprep.mubr.msk.f32.mxu1 %vm939_vm0, %v940_v33 }
  0x65   :  { %822 = vmatmul.mubr.msk.f32.gmra.mrb[32].mxu0 %vm158_vm1, %v33_v40 }
  0x66   :  { %843 = vmatmul.mubr.msk.f32.gmra.mrb[32].mxu1 %vm158_vm1, %v68_v41  ;;  %824 = vmatprep.mubr.msk.f32.mxu0 %vm939_vm0, %v940_v33 }
  0x67   :  { %845 = vmatprep.mubr.msk.f32.mxu1 %vm939_vm0, %v940_v33 }
  0x69   :  { %825 = vmatmul.mubr.msk.f32.gmra.mrb[34].mxu0 %vm158_vm1, %v38_v42 }
  0x6a   :  { %846 = vmatmul.mubr.msk.f32.gmra.mrb[34].mxu1 %vm158_vm1, %v73_v43  ;;  %827 = vmatprep.mubr.msk.f32.mxu0 %vm939_vm0, %v940_v33 }
  0x6b   :  { %848 = vmatprep.mubr.msk.f32.mxu1 %vm939_vm0, %v940_v33 }
  0x6d   :  { %828 = vmatmul.mubr.msk.f32.gmra.mrb[36].mxu0 %vm158_vm1, %v43_v44 }
  0x6e   :  { %849 = vmatmul.mubr.msk.f32.gmra.mrb[36].mxu1 %vm158_vm1, %v78_v45  ;;  %830 = vmatprep.mubr.msk.f32.mxu0 %vm939_vm0, %v940_v33 }
  0x71   :  { %831 = vmatmul.mubr.msk.f32.gmra.mrb[38].mxu0 %vm158_vm1, %v48_v46 }
  0xf8   :  { %v665_v47 = vpop.f32.mrb[0].mxu0 }
  0xf9   :  { %v666_v49 = vpop.f32.mrb[1].mxu0  ;;  %v736_v50 = vpop.f32.mrb[0].mxu1 }
  0xfa   :  { %v667_v51 = vadd.f32 %v666_v49, %v665_v47  ;;  %v737_v52 = vpop.f32.mrb[1].mxu1 }
  0xfb   :  { %v738_v53 = vadd.f32 %v737_v52, %v736_v50 }
  0xfc   :  { %v265_v54 = vadd.f32 %v667_v51, %v1401_v48  ;;  %v668_v55 = vpop.f32.mrb[2].mxu0 }
  0xfd   :  { %v669_v56 = vpop.f32.mrb[3].mxu0  ;;  %v739_v57 = vpop.f32.mrb[2].mxu1 }
  0xfe   :  { %v670_v58 = vadd.f32 %v669_v56, %v668_v55  ;;  %v740_v59 = vpop.f32.mrb[3].mxu1  ;;  %v1404_v60 = vadd.f32 %v738_v53, %v265_v54 }
  0xff   :  { %v741_v61 = vadd.f32 %v740_v59, %v739_v57 }
 0x100   :  { %v270_v62 = vadd.f32 %v670_v58, %v1401_v48  ;;  %v671_v63 = vpop.f32.mrb[4].mxu0 }
 0x101   :  { %v672_v0 = vpop.f32.mrb[5].mxu0  ;;  %v742_v1 = vpop.f32.mrb[4].mxu1 }
 0x102   :  { %v673_v2 = vadd.f32 %v672_v0, %v671_v63  ;;  %v743_v3 = vpop.f32.mrb[5].mxu1  ;;  %v1407_v4 = vadd.f32 %v741_v61, %v270_v62 }
 0x103   :  { %v744_v5 = vadd.f32 %v743_v3, %v742_v1 }
 0x104   :  { %v275_v6 = vadd.f32 %v673_v2, %v1401_v48  ;;  %v674_v7 = vpop.f32.mrb[6].mxu0 }
 0x105   :  { %v675_v8 = vpop.f32.mrb[7].mxu0  ;;  %v745_v9 = vpop.f32.mrb[6].mxu1 }
 0x106   :  { %v676_v10 = vadd.f32 %v675_v8, %v674_v7  ;;  %v746_v11 = vpop.f32.mrb[7].mxu1  ;;  %v1410_v12 = vadd.f32 %v744_v5, %v275_v6 }
 0x107   :  { %v747_v13 = vadd.f32 %v746_v11, %v745_v9 }
 0x108   :  { %v280_v14 = vadd.f32 %v676_v10, %v1401_v48  ;;  %v677_v15 = vpop.f32.mrb[8].mxu0 }
 0x109   :  { %v678_v16 = vpop.f32.mrb[9].mxu0  ;;  %v748_v17 = vpop.f32.mrb[8].mxu1 }
 0x10a   :  { %v679_v18 = vadd.f32 %v678_v16, %v677_v15  ;;  %v749_v19 = vpop.f32.mrb[9].mxu1  ;;  %v1413_v20 = vadd.f32 %v747_v13, %v280_v14 }
 0x10b   :  { %v750_v21 = vadd.f32 %v749_v19, %v748_v17 }
 0x10c   :  { %v285_v22 = vadd.f32 %v679_v18, %v1401_v48  ;;  %v680_v23 = vpop.f32.mrb[10].mxu0 }
 0x10d   :  { %v681_v24 = vpop.f32.mrb[11].mxu0  ;;  %v751_v25 = vpop.f32.mrb[10].mxu1 }
 0x10e   :  { %v682_v26 = vadd.f32 %v681_v24, %v680_v23  ;;  %v752_v27 = vpop.f32.mrb[11].mxu1  ;;  %v1416_v28 = vadd.f32 %v750_v21, %v285_v22 }
 0x10f   :  { %v753_v29 = vadd.f32 %v752_v27, %v751_v25 }
 0x110   :  { %v290_v30 = vadd.f32 %v682_v26, %v1401_v48  ;;  %v683_v31 = vpop.f32.mrb[12].mxu0 }
 0x111   :  { %v684_v32 = vpop.f32.mrb[13].mxu0  ;;  %v754_v33 = vpop.f32.mrb[12].mxu1 }
 0x112   :  { %v685_v34 = vadd.f32 %v684_v32, %v683_v31  ;;  %v755_v35 = vpop.f32.mrb[13].mxu1  ;;  %v1419_v36 = vadd.f32 %v753_v29, %v290_v30 }
 0x113   :  { %v756_v37 = vadd.f32 %v755_v35, %v754_v33 }
 0x114   :  { %v295_v38 = vadd.f32 %v685_v34, %v1401_v48  ;;  %v686_v39 = vpop.f32.mrb[14].mxu0 }
 0x115   :  { %v687_v40 = vpop.f32.mrb[15].mxu0  ;;  %v757_v41 = vpop.f32.mrb[14].mxu1 }
 0x116   :  { %v688_v42 = vadd.f32 %v687_v40, %v686_v39  ;;  %v758_v43 = vpop.f32.mrb[15].mxu1  ;;  %v1422_v44 = vadd.f32 %v756_v37, %v295_v38 }
 0x117   :  { %v759_v45 = vadd.f32 %v758_v43, %v757_v41 }
 0x118   :  { %v300_v46 = vadd.f32 %v688_v42, %v1401_v48  ;;  %v689_v47 = vpop.f32.mrb[16].mxu0 }
 0x119   :  { %v690_v49 = vpop.f32.mrb[17].mxu0  ;;  %v760_v50 = vpop.f32.mrb[16].mxu1 }
 0x11a   :  { %v691_v51 = vadd.f32 %v690_v49, %v689_v47  ;;  %v761_v52 = vpop.f32.mrb[17].mxu1  ;;  %v430_v53 = vadd.f32 %v759_v45, %v300_v46 }
 0x11b   :  { %v762_v54 = vadd.f32 %v761_v52, %v760_v50 }
 0x11c   :  { %v305_v55 = vadd.f32 %v691_v51, %v1401_v48  ;;  %v692_v56 = vpop.f32.mrb[18].mxu0 }
 0x11d   :  { %v693_v57 = vpop.f32.mrb[19].mxu0  ;;  %v763_v58 = vpop.f32.mrb[18].mxu1 }
 0x11e   :  { %v694_v59 = vadd.f32 %v693_v57, %v692_v56  ;;  %v764_v61 = vpop.f32.mrb[19].mxu1  ;;  %v435_v62 = vadd.f32 %v762_v54, %v305_v55 }
 0x11f   :  { %v765_v63 = vadd.f32 %v764_v61, %v763_v58 }
 0x120   :  { %v310_v0 = vadd.f32 %v694_v59, %v1401_v48  ;;  %v695_v1 = vpop.f32.mrb[20].mxu0 }
 0x121   :  { %v696_v2 = vpop.f32.mrb[21].mxu0  ;;  %v766_v3 = vpop.f32.mrb[20].mxu1 }
 0x122   :  { %v697_v5 = vadd.f32 %v696_v2, %v695_v1  ;;  %v767_v6 = vpop.f32.mrb[21].mxu1  ;;  %v440_v7 = vadd.f32 %v765_v63, %v310_v0 }
 0x123   :  { %v768_v8 = vadd.f32 %v767_v6, %v766_v3 }
 0x124   :  { %v315_v9 = vadd.f32 %v697_v5, %v1401_v48  ;;  %v698_v10 = vpop.f32.mrb[22].mxu0 }
 0x125   :  { %v699_v11 = vpop.f32.mrb[23].mxu0  ;;  %v769_v13 = vpop.f32.mrb[22].mxu1 }
 0x126   :  { %v700_v14 = vadd.f32 %v699_v11, %v698_v10  ;;  %v770_v15 = vpop.f32.mrb[23].mxu1  ;;  %v445_v16 = vadd.f32 %v768_v8, %v315_v9 }
 0x127   :  { %v771_v17 = vadd.f32 %v770_v15, %v769_v13 }
 0x128   :  { %v320_v18 = vadd.f32 %v700_v14, %v1401_v48  ;;  %v701_v19 = vpop.f32.mrb[24].mxu0 }
 0x129   :  { %v702_v21 = vpop.f32.mrb[25].mxu0  ;;  %v772_v22 = vpop.f32.mrb[24].mxu1 }
 0x12a   :  { %v703_v23 = vadd.f32 %v702_v21, %v701_v19  ;;  %v773_v24 = vpop.f32.mrb[25].mxu1  ;;  %v450_v25 = vadd.f32 %v771_v17, %v320_v18 }
 0x12b   :  { %v774_v26 = vadd.f32 %v773_v24, %v772_v22 }
 0x12c   :  { %v325_v27 = vadd.f32 %v703_v23, %v1401_v48  ;;  %v524_v29 = vpop.f32.mrb[26].mxu0 }
 0x12d   :  { %v525_v30 = vadd.f32 %v524_v29, %v1404_v60  ;;  %v559_v31 = vpop.f32.mrb[26].mxu1  ;;  %v814_v32 = vpop.f32.mrb[27].mxu0 }
 0x12e   :  { %v560_v33 = vadd.f32 %v559_v31, %v430_v53  ;;  %v835_v34 = vpop.f32.mrb[27].mxu1  ;;  %v455_v35 = vadd.f32 %v774_v26, %v325_v27 }
 0x12f   :  { %v588_v37 = vmax.f32 %v525_v30, 0.0 }
 0x130   :  { %v595_v38 = vmax.f32 %v560_v33, 0.0  ;;  %v529_v39 = vpop.f32.mrb[28].mxu0 }
 0x131   :  { %601 = vst.msk [vmem:[%s1491_s3] sm:$0xff] %vm158_vm1, %v588_v37  ;;  %v530_v40 = vadd.f32 %v529_v39, %v1407_v4  ;;  %v564_v41 = vpop.f32.mrb[28].mxu1  ;;  %v817_v48 = vpop.f32.mrb[29].mxu0 }
 0x132   :  { %608 = vst.msk [vmem:[%s1491_s3 + $0x38] sm:$0xff] %vm158_vm1, %v595_v38  ;;  %v565_v60 = vadd.f32 %v564_v41, %v435_v62  ;;  %v838_v42 = vpop.f32.mrb[29].mxu1 }
 0x133   :  { %v589_v43 = vmax.f32 %v530_v40, 0.0 }
 0x134   :  { %v596_v45 = vmax.f32 %v565_v60, 0.0  ;;  %v534_v46 = vpop.f32.mrb[30].mxu0 }
 0x135   :  { %602 = vst.msk [vmem:[%s1491_s3 + $0x8] sm:$0xff] %vm158_vm1, %v589_v43  ;;  %v535_v47 = vadd.f32 %v534_v46, %v1410_v12  ;;  %v569_v4 = vpop.f32.mrb[30].mxu1  ;;  %v820_v49 = vpop.f32.mrb[31].mxu0 }
 0x136   :  { %609 = vst.msk [vmem:[%s1491_s3 + $0x40] sm:$0xff] %vm158_vm1, %v596_v45  ;;  %v570_v50 = vadd.f32 %v569_v4, %v440_v7  ;;  %v841_v51 = vpop.f32.mrb[31].mxu1 }
 0x137   :  { %v590_v52 = vmax.f32 %v535_v47, 0.0 }
 0x138   :  { %v597_v53 = vmax.f32 %v570_v50, 0.0  ;;  %v539_v54 = vpop.f32.mrb[32].mxu0 }
 0x139   :  { %603 = vst.msk [vmem:[%s1491_s3 + $0x10] sm:$0xff] %vm158_vm1, %v590_v52  ;;  %v540_v55 = vadd.f32 %v539_v54, %v1413_v20  ;;  %v574_v12 = vpop.f32.mrb[32].mxu1  ;;  %v823_v56 = vpop.f32.mrb[33].mxu0 }
 0x13a   :  { %610 = vst.msk [vmem:[%s1491_s3 + $0x48] sm:$0xff] %vm158_vm1, %v597_v53  ;;  %v575_v57 = vadd.f32 %v574_v12, %v445_v16  ;;  %v844_v58 = vpop.f32.mrb[33].mxu1 }
 0x13b   :  { %v591_v59 = vmax.f32 %v540_v55, 0.0 }
 0x13c   :  { %v598_v61 = vmax.f32 %v575_v57, 0.0  ;;  %v544_v62 = vpop.f32.mrb[34].mxu0 }
 0x13d   :  { %604 = vst.msk [vmem:[%s1491_s3 + $0x18] sm:$0xff] %vm158_vm1, %v591_v59  ;;  %v545_v63 = vadd.f32 %v544_v62, %v1416_v28  ;;  %v579_v20 = vpop.f32.mrb[34].mxu1  ;;  %v826_v0 = vpop.f32.mrb[35].mxu0 }
 0x13e   :  { %611 = vst.msk [vmem:[%s1491_s3 + $0x50] sm:$0xff] %vm158_vm1, %v598_v61  ;;  %v580_v1 = vadd.f32 %v579_v20, %v450_v25  ;;  %v847_v2 = vpop.f32.mrb[35].mxu1 }
 0x13f   :  { %v592_v3 = vmax.f32 %v545_v63, 0.0 }
 0x140   :  { %v599_v5 = vmax.f32 %v580_v1, 0.0  ;;  %v549_v6 = vpop.f32.mrb[36].mxu0 }
 0x141   :  { %605 = vst.msk [vmem:[%s1491_s3 + $0x20] sm:$0xff] %vm158_vm1, %v592_v3  ;;  %v550_v7 = vadd.f32 %v549_v6, %v1419_v36  ;;  %v584_v28 = vpop.f32.mrb[36].mxu1  ;;  %v829_v8 = vpop.f32.mrb[37].mxu0 }
 0x142   :  { %612 = vst.msk [vmem:[%s1491_s3 + $0x58] sm:$0xff] %vm158_vm1, %v599_v5  ;;  %v585_v9 = vadd.f32 %v584_v28, %v455_v35  ;;  %v850_v10 = vpop.f32.mrb[37].mxu1 }
 0x143   :  { %v593_v11 = vmax.f32 %v550_v7, 0.0 }
 0x144   :  { %v600_v13 = vmax.f32 %v585_v9, 0.0  ;;  %v554_v14 = vpop.f32.mrb[38].mxu0 }
 0x145   :  { %606 = vst.msk [vmem:[%s1491_s3 + $0x28] sm:$0xff] %vm158_vm1, %v593_v11  ;;  %v555_v36 = vadd.f32 %v554_v14, %v1422_v44  ;;  %v832_v15 = vpop.f32.mrb[39].mxu0 }
 0x146   :  { %614 = vst.msk [vmem:[%s1491_s3 + $0x60] sm:$0x3] %vm613_vm2, %v600_v13 }
 0x147   :  { %v594_v16 = vmax.f32 %v555_v36, 0.0 }
 0x149   :  { %607 = vst.msk [vmem:[%s1491_s3 + $0x30] sm:$0xff] %vm158_vm1, %v594_v16 }

// kernel: dqn_forward.7
= control target key start
LH: loop header
LB: loop body
LE: loop exit
PB: predicated region body
PF: predicated region fallthrough
CT: control target
= control target key end

     0   :  { %s10722_s0 = inlined_call_operand.vmem [shape: f32[2,3136], index: 0, kind: input, shape index: {}]   ;;  %s10723_s1 = inlined_call_operand.vmem [shape: f32[3136,512], index: 1, kind: input, shape index: {}]   ;;  %s10724_s2 = inlined_call_operand.vmem [shape: f32[1,512], index: 2, kind: input, shape index: {}]   ;;  %s10725_s3 = inlined_call_operand.vmem [shape: f32[512,2], index: 3, kind: input, shape index: {}]   ;;  %s10726_s4 = inlined_call_operand.vmem [shape: f32[1,2], index: 4, kind: input, shape index: {}]   ;;  %s10727_s5 = inlined_call_operand.hbm [shape: f32[2,2], index: 5, kind: output, shape index: {}]  }
   0x1   :  { %v29_v0 = vld [vmem:[%s10723_s1 + $0x8] sm:$0xff]  ;;  %v31_v2 = vld [vmem:[%s10723_s1 + $0x18] sm:$0xff]  ;;  %v28_v5 = vld [vmem:[%s10723_s1] sm:$0xff] }
   0x2   :  { %v33_v1 = vld [vmem:[%s10723_s1 + $0x28] sm:$0xff]  ;;  %v35_v4 = vld [vmem:[%s10723_s1 + $0x38] sm:$0xff]  ;;  %v32_v6 = vld [vmem:[%s10723_s1 + $0x20] sm:$0xff] }
   0x3   :  { %v3912_v3 = vpack.c.bf16 %v33_v1, %v29_v0  ;;  %v4696_v7 = vpack.c.bf16 %v35_v4, %v31_v2  ;;  %v3914_v8 = vpack.c.bf16 %v32_v6, %v28_v5  ;;  %v30_v9 = vld [vmem:[%s10723_s1 + $0x10] sm:$0xff]  ;;  %v37_v11 = vld [vmem:[%s10723_s1 + $0x48] sm:$0xff]  ;;  %v39_v14 = vld [vmem:[%s10723_s1 + $0x58] sm:$0xff] }
   0x4   :  { %v34_v10 = vld [vmem:[%s10723_s1 + $0x30] sm:$0xff]  ;;  %v41_v13 = vld [vmem:[%s10723_s1 + $0x68] sm:$0xff]  ;;  %v43_v15 = vld [vmem:[%s10723_s1 + $0x78] sm:$0xff] }
   0x5   :  { %3913 = vmatprep.subr.bf16.mxu0 %v3912_v3  ;;  %v4698_v12 = vpack.c.bf16 %v34_v10, %v30_v9  ;;  %4697 = vmatprep.subr.bf16.mxu1 %v4696_v7  ;;  %v3916_v16 = vpack.c.bf16 %v41_v13, %v37_v11  ;;  %v4700_v17 = vpack.c.bf16 %v43_v15, %v39_v14  ;;  %v36_v18 = vld [vmem:[%s10723_s1 + $0x40] sm:$0xff]  ;;  %v38_v20 = vld [vmem:[%s10723_s1 + $0x50] sm:$0xff]  ;;  %v45_v23 = vld [vmem:[%s10723_s1 + $0x88] sm:$0xff] }
   0x6   :  { %3915 = vmatpush1.bf16.msra.mxu0 %v3914_v8  ;;  %v40_v19 = vld [vmem:[%s10723_s1 + $0x60] sm:$0xff]  ;;  %v42_v22 = vld [vmem:[%s10723_s1 + $0x70] sm:$0xff]  ;;  %v49_v24 = vld [vmem:[%s10723_s1 + $0xa8] sm:$0xff] }
   0x7   :  { %4699 = vmatpush1.bf16.msra.mxu1 %v4698_v12  ;;  %v3918_v21 = vpack.c.bf16 %v40_v19, %v36_v18  ;;  %3917 = vmatprep.subr.bf16.mxu0 %v3916_v16  ;;  %v4702_v25 = vpack.c.bf16 %v42_v22, %v38_v20  ;;  %v3920_v26 = vpack.c.bf16 %v49_v24, %v45_v23  ;;  %v47_v27 = vld [vmem:[%s10723_s1 + $0x98] sm:$0xff]  ;;  %v44_v29 = vld [vmem:[%s10723_s1 + $0x80] sm:$0xff]  ;;  %v46_v32 = vld [vmem:[%s10723_s1 + $0x90] sm:$0xff] }
   0x8   :  { %4701 = vmatprep.subr.bf16.mxu1 %v4700_v17  ;;  %v51_v28 = vld [vmem:[%s10723_s1 + $0xb8] sm:$0xff]  ;;  %v48_v31 = vld [vmem:[%s10723_s1 + $0xa0] sm:$0xff]  ;;  %v50_v33 = vld [vmem:[%s10723_s1 + $0xb0] sm:$0xff] }
   0x9   :  { %v4704_v30 = vpack.c.bf16 %v51_v28, %v47_v27  ;;  %v3922_v34 = vpack.c.bf16 %v48_v31, %v44_v29  ;;  %v53_v35 = vld [vmem:[%s10723_s1 + $0xc8] sm:$0xff]  ;;  %v55_v37 = vld [vmem:[%s10723_s1 + $0xd8] sm:$0xff]  ;;  %v4706_v38 = vpack.c.bf16 %v50_v33, %v46_v32  ;;  %v52_v41 = vld [vmem:[%s10723_s1 + $0xc0] sm:$0xff] }
   0xa   :  { %3919 = vmatpush1.bf16.msra.mxu0 %v3918_v21  ;;  %v57_v36 = vld [vmem:[%s10723_s1 + $0xe8] sm:$0xff]  ;;  %v59_v40 = vld [vmem:[%s10723_s1 + $0xf8] sm:$0xff]  ;;  %v56_v42 = vld [vmem:[%s10723_s1 + $0xe0] sm:$0xff] }
   0xb   :  { %4703 = vmatpush1.bf16.msra.mxu1 %v4702_v25  ;;  %3921 = vmatprep.subr.bf16.mxu0 %v3920_v26  ;;  %v3924_v39 = vpack.c.bf16 %v57_v36, %v53_v35  ;;  %v4708_v43 = vpack.c.bf16 %v59_v40, %v55_v37  ;;  %v54_v44 = vld [vmem:[%s10723_s1 + $0xd0] sm:$0xff]  ;;  %v61_v46 = vld [vmem:[%s10723_s1 + $0x108] sm:$0xff]  ;;  %v63_v48 = vld [vmem:[%s10723_s1 + $0x118] sm:$0xff]  ;;  %v3926_v50 = vpack.c.bf16 %v56_v42, %v52_v41 }
   0xc   :  { %4705 = vmatprep.subr.bf16.mxu1 %v4704_v30  ;;  %v58_v45 = vld [vmem:[%s10723_s1 + $0xf0] sm:$0xff]  ;;  %v65_v47 = vld [vmem:[%s10723_s1 + $0x128] sm:$0xff]  ;;  %v67_v49 = vld [vmem:[%s10723_s1 + $0x138] sm:$0xff] }
   0xd   :  { %v4710_v51 = vpack.c.bf16 %v58_v45, %v54_v44  ;;  %v3928_v52 = vpack.c.bf16 %v65_v47, %v61_v46  ;;  %v60_v53 = vld [vmem:[%s10723_s1 + $0x100] sm:$0xff]  ;;  %v62_v55 = vld [vmem:[%s10723_s1 + $0x110] sm:$0xff]  ;;  %v4712_v56 = vpack.c.bf16 %v67_v49, %v63_v48  ;;  %v69_v58 = vld [vmem:[%s10723_s1 + $0x148] sm:$0xff]  ;;  %v1598_v46 = vlaneseq }
   0xe   :  { %3923 = vmatpush1.bf16.msra.mxu0 %v3922_v34  ;;  %v64_v54 = vld [vmem:[%s10723_s1 + $0x120] sm:$0xff]  ;;  %v66_v57 = vld [vmem:[%s10723_s1 + $0x130] sm:$0xff]  ;;  %v73_v59 = vld [vmem:[%s10723_s1 + $0x168] sm:$0xff]  ;;  %v5629_v47 = vmov 1983009808  }
   0xf   :  { %4707 = vmatpush1.bf16.msra.mxu1 %v4706_v38  ;;  %3925 = vmatprep.subr.bf16.mxu0 %v3924_v39  ;;  %v71_v60 = vld [vmem:[%s10723_s1 + $0x158] sm:$0xff]  ;;  %v3930_v62 = vpack.c.bf16 %v64_v54, %v60_v53  ;;  %v4714_v63 = vpack.c.bf16 %v66_v57, %v62_v55  ;;  %v3932_v0 = vpack.c.bf16 %v73_v59, %v69_v58  ;;  %v68_v1 = vld [vmem:[%s10723_s1 + $0x140] sm:$0xff]  ;;  %v70_v3 = vld [vmem:[%s10723_s1 + $0x150] sm:$0xff]  ;;  %v1627_v48 = vunpack.c.l.s4 %v5629_v47 }
  0x10   :  { %4709 = vmatprep.subr.bf16.mxu1 %v4708_v43  ;;  %v75_v61 = vld [vmem:[%s10723_s1 + $0x178] sm:$0xff]  ;;  %v72_v2 = vld [vmem:[%s10723_s1 + $0x160] sm:$0xff]  ;;  %v74_v5 = vld [vmem:[%s10723_s1 + $0x170] sm:$0xff] }
  0x11   :  { %v4716_v4 = vpack.c.bf16 %v75_v61, %v71_v60  ;;  %v77_v6 = vld [vmem:[%s10723_s1 + $0x188] sm:$0xff]  ;;  %v79_v8 = vld [vmem:[%s10723_s1 + $0x198] sm:$0xff]  ;;  %v3934_v10 = vpack.c.bf16 %v72_v2, %v68_v1  ;;  %v4718_v11 = vpack.c.bf16 %v74_v5, %v70_v3  ;;  %v76_v13 = vld [vmem:[%s10723_s1 + $0x180] sm:$0xff]  ;;  %v5914_v61 = vshrl.u32 %v1598_v46, 7 }
  0x12   :  { %3927 = vmatpush1.bf16.msra.mxu0 %v3926_v50  ;;  %v81_v7 = vld [vmem:[%s10723_s1 + $0x1a8] sm:$0xff]  ;;  %v83_v9 = vld [vmem:[%s10723_s1 + $0x1b8] sm:$0xff]  ;;  %v80_v14 = vld [vmem:[%s10723_s1 + $0x1a0] sm:$0xff] }
  0x13   :  { %4711 = vmatpush1.bf16.msra.mxu1 %v4710_v51  ;;  %3929 = vmatprep.subr.bf16.mxu0 %v3928_v52  ;;  %v3936_v12 = vpack.c.bf16 %v81_v7, %v77_v6  ;;  %v78_v15 = vld [vmem:[%s10723_s1 + $0x190] sm:$0xff]  ;;  %v4720_v16 = vpack.c.bf16 %v83_v9, %v79_v8  ;;  %v85_v18 = vld [vmem:[%s10723_s1 + $0x1c8] sm:$0xff]  ;;  %v87_v20 = vld [vmem:[%s10723_s1 + $0x1d8] sm:$0xff]  ;;  %v3938_v22 = vpack.c.bf16 %v80_v14, %v76_v13 }
  0x14   :  { %4713 = vmatprep.subr.bf16.mxu1 %v4712_v56  ;;  %v82_v17 = vld [vmem:[%s10723_s1 + $0x1b0] sm:$0xff]  ;;  %v89_v19 = vld [vmem:[%s10723_s1 + $0x1e8] sm:$0xff]  ;;  %v91_v21 = vld [vmem:[%s10723_s1 + $0x1f8] sm:$0xff] }
  0x15   :  { %v4722_v23 = vpack.c.bf16 %v82_v17, %v78_v15  ;;  %v3940_v24 = vpack.c.bf16 %v89_v19, %v85_v18  ;;  %v84_v25 = vld [vmem:[%s10723_s1 + $0x1c0] sm:$0xff]  ;;  %v86_v27 = vld [vmem:[%s10723_s1 + $0x1d0] sm:$0xff]  ;;  %v4724_v28 = vpack.c.bf16 %v91_v21, %v87_v20  ;;  %v93_v30 = vld [vmem:[%s10723_s1 + $0x208] sm:$0xff] }
  0x16   :  { %3931 = vmatpush1.bf16.msra.mxu0 %v3930_v62  ;;  %v88_v26 = vld [vmem:[%s10723_s1 + $0x1e0] sm:$0xff]  ;;  %v90_v29 = vld [vmem:[%s10723_s1 + $0x1f0] sm:$0xff]  ;;  %v97_v31 = vld [vmem:[%s10723_s1 + $0x228] sm:$0xff]  ;;  %v1628_v62 = vunpack.c.0.s8 %v1627_v48 }
  0x17   :  { %4715 = vmatpush1.bf16.msra.mxu1 %v4714_v63  ;;  %3933 = vmatprep.subr.bf16.mxu0 %v3932_v0  ;;  %v95_v32 = vld [vmem:[%s10723_s1 + $0x218] sm:$0xff]  ;;  %v3942_v34 = vpack.c.bf16 %v88_v26, %v84_v25  ;;  %v4726_v35 = vpack.c.bf16 %v90_v29, %v86_v27  ;;  %v3944_v36 = vpack.c.bf16 %v97_v31, %v93_v30  ;;  %v92_v37 = vld [vmem:[%s10723_s1 + $0x200] sm:$0xff]  ;;  %v94_v39 = vld [vmem:[%s10723_s1 + $0x210] sm:$0xff] }
  0x18   :  { %4717 = vmatprep.subr.bf16.mxu1 %v4716_v4  ;;  %v99_v33 = vld [vmem:[%s10723_s1 + $0x238] sm:$0xff]  ;;  %v96_v38 = vld [vmem:[%s10723_s1 + $0x220] sm:$0xff]  ;;  %v98_v41 = vld [vmem:[%s10723_s1 + $0x230] sm:$0xff] }
  0x19   :  { %v4728_v40 = vpack.c.bf16 %v99_v33, %v95_v32  ;;  %v101_v42 = vld [vmem:[%s10723_s1 + $0x248] sm:$0xff]  ;;  %v103_v44 = vld [vmem:[%s10723_s1 + $0x258] sm:$0xff]  ;;  %v3946_v49 = vpack.c.bf16 %v96_v38, %v92_v37  ;;  %v4730_v50 = vpack.c.bf16 %v98_v41, %v94_v39  ;;  %v100_v52 = vld [vmem:[%s10723_s1 + $0x240] sm:$0xff] }
  0x1a   :  { %3935 = vmatpush1.bf16.msra.mxu0 %v3934_v10  ;;  %v105_v43 = vld [vmem:[%s10723_s1 + $0x268] sm:$0xff]  ;;  %v107_v45 = vld [vmem:[%s10723_s1 + $0x278] sm:$0xff]  ;;  %v104_v53 = vld [vmem:[%s10723_s1 + $0x260] sm:$0xff] }
  0x1b   :  { %4719 = vmatpush1.bf16.msra.mxu1 %v4718_v11  ;;  %3937 = vmatprep.subr.bf16.mxu0 %v3936_v12  ;;  %v3948_v51 = vpack.c.bf16 %v105_v43, %v101_v42  ;;  %v102_v54 = vld [vmem:[%s10723_s1 + $0x250] sm:$0xff]  ;;  %v4732_v55 = vpack.c.bf16 %v107_v45, %v103_v44  ;;  %v109_v57 = vld [vmem:[%s10723_s1 + $0x288] sm:$0xff]  ;;  %v111_v59 = vld [vmem:[%s10723_s1 + $0x298] sm:$0xff]  ;;  %v3950_v63 = vpack.c.bf16 %v104_v53, %v100_v52 }
  0x1c   :  { %4721 = vmatprep.subr.bf16.mxu1 %v4720_v16  ;;  %v106_v56 = vld [vmem:[%s10723_s1 + $0x270] sm:$0xff]  ;;  %v113_v58 = vld [vmem:[%s10723_s1 + $0x2a8] sm:$0xff]  ;;  %v115_v60 = vld [vmem:[%s10723_s1 + $0x2b8] sm:$0xff]  ;;  %v5941_v11 = vsub.s32 %v1628_v62, %v5914_v61 }
  0x1d   :  { %v4734_v0 = vpack.c.bf16 %v106_v56, %v102_v54  ;;  %v3952_v1 = vpack.c.bf16 %v113_v58, %v109_v57  ;;  %v108_v2 = vld [vmem:[%s10723_s1 + $0x280] sm:$0xff]  ;;  %v110_v4 = vld [vmem:[%s10723_s1 + $0x290] sm:$0xff]  ;;  %v4736_v5 = vpack.c.bf16 %v115_v60, %v111_v59  ;;  %v117_v7 = vld [vmem:[%s10723_s1 + $0x2c8] sm:$0xff] }
  0x1e   :  { %3939 = vmatpush1.bf16.msra.mxu0 %v3938_v22  ;;  %v112_v3 = vld [vmem:[%s10723_s1 + $0x2a0] sm:$0xff]  ;;  %v114_v6 = vld [vmem:[%s10723_s1 + $0x2b0] sm:$0xff]  ;;  %v121_v8 = vld [vmem:[%s10723_s1 + $0x2e8] sm:$0xff] }
  0x1f   :  { %4723 = vmatpush1.bf16.msra.mxu1 %v4722_v23  ;;  %3941 = vmatprep.subr.bf16.mxu0 %v3940_v24  ;;  %v119_v9 = vld [vmem:[%s10723_s1 + $0x2d8] sm:$0xff]  ;;  %v3954_v12 = vpack.c.bf16 %v112_v3, %v108_v2  ;;  %v116_v13 = vld [vmem:[%s10723_s1 + $0x2c0] sm:$0xff]  ;;  %v4738_v14 = vpack.c.bf16 %v114_v6, %v110_v4  ;;  %v3956_v15 = vpack.c.bf16 %v121_v8, %v117_v7  ;;  %v118_v17 = vld [vmem:[%s10723_s1 + $0x2d0] sm:$0xff] }
  0x20   :  { %4725 = vmatprep.subr.bf16.mxu1 %v4724_v28  ;;  %v123_v10 = vld [vmem:[%s10723_s1 + $0x2f8] sm:$0xff]  ;;  %v120_v16 = vld [vmem:[%s10723_s1 + $0x2e0] sm:$0xff]  ;;  %v122_v18 = vld [vmem:[%s10723_s1 + $0x2f0] sm:$0xff] }
  0x21   :  { %v4740_v19 = vpack.c.bf16 %v123_v10, %v119_v9  ;;  %v125_v20 = vld [vmem:[%s10723_s1 + $0x308] sm:$0xff]  ;;  %v5964_v22 = vld [vmem:[%s10722_s0] sm:$0xff]  ;;  %v127_v23 = vld [vmem:[%s10723_s1 + $0x318] sm:$0xff]  ;;  %v3958_v26 = vpack.c.bf16 %v120_v16, %v116_v13  ;;  %v4742_v27 = vpack.c.bf16 %v122_v18, %v118_v17 }
  0x22   :  { %3943 = vmatpush1.bf16.msra.mxu0 %v3942_v34  ;;  %v129_v21 = vld [vmem:[%s10723_s1 + $0x328] sm:$0xff]  ;;  %v131_v24 = vld [vmem:[%s10723_s1 + $0x338] sm:$0xff]  ;;  %v5974_v25 = vrot.slane %v5964_v22, %v5941_v11  ;;  %v124_v29 = vld [vmem:[%s10723_s1 + $0x300] sm:$0xff]  ;;  %v1625_v8 = vcombine.high %v5964_v22, %v5964_v22 }
  0x23   :  { %4727 = vmatpush1.bf16.msra.mxu1 %v4726_v35  ;;  %3945 = vmatprep.subr.bf16.mxu0 %v3944_v36  ;;  %v3960_v28 = vpack.c.bf16 %v129_v21, %v125_v20  ;;  %v128_v30 = vld [vmem:[%s10723_s1 + $0x320] sm:$0xff]  ;;  %v126_v31 = vld [vmem:[%s10723_s1 + $0x310] sm:$0xff]  ;;  %v4744_v33 = vpack.c.bf16 %v131_v24, %v127_v23  ;;  %v133_v35 = vld [vmem:[%s10723_s1 + $0x348] sm:$0xff] }
  0x24   :  { %4729 = vmatprep.subr.bf16.mxu1 %v4728_v40  ;;  %v1640_v32 = vcombine.high %v5974_v25, %v5974_v25  ;;  %v130_v34 = vld [vmem:[%s10723_s1 + $0x330] sm:$0xff]  ;;  %v137_v36 = vld [vmem:[%s10723_s1 + $0x368] sm:$0xff]  ;;  %v135_v37 = vld [vmem:[%s10723_s1 + $0x358] sm:$0xff]  ;;  %v3962_v39 = vpack.c.bf16 %v128_v30, %v124_v29  ;;  %v6095_v24 = vrot.slane %v1625_v8, %v5941_v11 }
  0x25   :  { %v139_v38 = vld [vmem:[%s10723_s1 + $0x378] sm:$0xff]  ;;  %v4746_v40 = vpack.c.bf16 %v130_v34, %v126_v31  ;;  %v3964_v41 = vpack.c.bf16 %v137_v36, %v133_v35  ;;  %v132_v42 = vld [vmem:[%s10723_s1 + $0x340] sm:$0xff]  ;;  %v134_v44 = vld [vmem:[%s10723_s1 + $0x350] sm:$0xff] }
  0x26   :  { %3947 = vmatpush1.bf16.msra.mxu0 %v3946_v49  ;;  %1825 = vmatprep.mubr.f32.mxu0 %v1640_v32  ;;  %v136_v43 = vld [vmem:[%s10723_s1 + $0x360] sm:$0xff]  ;;  %v4748_v45 = vpack.c.bf16 %v139_v38, %v135_v37  ;;  %v138_v46 = vld [vmem:[%s10723_s1 + $0x370] sm:$0xff]  ;;  %v141_v47 = vld [vmem:[%s10723_s1 + $0x388] sm:$0xff]  ;;  %v1641_v38 = vcombine.high %v6095_v24, %v6095_v24 }
  0x27   :  { %4731 = vmatpush1.bf16.msra.mxu1 %v4730_v50  ;;  %3949 = vmatprep.subr.bf16.mxu0 %v3948_v51  ;;  %v145_v48 = vld [vmem:[%s10723_s1 + $0x3a8] sm:$0xff]  ;;  %v143_v49 = vld [vmem:[%s10723_s1 + $0x398] sm:$0xff]  ;;  %v3966_v51 = vpack.c.bf16 %v136_v43, %v132_v42  ;;  %v4750_v52 = vpack.c.bf16 %v138_v46, %v134_v44  ;;  %v140_v54 = vld [vmem:[%s10723_s1 + $0x380] sm:$0xff] }
  0x28   :  { %4733 = vmatprep.subr.bf16.mxu1 %v4732_v55  ;;  %2748 = vmatprep.mubr.f32.mxu1 %v1640_v32  ;;  %v147_v50 = vld [vmem:[%s10723_s1 + $0x3b8] sm:$0xff]  ;;  %v3968_v53 = vpack.c.bf16 %v145_v48, %v141_v47  ;;  %v144_v55 = vld [vmem:[%s10723_s1 + $0x3a0] sm:$0xff]  ;;  %v142_v56 = vld [vmem:[%s10723_s1 + $0x390] sm:$0xff] }
  0x29   :  { %v4752_v57 = vpack.c.bf16 %v147_v50, %v143_v49  ;;  %v146_v58 = vld [vmem:[%s10723_s1 + $0x3b0] sm:$0xff]  ;;  %v149_v59 = vld [vmem:[%s10723_s1 + $0x3c8] sm:$0xff]  ;;  %v151_v62 = vld [vmem:[%s10723_s1 + $0x3d8] sm:$0xff] }
  0x2a   :  { %3951 = vmatpush1.bf16.msra.mxu0 %v3950_v63  ;;  %v153_v60 = vld [vmem:[%s10723_s1 + $0x3e8] sm:$0xff]  ;;  %v155_v63 = vld [vmem:[%s10723_s1 + $0x3f8] sm:$0xff]  ;;  %v148_v3 = vld [vmem:[%s10723_s1 + $0x3c0] sm:$0xff] }
  0x2b   :  { %4735 = vmatpush1.bf16.msra.mxu1 %v4734_v0  ;;  %3953 = vmatprep.subr.bf16.mxu0 %v3952_v1  ;;  %v3970_v0 = vpack.c.bf16 %v144_v55, %v140_v54  ;;  %v4754_v1 = vpack.c.bf16 %v146_v58, %v142_v56  ;;  %v3972_v2 = vpack.c.bf16 %v153_v60, %v149_v59  ;;  %v152_v4 = vld [vmem:[%s10723_s1 + $0x3e0] sm:$0xff]  ;;  %v154_v7 = vld [vmem:[%s10723_s1 + $0x3f0] sm:$0xff]  ;;  %v157_v9 = vld [vmem:[%s10723_s1 + $0x408] sm:$0xff] }
  0x2c   :  { %4737 = vmatprep.subr.bf16.mxu1 %v4736_v5  ;;  %v150_v5 = vld [vmem:[%s10723_s1 + $0x3d0] sm:$0xff]  ;;  %v4756_v6 = vpack.c.bf16 %v155_v63, %v151_v62  ;;  %v161_v10 = vld [vmem:[%s10723_s1 + $0x428] sm:$0xff]  ;;  %v163_v13 = vld [vmem:[%s10723_s1 + $0x438] sm:$0xff] }
  0x2d   :  { %v3976_v16 = vpack.c.bf16 %v161_v10, %v157_v9  ;;  %v156_v17 = vld [vmem:[%s10723_s1 + $0x400] sm:$0xff]  ;;  %v162_v21 = vld [vmem:[%s10723_s1 + $0x430] sm:$0xff]  ;;  %v165_v22 = vld [vmem:[%s10723_s1 + $0x448] sm:$0xff] }
  0x2e   :  { %3955 = vmatpush1.bf16.msra.mxu0 %v3954_v12  ;;  %v159_v12 = vld [vmem:[%s10723_s1 + $0x418] sm:$0xff]  ;;  %v160_v18 = vld [vmem:[%s10723_s1 + $0x420] sm:$0xff]  ;;  %v169_v23 = vld [vmem:[%s10723_s1 + $0x468] sm:$0xff] }
  0x2f   :  { %4739 = vmatpush1.bf16.msra.mxu1 %v4738_v14  ;;  %3957 = vmatprep.subr.bf16.mxu0 %v3956_v15  ;;  %v3974_v14 = vpack.c.bf16 %v152_v4, %v148_v3  ;;  %v4758_v15 = vpack.c.bf16 %v154_v7, %v150_v5  ;;  %v4760_v20 = vpack.c.bf16 %v163_v13, %v159_v12  ;;  %v164_v31 = vld [vmem:[%s10723_s1 + $0x440] sm:$0xff]  ;;  %v170_v35 = vld [vmem:[%s10723_s1 + $0x470] sm:$0xff]  ;;  %v173_v36 = vld [vmem:[%s10723_s1 + $0x488] sm:$0xff] }
  0x30   :  { %4741 = vmatprep.subr.bf16.mxu1 %v4740_v19  ;;  %v158_v19 = vld [vmem:[%s10723_s1 + $0x410] sm:$0xff]  ;;  %v3980_v30 = vpack.c.bf16 %v169_v23, %v165_v22  ;;  %v168_v32 = vld [vmem:[%s10723_s1 + $0x460] sm:$0xff]  ;;  %v177_v37 = vld [vmem:[%s10723_s1 + $0x4a8] sm:$0xff] }
  0x31   :  { %v4762_v29 = vpack.c.bf16 %v162_v21, %v158_v19  ;;  %v3984_v43 = vpack.c.bf16 %v177_v37, %v173_v36  ;;  %v172_v44 = vld [vmem:[%s10723_s1 + $0x480] sm:$0xff]  ;;  %v174_v46 = vld [vmem:[%s10723_s1 + $0x490] sm:$0xff]  ;;  %v181_v48 = vld [vmem:[%s10723_s1 + $0x4c8] sm:$0xff] }
  0x32   :  { %3959 = vmatpush1.bf16.msra.mxu0 %v3958_v26  ;;  %v167_v26 = vld [vmem:[%s10723_s1 + $0x458] sm:$0xff]  ;;  %v185_v49 = vld [vmem:[%s10723_s1 + $0x4e8] sm:$0xff]  ;;  %v180_v55 = vld [vmem:[%s10723_s1 + $0x4c0] sm:$0xff] }
  0x33   :  { %4743 = vmatpush1.bf16.msra.mxu1 %v4742_v27  ;;  %3961 = vmatprep.subr.bf16.mxu0 %v3960_v28  ;;  %v171_v27 = vld [vmem:[%s10723_s1 + $0x478] sm:$0xff]  ;;  %v3978_v28 = vpack.c.bf16 %v160_v18, %v156_v17  ;;  %v3988_v54 = vpack.c.bf16 %v185_v49, %v181_v48  ;;  %v184_v56 = vld [vmem:[%s10723_s1 + $0x4e0] sm:$0xff]  ;;  %v186_v59 = vld [vmem:[%s10723_s1 + $0x4f0] sm:$0xff] }
  0x34   :  { %4745 = vmatprep.subr.bf16.mxu1 %v4744_v33  ;;  %v166_v33 = vld [vmem:[%s10723_s1 + $0x450] sm:$0xff]  ;;  %v4764_v34 = vpack.c.bf16 %v171_v27, %v167_v26  ;;  %v183_v50 = vld [vmem:[%s10723_s1 + $0x4d8] sm:$0xff]  ;;  %v189_v60 = vld [vmem:[%s10723_s1 + $0x508] sm:$0xff] }
  0x35   :  { %v4766_v42 = vpack.c.bf16 %v170_v35, %v166_v33  ;;  %v193_v62 = vld [vmem:[%s10723_s1 + $0x528] sm:$0xff]  ;;  %v191_v63 = vld [vmem:[%s10723_s1 + $0x518] sm:$0xff]  ;;  %v188_v4 = vld [vmem:[%s10723_s1 + $0x500] sm:$0xff] }
  0x36   :  { %3963 = vmatpush1.bf16.msra.mxu0 %v3962_v39  ;;  %v175_v39 = vld [vmem:[%s10723_s1 + $0x498] sm:$0xff]  ;;  %v3992_v3 = vpack.c.bf16 %v193_v62, %v189_v60  ;;  %v192_v5 = vld [vmem:[%s10723_s1 + $0x520] sm:$0xff]  ;;  %v194_v8 = vld [vmem:[%s10723_s1 + $0x530] sm:$0xff] }
  0x37   :  { %4747 = vmatpush1.bf16.msra.mxu1 %v4746_v40  ;;  %3965 = vmatprep.subr.bf16.mxu0 %v3964_v41  ;;  %v179_v40 = vld [vmem:[%s10723_s1 + $0x4b8] sm:$0xff]  ;;  %v3982_v41 = vpack.c.bf16 %v168_v32, %v164_v31  ;;  %v197_v9 = vld [vmem:[%s10723_s1 + $0x548] sm:$0xff]  ;;  %v196_v17 = vld [vmem:[%s10723_s1 + $0x540] sm:$0xff] }
  0x38   :  { %4749 = vmatprep.subr.bf16.mxu1 %v4748_v45  ;;  %v176_v45 = vld [vmem:[%s10723_s1 + $0x4a0] sm:$0xff]  ;;  %v4768_v47 = vpack.c.bf16 %v179_v40, %v175_v39  ;;  %v201_v10 = vld [vmem:[%s10723_s1 + $0x568] sm:$0xff]  ;;  %v199_v12 = vld [vmem:[%s10723_s1 + $0x558] sm:$0xff] }
  0x39   :  { %v203_v13 = vld [vmem:[%s10723_s1 + $0x578] sm:$0xff]  ;;  %v200_v18 = vld [vmem:[%s10723_s1 + $0x560] sm:$0xff]  ;;  %v198_v19 = vld [vmem:[%s10723_s1 + $0x550] sm:$0xff] }
  0x3a   :  { %3967 = vmatpush1.bf16.msra.mxu0 %v3966_v51  ;;  %v187_v51 = vld [vmem:[%s10723_s1 + $0x4f8] sm:$0xff]  ;;  %v202_v21 = vld [vmem:[%s10723_s1 + $0x570] sm:$0xff]  ;;  %v205_v22 = vld [vmem:[%s10723_s1 + $0x588] sm:$0xff] }
  0x3b   :  { %4751 = vmatpush1.bf16.msra.mxu1 %v4750_v52  ;;  %3969 = vmatprep.subr.bf16.mxu0 %v3968_v53  ;;  %v3986_v52 = vpack.c.bf16 %v176_v45, %v172_v44  ;;  %v4772_v58 = vpack.c.bf16 %v187_v51, %v183_v50  ;;  %v209_v23 = vld [vmem:[%s10723_s1 + $0x5a8] sm:$0xff]  ;;  %v207_v26 = vld [vmem:[%s10723_s1 + $0x598] sm:$0xff]  ;;  %v204_v31 = vld [vmem:[%s10723_s1 + $0x580] sm:$0xff] }
  0x3c   :  { %4753 = vmatprep.subr.bf16.mxu1 %v4752_v57  ;;  %v182_v57 = vld [vmem:[%s10723_s1 + $0x4d0] sm:$0xff]  ;;  %v211_v27 = vld [vmem:[%s10723_s1 + $0x5b8] sm:$0xff]  ;;  %v208_v32 = vld [vmem:[%s10723_s1 + $0x5a0] sm:$0xff] }
  0x3d   :  { %v206_v33 = vld [vmem:[%s10723_s1 + $0x590] sm:$0xff]  ;;  %v213_v36 = vld [vmem:[%s10723_s1 + $0x5c8] sm:$0xff]  ;;  %v219_v39 = vld [vmem:[%s10723_s1 + $0x5f8] sm:$0xff]  ;;  %v4002_v40 = vpack.c.bf16 %v208_v32, %v204_v31 }
  0x3e   :  { %3971 = vmatpush1.bf16.msra.mxu0 %v3970_v0  ;;  %v195_v0 = vld [vmem:[%s10723_s1 + $0x538] sm:$0xff]  ;;  %v210_v35 = vld [vmem:[%s10723_s1 + $0x5b0] sm:$0xff]  ;;  %v217_v37 = vld [vmem:[%s10723_s1 + $0x5e8] sm:$0xff] }
  0x3f   :  { %4755 = vmatpush1.bf16.msra.mxu1 %v4754_v1  ;;  %3973 = vmatprep.subr.bf16.mxu0 %v3972_v2  ;;  %v3990_v1 = vpack.c.bf16 %v184_v56, %v180_v55  ;;  %v4774_v2 = vpack.c.bf16 %v186_v59, %v182_v57  ;;  %v4776_v7 = vpack.c.bf16 %v195_v0, %v191_v63  ;;  %v216_v44 = vld [vmem:[%s10723_s1 + $0x5e0] sm:$0xff]  ;;  %v214_v45 = vld [vmem:[%s10723_s1 + $0x5d0] sm:$0xff]  ;;  %v225_v48 = vld [vmem:[%s10723_s1 + $0x628] sm:$0xff] }
  0x40   :  { %4757 = vmatprep.subr.bf16.mxu1 %v4756_v6  ;;  %v190_v6 = vld [vmem:[%s10723_s1 + $0x510] sm:$0xff]  ;;  %v223_v49 = vld [vmem:[%s10723_s1 + $0x618] sm:$0xff]  ;;  %v224_v55 = vld [vmem:[%s10723_s1 + $0x620] sm:$0xff] }
  0x41   :  { %v227_v50 = vld [vmem:[%s10723_s1 + $0x638] sm:$0xff]  ;;  %v222_v56 = vld [vmem:[%s10723_s1 + $0x610] sm:$0xff]  ;;  %v229_v59 = vld [vmem:[%s10723_s1 + $0x648] sm:$0xff] }
  0x42   :  { %3975 = vmatpush1.bf16.msra.mxu0 %v3974_v14  ;;  %v3994_v14 = vpack.c.bf16 %v192_v5, %v188_v4  ;;  %v4792_v57 = vpack.c.bf16 %v227_v50, %v223_v49  ;;  %v233_v60 = vld [vmem:[%s10723_s1 + $0x668] sm:$0xff]  ;;  %v231_v62 = vld [vmem:[%s10723_s1 + $0x658] sm:$0xff]  ;;  %v232_v4 = vld [vmem:[%s10723_s1 + $0x660] sm:$0xff] }
  0x43   :  { %4759 = vmatpush1.bf16.msra.mxu1 %v4758_v15  ;;  %3977 = vmatprep.subr.bf16.mxu0 %v3976_v16  ;;  %v4778_v15 = vpack.c.bf16 %v194_v8, %v190_v6  ;;  %v3996_v16 = vpack.c.bf16 %v201_v10, %v197_v9  ;;  %v235_v63 = vld [vmem:[%s10723_s1 + $0x678] sm:$0xff]  ;;  %v230_v5 = vld [vmem:[%s10723_s1 + $0x650] sm:$0xff]  ;;  %v237_v8 = vld [vmem:[%s10723_s1 + $0x688] sm:$0xff] }
  0x44   :  { %4761 = vmatprep.subr.bf16.mxu1 %v4760_v20  ;;  %v4780_v20 = vpack.c.bf16 %v203_v13, %v199_v12  ;;  %v4796_v6 = vpack.c.bf16 %v235_v63, %v231_v62  ;;  %v241_v9 = vld [vmem:[%s10723_s1 + $0x6a8] sm:$0xff]  ;;  %v239_v10 = vld [vmem:[%s10723_s1 + $0x698] sm:$0xff]  ;;  %v248_v31 = vld [vmem:[%s10723_s1 + $0x6e0] sm:$0xff] }
  0x45   :  { %1826 = vmatmul.mubr.f32.vlgmr.msra.gmra.mrb[0].mxu0 %v5974_v25  ;;  %v243_v12 = vld [vmem:[%s10723_s1 + $0x6b8] sm:$0xff]  ;;  %v246_v32 = vld [vmem:[%s10723_s1 + $0x6d0] sm:$0xff] }
  0x46   :  { %3979 = vmatpush1.bf16.msra.mxu0 %v3978_v28  ;;  %2749 = vmatmul.mubr.f32.vlgmr.msra.gmra.mrb[0].mxu1 %v5974_v25  ;;  %v178_v25 = vld [vmem:[%s10723_s1 + $0x4b0] sm:$0xff]  ;;  %v3998_v28 = vpack.c.bf16 %v200_v18, %v196_v17  ;;  %v240_v17 = vld [vmem:[%s10723_s1 + $0x6a0] sm:$0xff]  ;;  %v267_v49 = vld [vmem:[%s10723_s1 + $0x778] sm:$0xff] }
  0x47   :  { %4763 = vmatpush1.bf16.msra.mxu1 %v4762_v29  ;;  %3981 = vmatprep.subr.bf16.mxu0 %v3980_v30  ;;  %v4770_v53 = vpack.c.bf16 %v178_v25, %v174_v46  ;;  %v4782_v29 = vpack.c.bf16 %v202_v21, %v198_v19  ;;  %v4000_v30 = vpack.c.bf16 %v209_v23, %v205_v22  ;;  %v221_v25 = vld [vmem:[%s10723_s1 + $0x608] sm:$0xff]  ;;  %v238_v18 = vld [vmem:[%s10723_s1 + $0x690] sm:$0xff]  ;;  %v247_v23 = vld [vmem:[%s10723_s1 + $0x6d8] sm:$0xff] }
  0x48   :  { %4765 = vmatprep.subr.bf16.mxu1 %v4764_v34  ;;  %1896 = vmatprep.mubr.f32.mxu0 %v1641_v38  ;;  %v4784_v34 = vpack.c.bf16 %v211_v27, %v207_v26  ;;  %v4800_v19 = vpack.c.bf16 %v243_v12, %v239_v10  ;;  %v245_v21 = vld [vmem:[%s10723_s1 + $0x6c8] sm:$0xff]  ;;  %v251_v26 = vld [vmem:[%s10723_s1 + $0x6f8] sm:$0xff] }
  0x49   :  { %2819 = vmatprep.mubr.f32.mxu1 %v1641_v38  ;;  %v215_v38 = vld [vmem:[%s10723_s1 + $0x5d8] sm:$0xff]  ;;  %v249_v22 = vld [vmem:[%s10723_s1 + $0x6e8] sm:$0xff] }
  0x4a   :  { %3983 = vmatpush1.bf16.msra.mxu0 %v3982_v41  ;;  %v4786_v41 = vpack.c.bf16 %v210_v35, %v206_v33  ;;  %v4788_v46 = vpack.c.bf16 %v219_v39, %v215_v38  ;;  %v4804_v33 = vpack.c.bf16 %v251_v26, %v247_v23  ;;  %v253_v35 = vld [vmem:[%s10723_s1 + $0x708] sm:$0xff]  ;;  %v259_v38 = vld [vmem:[%s10723_s1 + $0x738] sm:$0xff] }
  0x4b   :  { %4767 = vmatpush1.bf16.msra.mxu1 %v4766_v42  ;;  %3985 = vmatprep.subr.bf16.mxu0 %v3984_v43  ;;  %v4004_v42 = vpack.c.bf16 %v217_v37, %v213_v36  ;;  %v212_v43 = vld [vmem:[%s10723_s1 + $0x5c0] sm:$0xff]  ;;  %v257_v36 = vld [vmem:[%s10723_s1 + $0x728] sm:$0xff]  ;;  %v255_v37 = vld [vmem:[%s10723_s1 + $0x718] sm:$0xff] }
  0x4c   :  { %4769 = vmatprep.subr.bf16.mxu1 %v4768_v47  ;;  %v218_v47 = vld [vmem:[%s10723_s1 + $0x5f0] sm:$0xff]  ;;  %v4006_v51 = vpack.c.bf16 %v216_v44, %v212_v43  ;;  %v256_v43 = vld [vmem:[%s10723_s1 + $0x720] sm:$0xff]  ;;  %v275_v62 = vld [vmem:[%s10723_s1 + $0x7b8] sm:$0xff] }
  0x4d   :  { %v254_v44 = vld [vmem:[%s10723_s1 + $0x710] sm:$0xff]  ;;  %v283_v10 = vld [vmem:[%s10723_s1 + $0x7f8] sm:$0xff] }
  0x4e   :  { %3987 = vmatpush1.bf16.msra.mxu0 %v3986_v52  ;;  %v4790_v52 = vpack.c.bf16 %v218_v47, %v214_v45  ;;  %v4808_v45 = vpack.c.bf16 %v259_v38, %v255_v37  ;;  %v261_v47 = vld [vmem:[%s10723_s1 + $0x748] sm:$0xff]  ;;  %v291_v23 = vld [vmem:[%s10723_s1 + $0x838] sm:$0xff] }
  0x4f   :  { %4771 = vmatpush1.bf16.msra.mxu1 %v4770_v53  ;;  %3989 = vmatprep.subr.bf16.mxu0 %v3988_v54  ;;  %v4008_v53 = vpack.c.bf16 %v225_v48, %v221_v25  ;;  %v220_v54 = vld [vmem:[%s10723_s1 + $0x600] sm:$0xff]  ;;  %v265_v25 = vld [vmem:[%s10723_s1 + $0x768] sm:$0xff]  ;;  %v263_v48 = vld [vmem:[%s10723_s1 + $0x758] sm:$0xff] }
  0x50   :  { %4773 = vmatprep.subr.bf16.mxu1 %v4772_v58  ;;  %v226_v58 = vld [vmem:[%s10723_s1 + $0x630] sm:$0xff]  ;;  %v4010_v0 = vpack.c.bf16 %v224_v55, %v220_v54  ;;  %v264_v54 = vld [vmem:[%s10723_s1 + $0x760] sm:$0xff]  ;;  %v299_v37 = vld [vmem:[%s10723_s1 + $0x878] sm:$0xff] }
  0x51   :  { %v262_v55 = vld [vmem:[%s10723_s1 + $0x750] sm:$0xff] }
  0x52   :  { %3991 = vmatpush1.bf16.msra.mxu0 %v3990_v1  ;;  %v4794_v1 = vpack.c.bf16 %v226_v58, %v222_v56  ;;  %v4812_v56 = vpack.c.bf16 %v267_v49, %v263_v48  ;;  %v269_v58 = vld [vmem:[%s10723_s1 + $0x788] sm:$0xff]  ;;  %v303_v49 = vld [vmem:[%s10723_s1 + $0x898] sm:$0xff] }
  0x53   :  { %4775 = vmatpush1.bf16.msra.mxu1 %v4774_v2  ;;  %3993 = vmatprep.subr.bf16.mxu0 %v3992_v3  ;;  %v4012_v2 = vpack.c.bf16 %v233_v60, %v229_v59  ;;  %v228_v3 = vld [vmem:[%s10723_s1 + $0x640] sm:$0xff]  ;;  %v273_v59 = vld [vmem:[%s10723_s1 + $0x7a8] sm:$0xff]  ;;  %v271_v60 = vld [vmem:[%s10723_s1 + $0x798] sm:$0xff] }
  0x54   :  { %4777 = vmatprep.subr.bf16.mxu1 %v4776_v7  ;;  %v234_v7 = vld [vmem:[%s10723_s1 + $0x670] sm:$0xff]  ;;  %v4014_v13 = vpack.c.bf16 %v232_v4, %v228_v3  ;;  %v272_v3 = vld [vmem:[%s10723_s1 + $0x7a0] sm:$0xff]  ;;  %v305_v48 = vld [vmem:[%s10723_s1 + $0x8a8] sm:$0xff] }
  0x55   :  { %v270_v4 = vld [vmem:[%s10723_s1 + $0x790] sm:$0xff] }
  0x56   :  { %3995 = vmatpush1.bf16.msra.mxu0 %v3994_v14  ;;  %v4798_v14 = vpack.c.bf16 %v234_v7, %v230_v5  ;;  %v4816_v5 = vpack.c.bf16 %v275_v62, %v271_v60  ;;  %v277_v7 = vld [vmem:[%s10723_s1 + $0x7c8] sm:$0xff]  ;;  %v311_v62 = vld [vmem:[%s10723_s1 + $0x8d8] sm:$0xff] }
  0x57   :  { %4779 = vmatpush1.bf16.msra.mxu1 %v4778_v15  ;;  %3997 = vmatprep.subr.bf16.mxu0 %v3996_v16  ;;  %v4016_v15 = vpack.c.bf16 %v241_v9, %v237_v8  ;;  %v236_v16 = vld [vmem:[%s10723_s1 + $0x680] sm:$0xff]  ;;  %v281_v8 = vld [vmem:[%s10723_s1 + $0x7e8] sm:$0xff]  ;;  %v279_v9 = vld [vmem:[%s10723_s1 + $0x7d8] sm:$0xff] }
  0x58   :  { %4781 = vmatprep.subr.bf16.mxu1 %v4780_v20  ;;  %v242_v20 = vld [vmem:[%s10723_s1 + $0x6b0] sm:$0xff]  ;;  %v4018_v27 = vpack.c.bf16 %v240_v17, %v236_v16  ;;  %v280_v16 = vld [vmem:[%s10723_s1 + $0x7e0] sm:$0xff]  ;;  %v313_v60 = vld [vmem:[%s10723_s1 + $0x8e8] sm:$0xff] }
  0x59   :  { %v278_v17 = vld [vmem:[%s10723_s1 + $0x7d0] sm:$0xff] }
  0x5a   :  { %3999 = vmatpush1.bf16.msra.mxu0 %v3998_v28  ;;  %v4802_v28 = vpack.c.bf16 %v242_v20, %v238_v18  ;;  %v4820_v18 = vpack.c.bf16 %v283_v10, %v279_v9  ;;  %v285_v20 = vld [vmem:[%s10723_s1 + $0x808] sm:$0xff]  ;;  %v319_v10 = vld [vmem:[%s10723_s1 + $0x918] sm:$0xff] }
  0x5b   :  { %4783 = vmatpush1.bf16.msra.mxu1 %v4782_v29  ;;  %4001 = vmatprep.subr.bf16.mxu0 %v4000_v30  ;;  %v4020_v29 = vpack.c.bf16 %v249_v22, %v245_v21  ;;  %v244_v30 = vld [vmem:[%s10723_s1 + $0x6c0] sm:$0xff]  ;;  %v289_v21 = vld [vmem:[%s10723_s1 + $0x828] sm:$0xff]  ;;  %v287_v22 = vld [vmem:[%s10723_s1 + $0x818] sm:$0xff] }
  0x5c   :  { %4785 = vmatprep.subr.bf16.mxu1 %v4784_v34  ;;  %v250_v34 = vld [vmem:[%s10723_s1 + $0x6f0] sm:$0xff]  ;;  %v4022_v39 = vpack.c.bf16 %v248_v31, %v244_v30  ;;  %v288_v30 = vld [vmem:[%s10723_s1 + $0x820] sm:$0xff]  ;;  %v321_v9 = vld [vmem:[%s10723_s1 + $0x928] sm:$0xff] }
  0x5d   :  { %v286_v31 = vld [vmem:[%s10723_s1 + $0x810] sm:$0xff] }
  0x5e   :  { %4003 = vmatpush1.bf16.msra.mxu0 %v4002_v40  ;;  %v4806_v40 = vpack.c.bf16 %v250_v34, %v246_v32  ;;  %v4824_v32 = vpack.c.bf16 %v291_v23, %v287_v22  ;;  %v293_v34 = vld [vmem:[%s10723_s1 + $0x848] sm:$0xff]  ;;  %v327_v23 = vld [vmem:[%s10723_s1 + $0x958] sm:$0xff] }
  0x5f   :  { %4787 = vmatpush1.bf16.msra.mxu1 %v4786_v41  ;;  %4005 = vmatprep.subr.bf16.mxu0 %v4004_v42  ;;  %v4024_v41 = vpack.c.bf16 %v257_v36, %v253_v35  ;;  %v252_v42 = vld [vmem:[%s10723_s1 + $0x700] sm:$0xff]  ;;  %v297_v35 = vld [vmem:[%s10723_s1 + $0x868] sm:$0xff]  ;;  %v295_v36 = vld [vmem:[%s10723_s1 + $0x858] sm:$0xff] }
  0x60   :  { %4789 = vmatprep.subr.bf16.mxu1 %v4788_v46  ;;  %v258_v46 = vld [vmem:[%s10723_s1 + $0x730] sm:$0xff]  ;;  %v4026_v50 = vpack.c.bf16 %v256_v43, %v252_v42  ;;  %v292_v42 = vld [vmem:[%s10723_s1 + $0x840] sm:$0xff]  ;;  %v329_v22 = vld [vmem:[%s10723_s1 + $0x968] sm:$0xff] }
  0x61   :  { %v296_v43 = vld [vmem:[%s10723_s1 + $0x860] sm:$0xff] }
  0x62   :  { %4007 = vmatpush1.bf16.msra.mxu0 %v4006_v51  ;;  %v4810_v51 = vpack.c.bf16 %v258_v46, %v254_v44  ;;  %v294_v44 = vld [vmem:[%s10723_s1 + $0x850] sm:$0xff]  ;;  %v4828_v46 = vpack.c.bf16 %v299_v37, %v295_v36  ;;  %v337_v36 = vld [vmem:[%s10723_s1 + $0x9a8] sm:$0xff]  ;;  %v335_v37 = vld [vmem:[%s10723_s1 + $0x998] sm:$0xff] }
  0x63   :  { %4791 = vmatpush1.bf16.msra.mxu1 %v4790_v52  ;;  %4009 = vmatprep.subr.bf16.mxu0 %v4008_v53  ;;  %v4028_v52 = vpack.c.bf16 %v265_v25, %v261_v47  ;;  %v260_v53 = vld [vmem:[%s10723_s1 + $0x740] sm:$0xff]  ;;  %v298_v47 = vld [vmem:[%s10723_s1 + $0x870] sm:$0xff]  ;;  %v301_v25 = vld [vmem:[%s10723_s1 + $0x888] sm:$0xff] }
  0x64   :  { %4793 = vmatprep.subr.bf16.mxu1 %v4792_v57  ;;  %v266_v57 = vld [vmem:[%s10723_s1 + $0x770] sm:$0xff]  ;;  %v4030_v63 = vpack.c.bf16 %v264_v54, %v260_v53  ;;  %v4830_v53 = vpack.c.bf16 %v298_v47, %v294_v44  ;;  %v4048_v54 = vpack.c.bf16 %v305_v48, %v301_v25  ;;  %v336_v44 = vld [vmem:[%s10723_s1 + $0x9a0] sm:$0xff]  ;;  %v341_v48 = vld [vmem:[%s10723_s1 + $0x9c8] sm:$0xff] }
  0x65   :  { %v338_v25 = vld [vmem:[%s10723_s1 + $0x9b0] sm:$0xff] }
  0x66   :  { %4011 = vmatpush1.bf16.msra.mxu0 %v4010_v0  ;;  %v4814_v0 = vpack.c.bf16 %v266_v57, %v262_v55  ;;  %v300_v55 = vld [vmem:[%s10723_s1 + $0x880] sm:$0xff]  ;;  %v302_v57 = vld [vmem:[%s10723_s1 + $0x890] sm:$0xff] }
  0x67   :  { %4795 = vmatpush1.bf16.msra.mxu1 %v4794_v1  ;;  %4013 = vmatprep.subr.bf16.mxu0 %v4012_v2  ;;  %v4032_v1 = vpack.c.bf16 %v273_v59, %v269_v58  ;;  %v268_v2 = vld [vmem:[%s10723_s1 + $0x780] sm:$0xff]  ;;  %v309_v59 = vld [vmem:[%s10723_s1 + $0x8c8] sm:$0xff] }
  0x68   :  { %4797 = vmatprep.subr.bf16.mxu1 %v4796_v6  ;;  %v274_v6 = vld [vmem:[%s10723_s1 + $0x7b0] sm:$0xff]  ;;  %v4034_v12 = vpack.c.bf16 %v272_v3, %v268_v2  ;;  %v4052_v2 = vpack.c.bf16 %v313_v60, %v309_v59  ;;  %v308_v3 = vld [vmem:[%s10723_s1 + $0x8c0] sm:$0xff]  ;;  %v349_v59 = vld [vmem:[%s10723_s1 + $0xa08] sm:$0xff] }
  0x69   :  { %v353_v60 = vld [vmem:[%s10723_s1 + $0xa28] sm:$0xff] }
  0x6a   :  { %4015 = vmatpush1.bf16.msra.mxu0 %v4014_v13  ;;  %v4818_v13 = vpack.c.bf16 %v274_v6, %v270_v4  ;;  %v312_v4 = vld [vmem:[%s10723_s1 + $0x8e0] sm:$0xff] }
  0x6b   :  { %4799 = vmatpush1.bf16.msra.mxu1 %v4798_v14  ;;  %4017 = vmatprep.subr.bf16.mxu0 %v4016_v15  ;;  %v4036_v14 = vpack.c.bf16 %v281_v8, %v277_v7  ;;  %v276_v15 = vld [vmem:[%s10723_s1 + $0x7c0] sm:$0xff]  ;;  %v314_v7 = vld [vmem:[%s10723_s1 + $0x8f0] sm:$0xff]  ;;  %v317_v8 = vld [vmem:[%s10723_s1 + $0x908] sm:$0xff] }
  0x6c   :  { %4801 = vmatprep.subr.bf16.mxu1 %v4800_v19  ;;  %v282_v19 = vld [vmem:[%s10723_s1 + $0x7f0] sm:$0xff]  ;;  %v4038_v26 = vpack.c.bf16 %v280_v16, %v276_v15  ;;  %v4056_v15 = vpack.c.bf16 %v321_v9, %v317_v8  ;;  %v316_v16 = vld [vmem:[%s10723_s1 + $0x900] sm:$0xff]  ;;  %v357_v8 = vld [vmem:[%s10723_s1 + $0xa48] sm:$0xff] }
  0x6d   :  { %v361_v9 = vld [vmem:[%s10723_s1 + $0xa68] sm:$0xff] }
  0x6e   :  { %4019 = vmatpush1.bf16.msra.mxu0 %v4018_v27  ;;  %v4822_v27 = vpack.c.bf16 %v282_v19, %v278_v17  ;;  %v320_v17 = vld [vmem:[%s10723_s1 + $0x920] sm:$0xff] }
  0x6f   :  { %4803 = vmatpush1.bf16.msra.mxu1 %v4802_v28  ;;  %4021 = vmatprep.subr.bf16.mxu0 %v4020_v29  ;;  %v4040_v28 = vpack.c.bf16 %v289_v21, %v285_v20  ;;  %v284_v29 = vld [vmem:[%s10723_s1 + $0x800] sm:$0xff]  ;;  %v322_v20 = vld [vmem:[%s10723_s1 + $0x930] sm:$0xff]  ;;  %v325_v21 = vld [vmem:[%s10723_s1 + $0x948] sm:$0xff] }
  0x70   :  { %4805 = vmatprep.subr.bf16.mxu1 %v4804_v33  ;;  %v290_v33 = vld [vmem:[%s10723_s1 + $0x830] sm:$0xff]  ;;  %v4042_v38 = vpack.c.bf16 %v288_v30, %v284_v29  ;;  %v4060_v29 = vpack.c.bf16 %v329_v22, %v325_v21  ;;  %v324_v30 = vld [vmem:[%s10723_s1 + $0x940] sm:$0xff]  ;;  %v365_v21 = vld [vmem:[%s10723_s1 + $0xa88] sm:$0xff] }
  0x71   :  { %v369_v22 = vld [vmem:[%s10723_s1 + $0xaa8] sm:$0xff] }
  0x72   :  { %4023 = vmatpush1.bf16.msra.mxu0 %v4022_v39  ;;  %v6494_v39 = vld [vmem:[%s10722_s0 + $0x8] sm:$0xff] }
  0x73   :  { %4807 = vmatpush1.bf16.msra.mxu1 %v4806_v40  ;;  %4025 = vmatprep.subr.bf16.mxu0 %v4024_v41  ;;  %v4826_v40 = vpack.c.bf16 %v290_v33, %v286_v31  ;;  %v4044_v41 = vpack.c.bf16 %v297_v35, %v293_v34  ;;  %v328_v31 = vld [vmem:[%s10723_s1 + $0x960] sm:$0xff]  ;;  %v330_v34 = vld [vmem:[%s10723_s1 + $0x970] sm:$0xff]  ;;  %v333_v35 = vld [vmem:[%s10723_s1 + $0x988] sm:$0xff] }
  0x74   :  { %4809 = vmatprep.subr.bf16.mxu1 %v4808_v45  ;;  %v6507_v45 = vrot.slane %v6494_v39, %v5941_v11 }
  0x76   :  { %4027 = vmatpush1.bf16.msra.mxu0 %v4026_v50  ;;  %v307_v50 = vld [vmem:[%s10723_s1 + $0x8b8] sm:$0xff] }
  0x77   :  { %4811 = vmatpush1.bf16.msra.mxu1 %v4810_v51  ;;  %4029 = vmatprep.subr.bf16.mxu0 %v4028_v52  ;;  %v1657_v51 = vcombine.high %v6507_v45, %v6507_v45  ;;  %v4046_v52 = vpack.c.bf16 %v296_v43, %v292_v42  ;;  %v4832_v58 = vpack.c.bf16 %v307_v50, %v303_v49  ;;  %v332_v43 = vld [vmem:[%s10723_s1 + $0x980] sm:$0xff]  ;;  %v345_v49 = vld [vmem:[%s10723_s1 + $0x9e8] sm:$0xff]  ;;  %v343_v50 = vld [vmem:[%s10723_s1 + $0x9d8] sm:$0xff] }
  0x78   :  { %4813 = vmatprep.subr.bf16.mxu1 %v4812_v56  ;;  %v304_v56 = vld [vmem:[%s10723_s1 + $0x8a0] sm:$0xff]  ;;  %v4064_v42 = vpack.c.bf16 %v337_v36, %v333_v35  ;;  %v373_v35 = vld [vmem:[%s10723_s1 + $0xac8] sm:$0xff] }
  0x79   :  { %v377_v36 = vld [vmem:[%s10723_s1 + $0xae8] sm:$0xff] }
  0x7a   :  { %4031 = vmatpush1.bf16.msra.mxu0 %v4030_v63  ;;  %v315_v63 = vld [vmem:[%s10723_s1 + $0x8f8] sm:$0xff] }
  0x7b   :  { %4815 = vmatpush1.bf16.msra.mxu1 %v4814_v0  ;;  %4033 = vmatprep.subr.bf16.mxu0 %v4032_v1  ;;  %v4050_v0 = vpack.c.bf16 %v304_v56, %v300_v55  ;;  %v4836_v6 = vpack.c.bf16 %v315_v63, %v311_v62  ;;  %v340_v55 = vld [vmem:[%s10723_s1 + $0x9c0] sm:$0xff]  ;;  %v351_v62 = vld [vmem:[%s10723_s1 + $0xa18] sm:$0xff] }
  0x7c   :  { %4817 = vmatprep.subr.bf16.mxu1 %v4816_v5  ;;  %v310_v5 = vld [vmem:[%s10723_s1 + $0x8d0] sm:$0xff]  ;;  %v344_v56 = vld [vmem:[%s10723_s1 + $0x9e0] sm:$0xff]  ;;  %v355_v63 = vld [vmem:[%s10723_s1 + $0xa38] sm:$0xff] }
  0x7e   :  { %4035 = vmatpush1.bf16.msra.mxu0 %v4034_v12  ;;  %v323_v12 = vld [vmem:[%s10723_s1 + $0x938] sm:$0xff] }
  0x7f   :  { %4819 = vmatpush1.bf16.msra.mxu1 %v4818_v13  ;;  %4037 = vmatprep.subr.bf16.mxu0 %v4036_v14  ;;  %v4054_v13 = vpack.c.bf16 %v312_v4, %v308_v3  ;;  %v4838_v14 = vpack.c.bf16 %v314_v7, %v310_v5  ;;  %v4840_v19 = vpack.c.bf16 %v323_v12, %v319_v10  ;;  %v348_v3 = vld [vmem:[%s10723_s1 + $0xa00] sm:$0xff]  ;;  %v350_v5 = vld [vmem:[%s10723_s1 + $0xa10] sm:$0xff]  ;;  %v359_v10 = vld [vmem:[%s10723_s1 + $0xa58] sm:$0xff] }
  0x80   :  { %4821 = vmatprep.subr.bf16.mxu1 %v4820_v18  ;;  %v318_v18 = vld [vmem:[%s10723_s1 + $0x910] sm:$0xff]  ;;  %v352_v4 = vld [vmem:[%s10723_s1 + $0xa20] sm:$0xff]  ;;  %v363_v12 = vld [vmem:[%s10723_s1 + $0xa78] sm:$0xff] }
  0x81   :  { %v354_v7 = vld [vmem:[%s10723_s1 + $0xa30] sm:$0xff] }
  0x82   :  { %4039 = vmatpush1.bf16.msra.mxu0 %v4038_v26  ;;  %v331_v26 = vld [vmem:[%s10723_s1 + $0x978] sm:$0xff] }
  0x83   :  { %4823 = vmatpush1.bf16.msra.mxu1 %v4822_v27  ;;  %4041 = vmatprep.subr.bf16.mxu0 %v4040_v28  ;;  %v4058_v27 = vpack.c.bf16 %v320_v17, %v316_v16  ;;  %v4842_v28 = vpack.c.bf16 %v322_v20, %v318_v18  ;;  %v4844_v33 = vpack.c.bf16 %v331_v26, %v327_v23  ;;  %v356_v16 = vld [vmem:[%s10723_s1 + $0xa40] sm:$0xff]  ;;  %v358_v18 = vld [vmem:[%s10723_s1 + $0xa50] sm:$0xff]  ;;  %v367_v23 = vld [vmem:[%s10723_s1 + $0xa98] sm:$0xff] }
  0x84   :  { %4825 = vmatprep.subr.bf16.mxu1 %v4824_v32  ;;  %v326_v32 = vld [vmem:[%s10723_s1 + $0x950] sm:$0xff]  ;;  %v360_v17 = vld [vmem:[%s10723_s1 + $0xa60] sm:$0xff]  ;;  %v371_v26 = vld [vmem:[%s10723_s1 + $0xab8] sm:$0xff] }
  0x85   :  { %1897 = vmatmul.mubr.f32.vlgmr.msra.gmra.mrb[0].mxu0 %v6095_v24  ;;  %v362_v20 = vld [vmem:[%s10723_s1 + $0xa70] sm:$0xff] }
  0x86   :  { %4043 = vmatpush1.bf16.msra.mxu0 %v4042_v38  ;;  %2820 = vmatmul.mubr.f32.vlgmr.msra.gmra.mrb[0].mxu1 %v6095_v24  ;;  %v306_v24 = vld [vmem:[%s10723_s1 + $0x8b0] sm:$0xff]  ;;  %v339_v38 = vld [vmem:[%s10723_s1 + $0x9b8] sm:$0xff] }
  0x87   :  { %4827 = vmatpush1.bf16.msra.mxu1 %v4826_v40  ;;  %4045 = vmatprep.subr.bf16.mxu0 %v4044_v41  ;;  %v4834_v1 = vpack.c.bf16 %v306_v24, %v302_v57  ;;  %v4062_v40 = vpack.c.bf16 %v328_v31, %v324_v30  ;;  %v4846_v41 = vpack.c.bf16 %v330_v34, %v326_v32  ;;  %v342_v57 = vld [vmem:[%s10723_s1 + $0x9d0] sm:$0xff]  ;;  %v364_v30 = vld [vmem:[%s10723_s1 + $0xa80] sm:$0xff] }
  0x88   :  { %4829 = vmatprep.subr.bf16.mxu1 %v4828_v46  ;;  %1967 = vmatprep.mubr.f32.mxu0 %v1657_v51  ;;  %v334_v46 = vld [vmem:[%s10723_s1 + $0x990] sm:$0xff]  ;;  %v4848_v47 = vpack.c.bf16 %v339_v38, %v335_v37  ;;  %v368_v31 = vld [vmem:[%s10723_s1 + $0xaa0] sm:$0xff]  ;;  %v375_v37 = vld [vmem:[%s10723_s1 + $0xad8] sm:$0xff] }
  0x89   :  { %2890 = vmatprep.mubr.f32.mxu1 %v1657_v51  ;;  %v347_v51 = vld [vmem:[%s10723_s1 + $0x9f8] sm:$0xff]  ;;  %v346_v24 = vld [vmem:[%s10723_s1 + $0x9f0] sm:$0xff] }
  0x8a   :  { %4047 = vmatpush1.bf16.msra.mxu0 %v4046_v52  ;;  %v4066_v52 = vpack.c.bf16 %v336_v44, %v332_v43  ;;  %v366_v32 = vld [vmem:[%s10723_s1 + $0xa90] sm:$0xff]  ;;  %v379_v38 = vld [vmem:[%s10723_s1 + $0xaf8] sm:$0xff]  ;;  %v372_v43 = vld [vmem:[%s10723_s1 + $0xac0] sm:$0xff] }
  0x8b   :  { %4831 = vmatpush1.bf16.msra.mxu1 %v4830_v53  ;;  %4049 = vmatprep.subr.bf16.mxu0 %v4048_v54  ;;  %v4850_v53 = vpack.c.bf16 %v338_v25, %v334_v46  ;;  %v4068_v54 = vpack.c.bf16 %v345_v49, %v341_v48  ;;  %v370_v34 = vld [vmem:[%s10723_s1 + $0xab0] sm:$0xff]  ;;  %v376_v44 = vld [vmem:[%s10723_s1 + $0xae0] sm:$0xff]  ;;  %v381_v48 = vld [vmem:[%s10723_s1 + $0xb08] sm:$0xff] }
  0x8c   :  { %4833 = vmatprep.subr.bf16.mxu1 %v4832_v58  ;;  %v4852_v58 = vpack.c.bf16 %v347_v51, %v343_v50  ;;  %v374_v46 = vld [vmem:[%s10723_s1 + $0xad0] sm:$0xff]  ;;  %v385_v49 = vld [vmem:[%s10723_s1 + $0xb28] sm:$0xff]  ;;  %v383_v50 = vld [vmem:[%s10723_s1 + $0xb18] sm:$0xff] }
  0x8d   :  { %v378_v25 = vld [vmem:[%s10723_s1 + $0xaf0] sm:$0xff]  ;;  %v387_v51 = vld [vmem:[%s10723_s1 + $0xb38] sm:$0xff] }
  0x8e   :  { %4051 = vmatpush1.bf16.msra.mxu0 %v4050_v0  ;;  %v4070_v0 = vpack.c.bf16 %v344_v56, %v340_v55  ;;  %v380_v55 = vld [vmem:[%s10723_s1 + $0xb00] sm:$0xff] }
  0x8f   :  { %4835 = vmatpush1.bf16.msra.mxu1 %v4834_v1  ;;  %4053 = vmatprep.subr.bf16.mxu0 %v4052_v2  ;;  %v4854_v1 = vpack.c.bf16 %v346_v24, %v342_v57  ;;  %v4072_v2 = vpack.c.bf16 %v353_v60, %v349_v59  ;;  %v384_v56 = vld [vmem:[%s10723_s1 + $0xb20] sm:$0xff]  ;;  %v382_v57 = vld [vmem:[%s10723_s1 + $0xb10] sm:$0xff]  ;;  %v389_v59 = vld [vmem:[%s10723_s1 + $0xb48] sm:$0xff] }
  0x90   :  { %4837 = vmatprep.subr.bf16.mxu1 %v4836_v6  ;;  %v4856_v6 = vpack.c.bf16 %v355_v63, %v351_v62  ;;  %v386_v24 = vld [vmem:[%s10723_s1 + $0xb30] sm:$0xff]  ;;  %v393_v60 = vld [vmem:[%s10723_s1 + $0xb68] sm:$0xff]  ;;  %v391_v62 = vld [vmem:[%s10723_s1 + $0xb58] sm:$0xff] }
  0x91   :  { %v395_v63 = vld [vmem:[%s10723_s1 + $0xb78] sm:$0xff] }
  0x92   :  { %4055 = vmatpush1.bf16.msra.mxu0 %v4054_v13  ;;  %v4074_v13 = vpack.c.bf16 %v352_v4, %v348_v3  ;;  %v388_v3 = vld [vmem:[%s10723_s1 + $0xb40] sm:$0xff] }
  0x93   :  { %4839 = vmatpush1.bf16.msra.mxu1 %v4838_v14  ;;  %4057 = vmatprep.subr.bf16.mxu0 %v4056_v15  ;;  %v4858_v14 = vpack.c.bf16 %v354_v7, %v350_v5  ;;  %v4076_v15 = vpack.c.bf16 %v361_v9, %v357_v8  ;;  %v392_v4 = vld [vmem:[%s10723_s1 + $0xb60] sm:$0xff]  ;;  %v390_v5 = vld [vmem:[%s10723_s1 + $0xb50] sm:$0xff]  ;;  %v397_v8 = vld [vmem:[%s10723_s1 + $0xb88] sm:$0xff] }
  0x94   :  { %4841 = vmatprep.subr.bf16.mxu1 %v4840_v19  ;;  %v4860_v19 = vpack.c.bf16 %v363_v12, %v359_v10  ;;  %v394_v7 = vld [vmem:[%s10723_s1 + $0xb70] sm:$0xff]  ;;  %v401_v9 = vld [vmem:[%s10723_s1 + $0xba8] sm:$0xff]  ;;  %v399_v10 = vld [vmem:[%s10723_s1 + $0xb98] sm:$0xff] }
  0x95   :  { %v403_v12 = vld [vmem:[%s10723_s1 + $0xbb8] sm:$0xff] }
  0x96   :  { %4059 = vmatpush1.bf16.msra.mxu0 %v4058_v27  ;;  %v4078_v27 = vpack.c.bf16 %v360_v17, %v356_v16  ;;  %v396_v16 = vld [vmem:[%s10723_s1 + $0xb80] sm:$0xff] }
  0x97   :  { %4843 = vmatpush1.bf16.msra.mxu1 %v4842_v28  ;;  %4061 = vmatprep.subr.bf16.mxu0 %v4060_v29  ;;  %v4862_v28 = vpack.c.bf16 %v362_v20, %v358_v18  ;;  %v4080_v29 = vpack.c.bf16 %v369_v22, %v365_v21  ;;  %v400_v17 = vld [vmem:[%s10723_s1 + $0xba0] sm:$0xff]  ;;  %v398_v18 = vld [vmem:[%s10723_s1 + $0xb90] sm:$0xff]  ;;  %v405_v21 = vld [vmem:[%s10723_s1 + $0xbc8] sm:$0xff] }
  0x98   :  { %4845 = vmatprep.subr.bf16.mxu1 %v4844_v33  ;;  %v4864_v33 = vpack.c.bf16 %v371_v26, %v367_v23  ;;  %v402_v20 = vld [vmem:[%s10723_s1 + $0xbb0] sm:$0xff]  ;;  %v409_v22 = vld [vmem:[%s10723_s1 + $0xbe8] sm:$0xff]  ;;  %v407_v23 = vld [vmem:[%s10723_s1 + $0xbd8] sm:$0xff] }
  0x99   :  { %v411_v26 = vld [vmem:[%s10723_s1 + $0xbf8] sm:$0xff] }
  0x9a   :  { %4063 = vmatpush1.bf16.msra.mxu0 %v4062_v40  ;;  %v4082_v40 = vpack.c.bf16 %v368_v31, %v364_v30  ;;  %v404_v30 = vld [vmem:[%s10723_s1 + $0xbc0] sm:$0xff] }
  0x9b   :  { %4847 = vmatpush1.bf16.msra.mxu1 %v4846_v41  ;;  %4065 = vmatprep.subr.bf16.mxu0 %v4064_v42  ;;  %v4866_v41 = vpack.c.bf16 %v370_v34, %v366_v32  ;;  %v4084_v42 = vpack.c.bf16 %v377_v36, %v373_v35  ;;  %v408_v31 = vld [vmem:[%s10723_s1 + $0xbe0] sm:$0xff]  ;;  %v406_v32 = vld [vmem:[%s10723_s1 + $0xbd0] sm:$0xff]  ;;  %v413_v35 = vld [vmem:[%s10723_s1 + $0xc08] sm:$0xff] }
  0x9c   :  { %4849 = vmatprep.subr.bf16.mxu1 %v4848_v47  ;;  %v4868_v47 = vpack.c.bf16 %v379_v38, %v375_v37  ;;  %v410_v34 = vld [vmem:[%s10723_s1 + $0xbf0] sm:$0xff]  ;;  %v417_v36 = vld [vmem:[%s10723_s1 + $0xc28] sm:$0xff]  ;;  %v1642_v37 = vcombine.high %v6494_v39, %v6494_v39  ;;  %v415_v38 = vld [vmem:[%s10723_s1 + $0xc18] sm:$0xff] }
  0x9d   :  { %v416_v39 = vld [vmem:[%s10723_s1 + $0xc20] sm:$0xff] }
  0x9e   :  { %4067 = vmatpush1.bf16.msra.mxu0 %v4066_v52  ;;  %v4086_v52 = vpack.c.bf16 %v376_v44, %v372_v43  ;;  %v4104_v43 = vpack.c.bf16 %v417_v36, %v413_v35  ;;  %v412_v44 = vld [vmem:[%s10723_s1 + $0xc00] sm:$0xff]  ;;  %v450_v35 = vld [vmem:[%s10723_s1 + $0xd30] sm:$0xff]  ;;  %v453_v36 = vld [vmem:[%s10723_s1 + $0xd48] sm:$0xff] }
  0x9f   :  { %4851 = vmatpush1.bf16.msra.mxu1 %v4850_v53  ;;  %4069 = vmatprep.subr.bf16.mxu0 %v4068_v54  ;;  %v4870_v53 = vpack.c.bf16 %v378_v25, %v374_v46  ;;  %v4088_v54 = vpack.c.bf16 %v385_v49, %v381_v48  ;;  %v414_v46 = vld [vmem:[%s10723_s1 + $0xc10] sm:$0xff]  ;;  %v421_v48 = vld [vmem:[%s10723_s1 + $0xc48] sm:$0xff] }
  0xa0   :  { %4853 = vmatprep.subr.bf16.mxu1 %v4852_v58  ;;  %v4872_v58 = vpack.c.bf16 %v387_v51, %v383_v50  ;;  %v418_v25 = vld [vmem:[%s10723_s1 + $0xc30] sm:$0xff]  ;;  %v425_v49 = vld [vmem:[%s10723_s1 + $0xc68] sm:$0xff]  ;;  %v6885_v50 = vrot.slane %v1642_v37, %v5941_v11  ;;  %v423_v51 = vld [vmem:[%s10723_s1 + $0xc58] sm:$0xff] }
  0xa1   :  { %v457_v37 = vld [vmem:[%s10723_s1 + $0xd68] sm:$0xff] }
  0xa2   :  { %4071 = vmatpush1.bf16.msra.mxu0 %v4070_v0  ;;  %v4090_v0 = vpack.c.bf16 %v384_v56, %v380_v55  ;;  %v4108_v55 = vpack.c.bf16 %v425_v49, %v421_v48  ;;  %v420_v56 = vld [vmem:[%s10723_s1 + $0xc40] sm:$0xff]  ;;  %v461_v48 = vld [vmem:[%s10723_s1 + $0xd88] sm:$0xff] }
  0xa3   :  { %4855 = vmatpush1.bf16.msra.mxu1 %v4854_v1  ;;  %4073 = vmatprep.subr.bf16.mxu0 %v4072_v2  ;;  %v4874_v1 = vpack.c.bf16 %v386_v24, %v382_v57  ;;  %v4092_v2 = vpack.c.bf16 %v393_v60, %v389_v59  ;;  %v424_v57 = vld [vmem:[%s10723_s1 + $0xc60] sm:$0xff]  ;;  %v426_v59 = vld [vmem:[%s10723_s1 + $0xc70] sm:$0xff]  ;;  %v429_v60 = vld [vmem:[%s10723_s1 + $0xc88] sm:$0xff] }
  0xa4   :  { %4857 = vmatprep.subr.bf16.mxu1 %v4856_v6  ;;  %v4876_v6 = vpack.c.bf16 %v395_v63, %v391_v62  ;;  %v433_v62 = vld [vmem:[%s10723_s1 + $0xca8] sm:$0xff]  ;;  %v1658_v63 = vcombine.high %v6885_v50, %v6885_v50 }
  0xa5   :  { %v465_v49 = vld [vmem:[%s10723_s1 + $0xda8] sm:$0xff] }
  0xa6   :  { %4075 = vmatpush1.bf16.msra.mxu0 %v4074_v13  ;;  %v4094_v13 = vpack.c.bf16 %v392_v4, %v388_v3  ;;  %v4112_v4 = vpack.c.bf16 %v433_v62, %v429_v60  ;;  %v469_v60 = vld [vmem:[%s10723_s1 + $0xdc8] sm:$0xff] }
  0xa7   :  { %4859 = vmatpush1.bf16.msra.mxu1 %v4858_v14  ;;  %4077 = vmatprep.subr.bf16.mxu0 %v4076_v15  ;;  %v4878_v14 = vpack.c.bf16 %v394_v7, %v390_v5  ;;  %v4096_v15 = vpack.c.bf16 %v401_v9, %v397_v8  ;;  %v428_v5 = vld [vmem:[%s10723_s1 + $0xc80] sm:$0xff]  ;;  %v430_v7 = vld [vmem:[%s10723_s1 + $0xc90] sm:$0xff]  ;;  %v437_v9 = vld [vmem:[%s10723_s1 + $0xcc8] sm:$0xff] }
  0xa8   :  { %4861 = vmatprep.subr.bf16.mxu1 %v4860_v19  ;;  %v4880_v19 = vpack.c.bf16 %v403_v12, %v399_v10  ;;  %v441_v10 = vld [vmem:[%s10723_s1 + $0xce8] sm:$0xff]  ;;  %v439_v12 = vld [vmem:[%s10723_s1 + $0xcd8] sm:$0xff] }
  0xa9   :  { %v473_v62 = vld [vmem:[%s10723_s1 + $0xde8] sm:$0xff] }
  0xaa   :  { %4079 = vmatpush1.bf16.msra.mxu0 %v4078_v27  ;;  %v4098_v27 = vpack.c.bf16 %v400_v17, %v396_v16  ;;  %v4116_v16 = vpack.c.bf16 %v441_v10, %v437_v9  ;;  %v436_v17 = vld [vmem:[%s10723_s1 + $0xcc0] sm:$0xff]  ;;  %v481_v9 = vld [vmem:[%s10723_s1 + $0xe28] sm:$0xff]  ;;  %v479_v10 = vld [vmem:[%s10723_s1 + $0xe18] sm:$0xff] }
  0xab   :  { %4863 = vmatpush1.bf16.msra.mxu1 %v4862_v28  ;;  %4081 = vmatprep.subr.bf16.mxu0 %v4080_v29  ;;  %v4882_v28 = vpack.c.bf16 %v402_v20, %v398_v18  ;;  %v4100_v29 = vpack.c.bf16 %v409_v22, %v405_v21  ;;  %v440_v18 = vld [vmem:[%s10723_s1 + $0xce0] sm:$0xff]  ;;  %v442_v21 = vld [vmem:[%s10723_s1 + $0xcf0] sm:$0xff]  ;;  %v445_v22 = vld [vmem:[%s10723_s1 + $0xd08] sm:$0xff] }
  0xac   :  { %4865 = vmatprep.subr.bf16.mxu1 %v4864_v33  ;;  %v4884_v33 = vpack.c.bf16 %v411_v26, %v407_v23  ;;  %v449_v23 = vld [vmem:[%s10723_s1 + $0xd28] sm:$0xff]  ;;  %v447_v26 = vld [vmem:[%s10723_s1 + $0xd18] sm:$0xff] }
  0xae   :  { %4083 = vmatpush1.bf16.msra.mxu0 %v4082_v40  ;;  %v419_v40 = vld [vmem:[%s10723_s1 + $0xc38] sm:$0xff] }
  0xaf   :  { %4867 = vmatpush1.bf16.msra.mxu1 %v4866_v41  ;;  %4085 = vmatprep.subr.bf16.mxu0 %v4084_v42  ;;  %v4102_v41 = vpack.c.bf16 %v408_v31, %v404_v30  ;;  %v4886_v42 = vpack.c.bf16 %v410_v34, %v406_v32  ;;  %v4120_v30 = vpack.c.bf16 %v449_v23, %v445_v22  ;;  %v444_v31 = vld [vmem:[%s10723_s1 + $0xd00] sm:$0xff]  ;;  %v489_v22 = vld [vmem:[%s10723_s1 + $0xe68] sm:$0xff]  ;;  %v487_v23 = vld [vmem:[%s10723_s1 + $0xe58] sm:$0xff] }
  0xb0   :  { %4869 = vmatprep.subr.bf16.mxu1 %v4868_v47  ;;  %v4888_v47 = vpack.c.bf16 %v419_v40, %v415_v38  ;;  %v448_v32 = vld [vmem:[%s10723_s1 + $0xd20] sm:$0xff]  ;;  %v455_v38 = vld [vmem:[%s10723_s1 + $0xd58] sm:$0xff] }
  0xb1   :  { %v459_v40 = vld [vmem:[%s10723_s1 + $0xd78] sm:$0xff] }
  0xb2   :  { %4087 = vmatpush1.bf16.msra.mxu0 %v4086_v52  ;;  %v427_v52 = vld [vmem:[%s10723_s1 + $0xc78] sm:$0xff] }
  0xb3   :  { %4871 = vmatpush1.bf16.msra.mxu1 %v4870_v53  ;;  %4089 = vmatprep.subr.bf16.mxu0 %v4088_v54  ;;  %v4106_v53 = vpack.c.bf16 %v416_v39, %v412_v44  ;;  %v4890_v54 = vpack.c.bf16 %v418_v25, %v414_v46  ;;  %v4892_v24 = vpack.c.bf16 %v427_v52, %v423_v51  ;;  %v452_v44 = vld [vmem:[%s10723_s1 + $0xd40] sm:$0xff]  ;;  %v454_v46 = vld [vmem:[%s10723_s1 + $0xd50] sm:$0xff]  ;;  %v463_v51 = vld [vmem:[%s10723_s1 + $0xd98] sm:$0xff] }
  0xb4   :  { %4873 = vmatprep.subr.bf16.mxu1 %v4872_v58  ;;  %v422_v58 = vld [vmem:[%s10723_s1 + $0xc50] sm:$0xff]  ;;  %v456_v39 = vld [vmem:[%s10723_s1 + $0xd60] sm:$0xff]  ;;  %v467_v52 = vld [vmem:[%s10723_s1 + $0xdb8] sm:$0xff] }
  0xb5   :  { %v4894_v3 = vpack.c.bf16 %v426_v59, %v422_v58  ;;  %v458_v25 = vld [vmem:[%s10723_s1 + $0xd70] sm:$0xff] }
  0xb6   :  { %4091 = vmatpush1.bf16.msra.mxu0 %v4090_v0  ;;  %v431_v0 = vld [vmem:[%s10723_s1 + $0xc98] sm:$0xff]  ;;  %v462_v58 = vld [vmem:[%s10723_s1 + $0xd90] sm:$0xff] }
  0xb7   :  { %4875 = vmatpush1.bf16.msra.mxu1 %v4874_v1  ;;  %4093 = vmatprep.subr.bf16.mxu0 %v4092_v2  ;;  %v435_v1 = vld [vmem:[%s10723_s1 + $0xcb8] sm:$0xff]  ;;  %v4110_v2 = vpack.c.bf16 %v424_v57, %v420_v56  ;;  %v460_v56 = vld [vmem:[%s10723_s1 + $0xd80] sm:$0xff]  ;;  %v466_v59 = vld [vmem:[%s10723_s1 + $0xdb0] sm:$0xff] }
  0xb8   :  { %4877 = vmatprep.subr.bf16.mxu1 %v4876_v6  ;;  %v432_v6 = vld [vmem:[%s10723_s1 + $0xca0] sm:$0xff]  ;;  %v4896_v8 = vpack.c.bf16 %v435_v1, %v431_v0  ;;  %v475_v0 = vld [vmem:[%s10723_s1 + $0xdf8] sm:$0xff] }
  0xb9   :  { %v464_v57 = vld [vmem:[%s10723_s1 + $0xda0] sm:$0xff] }
  0xba   :  { %4095 = vmatpush1.bf16.msra.mxu0 %v4094_v13  ;;  %v443_v13 = vld [vmem:[%s10723_s1 + $0xcf8] sm:$0xff]  ;;  %v4130_v1 = vpack.c.bf16 %v464_v57, %v460_v56  ;;  %v504_v56 = vld [vmem:[%s10723_s1 + $0xee0] sm:$0xff]  ;;  %v502_v57 = vld [vmem:[%s10723_s1 + $0xed0] sm:$0xff] }
  0xbb   :  { %4879 = vmatpush1.bf16.msra.mxu1 %v4878_v14  ;;  %4097 = vmatprep.subr.bf16.mxu0 %v4096_v15  ;;  %v4114_v14 = vpack.c.bf16 %v432_v6, %v428_v5  ;;  %v4900_v20 = vpack.c.bf16 %v443_v13, %v439_v12  ;;  %v472_v5 = vld [vmem:[%s10723_s1 + $0xde0] sm:$0xff]  ;;  %v470_v6 = vld [vmem:[%s10723_s1 + $0xdd0] sm:$0xff]  ;;  %v483_v12 = vld [vmem:[%s10723_s1 + $0xe38] sm:$0xff] }
  0xbc   :  { %4881 = vmatprep.subr.bf16.mxu1 %v4880_v19  ;;  %v438_v19 = vld [vmem:[%s10723_s1 + $0xcd0] sm:$0xff] }
  0xbe   :  { %4099 = vmatpush1.bf16.msra.mxu0 %v4098_v27  ;;  %v451_v27 = vld [vmem:[%s10723_s1 + $0xd38] sm:$0xff] }
  0xbf   :  { %4883 = vmatpush1.bf16.msra.mxu1 %v4882_v28  ;;  %4101 = vmatprep.subr.bf16.mxu0 %v4100_v29  ;;  %v4118_v28 = vpack.c.bf16 %v440_v18, %v436_v17  ;;  %v4902_v29 = vpack.c.bf16 %v442_v21, %v438_v19  ;;  %v4904_v34 = vpack.c.bf16 %v451_v27, %v447_v26  ;;  %v480_v17 = vld [vmem:[%s10723_s1 + $0xe20] sm:$0xff]  ;;  %v478_v18 = vld [vmem:[%s10723_s1 + $0xe10] sm:$0xff]  ;;  %v485_v21 = vld [vmem:[%s10723_s1 + $0xe48] sm:$0xff] }
  0xc0   :  { %4885 = vmatprep.subr.bf16.mxu1 %v4884_v33  ;;  %v446_v33 = vld [vmem:[%s10723_s1 + $0xd10] sm:$0xff]  ;;  %v4920_v19 = vpack.c.bf16 %v483_v12, %v479_v10  ;;  %v491_v26 = vld [vmem:[%s10723_s1 + $0xe78] sm:$0xff] }
  0xc1   :  { %v523_v10 = vld [vmem:[%s10723_s1 + $0xf78] sm:$0xff] }
  0xc2   :  { %4103 = vmatpush1.bf16.msra.mxu0 %v4102_v41  ;;  %v4122_v41 = vpack.c.bf16 %v448_v32, %v444_v31  ;;  %v488_v31 = vld [vmem:[%s10723_s1 + $0xe60] sm:$0xff]  ;;  %v486_v32 = vld [vmem:[%s10723_s1 + $0xe50] sm:$0xff] }
  0xc3   :  { %4887 = vmatpush1.bf16.msra.mxu1 %v4886_v42  ;;  %4105 = vmatprep.subr.bf16.mxu0 %v4104_v43  ;;  %v4906_v42 = vpack.c.bf16 %v450_v35, %v446_v33  ;;  %v4124_v43 = vpack.c.bf16 %v457_v37, %v453_v36  ;;  %v4924_v33 = vpack.c.bf16 %v491_v26, %v487_v23  ;;  %v493_v35 = vld [vmem:[%s10723_s1 + $0xe88] sm:$0xff]  ;;  %v495_v37 = vld [vmem:[%s10723_s1 + $0xe98] sm:$0xff] }
  0xc4   :  { %4889 = vmatprep.subr.bf16.mxu1 %v4888_v47  ;;  %v4908_v47 = vpack.c.bf16 %v459_v40, %v455_v38  ;;  %v497_v36 = vld [vmem:[%s10723_s1 + $0xea8] sm:$0xff]  ;;  %v499_v38 = vld [vmem:[%s10723_s1 + $0xeb8] sm:$0xff] }
  0xc5   :  { %1968 = vmatmul.mubr.f32.vlgmr.msra.gmra.mrb[0].mxu0 %v6507_v45  ;;  %v531_v23 = vld [vmem:[%s10723_s1 + $0xfb8] sm:$0xff] }
  0xc6   :  { %4107 = vmatpush1.bf16.msra.mxu0 %v4106_v53  ;;  %2891 = vmatmul.mubr.f32.vlgmr.msra.gmra.mrb[0].mxu1 %v6507_v45  ;;  %v434_v45 = vld [vmem:[%s10723_s1 + $0xcb0] sm:$0xff]  ;;  %v4126_v53 = vpack.c.bf16 %v456_v39, %v452_v44  ;;  %v496_v44 = vld [vmem:[%s10723_s1 + $0xea0] sm:$0xff] }
  0xc7   :  { %4891 = vmatpush1.bf16.msra.mxu1 %v4890_v54  ;;  %4109 = vmatprep.subr.bf16.mxu0 %v4108_v55  ;;  %v4898_v15 = vpack.c.bf16 %v434_v45, %v430_v7  ;;  %v4910_v54 = vpack.c.bf16 %v458_v25, %v454_v46  ;;  %v4128_v55 = vpack.c.bf16 %v465_v49, %v461_v48  ;;  %v477_v45 = vld [vmem:[%s10723_s1 + $0xe08] sm:$0xff]  ;;  %v494_v39 = vld [vmem:[%s10723_s1 + $0xe90] sm:$0xff]  ;;  %v503_v49 = vld [vmem:[%s10723_s1 + $0xed8] sm:$0xff] }
  0xc8   :  { %4893 = vmatprep.subr.bf16.mxu1 %v4892_v24  ;;  %2038 = vmatprep.mubr.f32.mxu0 %v1658_v63  ;;  %v4912_v24 = vpack.c.bf16 %v467_v52, %v463_v51  ;;  %v4928_v46 = vpack.c.bf16 %v499_v38, %v495_v37  ;;  %v501_v25 = vld [vmem:[%s10723_s1 + $0xec8] sm:$0xff]  ;;  %v507_v51 = vld [vmem:[%s10723_s1 + $0xef8] sm:$0xff] }
  0xc9   :  { %2961 = vmatprep.mubr.f32.mxu1 %v1658_v63  ;;  %v471_v63 = vld [vmem:[%s10723_s1 + $0xdd8] sm:$0xff]  ;;  %v505_v48 = vld [vmem:[%s10723_s1 + $0xee8] sm:$0xff] }
  0xca   :  { %4111 = vmatpush1.bf16.msra.mxu0 %v4110_v2  ;;  %v4914_v2 = vpack.c.bf16 %v466_v59, %v462_v58  ;;  %v4916_v7 = vpack.c.bf16 %v475_v0, %v471_v63  ;;  %v4932_v58 = vpack.c.bf16 %v507_v51, %v503_v49  ;;  %v509_v59 = vld [vmem:[%s10723_s1 + $0xf08] sm:$0xff]  ;;  %v515_v63 = vld [vmem:[%s10723_s1 + $0xf38] sm:$0xff]  ;;  %v7260_v51 = vld [vmem:[%s10722_s0 + $0x10] sm:$0xff] }
  0xcb   :  { %4895 = vmatpush1.bf16.msra.mxu1 %v4894_v3  ;;  %4113 = vmatprep.subr.bf16.mxu0 %v4112_v4  ;;  %v4132_v3 = vpack.c.bf16 %v473_v62, %v469_v60  ;;  %v468_v4 = vld [vmem:[%s10723_s1 + $0xdc0] sm:$0xff]  ;;  %v513_v60 = vld [vmem:[%s10723_s1 + $0xf28] sm:$0xff]  ;;  %v511_v62 = vld [vmem:[%s10723_s1 + $0xf18] sm:$0xff] }
  0xcc   :  { %4897 = vmatprep.subr.bf16.mxu1 %v4896_v8  ;;  %v474_v8 = vld [vmem:[%s10723_s1 + $0xdf0] sm:$0xff]  ;;  %v4134_v13 = vpack.c.bf16 %v472_v5, %v468_v4  ;;  %v512_v4 = vld [vmem:[%s10723_s1 + $0xf20] sm:$0xff]  ;;  %v539_v37 = vld [vmem:[%s10723_s1 + $0xff8] sm:$0xff] }
  0xcd   :  { %v510_v5 = vld [vmem:[%s10723_s1 + $0xf10] sm:$0xff]  ;;  %v547_v49 = vld [vmem:[%s10723_s1 + $0x1038] sm:$0xff] }
  0xce   :  { %4115 = vmatpush1.bf16.msra.mxu0 %v4114_v14  ;;  %v4918_v14 = vpack.c.bf16 %v474_v8, %v470_v6  ;;  %v4936_v6 = vpack.c.bf16 %v515_v63, %v511_v62  ;;  %v517_v8 = vld [vmem:[%s10723_s1 + $0xf48] sm:$0xff]  ;;  %v7282_v62 = vrot.slane %v7260_v51, %v5941_v11  ;;  %v551_v63 = vld [vmem:[%s10723_s1 + $0x1058] sm:$0xff] }
  0xcf   :  { %4899 = vmatpush1.bf16.msra.mxu1 %v4898_v15  ;;  %4117 = vmatprep.subr.bf16.mxu0 %v4116_v16  ;;  %v4136_v15 = vpack.c.bf16 %v481_v9, %v477_v45  ;;  %v476_v16 = vld [vmem:[%s10723_s1 + $0xe00] sm:$0xff]  ;;  %v521_v45 = vld [vmem:[%s10723_s1 + $0xf68] sm:$0xff]  ;;  %v519_v9 = vld [vmem:[%s10723_s1 + $0xf58] sm:$0xff] }
  0xd0   :  { %4901 = vmatprep.subr.bf16.mxu1 %v4900_v20  ;;  %v482_v20 = vld [vmem:[%s10723_s1 + $0xe30] sm:$0xff]  ;;  %v4138_v27 = vpack.c.bf16 %v480_v17, %v476_v16  ;;  %v520_v16 = vld [vmem:[%s10723_s1 + $0xf60] sm:$0xff] }
  0xd1   :  { %v518_v17 = vld [vmem:[%s10723_s1 + $0xf50] sm:$0xff] }
  0xd2   :  { %4119 = vmatpush1.bf16.msra.mxu0 %v4118_v28  ;;  %v4922_v28 = vpack.c.bf16 %v482_v20, %v478_v18  ;;  %v4940_v18 = vpack.c.bf16 %v523_v10, %v519_v9  ;;  %v525_v20 = vld [vmem:[%s10723_s1 + $0xf88] sm:$0xff]  ;;  %v1674_v10 = vcombine.high %v7282_v62, %v7282_v62 }
  0xd3   :  { %4903 = vmatpush1.bf16.msra.mxu1 %v4902_v29  ;;  %4121 = vmatprep.subr.bf16.mxu0 %v4120_v30  ;;  %v4140_v29 = vpack.c.bf16 %v489_v22, %v485_v21  ;;  %v484_v30 = vld [vmem:[%s10723_s1 + $0xe40] sm:$0xff]  ;;  %v529_v21 = vld [vmem:[%s10723_s1 + $0xfa8] sm:$0xff]  ;;  %v527_v22 = vld [vmem:[%s10723_s1 + $0xf98] sm:$0xff] }
  0xd4   :  { %4905 = vmatprep.subr.bf16.mxu1 %v4904_v34  ;;  %v490_v34 = vld [vmem:[%s10723_s1 + $0xe70] sm:$0xff]  ;;  %v4142_v40 = vpack.c.bf16 %v488_v31, %v484_v30  ;;  %v528_v30 = vld [vmem:[%s10723_s1 + $0xfa0] sm:$0xff]  ;;  %v561_v9 = vld [vmem:[%s10723_s1 + $0x10a8] sm:$0xff] }
  0xd5   :  { %v526_v31 = vld [vmem:[%s10723_s1 + $0xf90] sm:$0xff] }
  0xd6   :  { %4123 = vmatpush1.bf16.msra.mxu0 %v4122_v41  ;;  %v4926_v41 = vpack.c.bf16 %v490_v34, %v486_v32  ;;  %v4944_v32 = vpack.c.bf16 %v531_v23, %v527_v22  ;;  %v533_v34 = vld [vmem:[%s10723_s1 + $0xfc8] sm:$0xff] }
  0xd7   :  { %4907 = vmatpush1.bf16.msra.mxu1 %v4906_v42  ;;  %4125 = vmatprep.subr.bf16.mxu0 %v4124_v43  ;;  %v4144_v42 = vpack.c.bf16 %v497_v36, %v493_v35  ;;  %v492_v43 = vld [vmem:[%s10723_s1 + $0xe80] sm:$0xff]  ;;  %v537_v35 = vld [vmem:[%s10723_s1 + $0xfe8] sm:$0xff]  ;;  %v535_v36 = vld [vmem:[%s10723_s1 + $0xfd8] sm:$0xff] }
  0xd8   :  { %4909 = vmatprep.subr.bf16.mxu1 %v4908_v47  ;;  %v498_v47 = vld [vmem:[%s10723_s1 + $0xeb0] sm:$0xff]  ;;  %v4146_v52 = vpack.c.bf16 %v496_v44, %v492_v43  ;;  %v536_v43 = vld [vmem:[%s10723_s1 + $0xfe0] sm:$0xff] }
  0xd9   :  { %v534_v44 = vld [vmem:[%s10723_s1 + $0xfd0] sm:$0xff] }
  0xda   :  { %4127 = vmatpush1.bf16.msra.mxu0 %v4126_v53  ;;  %v4930_v53 = vpack.c.bf16 %v498_v47, %v494_v39  ;;  %v4948_v39 = vpack.c.bf16 %v539_v37, %v535_v36  ;;  %v541_v47 = vld [vmem:[%s10723_s1 + $0x1008] sm:$0xff] }
  0xdb   :  { %4911 = vmatpush1.bf16.msra.mxu1 %v4910_v54  ;;  %4129 = vmatprep.subr.bf16.mxu0 %v4128_v55  ;;  %v4148_v54 = vpack.c.bf16 %v505_v48, %v501_v25  ;;  %v500_v55 = vld [vmem:[%s10723_s1 + $0xec0] sm:$0xff]  ;;  %v545_v25 = vld [vmem:[%s10723_s1 + $0x1028] sm:$0xff]  ;;  %v543_v48 = vld [vmem:[%s10723_s1 + $0x1018] sm:$0xff] }
  0xdc   :  { %4913 = vmatprep.subr.bf16.mxu1 %v4912_v24  ;;  %v506_v24 = vld [vmem:[%s10723_s1 + $0xef0] sm:$0xff]  ;;  %v4150_v0 = vpack.c.bf16 %v504_v56, %v500_v55  ;;  %v540_v55 = vld [vmem:[%s10723_s1 + $0x1000] sm:$0xff] }
  0xdd   :  { %v544_v56 = vld [vmem:[%s10723_s1 + $0x1020] sm:$0xff] }
  0xde   :  { %4131 = vmatpush1.bf16.msra.mxu0 %v4130_v1  ;;  %v4934_v1 = vpack.c.bf16 %v506_v24, %v502_v57  ;;  %v542_v57 = vld [vmem:[%s10723_s1 + $0x1010] sm:$0xff] }
  0xdf   :  { %4915 = vmatpush1.bf16.msra.mxu1 %v4914_v2  ;;  %4133 = vmatprep.subr.bf16.mxu0 %v4132_v3  ;;  %v4152_v2 = vpack.c.bf16 %v513_v60, %v509_v59  ;;  %v508_v3 = vld [vmem:[%s10723_s1 + $0xf00] sm:$0xff]  ;;  %v546_v24 = vld [vmem:[%s10723_s1 + $0x1030] sm:$0xff]  ;;  %v549_v59 = vld [vmem:[%s10723_s1 + $0x1048] sm:$0xff] }
  0xe0   :  { %4917 = vmatprep.subr.bf16.mxu1 %v4916_v7  ;;  %v514_v7 = vld [vmem:[%s10723_s1 + $0xf30] sm:$0xff]  ;;  %v4154_v12 = vpack.c.bf16 %v512_v4, %v508_v3  ;;  %v553_v60 = vld [vmem:[%s10723_s1 + $0x1068] sm:$0xff]  ;;  %v548_v4 = vld [vmem:[%s10723_s1 + $0x1040] sm:$0xff] }
  0xe1   :  { %v4172_v3 = vpack.c.bf16 %v553_v60, %v549_v59 }
  0xe2   :  { %4135 = vmatpush1.bf16.msra.mxu0 %v4134_v13  ;;  %v4938_v13 = vpack.c.bf16 %v514_v7, %v510_v5  ;;  %v552_v5 = vld [vmem:[%s10723_s1 + $0x1060] sm:$0xff] }
  0xe3   :  { %4919 = vmatpush1.bf16.msra.mxu1 %v4918_v14  ;;  %4137 = vmatprep.subr.bf16.mxu0 %v4136_v15  ;;  %v4156_v14 = vpack.c.bf16 %v521_v45, %v517_v8  ;;  %v516_v15 = vld [vmem:[%s10723_s1 + $0xf40] sm:$0xff]  ;;  %v554_v8 = vld [vmem:[%s10723_s1 + $0x1070] sm:$0xff]  ;;  %v557_v45 = vld [vmem:[%s10723_s1 + $0x1088] sm:$0xff] }
  0xe4   :  { %4921 = vmatprep.subr.bf16.mxu1 %v4920_v19  ;;  %v522_v19 = vld [vmem:[%s10723_s1 + $0xf70] sm:$0xff]  ;;  %v4158_v26 = vpack.c.bf16 %v520_v16, %v516_v15 }
  0xe6   :  { %4139 = vmatpush1.bf16.msra.mxu0 %v4138_v27  ;;  %v4942_v27 = vpack.c.bf16 %v522_v19, %v518_v17 }
  0xe7   :  { %4923 = vmatpush1.bf16.msra.mxu1 %v4922_v28  ;;  %4141 = vmatprep.subr.bf16.mxu0 %v4140_v29  ;;  %v4160_v28 = vpack.c.bf16 %v529_v21, %v525_v20  ;;  %v524_v29 = vld [vmem:[%s10723_s1 + $0xf80] sm:$0xff] }
  0xe8   :  { %4925 = vmatprep.subr.bf16.mxu1 %v4924_v33  ;;  %v530_v33 = vld [vmem:[%s10723_s1 + $0xfb0] sm:$0xff]  ;;  %v4162_v38 = vpack.c.bf16 %v528_v30, %v524_v29 }
  0xea   :  { %4143 = vmatpush1.bf16.msra.mxu0 %v4142_v40  ;;  %v4946_v40 = vpack.c.bf16 %v530_v33, %v526_v31 }
  0xeb   :  { %4927 = vmatpush1.bf16.msra.mxu1 %v4926_v41  ;;  %4145 = vmatprep.subr.bf16.mxu0 %v4144_v42  ;;  %v4164_v41 = vpack.c.bf16 %v537_v35, %v533_v34  ;;  %v532_v42 = vld [vmem:[%s10723_s1 + $0xfc0] sm:$0xff] }
  0xec   :  { %4929 = vmatprep.subr.bf16.mxu1 %v4928_v46  ;;  %v538_v46 = vld [vmem:[%s10723_s1 + $0xff0] sm:$0xff] }
  0xee   :  { %4147 = vmatpush1.bf16.msra.mxu0 %v4146_v52  ;;  %v4166_v52 = vpack.c.bf16 %v536_v43, %v532_v42 }
  0xef   :  { %4931 = vmatpush1.bf16.msra.mxu1 %v4930_v53  ;;  %4149 = vmatprep.subr.bf16.mxu0 %v4148_v54  ;;  %v4950_v53 = vpack.c.bf16 %v538_v46, %v534_v44  ;;  %v4168_v54 = vpack.c.bf16 %v545_v25, %v541_v47 }
  0xf0   :  { %4933 = vmatprep.subr.bf16.mxu1 %v4932_v58  ;;  %v4952_v58 = vpack.c.bf16 %v547_v49, %v543_v48 }
  0xf2   :  { %4151 = vmatpush1.bf16.msra.mxu0 %v4150_v0  ;;  %v555_v0 = vld [vmem:[%s10723_s1 + $0x1078] sm:$0xff] }
  0xf3   :  { %4935 = vmatpush1.bf16.msra.mxu1 %v4934_v1  ;;  %4153 = vmatprep.subr.bf16.mxu0 %v4152_v2  ;;  %v4170_v1 = vpack.c.bf16 %v544_v56, %v540_v55  ;;  %v4954_v2 = vpack.c.bf16 %v546_v24, %v542_v57  ;;  %v4956_v7 = vpack.c.bf16 %v555_v0, %v551_v63 }
  0xf4   :  { %4937 = vmatprep.subr.bf16.mxu1 %v4936_v6  ;;  %v550_v6 = vld [vmem:[%s10723_s1 + $0x1050] sm:$0xff] }
  0xf6   :  { %4155 = vmatpush1.bf16.msra.mxu0 %v4154_v12  ;;  %v559_v12 = vld [vmem:[%s10723_s1 + $0x1098] sm:$0xff] }
  0xf7   :  { %4939 = vmatpush1.bf16.msra.mxu1 %v4938_v13  ;;  %4157 = vmatprep.subr.bf16.mxu0 %v4156_v14  ;;  %v563_v13 = vld [vmem:[%s10723_s1 + $0x10b8] sm:$0xff] }
  0xf8   :  { %4941 = vmatprep.subr.bf16.mxu1 %v4940_v18 }
  0xfa   :  { %4159 = vmatpush1.bf16.msra.mxu0 %v4158_v26 }
  0xfb   :  { %4943 = vmatpush1.bf16.msra.mxu1 %v4942_v27  ;;  %4161 = vmatprep.subr.bf16.mxu0 %v4160_v28 }
  0xfc   :  { %4945 = vmatprep.subr.bf16.mxu1 %v4944_v32 }
  0xfe   :  { %4163 = vmatpush1.bf16.msra.mxu0 %v4162_v38 }
  0xff   :  { %4947 = vmatpush1.bf16.msra.mxu1 %v4946_v40  ;;  %4165 = vmatprep.subr.bf16.mxu0 %v4164_v41 }
 0x100   :  { %4949 = vmatprep.subr.bf16.mxu1 %v4948_v39 }
 0x102   :  { %4167 = vmatpush1.bf16.msra.mxu0 %v4166_v52 }
 0x103   :  { %4951 = vmatpush1.bf16.msra.mxu1 %v4950_v53  ;;  %4169 = vmatprep.subr.bf16.mxu0 %v4168_v54 }
 0x104   :  { %4953 = vmatprep.subr.bf16.mxu1 %v4952_v58 }
 0x105   :  { %2039 = vmatmul.mubr.f32.vlgmr.msra.gmra.mrb[0].mxu0 %v6885_v50 }
 0x106   :  { %10 = vsyncpa [#allocation3], 0  ;;  %4171 = vmatpush1.bf16.msra.mxu0 %v4170_v1  ;;  %2962 = vmatmul.mubr.f32.vlgmr.msra.gmra.mrb[0].mxu1 %v6885_v50  ;;  %v4174_v14 = vpack.c.bf16 %v552_v5, %v548_v4  ;;  %v4958_v15 = vpack.c.bf16 %v554_v8, %v550_v6  ;;  %v4176_v16 = vpack.c.bf16 %v561_v9, %v557_v45  ;;  %v556_v17 = vld [vmem:[%s10723_s1 + $0x1080] sm:$0xff]  ;;  %v558_v19 = vld [vmem:[%s10723_s1 + $0x1090] sm:$0xff]  ;;  %vm1758_vm0 = vcmask 523264   ;;  %s5631_s14 = smov [#allocation2]  }
 0x107   :  { %4955 = vmatpush1.bf16.msra.mxu1 %v4954_v2  ;;  %4173 = vmatprep.subr.bf16.mxu0 %v4172_v3  ;;  %v560_v18 = vld [vmem:[%s10723_s1 + $0x10a0] sm:$0xff]  ;;  %v4960_v20 = vpack.c.bf16 %v563_v13, %v559_v12  ;;  %v562_v50 = vld [vmem:[%s10723_s1 + $0x10b0] sm:$0xff]  ;;  %v565_v21 = vld [vmem:[%s10723_s1 + $0x10c8] sm:$0xff]  ;;  %s3830_s15 = sshll.u32 %s5631_s14, 4  ;;  %vm3822_vm1 = vcmask 9216   ;;  %s3831_s15 = int_to_ptr.vmem [resolvable:$true] %s3830_s15 }
 0x108   :  { %4957 = vmatprep.subr.bf16.mxu1 %v4956_v7  ;;  %v569_v22 = vld [vmem:[%s10723_s1 + $0x10e8] sm:$0xff]  ;;  %2109 = vmatprep.mubr.f32.mxu0 %v1674_v10  ;;  %v567_v23 = vld [vmem:[%s10723_s1 + $0x10d8] sm:$0xff]  ;;  %v4178_v27 = vpack.c.bf16 %v560_v18, %v556_v17  ;;  %v4962_v28 = vpack.c.bf16 %v562_v50, %v558_v19  ;;  %v564_v30 = vld [vmem:[%s10723_s1 + $0x10c0] sm:$0xff]  ;;  %s5605_s16 = scalar_lea.vmem %s3831_s15, 32  ;;  %p5610_p1 = scmp.lt.s32.totalorder %s3831_s15, %s3831_s15 }
 0x109   :  { %v571_v26 = vld [vmem:[%s10723_s1 + $0x10f8] sm:$0xff]  ;;  %3032 = vmatprep.mubr.f32.mxu1 %v1674_v10  ;;  %v4180_v29 = vpack.c.bf16 %v569_v22, %v565_v21  ;;  %v568_v31 = vld [vmem:[%s10723_s1 + $0x10e0] sm:$0xff]  ;;  %v566_v32 = vld [vmem:[%s10723_s1 + $0x10d0] sm:$0xff]  ;;  %p5606_p0 = scmp.ne.s32.totalorder %s3831_s15, %s5605_s16  ;;  %p5611_p2 = scmp.lt.s32.totalorder %s5605_s16, %s5605_s16 }
 0x10a   :  { %4175 = vmatpush1.bf16.msra.mxu0 %v4174_v14  ;;  %v4964_v33 = vpack.c.bf16 %v571_v26, %v567_v23  ;;  %v570_v34 = vld [vmem:[%s10723_s1 + $0x10f0] sm:$0xff]  ;;  %v573_v35 = vld [vmem:[%s10723_s1 + $0x1108] sm:$0xff]  ;;  %v575_v37 = vld [vmem:[%s10723_s1 + $0x1118] sm:$0xff]  ;;  %v4182_v40 = vpack.c.bf16 %v568_v31, %v564_v30 }
 0x10b   :  { %4959 = vmatpush1.bf16.msra.mxu1 %v4958_v15  ;;  %4177 = vmatprep.subr.bf16.mxu0 %v4176_v16  ;;  %v577_v36 = vld [vmem:[%s10723_s1 + $0x1128] sm:$0xff]  ;;  %v579_v38 = vld [vmem:[%s10723_s1 + $0x1138] sm:$0xff]  ;;  %v4966_v41 = vpack.c.bf16 %v570_v34, %v566_v32  ;;  %v572_v43 = vld [vmem:[%s10723_s1 + $0x1100] sm:$0xff]  ;;  %p5612_p3 = por %p5611_p2, %p5610_p1 }
 0x10c   :  { %4961 = vmatprep.subr.bf16.mxu1 %v4960_v20  ;;  %v4184_v42 = vpack.c.bf16 %v577_v36, %v573_v35  ;;  %v576_v44 = vld [vmem:[%s10723_s1 + $0x1120] sm:$0xff]  ;;  %v574_v39 = vld [vmem:[%s10723_s1 + $0x1110] sm:$0xff]  ;;  %v4968_v46 = vpack.c.bf16 %v579_v38, %v575_v37  ;;  %v581_v25 = vld [vmem:[%s10723_s1 + $0x1148] sm:$0xff] }
 0x10d   :  { %v578_v47 = vld [vmem:[%s10723_s1 + $0x1130] sm:$0xff]  ;;  %v585_v48 = vld [vmem:[%s10723_s1 + $0x1168] sm:$0xff]  ;;  %v583_v49 = vld [vmem:[%s10723_s1 + $0x1158] sm:$0xff]  ;;  %v4186_v53 = vpack.c.bf16 %v576_v44, %v572_v43  ;;  %p5613_p4 = pnand %p5612_p3, %p5606_p0 }
 0x10e   :  { %4179 = vmatpush1.bf16.msra.mxu0 %v4178_v27  ;;  %v587_v52 = vld [vmem:[%s10723_s1 + $0x1178] sm:$0xff]  ;;  %v4970_v54 = vpack.c.bf16 %v578_v47, %v574_v39  ;;  %v4188_v55 = vpack.c.bf16 %v585_v48, %v581_v25  ;;  %v580_v56 = vld [vmem:[%s10723_s1 + $0x1140] sm:$0xff]  ;;  %v582_v58 = vld [vmem:[%s10723_s1 + $0x1150] sm:$0xff] }
 0x10f   :  { %4963 = vmatpush1.bf16.msra.mxu1 %v4962_v28  ;;  %4181 = vmatprep.subr.bf16.mxu0 %v4180_v29  ;;  %v584_v57 = vld [vmem:[%s10723_s1 + $0x1160] sm:$0xff]  ;;  %v4972_v24 = vpack.c.bf16 %v587_v52, %v583_v49  ;;  %v586_v59 = vld [vmem:[%s10723_s1 + $0x1170] sm:$0xff]  ;;  %v589_v60 = vld [vmem:[%s10723_s1 + $0x1188] sm:$0xff] }
 0x110   :  { %4965 = vmatprep.subr.bf16.mxu1 %v4964_v33  ;;  %v593_v63 = vld [vmem:[%s10723_s1 + $0x11a8] sm:$0xff]  ;;  %v591_v0 = vld [vmem:[%s10723_s1 + $0x1198] sm:$0xff]  ;;  %v4190_v2 = vpack.c.bf16 %v584_v57, %v580_v56  ;;  %v4974_v3 = vpack.c.bf16 %v586_v59, %v582_v58  ;;  %v588_v5 = vld [vmem:[%s10723_s1 + $0x1180] sm:$0xff] }
 0x111   :  { %v595_v1 = vld [vmem:[%s10723_s1 + $0x11b8] sm:$0xff]  ;;  %v4192_v4 = vpack.c.bf16 %v593_v63, %v589_v60  ;;  %v592_v6 = vld [vmem:[%s10723_s1 + $0x11a0] sm:$0xff]  ;;  %v590_v7 = vld [vmem:[%s10723_s1 + $0x1190] sm:$0xff] }
 0x112   :  { %4183 = vmatpush1.bf16.msra.mxu0 %v4182_v40  ;;  %v4976_v8 = vpack.c.bf16 %v595_v1, %v591_v0  ;;  %v594_v45 = vld [vmem:[%s10723_s1 + $0x11b0] sm:$0xff]  ;;  %v597_v9 = vld [vmem:[%s10723_s1 + $0x11c8] sm:$0xff]  ;;  %v599_v12 = vld [vmem:[%s10723_s1 + $0x11d8] sm:$0xff]  ;;  %v4194_v14 = vpack.c.bf16 %v592_v6, %v588_v5 }
 0x113   :  { %4967 = vmatpush1.bf16.msra.mxu1 %v4966_v41  ;;  %4185 = vmatprep.subr.bf16.mxu0 %v4184_v42  ;;  %v601_v10 = vld [vmem:[%s10723_s1 + $0x11e8] sm:$0xff]  ;;  %v603_v13 = vld [vmem:[%s10723_s1 + $0x11f8] sm:$0xff]  ;;  %v4978_v15 = vpack.c.bf16 %v594_v45, %v590_v7  ;;  %v596_v17 = vld [vmem:[%s10723_s1 + $0x11c0] sm:$0xff] }
 0x114   :  { %4969 = vmatprep.subr.bf16.mxu1 %v4968_v46  ;;  %v4196_v16 = vpack.c.bf16 %v601_v10, %v597_v9  ;;  %v600_v18 = vld [vmem:[%s10723_s1 + $0x11e0] sm:$0xff]  ;;  %v598_v19 = vld [vmem:[%s10723_s1 + $0x11d0] sm:$0xff]  ;;  %v4980_v20 = vpack.c.bf16 %v603_v13, %v599_v12  ;;  %v605_v21 = vld [vmem:[%s10723_s1 + $0x1208] sm:$0xff] }
 0x115   :  { %v602_v50 = vld [vmem:[%s10723_s1 + $0x11f0] sm:$0xff]  ;;  %v609_v22 = vld [vmem:[%s10723_s1 + $0x1228] sm:$0xff]  ;;  %v607_v23 = vld [vmem:[%s10723_s1 + $0x1218] sm:$0xff]  ;;  %v4198_v27 = vpack.c.bf16 %v600_v18, %v596_v17 }
 0x116   :  { %4187 = vmatpush1.bf16.msra.mxu0 %v4186_v53  ;;  %v611_v26 = vld [vmem:[%s10723_s1 + $0x1238] sm:$0xff]  ;;  %v4982_v28 = vpack.c.bf16 %v602_v50, %v598_v19  ;;  %v4200_v29 = vpack.c.bf16 %v609_v22, %v605_v21  ;;  %v604_v30 = vld [vmem:[%s10723_s1 + $0x1200] sm:$0xff]  ;;  %v606_v32 = vld [vmem:[%s10723_s1 + $0x1210] sm:$0xff] }
 0x117   :  { %4971 = vmatpush1.bf16.msra.mxu1 %v4970_v54  ;;  %4189 = vmatprep.subr.bf16.mxu0 %v4188_v55  ;;  %v608_v31 = vld [vmem:[%s10723_s1 + $0x1220] sm:$0xff]  ;;  %v4984_v33 = vpack.c.bf16 %v611_v26, %v607_v23  ;;  %v610_v34 = vld [vmem:[%s10723_s1 + $0x1230] sm:$0xff]  ;;  %v613_v35 = vld [vmem:[%s10723_s1 + $0x1248] sm:$0xff] }
 0x118   :  { %4973 = vmatprep.subr.bf16.mxu1 %v4972_v24  ;;  %v617_v36 = vld [vmem:[%s10723_s1 + $0x1268] sm:$0xff]  ;;  %v615_v37 = vld [vmem:[%s10723_s1 + $0x1258] sm:$0xff]  ;;  %v4202_v40 = vpack.c.bf16 %v608_v31, %v604_v30  ;;  %v4986_v41 = vpack.c.bf16 %v610_v34, %v606_v32  ;;  %v612_v43 = vld [vmem:[%s10723_s1 + $0x1240] sm:$0xff] }
 0x119   :  { %v619_v38 = vld [vmem:[%s10723_s1 + $0x1278] sm:$0xff]  ;;  %v4204_v42 = vpack.c.bf16 %v617_v36, %v613_v35  ;;  %v616_v44 = vld [vmem:[%s10723_s1 + $0x1260] sm:$0xff]  ;;  %v614_v39 = vld [vmem:[%s10723_s1 + $0x1250] sm:$0xff] }
 0x11a   :  { %4191 = vmatpush1.bf16.msra.mxu0 %v4190_v2  ;;  %v4988_v46 = vpack.c.bf16 %v619_v38, %v615_v37  ;;  %v618_v47 = vld [vmem:[%s10723_s1 + $0x1270] sm:$0xff]  ;;  %v621_v25 = vld [vmem:[%s10723_s1 + $0x1288] sm:$0xff]  ;;  %v623_v49 = vld [vmem:[%s10723_s1 + $0x1298] sm:$0xff]  ;;  %v4206_v53 = vpack.c.bf16 %v616_v44, %v612_v43 }
 0x11b   :  { %4975 = vmatpush1.bf16.msra.mxu1 %v4974_v3  ;;  %4193 = vmatprep.subr.bf16.mxu0 %v4192_v4  ;;  %v625_v48 = vld [vmem:[%s10723_s1 + $0x12a8] sm:$0xff]  ;;  %v627_v52 = vld [vmem:[%s10723_s1 + $0x12b8] sm:$0xff]  ;;  %v4990_v54 = vpack.c.bf16 %v618_v47, %v614_v39  ;;  %v620_v56 = vld [vmem:[%s10723_s1 + $0x1280] sm:$0xff] }
 0x11c   :  { %4977 = vmatprep.subr.bf16.mxu1 %v4976_v8  ;;  %v4208_v55 = vpack.c.bf16 %v625_v48, %v621_v25  ;;  %v624_v57 = vld [vmem:[%s10723_s1 + $0x12a0] sm:$0xff]  ;;  %v622_v58 = vld [vmem:[%s10723_s1 + $0x1290] sm:$0xff]  ;;  %v4992_v24 = vpack.c.bf16 %v627_v52, %v623_v49  ;;  %v629_v60 = vld [vmem:[%s10723_s1 + $0x12c8] sm:$0xff] }
 0x11d   :  { %v626_v59 = vld [vmem:[%s10723_s1 + $0x12b0] sm:$0xff]  ;;  %v633_v63 = vld [vmem:[%s10723_s1 + $0x12e8] sm:$0xff]  ;;  %v631_v0 = vld [vmem:[%s10723_s1 + $0x12d8] sm:$0xff]  ;;  %v4210_v2 = vpack.c.bf16 %v624_v57, %v620_v56 }
 0x11e   :  { %4195 = vmatpush1.bf16.msra.mxu0 %v4194_v14  ;;  %v635_v1 = vld [vmem:[%s10723_s1 + $0x12f8] sm:$0xff]  ;;  %v4994_v3 = vpack.c.bf16 %v626_v59, %v622_v58  ;;  %v4212_v4 = vpack.c.bf16 %v633_v63, %v629_v60  ;;  %v628_v5 = vld [vmem:[%s10723_s1 + $0x12c0] sm:$0xff]  ;;  %v630_v7 = vld [vmem:[%s10723_s1 + $0x12d0] sm:$0xff] }
 0x11f   :  { %4979 = vmatpush1.bf16.msra.mxu1 %v4978_v15  ;;  %4197 = vmatprep.subr.bf16.mxu0 %v4196_v16  ;;  %v632_v6 = vld [vmem:[%s10723_s1 + $0x12e0] sm:$0xff]  ;;  %v4996_v8 = vpack.c.bf16 %v635_v1, %v631_v0  ;;  %v634_v45 = vld [vmem:[%s10723_s1 + $0x12f0] sm:$0xff]  ;;  %v637_v9 = vld [vmem:[%s10723_s1 + $0x1308] sm:$0xff]  ;;  %v1659_v0 = vcombine.high %v7260_v51, %v7260_v51 }
 0x120   :  { %4981 = vmatprep.subr.bf16.mxu1 %v4980_v20  ;;  %v641_v10 = vld [vmem:[%s10723_s1 + $0x1328] sm:$0xff]  ;;  %v639_v12 = vld [vmem:[%s10723_s1 + $0x1318] sm:$0xff]  ;;  %v4214_v14 = vpack.c.bf16 %v632_v6, %v628_v5  ;;  %v4998_v15 = vpack.c.bf16 %v634_v45, %v630_v7  ;;  %v636_v17 = vld [vmem:[%s10723_s1 + $0x1300] sm:$0xff] }
 0x121   :  { %v643_v13 = vld [vmem:[%s10723_s1 + $0x1338] sm:$0xff]  ;;  %v4216_v16 = vpack.c.bf16 %v641_v10, %v637_v9  ;;  %v640_v18 = vld [vmem:[%s10723_s1 + $0x1320] sm:$0xff]  ;;  %v638_v19 = vld [vmem:[%s10723_s1 + $0x1310] sm:$0xff] }
 0x122   :  { %4199 = vmatpush1.bf16.msra.mxu0 %v4198_v27  ;;  %v5000_v20 = vpack.c.bf16 %v643_v13, %v639_v12  ;;  %v642_v50 = vld [vmem:[%s10723_s1 + $0x1330] sm:$0xff]  ;;  %v645_v21 = vld [vmem:[%s10723_s1 + $0x1348] sm:$0xff]  ;;  %v647_v23 = vld [vmem:[%s10723_s1 + $0x1358] sm:$0xff]  ;;  %v4218_v27 = vpack.c.bf16 %v640_v18, %v636_v17  ;;  %v7675_v12 = vrot.slane %v1659_v0, %v5941_v11 }
 0x123   :  { %4983 = vmatpush1.bf16.msra.mxu1 %v4982_v28  ;;  %4201 = vmatprep.subr.bf16.mxu0 %v4200_v29  ;;  %v649_v22 = vld [vmem:[%s10723_s1 + $0x1368] sm:$0xff]  ;;  %v651_v26 = vld [vmem:[%s10723_s1 + $0x1378] sm:$0xff]  ;;  %v5002_v28 = vpack.c.bf16 %v642_v50, %v638_v19  ;;  %v644_v30 = vld [vmem:[%s10723_s1 + $0x1340] sm:$0xff] }
 0x124   :  { %4985 = vmatprep.subr.bf16.mxu1 %v4984_v33  ;;  %v4220_v29 = vpack.c.bf16 %v649_v22, %v645_v21  ;;  %v648_v31 = vld [vmem:[%s10723_s1 + $0x1360] sm:$0xff]  ;;  %v646_v32 = vld [vmem:[%s10723_s1 + $0x1350] sm:$0xff]  ;;  %v5004_v33 = vpack.c.bf16 %v651_v26, %v647_v23  ;;  %v653_v35 = vld [vmem:[%s10723_s1 + $0x1388] sm:$0xff]  ;;  %v1675_v26 = vcombine.high %v7675_v12, %v7675_v12 }
 0x125   :  { %v650_v34 = vld [vmem:[%s10723_s1 + $0x1370] sm:$0xff]  ;;  %v657_v36 = vld [vmem:[%s10723_s1 + $0x13a8] sm:$0xff]  ;;  %v655_v37 = vld [vmem:[%s10723_s1 + $0x1398] sm:$0xff] }
 0x126   :  { %4203 = vmatpush1.bf16.msra.mxu0 %v4202_v40  ;;  %v659_v38 = vld [vmem:[%s10723_s1 + $0x13b8] sm:$0xff]  ;;  %v4222_v40 = vpack.c.bf16 %v648_v31, %v644_v30  ;;  %v652_v43 = vld [vmem:[%s10723_s1 + $0x1380] sm:$0xff]  ;;  %v654_v39 = vld [vmem:[%s10723_s1 + $0x1390] sm:$0xff] }
 0x127   :  { %4987 = vmatpush1.bf16.msra.mxu1 %v4986_v41  ;;  %4205 = vmatprep.subr.bf16.mxu0 %v4204_v42  ;;  %v5006_v41 = vpack.c.bf16 %v650_v34, %v646_v32  ;;  %v4224_v42 = vpack.c.bf16 %v657_v36, %v653_v35  ;;  %v656_v44 = vld [vmem:[%s10723_s1 + $0x13a0] sm:$0xff]  ;;  %v658_v47 = vld [vmem:[%s10723_s1 + $0x13b0] sm:$0xff]  ;;  %v661_v25 = vld [vmem:[%s10723_s1 + $0x13c8] sm:$0xff] }
 0x128   :  { %4989 = vmatprep.subr.bf16.mxu1 %v4988_v46  ;;  %v5008_v46 = vpack.c.bf16 %v659_v38, %v655_v37  ;;  %v665_v48 = vld [vmem:[%s10723_s1 + $0x13e8] sm:$0xff]  ;;  %v663_v49 = vld [vmem:[%s10723_s1 + $0x13d8] sm:$0xff]  ;;  %v660_v56 = vld [vmem:[%s10723_s1 + $0x13c0] sm:$0xff] }
 0x129   :  { %v667_v52 = vld [vmem:[%s10723_s1 + $0x13f8] sm:$0xff]  ;;  %v664_v57 = vld [vmem:[%s10723_s1 + $0x13e0] sm:$0xff]  ;;  %v662_v58 = vld [vmem:[%s10723_s1 + $0x13d0] sm:$0xff] }
 0x12a   :  { %4207 = vmatpush1.bf16.msra.mxu0 %v4206_v53  ;;  %v4226_v53 = vpack.c.bf16 %v656_v44, %v652_v43  ;;  %v666_v59 = vld [vmem:[%s10723_s1 + $0x13f0] sm:$0xff]  ;;  %v669_v60 = vld [vmem:[%s10723_s1 + $0x1408] sm:$0xff]  ;;  %v671_v1 = vld [vmem:[%s10723_s1 + $0x1418] sm:$0xff] }
 0x12b   :  { %4991 = vmatpush1.bf16.msra.mxu1 %v4990_v54  ;;  %4209 = vmatprep.subr.bf16.mxu0 %v4208_v55  ;;  %v5010_v54 = vpack.c.bf16 %v658_v47, %v654_v39  ;;  %v4228_v55 = vpack.c.bf16 %v665_v48, %v661_v25  ;;  %v673_v63 = vld [vmem:[%s10723_s1 + $0x1428] sm:$0xff]  ;;  %v668_v6 = vld [vmem:[%s10723_s1 + $0x1400] sm:$0xff]  ;;  %v670_v7 = vld [vmem:[%s10723_s1 + $0x1410] sm:$0xff] }
 0x12c   :  { %4993 = vmatprep.subr.bf16.mxu1 %v4992_v24  ;;  %v5012_v24 = vpack.c.bf16 %v667_v52, %v663_v49  ;;  %v4232_v5 = vpack.c.bf16 %v673_v63, %v669_v60  ;;  %v672_v51 = vld [vmem:[%s10723_s1 + $0x1420] sm:$0xff]  ;;  %v674_v45 = vld [vmem:[%s10723_s1 + $0x1430] sm:$0xff]  ;;  %v677_v9 = vld [vmem:[%s10723_s1 + $0x1448] sm:$0xff] }
 0x12d   :  { %v681_v10 = vld [vmem:[%s10723_s1 + $0x1468] sm:$0xff]  ;;  %v679_v13 = vld [vmem:[%s10723_s1 + $0x1458] sm:$0xff]  ;;  %v676_v18 = vld [vmem:[%s10723_s1 + $0x1440] sm:$0xff] }
 0x12e   :  { %4211 = vmatpush1.bf16.msra.mxu0 %v4210_v2  ;;  %v675_v2 = vld [vmem:[%s10723_s1 + $0x1438] sm:$0xff]  ;;  %v4236_v17 = vpack.c.bf16 %v681_v10, %v677_v9  ;;  %v680_v19 = vld [vmem:[%s10723_s1 + $0x1460] sm:$0xff]  ;;  %v682_v21 = vld [vmem:[%s10723_s1 + $0x1470] sm:$0xff] }
 0x12f   :  { %4995 = vmatpush1.bf16.msra.mxu1 %v4994_v3  ;;  %4213 = vmatprep.subr.bf16.mxu0 %v4212_v4  ;;  %v4230_v3 = vpack.c.bf16 %v664_v57, %v660_v56  ;;  %v5014_v4 = vpack.c.bf16 %v666_v59, %v662_v58  ;;  %v685_v22 = vld [vmem:[%s10723_s1 + $0x1488] sm:$0xff]  ;;  %v684_v32 = vld [vmem:[%s10723_s1 + $0x1480] sm:$0xff]  ;;  %v686_v34 = vld [vmem:[%s10723_s1 + $0x1490] sm:$0xff] }
 0x130   :  { %4997 = vmatprep.subr.bf16.mxu1 %v4996_v8  ;;  %v5016_v8 = vpack.c.bf16 %v675_v2, %v671_v1  ;;  %v689_v23 = vld [vmem:[%s10723_s1 + $0x14a8] sm:$0xff]  ;;  %v695_v38 = vld [vmem:[%s10723_s1 + $0x14d8] sm:$0xff]  ;;  %v692_v44 = vld [vmem:[%s10723_s1 + $0x14c0] sm:$0xff] }
 0x131   :  { %v4240_v31 = vpack.c.bf16 %v689_v23, %v685_v22  ;;  %v693_v36 = vld [vmem:[%s10723_s1 + $0x14c8] sm:$0xff]  ;;  %v696_v39 = vld [vmem:[%s10723_s1 + $0x14e0] sm:$0xff]  ;;  %v698_v25 = vld [vmem:[%s10723_s1 + $0x14f0] sm:$0xff] }
 0x132   :  { %4215 = vmatpush1.bf16.msra.mxu0 %v4214_v14  ;;  %v683_v14 = vld [vmem:[%s10723_s1 + $0x1478] sm:$0xff]  ;;  %v697_v37 = vld [vmem:[%s10723_s1 + $0x14e8] sm:$0xff]  ;;  %v700_v57 = vld [vmem:[%s10723_s1 + $0x1500] sm:$0xff] }
 0x133   :  { %4999 = vmatpush1.bf16.msra.mxu1 %v4998_v15  ;;  %4217 = vmatprep.subr.bf16.mxu0 %v4216_v16  ;;  %v4234_v15 = vpack.c.bf16 %v672_v51, %v668_v6  ;;  %v5018_v16 = vpack.c.bf16 %v674_v45, %v670_v7  ;;  %v5020_v50 = vpack.c.bf16 %v683_v14, %v679_v13  ;;  %v701_v48 = vld [vmem:[%s10723_s1 + $0x1508] sm:$0xff]  ;;  %v703_v52 = vld [vmem:[%s10723_s1 + $0x1518] sm:$0xff]  ;;  %v704_v58 = vld [vmem:[%s10723_s1 + $0x1520] sm:$0xff] }
 0x134   :  { %5001 = vmatprep.subr.bf16.mxu1 %v5000_v20  ;;  %v678_v20 = vld [vmem:[%s10723_s1 + $0x1450] sm:$0xff]  ;;  %v4244_v43 = vpack.c.bf16 %v697_v37, %v693_v36  ;;  %v705_v49 = vld [vmem:[%s10723_s1 + $0x1528] sm:$0xff]  ;;  %v711_v1 = vld [vmem:[%s10723_s1 + $0x1558] sm:$0xff] }
 0x135   :  { %v5022_v30 = vpack.c.bf16 %v682_v21, %v678_v20  ;;  %v4248_v56 = vpack.c.bf16 %v705_v49, %v701_v48  ;;  %v706_v60 = vld [vmem:[%s10723_s1 + $0x1530] sm:$0xff]  ;;  %v709_v63 = vld [vmem:[%s10723_s1 + $0x1548] sm:$0xff]  ;;  %v715_v2 = vld [vmem:[%s10723_s1 + $0x1578] sm:$0xff] }
 0x136   :  { %4219 = vmatpush1.bf16.msra.mxu0 %v4218_v27  ;;  %v687_v27 = vld [vmem:[%s10723_s1 + $0x1498] sm:$0xff]  ;;  %v713_v0 = vld [vmem:[%s10723_s1 + $0x1568] sm:$0xff]  ;;  %v708_v6 = vld [vmem:[%s10723_s1 + $0x1540] sm:$0xff] }
 0x137   :  { %5003 = vmatpush1.bf16.msra.mxu1 %v5002_v28  ;;  %4221 = vmatprep.subr.bf16.mxu0 %v4220_v29  ;;  %v691_v28 = vld [vmem:[%s10723_s1 + $0x14b8] sm:$0xff]  ;;  %v4238_v29 = vpack.c.bf16 %v680_v19, %v676_v18  ;;  %v712_v51 = vld [vmem:[%s10723_s1 + $0x1560] sm:$0xff]  ;;  %v710_v7 = vld [vmem:[%s10723_s1 + $0x1550] sm:$0xff] }
 0x138   :  { %5005 = vmatprep.subr.bf16.mxu1 %v5004_v33  ;;  %v688_v33 = vld [vmem:[%s10723_s1 + $0x14a0] sm:$0xff]  ;;  %v5024_v35 = vpack.c.bf16 %v691_v28, %v687_v27  ;;  %v714_v45 = vld [vmem:[%s10723_s1 + $0x1570] sm:$0xff]  ;;  %v717_v9 = vld [vmem:[%s10723_s1 + $0x1588] sm:$0xff] }
 0x139   :  { %v721_v10 = vld [vmem:[%s10723_s1 + $0x15a8] sm:$0xff]  ;;  %v719_v13 = vld [vmem:[%s10723_s1 + $0x1598] sm:$0xff]  ;;  %v716_v18 = vld [vmem:[%s10723_s1 + $0x1580] sm:$0xff] }
 0x13a   :  { %4223 = vmatpush1.bf16.msra.mxu0 %v4222_v40  ;;  %v699_v40 = vld [vmem:[%s10723_s1 + $0x14f8] sm:$0xff]  ;;  %v720_v19 = vld [vmem:[%s10723_s1 + $0x15a0] sm:$0xff]  ;;  %v718_v20 = vld [vmem:[%s10723_s1 + $0x1590] sm:$0xff] }
 0x13b   :  { %5007 = vmatpush1.bf16.msra.mxu1 %v5006_v41  ;;  %4225 = vmatprep.subr.bf16.mxu0 %v4224_v42  ;;  %v4242_v41 = vpack.c.bf16 %v688_v33, %v684_v32  ;;  %v5028_v47 = vpack.c.bf16 %v699_v40, %v695_v38  ;;  %v723_v14 = vld [vmem:[%s10723_s1 + $0x15b8] sm:$0xff]  ;;  %v722_v21 = vld [vmem:[%s10723_s1 + $0x15b0] sm:$0xff]  ;;  %v725_v22 = vld [vmem:[%s10723_s1 + $0x15c8] sm:$0xff]  ;;  %v4258_v28 = vpack.c.bf16 %v720_v19, %v716_v18 }
 0x13c   :  { %5009 = vmatprep.subr.bf16.mxu1 %v5008_v46  ;;  %v694_v46 = vld [vmem:[%s10723_s1 + $0x14d0] sm:$0xff]  ;;  %v729_v23 = vld [vmem:[%s10723_s1 + $0x15e8] sm:$0xff]  ;;  %v731_v27 = vld [vmem:[%s10723_s1 + $0x15f8] sm:$0xff] }
 0x13d   :  { %v728_v32 = vld [vmem:[%s10723_s1 + $0x15e0] sm:$0xff]  ;;  %v726_v33 = vld [vmem:[%s10723_s1 + $0x15d0] sm:$0xff]  ;;  %v737_v36 = vld [vmem:[%s10723_s1 + $0x1628] sm:$0xff] }
 0x13e   :  { %4227 = vmatpush1.bf16.msra.mxu0 %v4226_v53  ;;  %v707_v53 = vld [vmem:[%s10723_s1 + $0x1538] sm:$0xff]  ;;  %v745_v48 = vld [vmem:[%s10723_s1 + $0x1668] sm:$0xff]  ;;  %v760_v18 = vld [vmem:[%s10723_s1 + $0x16e0] sm:$0xff] }
 0x13f   :  { %5011 = vmatpush1.bf16.msra.mxu1 %v5010_v54  ;;  %4229 = vmatprep.subr.bf16.mxu0 %v4228_v55  ;;  %v4246_v54 = vpack.c.bf16 %v696_v39, %v692_v44  ;;  %v5030_v55 = vpack.c.bf16 %v698_v25, %v694_v46  ;;  %v5032_v59 = vpack.c.bf16 %v707_v53, %v703_v52  ;;  %v735_v37 = vld [vmem:[%s10723_s1 + $0x1618] sm:$0xff]  ;;  %v736_v44 = vld [vmem:[%s10723_s1 + $0x1620] sm:$0xff]  ;;  %v734_v39 = vld [vmem:[%s10723_s1 + $0x1610] sm:$0xff] }
 0x140   :  { %5013 = vmatprep.subr.bf16.mxu1 %v5012_v24  ;;  %v702_v24 = vld [vmem:[%s10723_s1 + $0x1510] sm:$0xff]  ;;  %v739_v38 = vld [vmem:[%s10723_s1 + $0x1638] sm:$0xff]  ;;  %v741_v25 = vld [vmem:[%s10723_s1 + $0x1648] sm:$0xff] }
 0x141   :  { %v5048_v46 = vpack.c.bf16 %v739_v38, %v735_v37  ;;  %v743_v49 = vld [vmem:[%s10723_s1 + $0x1658] sm:$0xff]  ;;  %v758_v19 = vld [vmem:[%s10723_s1 + $0x16d0] sm:$0xff] }
 0x142   :  { %4231 = vmatpush1.bf16.msra.mxu0 %v4230_v3  ;;  %v4250_v3 = vpack.c.bf16 %v704_v58, %v700_v57  ;;  %v747_v52 = vld [vmem:[%s10723_s1 + $0x1678] sm:$0xff]  ;;  %v744_v57 = vld [vmem:[%s10723_s1 + $0x1660] sm:$0xff]  ;;  %v742_v58 = vld [vmem:[%s10723_s1 + $0x1650] sm:$0xff] }
 0x143   :  { %5015 = vmatpush1.bf16.msra.mxu1 %v5014_v4  ;;  %4233 = vmatprep.subr.bf16.mxu0 %v4232_v5  ;;  %v5034_v4 = vpack.c.bf16 %v706_v60, %v702_v24  ;;  %v4252_v5 = vpack.c.bf16 %v713_v0, %v709_v63  ;;  %v5052_v24 = vpack.c.bf16 %v747_v52, %v743_v49  ;;  %v749_v60 = vld [vmem:[%s10723_s1 + $0x1688] sm:$0xff]  ;;  %v751_v0 = vld [vmem:[%s10723_s1 + $0x1698] sm:$0xff] }
 0x144   :  { %5017 = vmatprep.subr.bf16.mxu1 %v5016_v8  ;;  %v5036_v8 = vpack.c.bf16 %v715_v2, %v711_v1  ;;  %v753_v63 = vld [vmem:[%s10723_s1 + $0x16a8] sm:$0xff]  ;;  %v755_v1 = vld [vmem:[%s10723_s1 + $0x16b8] sm:$0xff] }
 0x145   :  { %2110 = vmatmul.mubr.f32.vlgmr.msra.gmra.mrb[0].mxu0 %v7282_v62  ;;  %v779_v37 = vld [vmem:[%s10723_s1 + $0x1778] sm:$0xff] }
 0x146   :  { %4235 = vmatpush1.bf16.msra.mxu0 %v4234_v15  ;;  %3033 = vmatmul.mubr.f32.vlgmr.msra.gmra.mrb[0].mxu1 %v7282_v62  ;;  %v690_v62 = vld [vmem:[%s10723_s1 + $0x14b0] sm:$0xff]  ;;  %v4254_v15 = vpack.c.bf16 %v712_v51, %v708_v6  ;;  %v752_v6 = vld [vmem:[%s10723_s1 + $0x16a0] sm:$0xff]  ;;  %v787_v49 = vld [vmem:[%s10723_s1 + $0x17b8] sm:$0xff] }
 0x147   :  { %5019 = vmatpush1.bf16.msra.mxu1 %v5018_v16  ;;  %4237 = vmatprep.subr.bf16.mxu0 %v4236_v17  ;;  %v5026_v42 = vpack.c.bf16 %v690_v62, %v686_v34  ;;  %v5038_v16 = vpack.c.bf16 %v714_v45, %v710_v7  ;;  %v4256_v17 = vpack.c.bf16 %v721_v10, %v717_v9  ;;  %v733_v62 = vld [vmem:[%s10723_s1 + $0x1608] sm:$0xff]  ;;  %v750_v51 = vld [vmem:[%s10723_s1 + $0x1690] sm:$0xff]  ;;  %v759_v10 = vld [vmem:[%s10723_s1 + $0x16d8] sm:$0xff] }
 0x148   :  { %5021 = vmatprep.subr.bf16.mxu1 %v5020_v50  ;;  %2180 = vmatprep.mubr.f32.mxu0 %v1675_v26  ;;  %v5040_v50 = vpack.c.bf16 %v723_v14, %v719_v13  ;;  %v5056_v7 = vpack.c.bf16 %v755_v1, %v751_v0  ;;  %v757_v45 = vld [vmem:[%s10723_s1 + $0x16c8] sm:$0xff]  ;;  %v763_v13 = vld [vmem:[%s10723_s1 + $0x16f8] sm:$0xff] }
 0x149   :  { %3103 = vmatprep.mubr.f32.mxu1 %v1675_v26  ;;  %v727_v26 = vld [vmem:[%s10723_s1 + $0x15d8] sm:$0xff]  ;;  %v761_v9 = vld [vmem:[%s10723_s1 + $0x16e8] sm:$0xff] }
 0x14a   :  { %4239 = vmatpush1.bf16.msra.mxu0 %v4238_v29  ;;  %v5042_v29 = vpack.c.bf16 %v722_v21, %v718_v20  ;;  %v5044_v34 = vpack.c.bf16 %v731_v27, %v727_v26  ;;  %v5060_v20 = vpack.c.bf16 %v763_v13, %v759_v10  ;;  %v765_v21 = vld [vmem:[%s10723_s1 + $0x1708] sm:$0xff]  ;;  %v771_v26 = vld [vmem:[%s10723_s1 + $0x1738] sm:$0xff] }
 0x14b   :  { %5023 = vmatpush1.bf16.msra.mxu1 %v5022_v30  ;;  %4241 = vmatprep.subr.bf16.mxu0 %v4240_v31  ;;  %v4260_v30 = vpack.c.bf16 %v729_v23, %v725_v22  ;;  %v724_v31 = vld [vmem:[%s10723_s1 + $0x15c0] sm:$0xff]  ;;  %v769_v22 = vld [vmem:[%s10723_s1 + $0x1728] sm:$0xff]  ;;  %v767_v23 = vld [vmem:[%s10723_s1 + $0x1718] sm:$0xff] }
 0x14c   :  { %5025 = vmatprep.subr.bf16.mxu1 %v5024_v35  ;;  %v730_v35 = vld [vmem:[%s10723_s1 + $0x15f0] sm:$0xff]  ;;  %v4262_v40 = vpack.c.bf16 %v728_v32, %v724_v31  ;;  %v768_v31 = vld [vmem:[%s10723_s1 + $0x1720] sm:$0xff]  ;;  %v795_v0 = vld [vmem:[%s10723_s1 + $0x17f8] sm:$0xff] }
 0x14d   :  { %v766_v32 = vld [vmem:[%s10723_s1 + $0x1710] sm:$0xff]  ;;  %v803_v10 = vld [vmem:[%s10723_s1 + $0x1838] sm:$0xff] }
 0x14e   :  { %4243 = vmatpush1.bf16.msra.mxu0 %v4242_v41  ;;  %v5046_v41 = vpack.c.bf16 %v730_v35, %v726_v33  ;;  %v5064_v33 = vpack.c.bf16 %v771_v26, %v767_v23  ;;  %v773_v35 = vld [vmem:[%s10723_s1 + $0x1748] sm:$0xff]  ;;  %v8050_v13 = vld [vmem:[%s10722_s0 + $0x18] sm:$0xff] }
 0x14f   :  { %5027 = vmatpush1.bf16.msra.mxu1 %v5026_v42  ;;  %4245 = vmatprep.subr.bf16.mxu0 %v4244_v43  ;;  %v4264_v42 = vpack.c.bf16 %v737_v36, %v733_v62  ;;  %v732_v43 = vld [vmem:[%s10723_s1 + $0x1600] sm:$0xff]  ;;  %v777_v62 = vld [vmem:[%s10723_s1 + $0x1768] sm:$0xff]  ;;  %v775_v36 = vld [vmem:[%s10723_s1 + $0x1758] sm:$0xff]  ;;  %v8072_v23 = vrot.slane %v8050_v13, %v5941_v11 }
 0x150   :  { %5029 = vmatprep.subr.bf16.mxu1 %v5028_v47  ;;  %v738_v47 = vld [vmem:[%s10723_s1 + $0x1630] sm:$0xff]  ;;  %v4266_v53 = vpack.c.bf16 %v736_v44, %v732_v43  ;;  %v776_v43 = vld [vmem:[%s10723_s1 + $0x1760] sm:$0xff]  ;;  %v807_v26 = vld [vmem:[%s10723_s1 + $0x1858] sm:$0xff] }
 0x151   :  { %v774_v44 = vld [vmem:[%s10723_s1 + $0x1750] sm:$0xff] }
 0x152   :  { %4247 = vmatpush1.bf16.msra.mxu0 %v4246_v54  ;;  %v5050_v54 = vpack.c.bf16 %v738_v47, %v734_v39  ;;  %v5068_v39 = vpack.c.bf16 %v779_v37, %v775_v36  ;;  %v781_v47 = vld [vmem:[%s10723_s1 + $0x1788] sm:$0xff]  ;;  %v1691_v37 = vcombine.high %v8072_v23, %v8072_v23 }
 0x153   :  { %5031 = vmatpush1.bf16.msra.mxu1 %v5030_v55  ;;  %4249 = vmatprep.subr.bf16.mxu0 %v4248_v56  ;;  %v4268_v55 = vpack.c.bf16 %v745_v48, %v741_v25  ;;  %v740_v56 = vld [vmem:[%s10723_s1 + $0x1640] sm:$0xff]  ;;  %v785_v25 = vld [vmem:[%s10723_s1 + $0x17a8] sm:$0xff]  ;;  %v783_v48 = vld [vmem:[%s10723_s1 + $0x1798] sm:$0xff] }
 0x154   :  { %5033 = vmatprep.subr.bf16.mxu1 %v5032_v59  ;;  %v746_v59 = vld [vmem:[%s10723_s1 + $0x1670] sm:$0xff]  ;;  %v4270_v2 = vpack.c.bf16 %v744_v57, %v740_v56  ;;  %v784_v56 = vld [vmem:[%s10723_s1 + $0x17a0] sm:$0xff]  ;;  %v817_v36 = vld [vmem:[%s10723_s1 + $0x18a8] sm:$0xff] }
 0x155   :  { %v782_v57 = vld [vmem:[%s10723_s1 + $0x1790] sm:$0xff] }
 0x156   :  { %4251 = vmatpush1.bf16.msra.mxu0 %v4250_v3  ;;  %v5054_v3 = vpack.c.bf16 %v746_v59, %v742_v58  ;;  %v5072_v58 = vpack.c.bf16 %v787_v49, %v783_v48  ;;  %v789_v59 = vld [vmem:[%s10723_s1 + $0x17c8] sm:$0xff]  ;;  %v823_v49 = vld [vmem:[%s10723_s1 + $0x18d8] sm:$0xff] }
 0x157   :  { %5035 = vmatpush1.bf16.msra.mxu1 %v5034_v4  ;;  %4253 = vmatprep.subr.bf16.mxu0 %v4252_v5  ;;  %v4272_v4 = vpack.c.bf16 %v753_v63, %v749_v60  ;;  %v748_v5 = vld [vmem:[%s10723_s1 + $0x1680] sm:$0xff]  ;;  %v793_v60 = vld [vmem:[%s10723_s1 + $0x17e8] sm:$0xff]  ;;  %v791_v63 = vld [vmem:[%s10723_s1 + $0x17d8] sm:$0xff] }
 0x158   :  { %5037 = vmatprep.subr.bf16.mxu1 %v5036_v8  ;;  %v754_v8 = vld [vmem:[%s10723_s1 + $0x16b0] sm:$0xff]  ;;  %v4274_v14 = vpack.c.bf16 %v752_v6, %v748_v5  ;;  %v792_v5 = vld [vmem:[%s10723_s1 + $0x17e0] sm:$0xff]  ;;  %v825_v48 = vld [vmem:[%s10723_s1 + $0x18e8] sm:$0xff] }
 0x159   :  { %v790_v6 = vld [vmem:[%s10723_s1 + $0x17d0] sm:$0xff] }
 0x15a   :  { %4255 = vmatpush1.bf16.msra.mxu0 %v4254_v15  ;;  %v5058_v15 = vpack.c.bf16 %v754_v8, %v750_v51  ;;  %v5076_v51 = vpack.c.bf16 %v795_v0, %v791_v63  ;;  %v797_v8 = vld [vmem:[%s10723_s1 + $0x1808] sm:$0xff]  ;;  %v831_v0 = vld [vmem:[%s10723_s1 + $0x1918] sm:$0xff] }
 0x15b   :  { %5039 = vmatpush1.bf16.msra.mxu1 %v5038_v16  ;;  %4257 = vmatprep.subr.bf16.mxu0 %v4256_v17  ;;  %v4276_v16 = vpack.c.bf16 %v761_v9, %v757_v45  ;;  %v756_v17 = vld [vmem:[%s10723_s1 + $0x16c0] sm:$0xff]  ;;  %v801_v45 = vld [vmem:[%s10723_s1 + $0x1828] sm:$0xff]  ;;  %v799_v9 = vld [vmem:[%s10723_s1 + $0x1818] sm:$0xff] }
 0x15c   :  { %5041 = vmatprep.subr.bf16.mxu1 %v5040_v50  ;;  %v762_v50 = vld [vmem:[%s10723_s1 + $0x16f0] sm:$0xff]  ;;  %v4278_v27 = vpack.c.bf16 %v760_v18, %v756_v17  ;;  %v796_v17 = vld [vmem:[%s10723_s1 + $0x1800] sm:$0xff]  ;;  %v833_v63 = vld [vmem:[%s10723_s1 + $0x1928] sm:$0xff] }
 0x15d   :  { %v800_v18 = vld [vmem:[%s10723_s1 + $0x1820] sm:$0xff] }
 0x15e   :  { %4259 = vmatpush1.bf16.msra.mxu0 %v4258_v28  ;;  %v5062_v28 = vpack.c.bf16 %v762_v50, %v758_v19  ;;  %v798_v19 = vld [vmem:[%s10723_s1 + $0x1810] sm:$0xff] }
 0x15f   :  { %5043 = vmatpush1.bf16.msra.mxu1 %v5042_v29  ;;  %4261 = vmatprep.subr.bf16.mxu0 %v4260_v30  ;;  %v4280_v29 = vpack.c.bf16 %v769_v22, %v765_v21  ;;  %v764_v30 = vld [vmem:[%s10723_s1 + $0x1700] sm:$0xff]  ;;  %v802_v50 = vld [vmem:[%s10723_s1 + $0x1830] sm:$0xff]  ;;  %v805_v21 = vld [vmem:[%s10723_s1 + $0x1848] sm:$0xff] }
 0x160   :  { %5045 = vmatprep.subr.bf16.mxu1 %v5044_v34  ;;  %v770_v34 = vld [vmem:[%s10723_s1 + $0x1730] sm:$0xff]  ;;  %v4282_v38 = vpack.c.bf16 %v768_v31, %v764_v30  ;;  %v809_v22 = vld [vmem:[%s10723_s1 + $0x1868] sm:$0xff]  ;;  %v804_v31 = vld [vmem:[%s10723_s1 + $0x1840] sm:$0xff] }
 0x161   :  { %v4300_v30 = vpack.c.bf16 %v809_v22, %v805_v21  ;;  %v842_v21 = vld [vmem:[%s10723_s1 + $0x1970] sm:$0xff]  ;;  %v845_v22 = vld [vmem:[%s10723_s1 + $0x1988] sm:$0xff] }
 0x162   :  { %4263 = vmatpush1.bf16.msra.mxu0 %v4262_v40  ;;  %v5066_v40 = vpack.c.bf16 %v770_v34, %v766_v32  ;;  %v808_v32 = vld [vmem:[%s10723_s1 + $0x1860] sm:$0xff] }
 0x163   :  { %5047 = vmatpush1.bf16.msra.mxu1 %v5046_v41  ;;  %4265 = vmatprep.subr.bf16.mxu0 %v4264_v42  ;;  %v4284_v41 = vpack.c.bf16 %v777_v62, %v773_v35  ;;  %v772_v42 = vld [vmem:[%s10723_s1 + $0x1740] sm:$0xff]  ;;  %v810_v35 = vld [vmem:[%s10723_s1 + $0x1870] sm:$0xff]  ;;  %v813_v62 = vld [vmem:[%s10723_s1 + $0x1888] sm:$0xff] }
 0x164   :  { %5049 = vmatprep.subr.bf16.mxu1 %v5048_v46  ;;  %v778_v46 = vld [vmem:[%s10723_s1 + $0x1770] sm:$0xff]  ;;  %v4286_v52 = vpack.c.bf16 %v776_v43, %v772_v42  ;;  %v4304_v43 = vpack.c.bf16 %v817_v36, %v813_v62  ;;  %v853_v36 = vld [vmem:[%s10723_s1 + $0x19c8] sm:$0xff] }
 0x165   :  { %v850_v62 = vld [vmem:[%s10723_s1 + $0x19b0] sm:$0xff] }
 0x166   :  { %4267 = vmatpush1.bf16.msra.mxu0 %v4266_v53  ;;  %v5070_v53 = vpack.c.bf16 %v778_v46, %v774_v44  ;;  %v812_v44 = vld [vmem:[%s10723_s1 + $0x1880] sm:$0xff]  ;;  %v814_v46 = vld [vmem:[%s10723_s1 + $0x1890] sm:$0xff] }
 0x167   :  { %5051 = vmatpush1.bf16.msra.mxu1 %v5050_v54  ;;  %4269 = vmatprep.subr.bf16.mxu0 %v4268_v55  ;;  %v4288_v54 = vpack.c.bf16 %v785_v25, %v781_v47  ;;  %v780_v55 = vld [vmem:[%s10723_s1 + $0x1780] sm:$0xff]  ;;  %v821_v25 = vld [vmem:[%s10723_s1 + $0x18c8] sm:$0xff] }
 0x168   :  { %5053 = vmatprep.subr.bf16.mxu1 %v5052_v24  ;;  %v786_v24 = vld [vmem:[%s10723_s1 + $0x17b0] sm:$0xff]  ;;  %v4290_v1 = vpack.c.bf16 %v784_v56, %v780_v55  ;;  %v4308_v55 = vpack.c.bf16 %v825_v48, %v821_v25  ;;  %v820_v56 = vld [vmem:[%s10723_s1 + $0x18c0] sm:$0xff]  ;;  %v861_v25 = vld [vmem:[%s10723_s1 + $0x1a08] sm:$0xff] }
 0x169   :  { %v865_v48 = vld [vmem:[%s10723_s1 + $0x1a28] sm:$0xff] }
 0x16a   :  { %4271 = vmatpush1.bf16.msra.mxu0 %v4270_v2  ;;  %v5074_v2 = vpack.c.bf16 %v786_v24, %v782_v57  ;;  %v824_v57 = vld [vmem:[%s10723_s1 + $0x18e0] sm:$0xff] }
 0x16b   :  { %5055 = vmatpush1.bf16.msra.mxu1 %v5054_v3  ;;  %4273 = vmatprep.subr.bf16.mxu0 %v4272_v4  ;;  %v4292_v3 = vpack.c.bf16 %v793_v60, %v789_v59  ;;  %v788_v4 = vld [vmem:[%s10723_s1 + $0x17c0] sm:$0xff]  ;;  %v826_v59 = vld [vmem:[%s10723_s1 + $0x18f0] sm:$0xff]  ;;  %v829_v60 = vld [vmem:[%s10723_s1 + $0x1908] sm:$0xff] }
 0x16c   :  { %5057 = vmatprep.subr.bf16.mxu1 %v5056_v7  ;;  %v794_v7 = vld [vmem:[%s10723_s1 + $0x17f0] sm:$0xff] }
 0x16e   :  { %4275 = vmatpush1.bf16.msra.mxu0 %v4274_v14  ;;  %v4294_v14 = vpack.c.bf16 %v792_v5, %v788_v4  ;;  %v4312_v4 = vpack.c.bf16 %v833_v63, %v829_v60  ;;  %v828_v5 = vld [vmem:[%s10723_s1 + $0x1900] sm:$0xff]  ;;  %v869_v60 = vld [vmem:[%s10723_s1 + $0x1a48] sm:$0xff] }
 0x16f   :  { %5059 = vmatpush1.bf16.msra.mxu1 %v5058_v15  ;;  %4277 = vmatprep.subr.bf16.mxu0 %v4276_v16  ;;  %v5078_v15 = vpack.c.bf16 %v794_v7, %v790_v6  ;;  %v4296_v16 = vpack.c.bf16 %v801_v45, %v797_v8  ;;  %v832_v6 = vld [vmem:[%s10723_s1 + $0x1920] sm:$0xff]  ;;  %v834_v8 = vld [vmem:[%s10723_s1 + $0x1930] sm:$0xff]  ;;  %v837_v45 = vld [vmem:[%s10723_s1 + $0x1948] sm:$0xff] }
 0x170   :  { %5061 = vmatprep.subr.bf16.mxu1 %v5060_v20  ;;  %v5080_v20 = vpack.c.bf16 %v803_v10, %v799_v9  ;;  %v841_v9 = vld [vmem:[%s10723_s1 + $0x1968] sm:$0xff]  ;;  %v839_v10 = vld [vmem:[%s10723_s1 + $0x1958] sm:$0xff] }
 0x171   :  { %v873_v63 = vld [vmem:[%s10723_s1 + $0x1a68] sm:$0xff] }
 0x172   :  { %4279 = vmatpush1.bf16.msra.mxu0 %v4278_v27  ;;  %v811_v27 = vld [vmem:[%s10723_s1 + $0x1878] sm:$0xff] }
 0x173   :  { %5063 = vmatpush1.bf16.msra.mxu1 %v5062_v28  ;;  %4281 = vmatprep.subr.bf16.mxu0 %v4280_v29  ;;  %v4298_v28 = vpack.c.bf16 %v800_v18, %v796_v17  ;;  %v5082_v29 = vpack.c.bf16 %v802_v50, %v798_v19  ;;  %v5084_v34 = vpack.c.bf16 %v811_v27, %v807_v26  ;;  %v836_v18 = vld [vmem:[%s10723_s1 + $0x1940] sm:$0xff]  ;;  %v849_v26 = vld [vmem:[%s10723_s1 + $0x19a8] sm:$0xff]  ;;  %v847_v27 = vld [vmem:[%s10723_s1 + $0x1998] sm:$0xff] }
 0x174   :  { %5065 = vmatprep.subr.bf16.mxu1 %v5064_v33  ;;  %v806_v33 = vld [vmem:[%s10723_s1 + $0x1850] sm:$0xff]  ;;  %v4316_v17 = vpack.c.bf16 %v841_v9, %v837_v45  ;;  %v840_v19 = vld [vmem:[%s10723_s1 + $0x1960] sm:$0xff]  ;;  %v877_v45 = vld [vmem:[%s10723_s1 + $0x1a88] sm:$0xff] }
 0x175   :  { %v5086_v42 = vpack.c.bf16 %v810_v35, %v806_v33  ;;  %v848_v33 = vld [vmem:[%s10723_s1 + $0x19a0] sm:$0xff]  ;;  %v881_v9 = vld [vmem:[%s10723_s1 + $0x1aa8] sm:$0xff] }
 0x176   :  { %4283 = vmatpush1.bf16.msra.mxu0 %v4282_v38  ;;  %v815_v38 = vld [vmem:[%s10723_s1 + $0x1898] sm:$0xff] }
 0x177   :  { %5067 = vmatpush1.bf16.msra.mxu1 %v5066_v40  ;;  %4285 = vmatprep.subr.bf16.mxu0 %v4284_v41  ;;  %v819_v40 = vld [vmem:[%s10723_s1 + $0x18b8] sm:$0xff]  ;;  %v4302_v41 = vpack.c.bf16 %v808_v32, %v804_v31  ;;  %v4320_v31 = vpack.c.bf16 %v849_v26, %v845_v22  ;;  %v844_v32 = vld [vmem:[%s10723_s1 + $0x1980] sm:$0xff]  ;;  %v885_v22 = vld [vmem:[%s10723_s1 + $0x1ac8] sm:$0xff] }
 0x178   :  { %5069 = vmatprep.subr.bf16.mxu1 %v5068_v39  ;;  %v816_v39 = vld [vmem:[%s10723_s1 + $0x18a0] sm:$0xff]  ;;  %v5088_v47 = vpack.c.bf16 %v819_v40, %v815_v38  ;;  %v855_v38 = vld [vmem:[%s10723_s1 + $0x19d8] sm:$0xff]  ;;  %v889_v26 = vld [vmem:[%s10723_s1 + $0x1ae8] sm:$0xff] }
 0x179   :  { %v859_v40 = vld [vmem:[%s10723_s1 + $0x19f8] sm:$0xff] }
 0x17a   :  { %4287 = vmatpush1.bf16.msra.mxu0 %v4286_v52  ;;  %v827_v52 = vld [vmem:[%s10723_s1 + $0x18f8] sm:$0xff] }
 0x17b   :  { %5071 = vmatpush1.bf16.msra.mxu1 %v5070_v53  ;;  %4289 = vmatprep.subr.bf16.mxu0 %v4288_v54  ;;  %v4306_v53 = vpack.c.bf16 %v816_v39, %v812_v44  ;;  %v5092_v24 = vpack.c.bf16 %v827_v52, %v823_v49  ;;  %v852_v44 = vld [vmem:[%s10723_s1 + $0x19c0] sm:$0xff]  ;;  %v863_v49 = vld [vmem:[%s10723_s1 + $0x1a18] sm:$0xff] }
 0x17c   :  { %5073 = vmatprep.subr.bf16.mxu1 %v5072_v58  ;;  %v822_v58 = vld [vmem:[%s10723_s1 + $0x18d0] sm:$0xff]  ;;  %v856_v39 = vld [vmem:[%s10723_s1 + $0x19e0] sm:$0xff]  ;;  %v867_v52 = vld [vmem:[%s10723_s1 + $0x1a38] sm:$0xff] }
 0x17e   :  { %4291 = vmatpush1.bf16.msra.mxu0 %v4290_v1  ;;  %v835_v1 = vld [vmem:[%s10723_s1 + $0x1938] sm:$0xff] }
 0x17f   :  { %5075 = vmatpush1.bf16.msra.mxu1 %v5074_v2  ;;  %4293 = vmatprep.subr.bf16.mxu0 %v4292_v3  ;;  %v4310_v2 = vpack.c.bf16 %v824_v57, %v820_v56  ;;  %v5094_v3 = vpack.c.bf16 %v826_v59, %v822_v58  ;;  %v5096_v7 = vpack.c.bf16 %v835_v1, %v831_v0  ;;  %v860_v56 = vld [vmem:[%s10723_s1 + $0x1a00] sm:$0xff]  ;;  %v862_v58 = vld [vmem:[%s10723_s1 + $0x1a10] sm:$0xff]  ;;  %v871_v0 = vld [vmem:[%s10723_s1 + $0x1a58] sm:$0xff] }
 0x180   :  { %5077 = vmatprep.subr.bf16.mxu1 %v5076_v51  ;;  %v830_v51 = vld [vmem:[%s10723_s1 + $0x1910] sm:$0xff]  ;;  %v864_v57 = vld [vmem:[%s10723_s1 + $0x1a20] sm:$0xff]  ;;  %v875_v1 = vld [vmem:[%s10723_s1 + $0x1a78] sm:$0xff] }
 0x181   :  { %v866_v59 = vld [vmem:[%s10723_s1 + $0x1a30] sm:$0xff] }
 0x182   :  { %4295 = vmatpush1.bf16.msra.mxu0 %v4294_v14  ;;  %v843_v14 = vld [vmem:[%s10723_s1 + $0x1978] sm:$0xff] }
 0x183   :  { %5079 = vmatpush1.bf16.msra.mxu1 %v5078_v15  ;;  %4297 = vmatprep.subr.bf16.mxu0 %v4296_v16  ;;  %v4314_v15 = vpack.c.bf16 %v832_v6, %v828_v5  ;;  %v5098_v16 = vpack.c.bf16 %v834_v8, %v830_v51  ;;  %v5100_v50 = vpack.c.bf16 %v843_v14, %v839_v10  ;;  %v868_v5 = vld [vmem:[%s10723_s1 + $0x1a40] sm:$0xff]  ;;  %v870_v51 = vld [vmem:[%s10723_s1 + $0x1a50] sm:$0xff]  ;;  %v879_v10 = vld [vmem:[%s10723_s1 + $0x1a98] sm:$0xff] }
 0x184   :  { %5081 = vmatprep.subr.bf16.mxu1 %v5080_v20  ;;  %v838_v20 = vld [vmem:[%s10723_s1 + $0x1950] sm:$0xff]  ;;  %v872_v6 = vld [vmem:[%s10723_s1 + $0x1a60] sm:$0xff]  ;;  %v883_v14 = vld [vmem:[%s10723_s1 + $0x1ab8] sm:$0xff] }
 0x185   :  { %2181 = vmatmul.mubr.f32.vlgmr.msra.gmra.mrb[0].mxu0 %v7675_v12  ;;  %v874_v8 = vld [vmem:[%s10723_s1 + $0x1a70] sm:$0xff] }
 0x186   :  { %4299 = vmatpush1.bf16.msra.mxu0 %v4298_v28  ;;  %3104 = vmatmul.mubr.f32.vlgmr.msra.gmra.mrb[0].mxu1 %v7675_v12  ;;  %v818_v12 = vld [vmem:[%s10723_s1 + $0x18b0] sm:$0xff]  ;;  %v851_v28 = vld [vmem:[%s10723_s1 + $0x19b8] sm:$0xff] }
 0x187   :  { %5083 = vmatpush1.bf16.msra.mxu1 %v5082_v29  ;;  %4301 = vmatprep.subr.bf16.mxu0 %v4300_v30  ;;  %v5090_v54 = vpack.c.bf16 %v818_v12, %v814_v46  ;;  %v4318_v29 = vpack.c.bf16 %v840_v19, %v836_v18  ;;  %v5102_v30 = vpack.c.bf16 %v842_v21, %v838_v20  ;;  %v854_v46 = vld [vmem:[%s10723_s1 + $0x19d0] sm:$0xff]  ;;  %v876_v18 = vld [vmem:[%s10723_s1 + $0x1a80] sm:$0xff] }
 0x188   :  { %5085 = vmatprep.subr.bf16.mxu1 %v5084_v34  ;;  %2251 = vmatprep.mubr.f32.mxu0 %v1691_v37  ;;  %v846_v34 = vld [vmem:[%s10723_s1 + $0x1990] sm:$0xff]  ;;  %v5104_v35 = vpack.c.bf16 %v851_v28, %v847_v27  ;;  %v880_v19 = vld [vmem:[%s10723_s1 + $0x1aa0] sm:$0xff]  ;;  %v887_v27 = vld [vmem:[%s10723_s1 + $0x1ad8] sm:$0xff] }
 0x189   :  { %3174 = vmatprep.mubr.f32.mxu1 %v1691_v37  ;;  %v857_v37 = vld [vmem:[%s10723_s1 + $0x19e8] sm:$0xff]  ;;  %v858_v12 = vld [vmem:[%s10723_s1 + $0x19f0] sm:$0xff]  ;;  %v891_v28 = vld [vmem:[%s10723_s1 + $0x1af8] sm:$0xff] }
 0x18a   :  { %4303 = vmatpush1.bf16.msra.mxu0 %v4302_v41  ;;  %v4322_v41 = vpack.c.bf16 %v848_v33, %v844_v32  ;;  %v878_v20 = vld [vmem:[%s10723_s1 + $0x1a90] sm:$0xff]  ;;  %v884_v32 = vld [vmem:[%s10723_s1 + $0x1ac0] sm:$0xff] }
 0x18b   :  { %5087 = vmatpush1.bf16.msra.mxu1 %v5086_v42  ;;  %4305 = vmatprep.subr.bf16.mxu0 %v4304_v43  ;;  %v5106_v42 = vpack.c.bf16 %v850_v62, %v846_v34  ;;  %v4324_v43 = vpack.c.bf16 %v857_v37, %v853_v36  ;;  %v882_v21 = vld [vmem:[%s10723_s1 + $0x1ab0] sm:$0xff]  ;;  %v888_v33 = vld [vmem:[%s10723_s1 + $0x1ae0] sm:$0xff]  ;;  %v893_v36 = vld [vmem:[%s10723_s1 + $0x1b08] sm:$0xff] }
 0x18c   :  { %5089 = vmatprep.subr.bf16.mxu1 %v5088_v47  ;;  %v5108_v47 = vpack.c.bf16 %v859_v40, %v855_v38  ;;  %v886_v34 = vld [vmem:[%s10723_s1 + $0x1ad0] sm:$0xff]  ;;  %v897_v37 = vld [vmem:[%s10723_s1 + $0x1b28] sm:$0xff]  ;;  %v895_v38 = vld [vmem:[%s10723_s1 + $0x1b18] sm:$0xff] }
 0x18d   :  { %v890_v62 = vld [vmem:[%s10723_s1 + $0x1af0] sm:$0xff]  ;;  %v899_v40 = vld [vmem:[%s10723_s1 + $0x1b38] sm:$0xff] }
 0x18e   :  { %4307 = vmatpush1.bf16.msra.mxu0 %v4306_v53  ;;  %v4326_v53 = vpack.c.bf16 %v856_v39, %v852_v44  ;;  %v892_v44 = vld [vmem:[%s10723_s1 + $0x1b00] sm:$0xff] }
 0x18f   :  { %5091 = vmatpush1.bf16.msra.mxu1 %v5090_v54  ;;  %4309 = vmatprep.subr.bf16.mxu0 %v4308_v55  ;;  %v5110_v54 = vpack.c.bf16 %v858_v12, %v854_v46  ;;  %v4328_v55 = vpack.c.bf16 %v865_v48, %v861_v25  ;;  %v896_v39 = vld [vmem:[%s10723_s1 + $0x1b20] sm:$0xff]  ;;  %v894_v46 = vld [vmem:[%s10723_s1 + $0x1b10] sm:$0xff]  ;;  %v901_v25 = vld [vmem:[%s10723_s1 + $0x1b48] sm:$0xff] }
 0x190   :  { %5093 = vmatprep.subr.bf16.mxu1 %v5092_v24  ;;  %v5112_v24 = vpack.c.bf16 %v867_v52, %v863_v49  ;;  %v898_v12 = vld [vmem:[%s10723_s1 + $0x1b30] sm:$0xff]  ;;  %v905_v48 = vld [vmem:[%s10723_s1 + $0x1b68] sm:$0xff]  ;;  %v903_v49 = vld [vmem:[%s10723_s1 + $0x1b58] sm:$0xff] }
 0x191   :  { %v907_v52 = vld [vmem:[%s10723_s1 + $0x1b78] sm:$0xff] }
 0x192   :  { %4311 = vmatpush1.bf16.msra.mxu0 %v4310_v2  ;;  %v4330_v2 = vpack.c.bf16 %v864_v57, %v860_v56  ;;  %v900_v56 = vld [vmem:[%s10723_s1 + $0x1b40] sm:$0xff] }
 0x193   :  { %5095 = vmatpush1.bf16.msra.mxu1 %v5094_v3  ;;  %4313 = vmatprep.subr.bf16.mxu0 %v4312_v4  ;;  %v5114_v3 = vpack.c.bf16 %v866_v59, %v862_v58  ;;  %v4332_v4 = vpack.c.bf16 %v873_v63, %v869_v60  ;;  %v904_v57 = vld [vmem:[%s10723_s1 + $0x1b60] sm:$0xff]  ;;  %v902_v58 = vld [vmem:[%s10723_s1 + $0x1b50] sm:$0xff]  ;;  %v909_v60 = vld [vmem:[%s10723_s1 + $0x1b88] sm:$0xff] }
 0x194   :  { %5097 = vmatprep.subr.bf16.mxu1 %v5096_v7  ;;  %v5116_v7 = vpack.c.bf16 %v875_v1, %v871_v0  ;;  %v906_v59 = vld [vmem:[%s10723_s1 + $0x1b70] sm:$0xff]  ;;  %v913_v63 = vld [vmem:[%s10723_s1 + $0x1ba8] sm:$0xff]  ;;  %v911_v0 = vld [vmem:[%s10723_s1 + $0x1b98] sm:$0xff] }
 0x195   :  { %v915_v1 = vld [vmem:[%s10723_s1 + $0x1bb8] sm:$0xff] }
 0x196   :  { %4315 = vmatpush1.bf16.msra.mxu0 %v4314_v15  ;;  %v4334_v15 = vpack.c.bf16 %v872_v6, %v868_v5  ;;  %v908_v5 = vld [vmem:[%s10723_s1 + $0x1b80] sm:$0xff] }
 0x197   :  { %5099 = vmatpush1.bf16.msra.mxu1 %v5098_v16  ;;  %4317 = vmatprep.subr.bf16.mxu0 %v4316_v17  ;;  %v5118_v16 = vpack.c.bf16 %v874_v8, %v870_v51  ;;  %v4336_v17 = vpack.c.bf16 %v881_v9, %v877_v45  ;;  %v912_v6 = vld [vmem:[%s10723_s1 + $0x1ba0] sm:$0xff]  ;;  %v910_v51 = vld [vmem:[%s10723_s1 + $0x1b90] sm:$0xff]  ;;  %v917_v45 = vld [vmem:[%s10723_s1 + $0x1bc8] sm:$0xff] }
 0x198   :  { %5101 = vmatprep.subr.bf16.mxu1 %v5100_v50  ;;  %v5120_v50 = vpack.c.bf16 %v883_v14, %v879_v10  ;;  %v914_v8 = vld [vmem:[%s10723_s1 + $0x1bb0] sm:$0xff]  ;;  %v921_v9 = vld [vmem:[%s10723_s1 + $0x1be8] sm:$0xff]  ;;  %v919_v10 = vld [vmem:[%s10723_s1 + $0x1bd8] sm:$0xff] }
 0x199   :  { %v923_v14 = vld [vmem:[%s10723_s1 + $0x1bf8] sm:$0xff] }
 0x19a   :  { %4319 = vmatpush1.bf16.msra.mxu0 %v4318_v29  ;;  %v4338_v29 = vpack.c.bf16 %v880_v19, %v876_v18  ;;  %v916_v18 = vld [vmem:[%s10723_s1 + $0x1bc0] sm:$0xff] }
 0x19b   :  { %5103 = vmatpush1.bf16.msra.mxu1 %v5102_v30  ;;  %4321 = vmatprep.subr.bf16.mxu0 %v4320_v31  ;;  %v5122_v30 = vpack.c.bf16 %v882_v21, %v878_v20  ;;  %v4340_v31 = vpack.c.bf16 %v889_v26, %v885_v22  ;;  %v920_v19 = vld [vmem:[%s10723_s1 + $0x1be0] sm:$0xff]  ;;  %v918_v20 = vld [vmem:[%s10723_s1 + $0x1bd0] sm:$0xff]  ;;  %v925_v22 = vld [vmem:[%s10723_s1 + $0x1c08] sm:$0xff] }
 0x19c   :  { %5105 = vmatprep.subr.bf16.mxu1 %v5104_v35  ;;  %v5124_v35 = vpack.c.bf16 %v891_v28, %v887_v27  ;;  %v922_v21 = vld [vmem:[%s10723_s1 + $0x1bf0] sm:$0xff]  ;;  %v929_v26 = vld [vmem:[%s10723_s1 + $0x1c28] sm:$0xff]  ;;  %v1676_v27 = vcombine.high %v8050_v13, %v8050_v13  ;;  %v927_v28 = vld [vmem:[%s10723_s1 + $0x1c18] sm:$0xff] }
 0x19d   :  { %v928_v13 = vld [vmem:[%s10723_s1 + $0x1c20] sm:$0xff] }
 0x19e   :  { %4323 = vmatpush1.bf16.msra.mxu0 %v4322_v41  ;;  %v4342_v41 = vpack.c.bf16 %v888_v33, %v884_v32  ;;  %v4360_v32 = vpack.c.bf16 %v929_v26, %v925_v22  ;;  %v924_v33 = vld [vmem:[%s10723_s1 + $0x1c00] sm:$0xff]  ;;  %v962_v22 = vld [vmem:[%s10723_s1 + $0x1d30] sm:$0xff]  ;;  %v965_v26 = vld [vmem:[%s10723_s1 + $0x1d48] sm:$0xff] }
 0x19f   :  { %5107 = vmatpush1.bf16.msra.mxu1 %v5106_v42  ;;  %4325 = vmatprep.subr.bf16.mxu0 %v4324_v43  ;;  %v5126_v42 = vpack.c.bf16 %v890_v62, %v886_v34  ;;  %v4344_v43 = vpack.c.bf16 %v897_v37, %v893_v36  ;;  %v926_v34 = vld [vmem:[%s10723_s1 + $0x1c10] sm:$0xff]  ;;  %v933_v36 = vld [vmem:[%s10723_s1 + $0x1c48] sm:$0xff] }
 0x1a0   :  { %5109 = vmatprep.subr.bf16.mxu1 %v5108_v47  ;;  %v5128_v47 = vpack.c.bf16 %v899_v40, %v895_v38  ;;  %v930_v62 = vld [vmem:[%s10723_s1 + $0x1c30] sm:$0xff]  ;;  %v937_v37 = vld [vmem:[%s10723_s1 + $0x1c68] sm:$0xff]  ;;  %v8465_v38 = vrot.slane %v1676_v27, %v5941_v11  ;;  %v935_v40 = vld [vmem:[%s10723_s1 + $0x1c58] sm:$0xff] }
 0x1a1   :  { %v969_v27 = vld [vmem:[%s10723_s1 + $0x1d68] sm:$0xff] }
 0x1a2   :  { %4327 = vmatpush1.bf16.msra.mxu0 %v4326_v53  ;;  %v4346_v53 = vpack.c.bf16 %v896_v39, %v892_v44  ;;  %v4364_v44 = vpack.c.bf16 %v937_v37, %v933_v36  ;;  %v932_v39 = vld [vmem:[%s10723_s1 + $0x1c40] sm:$0xff]  ;;  %v973_v36 = vld [vmem:[%s10723_s1 + $0x1d88] sm:$0xff] }
 0x1a3   :  { %5111 = vmatpush1.bf16.msra.mxu1 %v5110_v54  ;;  %4329 = vmatprep.subr.bf16.mxu0 %v4328_v55  ;;  %v5130_v54 = vpack.c.bf16 %v898_v12, %v894_v46  ;;  %v4348_v55 = vpack.c.bf16 %v905_v48, %v901_v25  ;;  %v936_v46 = vld [vmem:[%s10723_s1 + $0x1c60] sm:$0xff]  ;;  %v938_v25 = vld [vmem:[%s10723_s1 + $0x1c70] sm:$0xff]  ;;  %v941_v48 = vld [vmem:[%s10723_s1 + $0x1c88] sm:$0xff] }
 0x1a4   :  { %5113 = vmatprep.subr.bf16.mxu1 %v5112_v24  ;;  %v5132_v24 = vpack.c.bf16 %v907_v52, %v903_v49  ;;  %v945_v49 = vld [vmem:[%s10723_s1 + $0x1ca8] sm:$0xff]  ;;  %v1692_v52 = vcombine.high %v8465_v38, %v8465_v38 }
 0x1a5   :  { %v977_v37 = vld [vmem:[%s10723_s1 + $0x1da8] sm:$0xff] }
 0x1a6   :  { %4331 = vmatpush1.bf16.msra.mxu0 %v4330_v2  ;;  %v4350_v2 = vpack.c.bf16 %v904_v57, %v900_v56  ;;  %v4368_v57 = vpack.c.bf16 %v945_v49, %v941_v48  ;;  %v981_v48 = vld [vmem:[%s10723_s1 + $0x1dc8] sm:$0xff] }
 0x1a7   :  { %5115 = vmatpush1.bf16.msra.mxu1 %v5114_v3  ;;  %4333 = vmatprep.subr.bf16.mxu0 %v4332_v4  ;;  %v5134_v3 = vpack.c.bf16 %v906_v59, %v902_v58  ;;  %v4352_v4 = vpack.c.bf16 %v913_v63, %v909_v60  ;;  %v940_v58 = vld [vmem:[%s10723_s1 + $0x1c80] sm:$0xff]  ;;  %v942_v59 = vld [vmem:[%s10723_s1 + $0x1c90] sm:$0xff]  ;;  %v949_v63 = vld [vmem:[%s10723_s1 + $0x1cc8] sm:$0xff] }
 0x1a8   :  { %5117 = vmatprep.subr.bf16.mxu1 %v5116_v7  ;;  %v5136_v7 = vpack.c.bf16 %v915_v1, %v911_v0  ;;  %v953_v0 = vld [vmem:[%s10723_s1 + $0x1ce8] sm:$0xff]  ;;  %v951_v1 = vld [vmem:[%s10723_s1 + $0x1cd8] sm:$0xff] }
 0x1a9   :  { %v985_v49 = vld [vmem:[%s10723_s1 + $0x1de8] sm:$0xff] }
 0x1aa   :  { %4335 = vmatpush1.bf16.msra.mxu0 %v4334_v15  ;;  %v4354_v15 = vpack.c.bf16 %v912_v6, %v908_v5  ;;  %v4372_v5 = vpack.c.bf16 %v953_v0, %v949_v63  ;;  %v948_v6 = vld [vmem:[%s10723_s1 + $0x1cc0] sm:$0xff]  ;;  %v993_v63 = vld [vmem:[%s10723_s1 + $0x1e28] sm:$0xff]  ;;  %v991_v0 = vld [vmem:[%s10723_s1 + $0x1e18] sm:$0xff] }
 0x1ab   :  { %5119 = vmatpush1.bf16.msra.mxu1 %v5118_v16  ;;  %4337 = vmatprep.subr.bf16.mxu0 %v4336_v17  ;;  %v5138_v16 = vpack.c.bf16 %v914_v8, %v910_v51  ;;  %v4356_v17 = vpack.c.bf16 %v921_v9, %v917_v45  ;;  %v952_v51 = vld [vmem:[%s10723_s1 + $0x1ce0] sm:$0xff]  ;;  %v954_v45 = vld [vmem:[%s10723_s1 + $0x1cf0] sm:$0xff]  ;;  %v957_v9 = vld [vmem:[%s10723_s1 + $0x1d08] sm:$0xff] }
 0x1ac   :  { %5121 = vmatprep.subr.bf16.mxu1 %v5120_v50  ;;  %v5140_v50 = vpack.c.bf16 %v923_v14, %v919_v10  ;;  %v961_v10 = vld [vmem:[%s10723_s1 + $0x1d28] sm:$0xff]  ;;  %v959_v14 = vld [vmem:[%s10723_s1 + $0x1d18] sm:$0xff] }
 0x1ae   :  { %4339 = vmatpush1.bf16.msra.mxu0 %v4338_v29  ;;  %v931_v29 = vld [vmem:[%s10723_s1 + $0x1c38] sm:$0xff] }
 0x1af   :  { %5123 = vmatpush1.bf16.msra.mxu1 %v5122_v30  ;;  %4341 = vmatprep.subr.bf16.mxu0 %v4340_v31  ;;  %v4358_v30 = vpack.c.bf16 %v920_v19, %v916_v18  ;;  %v5142_v31 = vpack.c.bf16 %v922_v21, %v918_v20  ;;  %v4376_v18 = vpack.c.bf16 %v961_v10, %v957_v9  ;;  %v956_v19 = vld [vmem:[%s10723_s1 + $0x1d00] sm:$0xff]  ;;  %v1001_v9 = vld [vmem:[%s10723_s1 + $0x1e68] sm:$0xff]  ;;  %v999_v10 = vld [vmem:[%s10723_s1 + $0x1e58] sm:$0xff] }
 0x1b0   :  { %5125 = vmatprep.subr.bf16.mxu1 %v5124_v35  ;;  %v5144_v35 = vpack.c.bf16 %v931_v29, %v927_v28  ;;  %v960_v20 = vld [vmem:[%s10723_s1 + $0x1d20] sm:$0xff]  ;;  %v967_v28 = vld [vmem:[%s10723_s1 + $0x1d58] sm:$0xff] }
 0x1b1   :  { %v971_v29 = vld [vmem:[%s10723_s1 + $0x1d78] sm:$0xff] }
 0x1b2   :  { %4343 = vmatpush1.bf16.msra.mxu0 %v4342_v41  ;;  %v939_v41 = vld [vmem:[%s10723_s1 + $0x1c78] sm:$0xff] }
 0x1b3   :  { %5127 = vmatpush1.bf16.msra.mxu1 %v5126_v42  ;;  %4345 = vmatprep.subr.bf16.mxu0 %v4344_v43  ;;  %v4362_v42 = vpack.c.bf16 %v928_v13, %v924_v33  ;;  %v5146_v43 = vpack.c.bf16 %v930_v62, %v926_v34  ;;  %v5148_v12 = vpack.c.bf16 %v939_v41, %v935_v40  ;;  %v964_v33 = vld [vmem:[%s10723_s1 + $0x1d40] sm:$0xff]  ;;  %v966_v34 = vld [vmem:[%s10723_s1 + $0x1d50] sm:$0xff]  ;;  %v975_v40 = vld [vmem:[%s10723_s1 + $0x1d98] sm:$0xff] }
 0x1b4   :  { %5129 = vmatprep.subr.bf16.mxu1 %v5128_v47  ;;  %v934_v47 = vld [vmem:[%s10723_s1 + $0x1c50] sm:$0xff]  ;;  %v968_v13 = vld [vmem:[%s10723_s1 + $0x1d60] sm:$0xff]  ;;  %v979_v41 = vld [vmem:[%s10723_s1 + $0x1db8] sm:$0xff] }
 0x1b5   :  { %v5150_v56 = vpack.c.bf16 %v938_v25, %v934_v47  ;;  %v970_v62 = vld [vmem:[%s10723_s1 + $0x1d70] sm:$0xff] }
 0x1b6   :  { %4347 = vmatpush1.bf16.msra.mxu0 %v4346_v53  ;;  %v943_v53 = vld [vmem:[%s10723_s1 + $0x1c98] sm:$0xff]  ;;  %v974_v47 = vld [vmem:[%s10723_s1 + $0x1d90] sm:$0xff] }
 0x1b7   :  { %5131 = vmatpush1.bf16.msra.mxu1 %v5130_v54  ;;  %4349 = vmatprep.subr.bf16.mxu0 %v4348_v55  ;;  %v947_v54 = vld [vmem:[%s10723_s1 + $0x1cb8] sm:$0xff]  ;;  %v4366_v55 = vpack.c.bf16 %v936_v46, %v932_v39  ;;  %v972_v39 = vld [vmem:[%s10723_s1 + $0x1d80] sm:$0xff]  ;;  %v978_v25 = vld [vmem:[%s10723_s1 + $0x1db0] sm:$0xff] }
 0x1b8   :  { %5133 = vmatprep.subr.bf16.mxu1 %v5132_v24  ;;  %v944_v24 = vld [vmem:[%s10723_s1 + $0x1ca0] sm:$0xff]  ;;  %v5152_v60 = vpack.c.bf16 %v947_v54, %v943_v53  ;;  %v987_v53 = vld [vmem:[%s10723_s1 + $0x1df8] sm:$0xff] }
 0x1b9   :  { %v976_v46 = vld [vmem:[%s10723_s1 + $0x1da0] sm:$0xff] }
 0x1ba   :  { %4351 = vmatpush1.bf16.msra.mxu0 %v4350_v2  ;;  %v955_v2 = vld [vmem:[%s10723_s1 + $0x1cf8] sm:$0xff]  ;;  %v4386_v54 = vpack.c.bf16 %v976_v46, %v972_v39  ;;  %v1016_v39 = vld [vmem:[%s10723_s1 + $0x1ee0] sm:$0xff]  ;;  %v1014_v46 = vld [vmem:[%s10723_s1 + $0x1ed0] sm:$0xff] }
 0x1bb   :  { %5135 = vmatpush1.bf16.msra.mxu1 %v5134_v3  ;;  %4353 = vmatprep.subr.bf16.mxu0 %v4352_v4  ;;  %v4370_v3 = vpack.c.bf16 %v944_v24, %v940_v58  ;;  %v5156_v8 = vpack.c.bf16 %v955_v2, %v951_v1  ;;  %v984_v58 = vld [vmem:[%s10723_s1 + $0x1de0] sm:$0xff]  ;;  %v982_v24 = vld [vmem:[%s10723_s1 + $0x1dd0] sm:$0xff]  ;;  %v995_v1 = vld [vmem:[%s10723_s1 + $0x1e38] sm:$0xff] }
 0x1bc   :  { %5137 = vmatprep.subr.bf16.mxu1 %v5136_v7  ;;  %v950_v7 = vld [vmem:[%s10723_s1 + $0x1cd0] sm:$0xff] }
 0x1be   :  { %4355 = vmatpush1.bf16.msra.mxu0 %v4354_v15  ;;  %v963_v15 = vld [vmem:[%s10723_s1 + $0x1d38] sm:$0xff] }
 0x1bf   :  { %5139 = vmatpush1.bf16.msra.mxu1 %v5138_v16  ;;  %4357 = vmatprep.subr.bf16.mxu0 %v4356_v17  ;;  %v4374_v16 = vpack.c.bf16 %v952_v51, %v948_v6  ;;  %v5158_v17 = vpack.c.bf16 %v954_v45, %v950_v7  ;;  %v5160_v21 = vpack.c.bf16 %v963_v15, %v959_v14  ;;  %v992_v6 = vld [vmem:[%s10723_s1 + $0x1e20] sm:$0xff]  ;;  %v990_v51 = vld [vmem:[%s10723_s1 + $0x1e10] sm:$0xff]  ;;  %v997_v45 = vld [vmem:[%s10723_s1 + $0x1e48] sm:$0xff] }
 0x1c0   :  { %5141 = vmatprep.subr.bf16.mxu1 %v5140_v50  ;;  %v958_v50 = vld [vmem:[%s10723_s1 + $0x1d10] sm:$0xff]  ;;  %v5176_v7 = vpack.c.bf16 %v995_v1, %v991_v0  ;;  %v1003_v14 = vld [vmem:[%s10723_s1 + $0x1e78] sm:$0xff] }
 0x1c1   :  { %v1035_v0 = vld [vmem:[%s10723_s1 + $0x1f78] sm:$0xff] }
 0x1c2   :  { %4359 = vmatpush1.bf16.msra.mxu0 %v4358_v30  ;;  %v4378_v30 = vpack.c.bf16 %v960_v20, %v956_v19  ;;  %v1000_v19 = vld [vmem:[%s10723_s1 + $0x1e60] sm:$0xff]  ;;  %v998_v20 = vld [vmem:[%s10723_s1 + $0x1e50] sm:$0xff] }
 0x1c3   :  { %5143 = vmatpush1.bf16.msra.mxu1 %v5142_v31  ;;  %4361 = vmatprep.subr.bf16.mxu0 %v4360_v32  ;;  %v5162_v31 = vpack.c.bf16 %v962_v22, %v958_v50  ;;  %v4380_v32 = vpack.c.bf16 %v969_v27, %v965_v26  ;;  %v5180_v50 = vpack.c.bf16 %v1003_v14, %v999_v10  ;;  %v1005_v22 = vld [vmem:[%s10723_s1 + $0x1e88] sm:$0xff]  ;;  %v1007_v27 = vld [vmem:[%s10723_s1 + $0x1e98] sm:$0xff] }
 0x1c4   :  { %5145 = vmatprep.subr.bf16.mxu1 %v5144_v35  ;;  %v5164_v35 = vpack.c.bf16 %v971_v29, %v967_v28  ;;  %v1009_v26 = vld [vmem:[%s10723_s1 + $0x1ea8] sm:$0xff]  ;;  %v1011_v28 = vld [vmem:[%s10723_s1 + $0x1eb8] sm:$0xff] }
 0x1c5   :  { %2252 = vmatmul.mubr.f32.vlgmr.msra.gmra.mrb[0].mxu0 %v8072_v23  ;;  %v1043_v10 = vld [vmem:[%s10723_s1 + $0x1fb8] sm:$0xff] }
 0x1c6   :  { %4363 = vmatpush1.bf16.msra.mxu0 %v4362_v42  ;;  %3175 = vmatmul.mubr.f32.vlgmr.msra.gmra.mrb[0].mxu1 %v8072_v23  ;;  %v946_v23 = vld [vmem:[%s10723_s1 + $0x1cb0] sm:$0xff]  ;;  %v4382_v42 = vpack.c.bf16 %v968_v13, %v964_v33  ;;  %v1008_v33 = vld [vmem:[%s10723_s1 + $0x1ea0] sm:$0xff] }
 0x1c7   :  { %5147 = vmatpush1.bf16.msra.mxu1 %v5146_v43  ;;  %4365 = vmatprep.subr.bf16.mxu0 %v4364_v44  ;;  %v5154_v4 = vpack.c.bf16 %v946_v23, %v942_v59  ;;  %v5166_v43 = vpack.c.bf16 %v970_v62, %v966_v34  ;;  %v4384_v44 = vpack.c.bf16 %v977_v37, %v973_v36  ;;  %v989_v23 = vld [vmem:[%s10723_s1 + $0x1e08] sm:$0xff]  ;;  %v1006_v13 = vld [vmem:[%s10723_s1 + $0x1e90] sm:$0xff]  ;;  %v1015_v37 = vld [vmem:[%s10723_s1 + $0x1ed8] sm:$0xff] }
 0x1c8   :  { %5149 = vmatprep.subr.bf16.mxu1 %v5148_v12  ;;  %2322 = vmatprep.mubr.f32.mxu0 %v1692_v52  ;;  %v5168_v12 = vpack.c.bf16 %v979_v41, %v975_v40  ;;  %v5184_v34 = vpack.c.bf16 %v1011_v28, %v1007_v27  ;;  %v1013_v62 = vld [vmem:[%s10723_s1 + $0x1ec8] sm:$0xff]  ;;  %v1019_v40 = vld [vmem:[%s10723_s1 + $0x1ef8] sm:$0xff] }
 0x1c9   :  { %3245 = vmatprep.mubr.f32.mxu1 %v1692_v52  ;;  %v983_v52 = vld [vmem:[%s10723_s1 + $0x1dd8] sm:$0xff]  ;;  %v1017_v36 = vld [vmem:[%s10723_s1 + $0x1ee8] sm:$0xff] }
 0x1ca   :  { %4367 = vmatpush1.bf16.msra.mxu0 %v4366_v55  ;;  %v5170_v55 = vpack.c.bf16 %v978_v25, %v974_v47  ;;  %v5172_v59 = vpack.c.bf16 %v987_v53, %v983_v52  ;;  %v5188_v47 = vpack.c.bf16 %v1019_v40, %v1015_v37  ;;  %v1021_v25 = vld [vmem:[%s10723_s1 + $0x1f08] sm:$0xff]  ;;  %v1027_v52 = vld [vmem:[%s10723_s1 + $0x1f38] sm:$0xff]  ;;  %v8840_v40 = vld [vmem:[%s10722_s0 + $0x20] sm:$0xff] }
 0x1cb   :  { %5151 = vmatpush1.bf16.msra.mxu1 %v5150_v56  ;;  %4369 = vmatprep.subr.bf16.mxu0 %v4368_v57  ;;  %v4388_v56 = vpack.c.bf16 %v985_v49, %v981_v48  ;;  %v980_v57 = vld [vmem:[%s10723_s1 + $0x1dc0] sm:$0xff]  ;;  %v1025_v48 = vld [vmem:[%s10723_s1 + $0x1f28] sm:$0xff]  ;;  %v1023_v49 = vld [vmem:[%s10723_s1 + $0x1f18] sm:$0xff] }
 0x1cc   :  { %5153 = vmatprep.subr.bf16.mxu1 %v5152_v60  ;;  %v986_v60 = vld [vmem:[%s10723_s1 + $0x1df0] sm:$0xff]  ;;  %v4390_v2 = vpack.c.bf16 %v984_v58, %v980_v57  ;;  %v1024_v57 = vld [vmem:[%s10723_s1 + $0x1f20] sm:$0xff]  ;;  %v1051_v27 = vld [vmem:[%s10723_s1 + $0x1ff8] sm:$0xff] }
 0x1cd   :  { %v1022_v58 = vld [vmem:[%s10723_s1 + $0x1f10] sm:$0xff]  ;;  %v1059_v37 = vld [vmem:[%s10723_s1 + $0x2038] sm:$0xff] }
 0x1ce   :  { %4371 = vmatpush1.bf16.msra.mxu0 %v4370_v3  ;;  %v5174_v3 = vpack.c.bf16 %v986_v60, %v982_v24  ;;  %v5192_v24 = vpack.c.bf16 %v1027_v52, %v1023_v49  ;;  %v1029_v60 = vld [vmem:[%s10723_s1 + $0x1f48] sm:$0xff]  ;;  %v8862_v49 = vrot.slane %v8840_v40, %v5941_v11  ;;  %v1063_v52 = vld [vmem:[%s10723_s1 + $0x2058] sm:$0xff] }
 0x1cf   :  { %5155 = vmatpush1.bf16.msra.mxu1 %v5154_v4  ;;  %4373 = vmatprep.subr.bf16.mxu0 %v4372_v5  ;;  %v4392_v4 = vpack.c.bf16 %v993_v63, %v989_v23  ;;  %v988_v5 = vld [vmem:[%s10723_s1 + $0x1e00] sm:$0xff]  ;;  %v1033_v23 = vld [vmem:[%s10723_s1 + $0x1f68] sm:$0xff]  ;;  %v1031_v63 = vld [vmem:[%s10723_s1 + $0x1f58] sm:$0xff] }
 0x1d0   :  { %5157 = vmatprep.subr.bf16.mxu1 %v5156_v8  ;;  %v994_v8 = vld [vmem:[%s10723_s1 + $0x1e30] sm:$0xff]  ;;  %v4394_v15 = vpack.c.bf16 %v992_v6, %v988_v5  ;;  %v1032_v5 = vld [vmem:[%s10723_s1 + $0x1f60] sm:$0xff] }
 0x1d1   :  { %v1030_v6 = vld [vmem:[%s10723_s1 + $0x1f50] sm:$0xff] }
 0x1d2   :  { %4375 = vmatpush1.bf16.msra.mxu0 %v4374_v16  ;;  %v5178_v16 = vpack.c.bf16 %v994_v8, %v990_v51  ;;  %v5196_v51 = vpack.c.bf16 %v1035_v0, %v1031_v63  ;;  %v1037_v8 = vld [vmem:[%s10723_s1 + $0x1f88] sm:$0xff]  ;;  %v1708_v0 = vcombine.high %v8862_v49, %v8862_v49 }
 0x1d3   :  { %5159 = vmatpush1.bf16.msra.mxu1 %v5158_v17  ;;  %4377 = vmatprep.subr.bf16.mxu0 %v4376_v18  ;;  %v4396_v17 = vpack.c.bf16 %v1001_v9, %v997_v45  ;;  %v996_v18 = vld [vmem:[%s10723_s1 + $0x1e40] sm:$0xff]  ;;  %v1041_v45 = vld [vmem:[%s10723_s1 + $0x1fa8] sm:$0xff]  ;;  %v1039_v9 = vld [vmem:[%s10723_s1 + $0x1f98] sm:$0xff] }
 0x1d4   :  { %5161 = vmatprep.subr.bf16.mxu1 %v5160_v21  ;;  %v1002_v21 = vld [vmem:[%s10723_s1 + $0x1e70] sm:$0xff]  ;;  %v4398_v29 = vpack.c.bf16 %v1000_v19, %v996_v18  ;;  %v1040_v18 = vld [vmem:[%s10723_s1 + $0x1fa0] sm:$0xff]  ;;  %v1073_v63 = vld [vmem:[%s10723_s1 + $0x20a8] sm:$0xff] }
 0x1d5   :  { %v1038_v19 = vld [vmem:[%s10723_s1 + $0x1f90] sm:$0xff] }
 0x1d6   :  { %4379 = vmatpush1.bf16.msra.mxu0 %v4378_v30  ;;  %v5182_v30 = vpack.c.bf16 %v1002_v21, %v998_v20  ;;  %v5200_v20 = vpack.c.bf16 %v1043_v10, %v1039_v9  ;;  %v1045_v21 = vld [vmem:[%s10723_s1 + $0x1fc8] sm:$0xff]  ;;  %v1079_v10 = vld [vmem:[%s10723_s1 + $0x20d8] sm:$0xff] }
 0x1d7   :  { %5163 = vmatpush1.bf16.msra.mxu1 %v5162_v31  ;;  %4381 = vmatprep.subr.bf16.mxu0 %v4380_v32  ;;  %v4400_v31 = vpack.c.bf16 %v1009_v26, %v1005_v22  ;;  %v1004_v32 = vld [vmem:[%s10723_s1 + $0x1e80] sm:$0xff]  ;;  %v1049_v22 = vld [vmem:[%s10723_s1 + $0x1fe8] sm:$0xff]  ;;  %v1047_v26 = vld [vmem:[%s10723_s1 + $0x1fd8] sm:$0xff] }
 0x1d8   :  { %5165 = vmatprep.subr.bf16.mxu1 %v5164_v35  ;;  %v1010_v35 = vld [vmem:[%s10723_s1 + $0x1eb0] sm:$0xff]  ;;  %v4402_v41 = vpack.c.bf16 %v1008_v33, %v1004_v32  ;;  %v1048_v32 = vld [vmem:[%s10723_s1 + $0x1fe0] sm:$0xff]  ;;  %v1081_v9 = vld [vmem:[%s10723_s1 + $0x20e8] sm:$0xff] }
 0x1d9   :  { %v1046_v33 = vld [vmem:[%s10723_s1 + $0x1fd0] sm:$0xff] }
 0x1da   :  { %4383 = vmatpush1.bf16.msra.mxu0 %v4382_v42  ;;  %v5186_v42 = vpack.c.bf16 %v1010_v35, %v1006_v13  ;;  %v5204_v13 = vpack.c.bf16 %v1051_v27, %v1047_v26  ;;  %v1053_v35 = vld [vmem:[%s10723_s1 + $0x2008] sm:$0xff]  ;;  %v1087_v27 = vld [vmem:[%s10723_s1 + $0x2118] sm:$0xff] }
 0x1db   :  { %5167 = vmatpush1.bf16.msra.mxu1 %v5166_v43  ;;  %4385 = vmatprep.subr.bf16.mxu0 %v4384_v44  ;;  %v4404_v43 = vpack.c.bf16 %v1017_v36, %v1013_v62  ;;  %v1012_v44 = vld [vmem:[%s10723_s1 + $0x1ec0] sm:$0xff]  ;;  %v1057_v62 = vld [vmem:[%s10723_s1 + $0x2028] sm:$0xff]  ;;  %v1055_v36 = vld [vmem:[%s10723_s1 + $0x2018] sm:$0xff] }
 0x1dc   :  { %5169 = vmatprep.subr.bf16.mxu1 %v5168_v12  ;;  %v1018_v12 = vld [vmem:[%s10723_s1 + $0x1ef0] sm:$0xff]  ;;  %v4406_v53 = vpack.c.bf16 %v1016_v39, %v1012_v44  ;;  %v1052_v44 = vld [vmem:[%s10723_s1 + $0x2000] sm:$0xff]  ;;  %v1089_v26 = vld [vmem:[%s10723_s1 + $0x2128] sm:$0xff] }
 0x1dd   :  { %v1056_v39 = vld [vmem:[%s10723_s1 + $0x2020] sm:$0xff] }
 0x1de   :  { %4387 = vmatpush1.bf16.msra.mxu0 %v4386_v54  ;;  %v5190_v54 = vpack.c.bf16 %v1018_v12, %v1014_v46  ;;  %v1054_v46 = vld [vmem:[%s10723_s1 + $0x2010] sm:$0xff] }
 0x1df   :  { %5171 = vmatpush1.bf16.msra.mxu1 %v5170_v55  ;;  %4389 = vmatprep.subr.bf16.mxu0 %v4388_v56  ;;  %v4408_v55 = vpack.c.bf16 %v1025_v48, %v1021_v25  ;;  %v1020_v56 = vld [vmem:[%s10723_s1 + $0x1f00] sm:$0xff]  ;;  %v1058_v12 = vld [vmem:[%s10723_s1 + $0x2030] sm:$0xff]  ;;  %v1061_v25 = vld [vmem:[%s10723_s1 + $0x2048] sm:$0xff] }
 0x1e0   :  { %5173 = vmatprep.subr.bf16.mxu1 %v5172_v59  ;;  %v1026_v59 = vld [vmem:[%s10723_s1 + $0x1f30] sm:$0xff]  ;;  %v4410_v1 = vpack.c.bf16 %v1024_v57, %v1020_v56  ;;  %v1065_v48 = vld [vmem:[%s10723_s1 + $0x2068] sm:$0xff]  ;;  %v1060_v57 = vld [vmem:[%s10723_s1 + $0x2040] sm:$0xff] }
 0x1e1   :  { %v4428_v56 = vpack.c.bf16 %v1065_v48, %v1061_v25  ;;  %v1098_v25 = vld [vmem:[%s10723_s1 + $0x2170] sm:$0xff]  ;;  %v1101_v48 = vld [vmem:[%s10723_s1 + $0x2188] sm:$0xff] }
 0x1e2   :  { %4391 = vmatpush1.bf16.msra.mxu0 %v4390_v2  ;;  %v5194_v2 = vpack.c.bf16 %v1026_v59, %v1022_v58  ;;  %v1064_v58 = vld [vmem:[%s10723_s1 + $0x2060] sm:$0xff] }
 0x1e3   :  { %5175 = vmatpush1.bf16.msra.mxu1 %v5174_v3  ;;  %4393 = vmatprep.subr.bf16.mxu0 %v4392_v4  ;;  %v4412_v3 = vpack.c.bf16 %v1033_v23, %v1029_v60  ;;  %v1028_v4 = vld [vmem:[%s10723_s1 + $0x1f40] sm:$0xff]  ;;  %v1066_v60 = vld [vmem:[%s10723_s1 + $0x2070] sm:$0xff]  ;;  %v1069_v23 = vld [vmem:[%s10723_s1 + $0x2088] sm:$0xff] }
 0x1e4   :  { %5177 = vmatprep.subr.bf16.mxu1 %v5176_v7  ;;  %v1034_v7 = vld [vmem:[%s10723_s1 + $0x1f70] sm:$0xff]  ;;  %v4414_v14 = vpack.c.bf16 %v1032_v5, %v1028_v4  ;;  %v4432_v5 = vpack.c.bf16 %v1073_v63, %v1069_v23  ;;  %v1109_v63 = vld [vmem:[%s10723_s1 + $0x21c8] sm:$0xff] }
 0x1e5   :  { %v1106_v23 = vld [vmem:[%s10723_s1 + $0x21b0] sm:$0xff] }
 0x1e6   :  { %4395 = vmatpush1.bf16.msra.mxu0 %v4394_v15  ;;  %v5198_v15 = vpack.c.bf16 %v1034_v7, %v1030_v6  ;;  %v1068_v6 = vld [vmem:[%s10723_s1 + $0x2080] sm:$0xff]  ;;  %v1070_v7 = vld [vmem:[%s10723_s1 + $0x2090] sm:$0xff] }
 0x1e7   :  { %5179 = vmatpush1.bf16.msra.mxu1 %v5178_v16  ;;  %4397 = vmatprep.subr.bf16.mxu0 %v4396_v17  ;;  %v4416_v16 = vpack.c.bf16 %v1041_v45, %v1037_v8  ;;  %v1036_v17 = vld [vmem:[%s10723_s1 + $0x1f80] sm:$0xff]  ;;  %v1077_v45 = vld [vmem:[%s10723_s1 + $0x20c8] sm:$0xff] }
 0x1e8   :  { %5181 = vmatprep.subr.bf16.mxu1 %v5180_v50  ;;  %v1042_v50 = vld [vmem:[%s10723_s1 + $0x1fb0] sm:$0xff]  ;;  %v4418_v28 = vpack.c.bf16 %v1040_v18, %v1036_v17  ;;  %v4436_v17 = vpack.c.bf16 %v1081_v9, %v1077_v45  ;;  %v1076_v18 = vld [vmem:[%s10723_s1 + $0x20c0] sm:$0xff]  ;;  %v1117_v45 = vld [vmem:[%s10723_s1 + $0x2208] sm:$0xff] }
 0x1e9   :  { %v1121_v9 = vld [vmem:[%s10723_s1 + $0x2228] sm:$0xff] }
 0x1ea   :  { %4399 = vmatpush1.bf16.msra.mxu0 %v4398_v29  ;;  %v5202_v29 = vpack.c.bf16 %v1042_v50, %v1038_v19  ;;  %v1080_v19 = vld [vmem:[%s10723_s1 + $0x20e0] sm:$0xff] }
 0x1eb   :  { %5183 = vmatpush1.bf16.msra.mxu1 %v5182_v30  ;;  %4401 = vmatprep.subr.bf16.mxu0 %v4400_v31  ;;  %v4420_v30 = vpack.c.bf16 %v1049_v22, %v1045_v21  ;;  %v1044_v31 = vld [vmem:[%s10723_s1 + $0x1fc0] sm:$0xff]  ;;  %v1082_v21 = vld [vmem:[%s10723_s1 + $0x20f0] sm:$0xff]  ;;  %v1085_v22 = vld [vmem:[%s10723_s1 + $0x2108] sm:$0xff] }
 0x1ec   :  { %5185 = vmatprep.subr.bf16.mxu1 %v5184_v34  ;;  %v1050_v34 = vld [vmem:[%s10723_s1 + $0x1ff0] sm:$0xff] }
 0x1ee   :  { %4403 = vmatpush1.bf16.msra.mxu0 %v4402_v41  ;;  %v4422_v41 = vpack.c.bf16 %v1048_v32, %v1044_v31  ;;  %v4440_v31 = vpack.c.bf16 %v1089_v26, %v1085_v22  ;;  %v1084_v32 = vld [vmem:[%s10723_s1 + $0x2100] sm:$0xff]  ;;  %v1125_v22 = vld [vmem:[%s10723_s1 + $0x2248] sm:$0xff] }
 0x1ef   :  { %5187 = vmatpush1.bf16.msra.mxu1 %v5186_v42  ;;  %4405 = vmatprep.subr.bf16.mxu0 %v4404_v43  ;;  %v5206_v42 = vpack.c.bf16 %v1050_v34, %v1046_v33  ;;  %v4424_v43 = vpack.c.bf16 %v1057_v62, %v1053_v35  ;;  %v1088_v33 = vld [vmem:[%s10723_s1 + $0x2120] sm:$0xff]  ;;  %v1090_v35 = vld [vmem:[%s10723_s1 + $0x2130] sm:$0xff]  ;;  %v1093_v62 = vld [vmem:[%s10723_s1 + $0x2148] sm:$0xff] }
 0x1f0   :  { %5189 = vmatprep.subr.bf16.mxu1 %v5188_v47  ;;  %v5208_v47 = vpack.c.bf16 %v1059_v37, %v1055_v36  ;;  %v1097_v36 = vld [vmem:[%s10723_s1 + $0x2168] sm:$0xff]  ;;  %v1095_v37 = vld [vmem:[%s10723_s1 + $0x2158] sm:$0xff] }
 0x1f1   :  { %v1129_v26 = vld [vmem:[%s10723_s1 + $0x2268] sm:$0xff] }
 0x1f2   :  { %4407 = vmatpush1.bf16.msra.mxu0 %v4406_v53  ;;  %v1067_v53 = vld [vmem:[%s10723_s1 + $0x2078] sm:$0xff] }
 0x1f3   :  { %5191 = vmatpush1.bf16.msra.mxu1 %v5190_v54  ;;  %4409 = vmatprep.subr.bf16.mxu0 %v4408_v55  ;;  %v4426_v54 = vpack.c.bf16 %v1056_v39, %v1052_v44  ;;  %v5210_v55 = vpack.c.bf16 %v1058_v12, %v1054_v46  ;;  %v5212_v59 = vpack.c.bf16 %v1067_v53, %v1063_v52  ;;  %v1092_v39 = vld [vmem:[%s10723_s1 + $0x2140] sm:$0xff]  ;;  %v1105_v52 = vld [vmem:[%s10723_s1 + $0x21a8] sm:$0xff]  ;;  %v1103_v53 = vld [vmem:[%s10723_s1 + $0x2198] sm:$0xff] }
 0x1f4   :  { %5193 = vmatprep.subr.bf16.mxu1 %v5192_v24  ;;  %v1062_v24 = vld [vmem:[%s10723_s1 + $0x2050] sm:$0xff]  ;;  %v4444_v44 = vpack.c.bf16 %v1097_v36, %v1093_v62  ;;  %v1096_v46 = vld [vmem:[%s10723_s1 + $0x2160] sm:$0xff]  ;;  %v1133_v62 = vld [vmem:[%s10723_s1 + $0x2288] sm:$0xff] }
 0x1f5   :  { %v5214_v4 = vpack.c.bf16 %v1066_v60, %v1062_v24  ;;  %v1104_v24 = vld [vmem:[%s10723_s1 + $0x21a0] sm:$0xff]  ;;  %v1137_v36 = vld [vmem:[%s10723_s1 + $0x22a8] sm:$0xff] }
 0x1f6   :  { %4411 = vmatpush1.bf16.msra.mxu0 %v4410_v1  ;;  %v1071_v1 = vld [vmem:[%s10723_s1 + $0x2098] sm:$0xff] }
 0x1f7   :  { %5195 = vmatpush1.bf16.msra.mxu1 %v5194_v2  ;;  %4413 = vmatprep.subr.bf16.mxu0 %v4412_v3  ;;  %v1075_v2 = vld [vmem:[%s10723_s1 + $0x20b8] sm:$0xff]  ;;  %v4430_v3 = vpack.c.bf16 %v1064_v58, %v1060_v57  ;;  %v4448_v57 = vpack.c.bf16 %v1105_v52, %v1101_v48  ;;  %v1100_v58 = vld [vmem:[%s10723_s1 + $0x2180] sm:$0xff]  ;;  %v1141_v48 = vld [vmem:[%s10723_s1 + $0x22c8] sm:$0xff] }
 0x1f8   :  { %5197 = vmatprep.subr.bf16.mxu1 %v5196_v51  ;;  %v1072_v51 = vld [vmem:[%s10723_s1 + $0x20a0] sm:$0xff]  ;;  %v5216_v8 = vpack.c.bf16 %v1075_v2, %v1071_v1  ;;  %v1111_v1 = vld [vmem:[%s10723_s1 + $0x21d8] sm:$0xff]  ;;  %v1145_v52 = vld [vmem:[%s10723_s1 + $0x22e8] sm:$0xff] }
 0x1f9   :  { %v1115_v2 = vld [vmem:[%s10723_s1 + $0x21f8] sm:$0xff] }
 0x1fa   :  { %4415 = vmatpush1.bf16.msra.mxu0 %v4414_v14  ;;  %v1083_v14 = vld [vmem:[%s10723_s1 + $0x20f8] sm:$0xff] }
 0x1fb   :  { %5199 = vmatpush1.bf16.msra.mxu1 %v5198_v15  ;;  %4417 = vmatprep.subr.bf16.mxu0 %v4416_v16  ;;  %v4434_v15 = vpack.c.bf16 %v1072_v51, %v1068_v6  ;;  %v5220_v50 = vpack.c.bf16 %v1083_v14, %v1079_v10  ;;  %v1108_v6 = vld [vmem:[%s10723_s1 + $0x21c0] sm:$0xff]  ;;  %v1119_v10 = vld [vmem:[%s10723_s1 + $0x2218] sm:$0xff] }
 0x1fc   :  { %5201 = vmatprep.subr.bf16.mxu1 %v5200_v20  ;;  %v1078_v20 = vld [vmem:[%s10723_s1 + $0x20d0] sm:$0xff]  ;;  %v1112_v51 = vld [vmem:[%s10723_s1 + $0x21e0] sm:$0xff]  ;;  %v1123_v14 = vld [vmem:[%s10723_s1 + $0x2238] sm:$0xff] }
 0x1fe   :  { %4419 = vmatpush1.bf16.msra.mxu0 %v4418_v28  ;;  %v1091_v28 = vld [vmem:[%s10723_s1 + $0x2138] sm:$0xff] }
 0x1ff   :  { %5203 = vmatpush1.bf16.msra.mxu1 %v5202_v29  ;;  %4421 = vmatprep.subr.bf16.mxu0 %v4420_v30  ;;  %v4438_v29 = vpack.c.bf16 %v1080_v19, %v1076_v18  ;;  %v5222_v30 = vpack.c.bf16 %v1082_v21, %v1078_v20  ;;  %v5224_v34 = vpack.c.bf16 %v1091_v28, %v1087_v27  ;;  %v1116_v18 = vld [vmem:[%s10723_s1 + $0x2200] sm:$0xff]  ;;  %v1118_v20 = vld [vmem:[%s10723_s1 + $0x2210] sm:$0xff]  ;;  %v1127_v27 = vld [vmem:[%s10723_s1 + $0x2258] sm:$0xff] }
 0x200   :  { %5205 = vmatprep.subr.bf16.mxu1 %v5204_v13  ;;  %v1086_v13 = vld [vmem:[%s10723_s1 + $0x2110] sm:$0xff]  ;;  %v1120_v19 = vld [vmem:[%s10723_s1 + $0x2220] sm:$0xff]  ;;  %v1131_v28 = vld [vmem:[%s10723_s1 + $0x2278] sm:$0xff] }
 0x201   :  { %v1122_v21 = vld [vmem:[%s10723_s1 + $0x2230] sm:$0xff] }
 0x202   :  { %4423 = vmatpush1.bf16.msra.mxu0 %v4422_v41  ;;  %v1099_v41 = vld [vmem:[%s10723_s1 + $0x2178] sm:$0xff] }
 0x203   :  { %5207 = vmatpush1.bf16.msra.mxu1 %v5206_v42  ;;  %4425 = vmatprep.subr.bf16.mxu0 %v4424_v43  ;;  %v4442_v42 = vpack.c.bf16 %v1088_v33, %v1084_v32  ;;  %v5226_v43 = vpack.c.bf16 %v1090_v35, %v1086_v13  ;;  %v5228_v12 = vpack.c.bf16 %v1099_v41, %v1095_v37  ;;  %v1124_v32 = vld [vmem:[%s10723_s1 + $0x2240] sm:$0xff]  ;;  %v1126_v13 = vld [vmem:[%s10723_s1 + $0x2250] sm:$0xff]  ;;  %v1135_v37 = vld [vmem:[%s10723_s1 + $0x2298] sm:$0xff] }
 0x204   :  { %5209 = vmatprep.subr.bf16.mxu1 %v5208_v47  ;;  %v1094_v47 = vld [vmem:[%s10723_s1 + $0x2150] sm:$0xff]  ;;  %v1128_v33 = vld [vmem:[%s10723_s1 + $0x2260] sm:$0xff]  ;;  %v1139_v41 = vld [vmem:[%s10723_s1 + $0x22b8] sm:$0xff] }
 0x205   :  { %2323 = vmatmul.mubr.f32.vlgmr.msra.gmra.mrb[0].mxu0 %v8465_v38  ;;  %v1130_v35 = vld [vmem:[%s10723_s1 + $0x2270] sm:$0xff] }
 0x206   :  { %4427 = vmatpush1.bf16.msra.mxu0 %v4426_v54  ;;  %3246 = vmatmul.mubr.f32.vlgmr.msra.gmra.mrb[0].mxu1 %v8465_v38  ;;  %v1074_v38 = vld [vmem:[%s10723_s1 + $0x20b0] sm:$0xff]  ;;  %v1107_v54 = vld [vmem:[%s10723_s1 + $0x21b8] sm:$0xff] }
 0x207   :  { %5211 = vmatpush1.bf16.msra.mxu1 %v5210_v55  ;;  %4429 = vmatprep.subr.bf16.mxu0 %v4428_v56  ;;  %v5218_v16 = vpack.c.bf16 %v1074_v38, %v1070_v7  ;;  %v4446_v55 = vpack.c.bf16 %v1096_v46, %v1092_v39  ;;  %v5230_v56 = vpack.c.bf16 %v1098_v25, %v1094_v47  ;;  %v1110_v7 = vld [vmem:[%s10723_s1 + $0x21d0] sm:$0xff]  ;;  %v1132_v39 = vld [vmem:[%s10723_s1 + $0x2280] sm:$0xff] }
 0x208   :  { %5213 = vmatprep.subr.bf16.mxu1 %v5212_v59  ;;  %2393 = vmatprep.mubr.f32.mxu0 %v1708_v0  ;;  %v1102_v59 = vld [vmem:[%s10723_s1 + $0x2190] sm:$0xff]  ;;  %v5232_v60 = vpack.c.bf16 %v1107_v54, %v1103_v53  ;;  %v1136_v46 = vld [vmem:[%s10723_s1 + $0x22a0] sm:$0xff]  ;;  %v1143_v53 = vld [vmem:[%s10723_s1 + $0x22d8] sm:$0xff] }
 0x209   :  { %3316 = vmatprep.mubr.f32.mxu1 %v1708_v0  ;;  %v1113_v0 = vld [vmem:[%s10723_s1 + $0x21e8] sm:$0xff]  ;;  %v1114_v38 = vld [vmem:[%s10723_s1 + $0x21f0] sm:$0xff]  ;;  %v1147_v54 = vld [vmem:[%s10723_s1 + $0x22f8] sm:$0xff] }
 0x20a   :  { %4431 = vmatpush1.bf16.msra.mxu0 %v4430_v3  ;;  %v4450_v3 = vpack.c.bf16 %v1104_v24, %v1100_v58  ;;  %v1134_v47 = vld [vmem:[%s10723_s1 + $0x2290] sm:$0xff]  ;;  %v1140_v58 = vld [vmem:[%s10723_s1 + $0x22c0] sm:$0xff] }
 0x20b   :  { %5215 = vmatpush1.bf16.msra.mxu1 %v5214_v4  ;;  %4433 = vmatprep.subr.bf16.mxu0 %v4432_v5  ;;  %v5234_v4 = vpack.c.bf16 %v1106_v23, %v1102_v59  ;;  %v4452_v5 = vpack.c.bf16 %v1113_v0, %v1109_v63  ;;  %v1138_v25 = vld [vmem:[%s10723_s1 + $0x22b0] sm:$0xff]  ;;  %v1144_v24 = vld [vmem:[%s10723_s1 + $0x22e0] sm:$0xff]  ;;  %v1149_v63 = vld [vmem:[%s10723_s1 + $0x2308] sm:$0xff] }
 0x20c   :  { %5217 = vmatprep.subr.bf16.mxu1 %v5216_v8  ;;  %v5236_v8 = vpack.c.bf16 %v1115_v2, %v1111_v1  ;;  %v1142_v59 = vld [vmem:[%s10723_s1 + $0x22d0] sm:$0xff]  ;;  %v1153_v0 = vld [vmem:[%s10723_s1 + $0x2328] sm:$0xff]  ;;  %v1151_v1 = vld [vmem:[%s10723_s1 + $0x2318] sm:$0xff] }
 0x20d   :  { %v1146_v23 = vld [vmem:[%s10723_s1 + $0x22f0] sm:$0xff]  ;;  %v1155_v2 = vld [vmem:[%s10723_s1 + $0x2338] sm:$0xff] }
 0x20e   :  { %4435 = vmatpush1.bf16.msra.mxu0 %v4434_v15  ;;  %v4454_v15 = vpack.c.bf16 %v1112_v51, %v1108_v6  ;;  %v1148_v6 = vld [vmem:[%s10723_s1 + $0x2300] sm:$0xff] }
 0x20f   :  { %5219 = vmatpush1.bf16.msra.mxu1 %v5218_v16  ;;  %4437 = vmatprep.subr.bf16.mxu0 %v4436_v17  ;;  %v5238_v16 = vpack.c.bf16 %v1114_v38, %v1110_v7  ;;  %v4456_v17 = vpack.c.bf16 %v1121_v9, %v1117_v45  ;;  %v1152_v51 = vld [vmem:[%s10723_s1 + $0x2320] sm:$0xff]  ;;  %v1150_v7 = vld [vmem:[%s10723_s1 + $0x2310] sm:$0xff]  ;;  %v1157_v45 = vld [vmem:[%s10723_s1 + $0x2348] sm:$0xff] }
 0x210   :  { %5221 = vmatprep.subr.bf16.mxu1 %v5220_v50  ;;  %v5240_v50 = vpack.c.bf16 %v1123_v14, %v1119_v10  ;;  %v1154_v38 = vld [vmem:[%s10723_s1 + $0x2330] sm:$0xff]  ;;  %v1161_v9 = vld [vmem:[%s10723_s1 + $0x2368] sm:$0xff]  ;;  %v1159_v10 = vld [vmem:[%s10723_s1 + $0x2358] sm:$0xff] }
 0x211   :  { %v1163_v14 = vld [vmem:[%s10723_s1 + $0x2378] sm:$0xff] }
 0x212   :  { %4439 = vmatpush1.bf16.msra.mxu0 %v4438_v29  ;;  %v4458_v29 = vpack.c.bf16 %v1120_v19, %v1116_v18  ;;  %v1156_v18 = vld [vmem:[%s10723_s1 + $0x2340] sm:$0xff] }
 0x213   :  { %5223 = vmatpush1.bf16.msra.mxu1 %v5222_v30  ;;  %4441 = vmatprep.subr.bf16.mxu0 %v4440_v31  ;;  %v5242_v30 = vpack.c.bf16 %v1122_v21, %v1118_v20  ;;  %v4460_v31 = vpack.c.bf16 %v1129_v26, %v1125_v22  ;;  %v1160_v19 = vld [vmem:[%s10723_s1 + $0x2360] sm:$0xff]  ;;  %v1158_v20 = vld [vmem:[%s10723_s1 + $0x2350] sm:$0xff]  ;;  %v1165_v22 = vld [vmem:[%s10723_s1 + $0x2388] sm:$0xff] }
 0x214   :  { %5225 = vmatprep.subr.bf16.mxu1 %v5224_v34  ;;  %v5244_v34 = vpack.c.bf16 %v1131_v28, %v1127_v27  ;;  %v1162_v21 = vld [vmem:[%s10723_s1 + $0x2370] sm:$0xff]  ;;  %v1169_v26 = vld [vmem:[%s10723_s1 + $0x23a8] sm:$0xff]  ;;  %v1167_v27 = vld [vmem:[%s10723_s1 + $0x2398] sm:$0xff] }
 0x215   :  { %v1171_v28 = vld [vmem:[%s10723_s1 + $0x23b8] sm:$0xff] }
 0x216   :  { %4443 = vmatpush1.bf16.msra.mxu0 %v4442_v42  ;;  %v4462_v42 = vpack.c.bf16 %v1128_v33, %v1124_v32  ;;  %v1164_v32 = vld [vmem:[%s10723_s1 + $0x2380] sm:$0xff] }
 0x217   :  { %5227 = vmatpush1.bf16.msra.mxu1 %v5226_v43  ;;  %4445 = vmatprep.subr.bf16.mxu0 %v4444_v44  ;;  %v5246_v43 = vpack.c.bf16 %v1130_v35, %v1126_v13  ;;  %v4464_v44 = vpack.c.bf16 %v1137_v36, %v1133_v62  ;;  %v1168_v33 = vld [vmem:[%s10723_s1 + $0x23a0] sm:$0xff]  ;;  %v1166_v13 = vld [vmem:[%s10723_s1 + $0x2390] sm:$0xff]  ;;  %v1173_v62 = vld [vmem:[%s10723_s1 + $0x23c8] sm:$0xff] }
 0x218   :  { %5229 = vmatprep.subr.bf16.mxu1 %v5228_v12  ;;  %v5248_v12 = vpack.c.bf16 %v1139_v41, %v1135_v37  ;;  %v1170_v35 = vld [vmem:[%s10723_s1 + $0x23b0] sm:$0xff]  ;;  %v1177_v36 = vld [vmem:[%s10723_s1 + $0x23e8] sm:$0xff]  ;;  %v1175_v37 = vld [vmem:[%s10723_s1 + $0x23d8] sm:$0xff] }
 0x219   :  { %v1179_v41 = vld [vmem:[%s10723_s1 + $0x23f8] sm:$0xff] }
 0x21a   :  { %4447 = vmatpush1.bf16.msra.mxu0 %v4446_v55  ;;  %v4466_v55 = vpack.c.bf16 %v1136_v46, %v1132_v39  ;;  %v1172_v39 = vld [vmem:[%s10723_s1 + $0x23c0] sm:$0xff] }
 0x21b   :  { %5231 = vmatpush1.bf16.msra.mxu1 %v5230_v56  ;;  %4449 = vmatprep.subr.bf16.mxu0 %v4448_v57  ;;  %v5250_v56 = vpack.c.bf16 %v1138_v25, %v1134_v47  ;;  %v4468_v57 = vpack.c.bf16 %v1145_v52, %v1141_v48  ;;  %v1176_v46 = vld [vmem:[%s10723_s1 + $0x23e0] sm:$0xff]  ;;  %v1174_v47 = vld [vmem:[%s10723_s1 + $0x23d0] sm:$0xff]  ;;  %v1181_v48 = vld [vmem:[%s10723_s1 + $0x2408] sm:$0xff] }
 0x21c   :  { %5233 = vmatprep.subr.bf16.mxu1 %v5232_v60  ;;  %v5252_v60 = vpack.c.bf16 %v1147_v54, %v1143_v53  ;;  %v1178_v25 = vld [vmem:[%s10723_s1 + $0x23f0] sm:$0xff]  ;;  %v1185_v52 = vld [vmem:[%s10723_s1 + $0x2428] sm:$0xff]  ;;  %v1693_v53 = vcombine.high %v8840_v40, %v8840_v40  ;;  %v1183_v54 = vld [vmem:[%s10723_s1 + $0x2418] sm:$0xff] }
 0x21d   :  { %v1184_v40 = vld [vmem:[%s10723_s1 + $0x2420] sm:$0xff] }
 0x21e   :  { %4451 = vmatpush1.bf16.msra.mxu0 %v4450_v3  ;;  %v4470_v3 = vpack.c.bf16 %v1144_v24, %v1140_v58  ;;  %v4488_v58 = vpack.c.bf16 %v1185_v52, %v1181_v48  ;;  %v1180_v24 = vld [vmem:[%s10723_s1 + $0x2400] sm:$0xff]  ;;  %v1218_v48 = vld [vmem:[%s10723_s1 + $0x2530] sm:$0xff]  ;;  %v1221_v52 = vld [vmem:[%s10723_s1 + $0x2548] sm:$0xff] }
 0x21f   :  { %5235 = vmatpush1.bf16.msra.mxu1 %v5234_v4  ;;  %4453 = vmatprep.subr.bf16.mxu0 %v4452_v5  ;;  %v5254_v4 = vpack.c.bf16 %v1146_v23, %v1142_v59  ;;  %v4472_v5 = vpack.c.bf16 %v1153_v0, %v1149_v63  ;;  %v1182_v59 = vld [vmem:[%s10723_s1 + $0x2410] sm:$0xff]  ;;  %v1189_v63 = vld [vmem:[%s10723_s1 + $0x2448] sm:$0xff] }
 0x220   :  { %5237 = vmatprep.subr.bf16.mxu1 %v5236_v8  ;;  %v5256_v8 = vpack.c.bf16 %v1155_v2, %v1151_v1  ;;  %v1186_v23 = vld [vmem:[%s10723_s1 + $0x2430] sm:$0xff]  ;;  %v1193_v0 = vld [vmem:[%s10723_s1 + $0x2468] sm:$0xff]  ;;  %v9255_v1 = vrot.slane %v1693_v53, %v5941_v11  ;;  %v1191_v2 = vld [vmem:[%s10723_s1 + $0x2458] sm:$0xff] }
 0x221   :  { %v1225_v53 = vld [vmem:[%s10723_s1 + $0x2568] sm:$0xff] }
 0x222   :  { %4455 = vmatpush1.bf16.msra.mxu0 %v4454_v15  ;;  %v4474_v15 = vpack.c.bf16 %v1152_v51, %v1148_v6  ;;  %v4492_v6 = vpack.c.bf16 %v1193_v0, %v1189_v63  ;;  %v1188_v51 = vld [vmem:[%s10723_s1 + $0x2440] sm:$0xff]  ;;  %v1229_v63 = vld [vmem:[%s10723_s1 + $0x2588] sm:$0xff] }
 0x223   :  { %5239 = vmatpush1.bf16.msra.mxu1 %v5238_v16  ;;  %4457 = vmatprep.subr.bf16.mxu0 %v4456_v17  ;;  %v5258_v16 = vpack.c.bf16 %v1154_v38, %v1150_v7  ;;  %v4476_v17 = vpack.c.bf16 %v1161_v9, %v1157_v45  ;;  %v1192_v7 = vld [vmem:[%s10723_s1 + $0x2460] sm:$0xff]  ;;  %v1194_v45 = vld [vmem:[%s10723_s1 + $0x2470] sm:$0xff]  ;;  %v1197_v9 = vld [vmem:[%s10723_s1 + $0x2488] sm:$0xff] }
 0x224   :  { %5241 = vmatprep.subr.bf16.mxu1 %v5240_v50  ;;  %v5260_v50 = vpack.c.bf16 %v1163_v14, %v1159_v10  ;;  %v1201_v10 = vld [vmem:[%s10723_s1 + $0x24a8] sm:$0xff]  ;;  %v1709_v14 = vcombine.high %v9255_v1, %v9255_v1 }
 0x225   :  { %v1233_v0 = vld [vmem:[%s10723_s1 + $0x25a8] sm:$0xff] }
 0x226   :  { %4459 = vmatpush1.bf16.msra.mxu0 %v4458_v29  ;;  %v4478_v29 = vpack.c.bf16 %v1160_v19, %v1156_v18  ;;  %v4496_v19 = vpack.c.bf16 %v1201_v10, %v1197_v9  ;;  %v1237_v9 = vld [vmem:[%s10723_s1 + $0x25c8] sm:$0xff] }
 0x227   :  { %5243 = vmatpush1.bf16.msra.mxu1 %v5242_v30  ;;  %4461 = vmatprep.subr.bf16.mxu0 %v4460_v31  ;;  %v5262_v30 = vpack.c.bf16 %v1162_v21, %v1158_v20  ;;  %v4480_v31 = vpack.c.bf16 %v1169_v26, %v1165_v22  ;;  %v1196_v20 = vld [vmem:[%s10723_s1 + $0x2480] sm:$0xff]  ;;  %v1198_v21 = vld [vmem:[%s10723_s1 + $0x2490] sm:$0xff]  ;;  %v1205_v26 = vld [vmem:[%s10723_s1 + $0x24c8] sm:$0xff] }
 0x228   :  { %5245 = vmatprep.subr.bf16.mxu1 %v5244_v34  ;;  %v5264_v34 = vpack.c.bf16 %v1171_v28, %v1167_v27  ;;  %v1209_v27 = vld [vmem:[%s10723_s1 + $0x24e8] sm:$0xff]  ;;  %v1207_v28 = vld [vmem:[%s10723_s1 + $0x24d8] sm:$0xff] }
 0x229   :  { %v1241_v10 = vld [vmem:[%s10723_s1 + $0x25e8] sm:$0xff] }
 0x22a   :  { %4463 = vmatpush1.bf16.msra.mxu0 %v4462_v42  ;;  %v4482_v42 = vpack.c.bf16 %v1168_v33, %v1164_v32  ;;  %v4500_v32 = vpack.c.bf16 %v1209_v27, %v1205_v26  ;;  %v1204_v33 = vld [vmem:[%s10723_s1 + $0x24c0] sm:$0xff]  ;;  %v1249_v26 = vld [vmem:[%s10723_s1 + $0x2628] sm:$0xff]  ;;  %v1247_v27 = vld [vmem:[%s10723_s1 + $0x2618] sm:$0xff] }
 0x22b   :  { %5247 = vmatpush1.bf16.msra.mxu1 %v5246_v43  ;;  %4465 = vmatprep.subr.bf16.mxu0 %v4464_v44  ;;  %v5266_v43 = vpack.c.bf16 %v1170_v35, %v1166_v13  ;;  %v4484_v44 = vpack.c.bf16 %v1177_v36, %v1173_v62  ;;  %v1208_v13 = vld [vmem:[%s10723_s1 + $0x24e0] sm:$0xff]  ;;  %v1210_v62 = vld [vmem:[%s10723_s1 + $0x24f0] sm:$0xff]  ;;  %v1213_v36 = vld [vmem:[%s10723_s1 + $0x2508] sm:$0xff] }
 0x22c   :  { %5249 = vmatprep.subr.bf16.mxu1 %v5248_v12  ;;  %v5268_v12 = vpack.c.bf16 %v1179_v41, %v1175_v37  ;;  %v1217_v37 = vld [vmem:[%s10723_s1 + $0x2528] sm:$0xff]  ;;  %v1215_v41 = vld [vmem:[%s10723_s1 + $0x2518] sm:$0xff] }
 0x22e   :  { %4467 = vmatpush1.bf16.msra.mxu0 %v4466_v55  ;;  %v1187_v55 = vld [vmem:[%s10723_s1 + $0x2438] sm:$0xff] }
 0x22f   :  { %5251 = vmatpush1.bf16.msra.mxu1 %v5250_v56  ;;  %4469 = vmatprep.subr.bf16.mxu0 %v4468_v57  ;;  %v4486_v56 = vpack.c.bf16 %v1176_v46, %v1172_v39  ;;  %v5270_v57 = vpack.c.bf16 %v1178_v25, %v1174_v47  ;;  %v4504_v39 = vpack.c.bf16 %v1217_v37, %v1213_v36  ;;  %v1212_v46 = vld [vmem:[%s10723_s1 + $0x2500] sm:$0xff]  ;;  %v1257_v36 = vld [vmem:[%s10723_s1 + $0x2668] sm:$0xff]  ;;  %v1255_v37 = vld [vmem:[%s10723_s1 + $0x2658] sm:$0xff] }
 0x230   :  { %5253 = vmatprep.subr.bf16.mxu1 %v5252_v60  ;;  %v5272_v60 = vpack.c.bf16 %v1187_v55, %v1183_v54  ;;  %v1216_v47 = vld [vmem:[%s10723_s1 + $0x2520] sm:$0xff]  ;;  %v1223_v54 = vld [vmem:[%s10723_s1 + $0x2558] sm:$0xff] }
 0x231   :  { %v1227_v55 = vld [vmem:[%s10723_s1 + $0x2578] sm:$0xff] }
 0x232   :  { %4471 = vmatpush1.bf16.msra.mxu0 %v4470_v3  ;;  %v1195_v3 = vld [vmem:[%s10723_s1 + $0x2478] sm:$0xff] }
 0x233   :  { %5255 = vmatpush1.bf16.msra.mxu1 %v5254_v4  ;;  %4473 = vmatprep.subr.bf16.mxu0 %v4472_v5  ;;  %v4490_v4 = vpack.c.bf16 %v1184_v40, %v1180_v24  ;;  %v5274_v5 = vpack.c.bf16 %v1186_v23, %v1182_v59  ;;  %v5276_v38 = vpack.c.bf16 %v1195_v3, %v1191_v2  ;;  %v1220_v24 = vld [vmem:[%s10723_s1 + $0x2540] sm:$0xff]  ;;  %v1222_v59 = vld [vmem:[%s10723_s1 + $0x2550] sm:$0xff]  ;;  %v1231_v2 = vld [vmem:[%s10723_s1 + $0x2598] sm:$0xff] }
 0x234   :  { %5257 = vmatprep.subr.bf16.mxu1 %v5256_v8  ;;  %v1190_v8 = vld [vmem:[%s10723_s1 + $0x2450] sm:$0xff]  ;;  %v1224_v40 = vld [vmem:[%s10723_s1 + $0x2560] sm:$0xff]  ;;  %v1235_v3 = vld [vmem:[%s10723_s1 + $0x25b8] sm:$0xff] }
 0x235   :  { %v5278_v18 = vpack.c.bf16 %v1194_v45, %v1190_v8  ;;  %v1226_v23 = vld [vmem:[%s10723_s1 + $0x2570] sm:$0xff] }
 0x236   :  { %4475 = vmatpush1.bf16.msra.mxu0 %v4474_v15  ;;  %v1199_v15 = vld [vmem:[%s10723_s1 + $0x2498] sm:$0xff]  ;;  %v1230_v8 = vld [vmem:[%s10723_s1 + $0x2590] sm:$0xff] }
 0x237   :  { %5259 = vmatpush1.bf16.msra.mxu1 %v5258_v16  ;;  %4477 = vmatprep.subr.bf16.mxu0 %v4476_v17  ;;  %v1203_v16 = vld [vmem:[%s10723_s1 + $0x24b8] sm:$0xff]  ;;  %v4494_v17 = vpack.c.bf16 %v1192_v7, %v1188_v51  ;;  %v1228_v51 = vld [vmem:[%s10723_s1 + $0x2580] sm:$0xff]  ;;  %v1234_v45 = vld [vmem:[%s10723_s1 + $0x25b0] sm:$0xff] }
 0x238   :  { %5261 = vmatprep.subr.bf16.mxu1 %v5260_v50  ;;  %v1200_v50 = vld [vmem:[%s10723_s1 + $0x24a0] sm:$0xff]  ;;  %v5280_v22 = vpack.c.bf16 %v1203_v16, %v1199_v15  ;;  %v1243_v15 = vld [vmem:[%s10723_s1 + $0x25f8] sm:$0xff] }
 0x239   :  { %v1232_v7 = vld [vmem:[%s10723_s1 + $0x25a0] sm:$0xff] }
 0x23a   :  { %4479 = vmatpush1.bf16.msra.mxu0 %v4478_v29  ;;  %v1211_v29 = vld [vmem:[%s10723_s1 + $0x24f8] sm:$0xff]  ;;  %v4514_v16 = vpack.c.bf16 %v1232_v7, %v1228_v51  ;;  %v1272_v51 = vld [vmem:[%s10723_s1 + $0x26e0] sm:$0xff]  ;;  %v1270_v7 = vld [vmem:[%s10723_s1 + $0x26d0] sm:$0xff] }
 0x23b   :  { %5263 = vmatpush1.bf16.msra.mxu1 %v5262_v30  ;;  %4481 = vmatprep.subr.bf16.mxu0 %v4480_v31  ;;  %v4498_v30 = vpack.c.bf16 %v1200_v50, %v1196_v20  ;;  %v5284_v35 = vpack.c.bf16 %v1211_v29, %v1207_v28  ;;  %v1240_v20 = vld [vmem:[%s10723_s1 + $0x25e0] sm:$0xff]  ;;  %v1238_v50 = vld [vmem:[%s10723_s1 + $0x25d0] sm:$0xff]  ;;  %v1251_v28 = vld [vmem:[%s10723_s1 + $0x2638] sm:$0xff] }
 0x23c   :  { %5265 = vmatprep.subr.bf16.mxu1 %v5264_v34  ;;  %v1206_v34 = vld [vmem:[%s10723_s1 + $0x24d0] sm:$0xff] }
 0x23e   :  { %4483 = vmatpush1.bf16.msra.mxu0 %v4482_v42  ;;  %v1219_v42 = vld [vmem:[%s10723_s1 + $0x2538] sm:$0xff] }
 0x23f   :  { %5267 = vmatpush1.bf16.msra.mxu1 %v5266_v43  ;;  %4485 = vmatprep.subr.bf16.mxu0 %v4484_v44  ;;  %v4502_v43 = vpack.c.bf16 %v1208_v13, %v1204_v33  ;;  %v5286_v44 = vpack.c.bf16 %v1210_v62, %v1206_v34  ;;  %v5288_v25 = vpack.c.bf16 %v1219_v42, %v1215_v41  ;;  %v1248_v33 = vld [vmem:[%s10723_s1 + $0x2620] sm:$0xff]  ;;  %v1246_v13 = vld [vmem:[%s10723_s1 + $0x2610] sm:$0xff]  ;;  %v1253_v62 = vld [vmem:[%s10723_s1 + $0x2648] sm:$0xff] }
 0x240   :  { %5269 = vmatprep.subr.bf16.mxu1 %v5268_v12  ;;  %v1214_v12 = vld [vmem:[%s10723_s1 + $0x2510] sm:$0xff]  ;;  %v5304_v34 = vpack.c.bf16 %v1251_v28, %v1247_v27  ;;  %v1259_v41 = vld [vmem:[%s10723_s1 + $0x2678] sm:$0xff] }
 0x241   :  { %v1291_v27 = vld [vmem:[%s10723_s1 + $0x2778] sm:$0xff] }
 0x242   :  { %4487 = vmatpush1.bf16.msra.mxu0 %v4486_v56  ;;  %v4506_v56 = vpack.c.bf16 %v1216_v47, %v1212_v46  ;;  %v1256_v46 = vld [vmem:[%s10723_s1 + $0x2660] sm:$0xff]  ;;  %v1254_v47 = vld [vmem:[%s10723_s1 + $0x2650] sm:$0xff] }
 0x243   :  { %5271 = vmatpush1.bf16.msra.mxu1 %v5270_v57  ;;  %4489 = vmatprep.subr.bf16.mxu0 %v4488_v58  ;;  %v5290_v57 = vpack.c.bf16 %v1218_v48, %v1214_v12  ;;  %v4508_v58 = vpack.c.bf16 %v1225_v53, %v1221_v52  ;;  %v5308_v12 = vpack.c.bf16 %v1259_v41, %v1255_v37  ;;  %v1261_v48 = vld [vmem:[%s10723_s1 + $0x2688] sm:$0xff]  ;;  %v1263_v53 = vld [vmem:[%s10723_s1 + $0x2698] sm:$0xff] }
 0x244   :  { %5273 = vmatprep.subr.bf16.mxu1 %v5272_v60  ;;  %v5292_v60 = vpack.c.bf16 %v1227_v55, %v1223_v54  ;;  %v1265_v52 = vld [vmem:[%s10723_s1 + $0x26a8] sm:$0xff]  ;;  %v1267_v54 = vld [vmem:[%s10723_s1 + $0x26b8] sm:$0xff] }
 0x245   :  { %2394 = vmatmul.mubr.f32.vlgmr.msra.gmra.mrb[0].mxu0 %v8862_v49  ;;  %v1299_v37 = vld [vmem:[%s10723_s1 + $0x27b8] sm:$0xff] }
 0x246   :  { %4491 = vmatpush1.bf16.msra.mxu0 %v4490_v4  ;;  %3317 = vmatmul.mubr.f32.vlgmr.msra.gmra.mrb[0].mxu1 %v8862_v49  ;;  %v1202_v49 = vld [vmem:[%s10723_s1 + $0x24b0] sm:$0xff]  ;;  %v4510_v4 = vpack.c.bf16 %v1224_v40, %v1220_v24  ;;  %v1264_v24 = vld [vmem:[%s10723_s1 + $0x26a0] sm:$0xff] }
 0x247   :  { %5275 = vmatpush1.bf16.msra.mxu1 %v5274_v5  ;;  %4493 = vmatprep.subr.bf16.mxu0 %v4492_v6  ;;  %v5282_v31 = vpack.c.bf16 %v1202_v49, %v1198_v21  ;;  %v5294_v5 = vpack.c.bf16 %v1226_v23, %v1222_v59  ;;  %v4512_v6 = vpack.c.bf16 %v1233_v0, %v1229_v63  ;;  %v1245_v49 = vld [vmem:[%s10723_s1 + $0x2608] sm:$0xff]  ;;  %v1262_v40 = vld [vmem:[%s10723_s1 + $0x2690] sm:$0xff]  ;;  %v1271_v0 = vld [vmem:[%s10723_s1 + $0x26d8] sm:$0xff] }
 0x248   :  { %5277 = vmatprep.subr.bf16.mxu1 %v5276_v38  ;;  %2464 = vmatprep.mubr.f32.mxu0 %v1709_v14  ;;  %v5296_v38 = vpack.c.bf16 %v1235_v3, %v1231_v2  ;;  %v5312_v59 = vpack.c.bf16 %v1267_v54, %v1263_v53  ;;  %v1269_v23 = vld [vmem:[%s10723_s1 + $0x26c8] sm:$0xff]  ;;  %v1275_v2 = vld [vmem:[%s10723_s1 + $0x26f8] sm:$0xff] }
 0x249   :  { %3387 = vmatprep.mubr.f32.mxu1 %v1709_v14  ;;  %v1239_v14 = vld [vmem:[%s10723_s1 + $0x25d8] sm:$0xff]  ;;  %v1273_v63 = vld [vmem:[%s10723_s1 + $0x26e8] sm:$0xff] }
 0x24a   :  { %4495 = vmatpush1.bf16.msra.mxu0 %v4494_v17  ;;  %v5298_v17 = vpack.c.bf16 %v1234_v45, %v1230_v8  ;;  %v5300_v21 = vpack.c.bf16 %v1243_v15, %v1239_v14  ;;  %v5316_v8 = vpack.c.bf16 %v1275_v2, %v1271_v0  ;;  %v1277_v45 = vld [vmem:[%s10723_s1 + $0x2708] sm:$0xff]  ;;  %v1283_v14 = vld [vmem:[%s10723_s1 + $0x2738] sm:$0xff] }
 0x24b   :  { %5279 = vmatpush1.bf16.msra.mxu1 %v5278_v18  ;;  %4497 = vmatprep.subr.bf16.mxu0 %v4496_v19  ;;  %v4516_v18 = vpack.c.bf16 %v1241_v10, %v1237_v9  ;;  %v1236_v19 = vld [vmem:[%s10723_s1 + $0x25c0] sm:$0xff]  ;;  %v1281_v9 = vld [vmem:[%s10723_s1 + $0x2728] sm:$0xff]  ;;  %v1279_v10 = vld [vmem:[%s10723_s1 + $0x2718] sm:$0xff] }
 0x24c   :  { %5281 = vmatprep.subr.bf16.mxu1 %v5280_v22  ;;  %v1242_v22 = vld [vmem:[%s10723_s1 + $0x25f0] sm:$0xff]  ;;  %v4518_v29 = vpack.c.bf16 %v1240_v20, %v1236_v19  ;;  %v1280_v19 = vld [vmem:[%s10723_s1 + $0x2720] sm:$0xff]  ;;  %v1307_v53 = vld [vmem:[%s10723_s1 + $0x27f8] sm:$0xff] }
 0x24d   :  { %v1278_v20 = vld [vmem:[%s10723_s1 + $0x2710] sm:$0xff]  ;;  %v1315_v0 = vld [vmem:[%s10723_s1 + $0x2838] sm:$0xff]  ;;  %v9630_v2 = vld [vmem:[%s10722_s0 + $0x28] sm:$0xff] }
 0x24e   :  { %4499 = vmatpush1.bf16.msra.mxu0 %v4498_v30  ;;  %v5302_v30 = vpack.c.bf16 %v1242_v22, %v1238_v50  ;;  %v5320_v50 = vpack.c.bf16 %v1283_v14, %v1279_v10  ;;  %v1285_v22 = vld [vmem:[%s10723_s1 + $0x2748] sm:$0xff]  ;;  %v9652_v10 = vrot.slane %v9630_v2, %v5941_v11  ;;  %v1319_v14 = vld [vmem:[%s10723_s1 + $0x2858] sm:$0xff] }
 0x24f   :  { %5283 = vmatpush1.bf16.msra.mxu1 %v5282_v31  ;;  %4501 = vmatprep.subr.bf16.mxu0 %v4500_v32  ;;  %v4520_v31 = vpack.c.bf16 %v1249_v26, %v1245_v49  ;;  %v1244_v32 = vld [vmem:[%s10723_s1 + $0x2600] sm:$0xff]  ;;  %v1289_v49 = vld [vmem:[%s10723_s1 + $0x2768] sm:$0xff]  ;;  %v1287_v26 = vld [vmem:[%s10723_s1 + $0x2758] sm:$0xff] }
 0x250   :  { %5285 = vmatprep.subr.bf16.mxu1 %v5284_v35  ;;  %v1250_v35 = vld [vmem:[%s10723_s1 + $0x2630] sm:$0xff]  ;;  %v4522_v42 = vpack.c.bf16 %v1248_v33, %v1244_v32  ;;  %v1288_v32 = vld [vmem:[%s10723_s1 + $0x2760] sm:$0xff] }
 0x251   :  { %v1286_v33 = vld [vmem:[%s10723_s1 + $0x2750] sm:$0xff] }
 0x252   :  { %4503 = vmatpush1.bf16.msra.mxu0 %v4502_v43  ;;  %v5306_v43 = vpack.c.bf16 %v1250_v35, %v1246_v13  ;;  %v5324_v13 = vpack.c.bf16 %v1291_v27, %v1287_v26  ;;  %v1293_v35 = vld [vmem:[%s10723_s1 + $0x2788] sm:$0xff]  ;;  %v1725_v27 = vcombine.high %v9652_v10, %v9652_v10 }
 0x253   :  { %5287 = vmatpush1.bf16.msra.mxu1 %v5286_v44  ;;  %4505 = vmatprep.subr.bf16.mxu0 %v4504_v39  ;;  %v4524_v44 = vpack.c.bf16 %v1257_v36, %v1253_v62  ;;  %v1252_v39 = vld [vmem:[%s10723_s1 + $0x2640] sm:$0xff]  ;;  %v1297_v62 = vld [vmem:[%s10723_s1 + $0x27a8] sm:$0xff]  ;;  %v1295_v36 = vld [vmem:[%s10723_s1 + $0x2798] sm:$0xff] }
 0x254   :  { %5289 = vmatprep.subr.bf16.mxu1 %v5288_v25  ;;  %v1258_v25 = vld [vmem:[%s10723_s1 + $0x2670] sm:$0xff]  ;;  %v4526_v55 = vpack.c.bf16 %v1256_v46, %v1252_v39  ;;  %v1296_v39 = vld [vmem:[%s10723_s1 + $0x27a0] sm:$0xff]  ;;  %v1329_v26 = vld [vmem:[%s10723_s1 + $0x28a8] sm:$0xff] }
 0x255   :  { %v1294_v46 = vld [vmem:[%s10723_s1 + $0x2790] sm:$0xff] }
 0x256   :  { %4507 = vmatpush1.bf16.msra.mxu0 %v4506_v56  ;;  %v5310_v56 = vpack.c.bf16 %v1258_v25, %v1254_v47  ;;  %v5328_v47 = vpack.c.bf16 %v1299_v37, %v1295_v36  ;;  %v1301_v25 = vld [vmem:[%s10723_s1 + $0x27c8] sm:$0xff]  ;;  %v1335_v37 = vld [vmem:[%s10723_s1 + $0x28d8] sm:$0xff] }
 0x257   :  { %5291 = vmatpush1.bf16.msra.mxu1 %v5290_v57  ;;  %4509 = vmatprep.subr.bf16.mxu0 %v4508_v58  ;;  %v4528_v57 = vpack.c.bf16 %v1265_v52, %v1261_v48  ;;  %v1260_v58 = vld [vmem:[%s10723_s1 + $0x2680] sm:$0xff]  ;;  %v1305_v48 = vld [vmem:[%s10723_s1 + $0x27e8] sm:$0xff]  ;;  %v1303_v52 = vld [vmem:[%s10723_s1 + $0x27d8] sm:$0xff] }
 0x258   :  { %5293 = vmatprep.subr.bf16.mxu1 %v5292_v60  ;;  %v1266_v60 = vld [vmem:[%s10723_s1 + $0x26b0] sm:$0xff]  ;;  %v4530_v3 = vpack.c.bf16 %v1264_v24, %v1260_v58  ;;  %v1304_v58 = vld [vmem:[%s10723_s1 + $0x27e0] sm:$0xff]  ;;  %v1337_v36 = vld [vmem:[%s10723_s1 + $0x28e8] sm:$0xff] }
 0x259   :  { %v1302_v24 = vld [vmem:[%s10723_s1 + $0x27d0] sm:$0xff] }
 0x25a   :  { %4511 = vmatpush1.bf16.msra.mxu0 %v4510_v4  ;;  %v5314_v4 = vpack.c.bf16 %v1266_v60, %v1262_v40  ;;  %v5332_v40 = vpack.c.bf16 %v1307_v53, %v1303_v52  ;;  %v1309_v60 = vld [vmem:[%s10723_s1 + $0x2808] sm:$0xff]  ;;  %v1343_v53 = vld [vmem:[%s10723_s1 + $0x2918] sm:$0xff] }
 0x25b   :  { %5295 = vmatpush1.bf16.msra.mxu1 %v5294_v5  ;;  %4513 = vmatprep.subr.bf16.mxu0 %v4512_v6  ;;  %v4532_v5 = vpack.c.bf16 %v1273_v63, %v1269_v23  ;;  %v1268_v6 = vld [vmem:[%s10723_s1 + $0x26c0] sm:$0xff]  ;;  %v1313_v23 = vld [vmem:[%s10723_s1 + $0x2828] sm:$0xff]  ;;  %v1311_v63 = vld [vmem:[%s10723_s1 + $0x2818] sm:$0xff] }
 0x25c   :  { %5297 = vmatprep.subr.bf16.mxu1 %v5296_v38  ;;  %v1274_v38 = vld [vmem:[%s10723_s1 + $0x26f0] sm:$0xff]  ;;  %v4534_v15 = vpack.c.bf16 %v1272_v51, %v1268_v6  ;;  %v1308_v6 = vld [vmem:[%s10723_s1 + $0x2800] sm:$0xff]  ;;  %v1345_v52 = vld [vmem:[%s10723_s1 + $0x2928] sm:$0xff] }
 0x25d   :  { %v1312_v51 = vld [vmem:[%s10723_s1 + $0x2820] sm:$0xff] }
 0x25e   :  { %4515 = vmatpush1.bf16.msra.mxu0 %v4514_v16  ;;  %v5318_v16 = vpack.c.bf16 %v1274_v38, %v1270_v7  ;;  %v1310_v7 = vld [vmem:[%s10723_s1 + $0x2810] sm:$0xff] }
 0x25f   :  { %5299 = vmatpush1.bf16.msra.mxu1 %v5298_v17  ;;  %4517 = vmatprep.subr.bf16.mxu0 %v4516_v18  ;;  %v4536_v17 = vpack.c.bf16 %v1281_v9, %v1277_v45  ;;  %v1276_v18 = vld [vmem:[%s10723_s1 + $0x2700] sm:$0xff]  ;;  %v1314_v38 = vld [vmem:[%s10723_s1 + $0x2830] sm:$0xff]  ;;  %v1317_v45 = vld [vmem:[%s10723_s1 + $0x2848] sm:$0xff] }
 0x260   :  { %5301 = vmatprep.subr.bf16.mxu1 %v5300_v21  ;;  %v1282_v21 = vld [vmem:[%s10723_s1 + $0x2730] sm:$0xff]  ;;  %v4538_v28 = vpack.c.bf16 %v1280_v19, %v1276_v18  ;;  %v1321_v9 = vld [vmem:[%s10723_s1 + $0x2868] sm:$0xff]  ;;  %v1316_v19 = vld [vmem:[%s10723_s1 + $0x2840] sm:$0xff] }
 0x261   :  { %v4556_v18 = vpack.c.bf16 %v1321_v9, %v1317_v45  ;;  %v1354_v45 = vld [vmem:[%s10723_s1 + $0x2970] sm:$0xff]  ;;  %v1357_v9 = vld [vmem:[%s10723_s1 + $0x2988] sm:$0xff] }
 0x262   :  { %4519 = vmatpush1.bf16.msra.mxu0 %v4518_v29  ;;  %v5322_v29 = vpack.c.bf16 %v1282_v21, %v1278_v20  ;;  %v1320_v20 = vld [vmem:[%s10723_s1 + $0x2860] sm:$0xff] }
 0x263   :  { %5303 = vmatpush1.bf16.msra.mxu1 %v5302_v30  ;;  %4521 = vmatprep.subr.bf16.mxu0 %v4520_v31  ;;  %v4540_v30 = vpack.c.bf16 %v1289_v49, %v1285_v22  ;;  %v1284_v31 = vld [vmem:[%s10723_s1 + $0x2740] sm:$0xff]  ;;  %v1322_v22 = vld [vmem:[%s10723_s1 + $0x2870] sm:$0xff]  ;;  %v1325_v49 = vld [vmem:[%s10723_s1 + $0x2888] sm:$0xff] }
 0x264   :  { %5305 = vmatprep.subr.bf16.mxu1 %v5304_v34  ;;  %v1290_v34 = vld [vmem:[%s10723_s1 + $0x2770] sm:$0xff]  ;;  %v4542_v41 = vpack.c.bf16 %v1288_v32, %v1284_v31  ;;  %v4560_v32 = vpack.c.bf16 %v1329_v26, %v1325_v49  ;;  %v1365_v26 = vld [vmem:[%s10723_s1 + $0x29c8] sm:$0xff] }
 0x265   :  { %v1362_v49 = vld [vmem:[%s10723_s1 + $0x29b0] sm:$0xff] }
 0x266   :  { %4523 = vmatpush1.bf16.msra.mxu0 %v4522_v42  ;;  %v5326_v42 = vpack.c.bf16 %v1290_v34, %v1286_v33  ;;  %v1324_v33 = vld [vmem:[%s10723_s1 + $0x2880] sm:$0xff]  ;;  %v1326_v34 = vld [vmem:[%s10723_s1 + $0x2890] sm:$0xff] }
 0x267   :  { %5307 = vmatpush1.bf16.msra.mxu1 %v5306_v43  ;;  %4525 = vmatprep.subr.bf16.mxu0 %v4524_v44  ;;  %v4544_v43 = vpack.c.bf16 %v1297_v62, %v1293_v35  ;;  %v1292_v44 = vld [vmem:[%s10723_s1 + $0x2780] sm:$0xff]  ;;  %v1333_v62 = vld [vmem:[%s10723_s1 + $0x28c8] sm:$0xff] }
 0x268   :  { %5309 = vmatprep.subr.bf16.mxu1 %v5308_v12  ;;  %v1298_v12 = vld [vmem:[%s10723_s1 + $0x27b0] sm:$0xff]  ;;  %v4546_v54 = vpack.c.bf16 %v1296_v39, %v1292_v44  ;;  %v4564_v44 = vpack.c.bf16 %v1337_v36, %v1333_v62  ;;  %v1332_v39 = vld [vmem:[%s10723_s1 + $0x28c0] sm:$0xff]  ;;  %v1373_v62 = vld [vmem:[%s10723_s1 + $0x2a08] sm:$0xff] }
 0x269   :  { %v1377_v36 = vld [vmem:[%s10723_s1 + $0x2a28] sm:$0xff] }
 0x26a   :  { %4527 = vmatpush1.bf16.msra.mxu0 %v4526_v55  ;;  %v5330_v55 = vpack.c.bf16 %v1298_v12, %v1294_v46  ;;  %v1336_v46 = vld [vmem:[%s10723_s1 + $0x28e0] sm:$0xff] }
 0x26b   :  { %5311 = vmatpush1.bf16.msra.mxu1 %v5310_v56  ;;  %4529 = vmatprep.subr.bf16.mxu0 %v4528_v57  ;;  %v4548_v56 = vpack.c.bf16 %v1305_v48, %v1301_v25  ;;  %v1300_v57 = vld [vmem:[%s10723_s1 + $0x27c0] sm:$0xff]  ;;  %v1338_v25 = vld [vmem:[%s10723_s1 + $0x28f0] sm:$0xff]  ;;  %v1341_v48 = vld [vmem:[%s10723_s1 + $0x2908] sm:$0xff] }
 0x26c   :  { %5313 = vmatprep.subr.bf16.mxu1 %v5312_v59  ;;  %v1306_v59 = vld [vmem:[%s10723_s1 + $0x27f0] sm:$0xff] }
 0x26e   :  { %4531 = vmatpush1.bf16.msra.mxu0 %v4530_v3  ;;  %v4550_v3 = vpack.c.bf16 %v1304_v58, %v1300_v57  ;;  %v4568_v57 = vpack.c.bf16 %v1345_v52, %v1341_v48  ;;  %v1340_v58 = vld [vmem:[%s10723_s1 + $0x2900] sm:$0xff]  ;;  %v1381_v48 = vld [vmem:[%s10723_s1 + $0x2a48] sm:$0xff] }
 0x26f   :  { %5315 = vmatpush1.bf16.msra.mxu1 %v5314_v4  ;;  %4533 = vmatprep.subr.bf16.mxu0 %v4532_v5  ;;  %v5334_v4 = vpack.c.bf16 %v1306_v59, %v1302_v24  ;;  %v4552_v5 = vpack.c.bf16 %v1313_v23, %v1309_v60  ;;  %v1344_v24 = vld [vmem:[%s10723_s1 + $0x2920] sm:$0xff]  ;;  %v1346_v60 = vld [vmem:[%s10723_s1 + $0x2930] sm:$0xff]  ;;  %v1349_v23 = vld [vmem:[%s10723_s1 + $0x2948] sm:$0xff] }
 0x270   :  { %5317 = vmatprep.subr.bf16.mxu1 %v5316_v8  ;;  %v5336_v8 = vpack.c.bf16 %v1315_v0, %v1311_v63  ;;  %v1353_v63 = vld [vmem:[%s10723_s1 + $0x2968] sm:$0xff]  ;;  %v1351_v0 = vld [vmem:[%s10723_s1 + $0x2958] sm:$0xff] }
 0x271   :  { %v1385_v52 = vld [vmem:[%s10723_s1 + $0x2a68] sm:$0xff] }
 0x272   :  { %4535 = vmatpush1.bf16.msra.mxu0 %v4534_v15  ;;  %v1323_v15 = vld [vmem:[%s10723_s1 + $0x2878] sm:$0xff] }
 0x273   :  { %5319 = vmatpush1.bf16.msra.mxu1 %v5318_v16  ;;  %4537 = vmatprep.subr.bf16.mxu0 %v4536_v17  ;;  %v4554_v16 = vpack.c.bf16 %v1312_v51, %v1308_v6  ;;  %v5338_v17 = vpack.c.bf16 %v1314_v38, %v1310_v7  ;;  %v5340_v21 = vpack.c.bf16 %v1323_v15, %v1319_v14  ;;  %v1348_v51 = vld [vmem:[%s10723_s1 + $0x2940] sm:$0xff]  ;;  %v1361_v14 = vld [vmem:[%s10723_s1 + $0x29a8] sm:$0xff]  ;;  %v1359_v15 = vld [vmem:[%s10723_s1 + $0x2998] sm:$0xff] }
 0x274   :  { %5321 = vmatprep.subr.bf16.mxu1 %v5320_v50  ;;  %v1318_v50 = vld [vmem:[%s10723_s1 + $0x2850] sm:$0xff]  ;;  %v4572_v6 = vpack.c.bf16 %v1353_v63, %v1349_v23  ;;  %v1352_v7 = vld [vmem:[%s10723_s1 + $0x2960] sm:$0xff]  ;;  %v1389_v23 = vld [vmem:[%s10723_s1 + $0x2a88] sm:$0xff] }
 0x275   :  { %v5342_v31 = vpack.c.bf16 %v1322_v22, %v1318_v50  ;;  %v1360_v50 = vld [vmem:[%s10723_s1 + $0x29a0] sm:$0xff]  ;;  %v1393_v63 = vld [vmem:[%s10723_s1 + $0x2aa8] sm:$0xff] }
 0x276   :  { %4539 = vmatpush1.bf16.msra.mxu0 %v4538_v28  ;;  %v1327_v28 = vld [vmem:[%s10723_s1 + $0x2898] sm:$0xff] }
 0x277   :  { %5323 = vmatpush1.bf16.msra.mxu1 %v5322_v29  ;;  %4541 = vmatprep.subr.bf16.mxu0 %v4540_v30  ;;  %v1331_v29 = vld [vmem:[%s10723_s1 + $0x28b8] sm:$0xff]  ;;  %v4558_v30 = vpack.c.bf16 %v1320_v20, %v1316_v19  ;;  %v4576_v19 = vpack.c.bf16 %v1361_v14, %v1357_v9  ;;  %v1356_v20 = vld [vmem:[%s10723_s1 + $0x2980] sm:$0xff]  ;;  %v1397_v9 = vld [vmem:[%s10723_s1 + $0x2ac8] sm:$0xff] }
 0x278   :  { %5325 = vmatprep.subr.bf16.mxu1 %v5324_v13  ;;  %v1328_v13 = vld [vmem:[%s10723_s1 + $0x28a0] sm:$0xff]  ;;  %v5344_v35 = vpack.c.bf16 %v1331_v29, %v1327_v28  ;;  %v1367_v28 = vld [vmem:[%s10723_s1 + $0x29d8] sm:$0xff]  ;;  %v1401_v14 = vld [vmem:[%s10723_s1 + $0x2ae8] sm:$0xff] }
 0x279   :  { %v1371_v29 = vld [vmem:[%s10723_s1 + $0x29f8] sm:$0xff] }
 0x27a   :  { %4543 = vmatpush1.bf16.msra.mxu0 %v4542_v41  ;;  %v1339_v41 = vld [vmem:[%s10723_s1 + $0x28f8] sm:$0xff] }
 0x27b   :  { %5327 = vmatpush1.bf16.msra.mxu1 %v5326_v42  ;;  %4545 = vmatprep.subr.bf16.mxu0 %v4544_v43  ;;  %v4562_v42 = vpack.c.bf16 %v1328_v13, %v1324_v33  ;;  %v5348_v12 = vpack.c.bf16 %v1339_v41, %v1335_v37  ;;  %v1364_v33 = vld [vmem:[%s10723_s1 + $0x29c0] sm:$0xff]  ;;  %v1375_v37 = vld [vmem:[%s10723_s1 + $0x2a18] sm:$0xff] }
 0x27c   :  { %5329 = vmatprep.subr.bf16.mxu1 %v5328_v47  ;;  %v1334_v47 = vld [vmem:[%s10723_s1 + $0x28d0] sm:$0xff]  ;;  %v1368_v13 = vld [vmem:[%s10723_s1 + $0x29e0] sm:$0xff]  ;;  %v1379_v41 = vld [vmem:[%s10723_s1 + $0x2a38] sm:$0xff] }
 0x27e   :  { %4547 = vmatpush1.bf16.msra.mxu0 %v4546_v54  ;;  %v1347_v54 = vld [vmem:[%s10723_s1 + $0x2938] sm:$0xff] }
 0x27f   :  { %5331 = vmatpush1.bf16.msra.mxu1 %v5330_v55  ;;  %4549 = vmatprep.subr.bf16.mxu0 %v4548_v56  ;;  %v4566_v55 = vpack.c.bf16 %v1336_v46, %v1332_v39  ;;  %v5350_v56 = vpack.c.bf16 %v1338_v25, %v1334_v47  ;;  %v5352_v59 = vpack.c.bf16 %v1347_v54, %v1343_v53  ;;  %v1372_v39 = vld [vmem:[%s10723_s1 + $0x2a00] sm:$0xff]  ;;  %v1374_v47 = vld [vmem:[%s10723_s1 + $0x2a10] sm:$0xff]  ;;  %v1383_v53 = vld [vmem:[%s10723_s1 + $0x2a58] sm:$0xff] }
 0x280   :  { %5333 = vmatprep.subr.bf16.mxu1 %v5332_v40  ;;  %v1342_v40 = vld [vmem:[%s10723_s1 + $0x2910] sm:$0xff]  ;;  %v1376_v46 = vld [vmem:[%s10723_s1 + $0x2a20] sm:$0xff]  ;;  %v1387_v54 = vld [vmem:[%s10723_s1 + $0x2a78] sm:$0xff] }
 0x281   :  { %v1378_v25 = vld [vmem:[%s10723_s1 + $0x2a30] sm:$0xff] }
 0x282   :  { %4551 = vmatpush1.bf16.msra.mxu0 %v4550_v3  ;;  %v1355_v3 = vld [vmem:[%s10723_s1 + $0x2978] sm:$0xff] }
 0x283   :  { %5335 = vmatpush1.bf16.msra.mxu1 %v5334_v4  ;;  %4553 = vmatprep.subr.bf16.mxu0 %v4552_v5  ;;  %v4570_v4 = vpack.c.bf16 %v1344_v24, %v1340_v58  ;;  %v5354_v5 = vpack.c.bf16 %v1346_v60, %v1342_v40  ;;  %v5356_v38 = vpack.c.bf16 %v1355_v3, %v1351_v0  ;;  %v1380_v58 = vld [vmem:[%s10723_s1 + $0x2a40] sm:$0xff]  ;;  %v1382_v40 = vld [vmem:[%s10723_s1 + $0x2a50] sm:$0xff]  ;;  %v1391_v0 = vld [vmem:[%s10723_s1 + $0x2a98] sm:$0xff] }
 0x284   :  { %5337 = vmatprep.subr.bf16.mxu1 %v5336_v8  ;;  %v1350_v8 = vld [vmem:[%s10723_s1 + $0x2950] sm:$0xff]  ;;  %v1384_v24 = vld [vmem:[%s10723_s1 + $0x2a60] sm:$0xff]  ;;  %v1395_v3 = vld [vmem:[%s10723_s1 + $0x2ab8] sm:$0xff] }
 0x285   :  { %2465 = vmatmul.mubr.f32.vlgmr.msra.gmra.mrb[0].mxu0 %v9255_v1  ;;  %v1386_v60 = vld [vmem:[%s10723_s1 + $0x2a70] sm:$0xff] }
 0x286   :  { %4555 = vmatpush1.bf16.msra.mxu0 %v4554_v16  ;;  %3388 = vmatmul.mubr.f32.vlgmr.msra.gmra.mrb[0].mxu1 %v9255_v1  ;;  %v1330_v1 = vld [vmem:[%s10723_s1 + $0x28b0] sm:$0xff]  ;;  %v1363_v16 = vld [vmem:[%s10723_s1 + $0x29b8] sm:$0xff] }
 0x287   :  { %5339 = vmatpush1.bf16.msra.mxu1 %v5338_v17  ;;  %4557 = vmatprep.subr.bf16.mxu0 %v4556_v18  ;;  %v5346_v43 = vpack.c.bf16 %v1330_v1, %v1326_v34  ;;  %v4574_v17 = vpack.c.bf16 %v1352_v7, %v1348_v51  ;;  %v5358_v18 = vpack.c.bf16 %v1354_v45, %v1350_v8  ;;  %v1366_v34 = vld [vmem:[%s10723_s1 + $0x29d0] sm:$0xff]  ;;  %v1388_v51 = vld [vmem:[%s10723_s1 + $0x2a80] sm:$0xff] }
 0x288   :  { %5341 = vmatprep.subr.bf16.mxu1 %v5340_v21  ;;  %2535 = vmatprep.mubr.f32.mxu0 %v1725_v27  ;;  %v1358_v21 = vld [vmem:[%s10723_s1 + $0x2990] sm:$0xff]  ;;  %v5360_v22 = vpack.c.bf16 %v1363_v16, %v1359_v15  ;;  %v1392_v7 = vld [vmem:[%s10723_s1 + $0x2aa0] sm:$0xff]  ;;  %v1399_v15 = vld [vmem:[%s10723_s1 + $0x2ad8] sm:$0xff] }
 0x289   :  { %3458 = vmatprep.mubr.f32.mxu1 %v1725_v27  ;;  %v1369_v27 = vld [vmem:[%s10723_s1 + $0x29e8] sm:$0xff]  ;;  %v1370_v1 = vld [vmem:[%s10723_s1 + $0x29f0] sm:$0xff]  ;;  %v1403_v16 = vld [vmem:[%s10723_s1 + $0x2af8] sm:$0xff] }
 0x28a   :  { %4559 = vmatpush1.bf16.msra.mxu0 %v4558_v30  ;;  %v4578_v30 = vpack.c.bf16 %v1360_v50, %v1356_v20  ;;  %v1390_v8 = vld [vmem:[%s10723_s1 + $0x2a90] sm:$0xff]  ;;  %v1396_v20 = vld [vmem:[%s10723_s1 + $0x2ac0] sm:$0xff] }
 0x28b   :  { %5343 = vmatpush1.bf16.msra.mxu1 %v5342_v31  ;;  %4561 = vmatprep.subr.bf16.mxu0 %v4560_v32  ;;  %v5362_v31 = vpack.c.bf16 %v1362_v49, %v1358_v21  ;;  %v4580_v32 = vpack.c.bf16 %v1369_v27, %v1365_v26  ;;  %v1394_v45 = vld [vmem:[%s10723_s1 + $0x2ab0] sm:$0xff]  ;;  %v1400_v50 = vld [vmem:[%s10723_s1 + $0x2ae0] sm:$0xff]  ;;  %v1405_v26 = vld [vmem:[%s10723_s1 + $0x2b08] sm:$0xff] }
 0x28c   :  { %5345 = vmatprep.subr.bf16.mxu1 %v5344_v35  ;;  %v5364_v35 = vpack.c.bf16 %v1371_v29, %v1367_v28  ;;  %v1398_v21 = vld [vmem:[%s10723_s1 + $0x2ad0] sm:$0xff]  ;;  %v1409_v27 = vld [vmem:[%s10723_s1 + $0x2b28] sm:$0xff]  ;;  %v1407_v28 = vld [vmem:[%s10723_s1 + $0x2b18] sm:$0xff] }
 0x28d   :  { %v1402_v49 = vld [vmem:[%s10723_s1 + $0x2af0] sm:$0xff]  ;;  %v1411_v29 = vld [vmem:[%s10723_s1 + $0x2b38] sm:$0xff] }
 0x28e   :  { %4563 = vmatpush1.bf16.msra.mxu0 %v4562_v42  ;;  %v4582_v42 = vpack.c.bf16 %v1368_v13, %v1364_v33  ;;  %v1404_v33 = vld [vmem:[%s10723_s1 + $0x2b00] sm:$0xff] }
 0x28f   :  { %5347 = vmatpush1.bf16.msra.mxu1 %v5346_v43  ;;  %4565 = vmatprep.subr.bf16.mxu0 %v4564_v44  ;;  %v5366_v43 = vpack.c.bf16 %v1370_v1, %v1366_v34  ;;  %v4584_v44 = vpack.c.bf16 %v1377_v36, %v1373_v62  ;;  %v1408_v13 = vld [vmem:[%s10723_s1 + $0x2b20] sm:$0xff]  ;;  %v1406_v34 = vld [vmem:[%s10723_s1 + $0x2b10] sm:$0xff]  ;;  %v1413_v62 = vld [vmem:[%s10723_s1 + $0x2b48] sm:$0xff] }
 0x290   :  { %5349 = vmatprep.subr.bf16.mxu1 %v5348_v12  ;;  %v5368_v12 = vpack.c.bf16 %v1379_v41, %v1375_v37  ;;  %v1410_v1 = vld [vmem:[%s10723_s1 + $0x2b30] sm:$0xff]  ;;  %v1417_v36 = vld [vmem:[%s10723_s1 + $0x2b68] sm:$0xff]  ;;  %v1415_v37 = vld [vmem:[%s10723_s1 + $0x2b58] sm:$0xff] }
 0x291   :  { %v1419_v41 = vld [vmem:[%s10723_s1 + $0x2b78] sm:$0xff] }
 0x292   :  { %4567 = vmatpush1.bf16.msra.mxu0 %v4566_v55  ;;  %v4586_v55 = vpack.c.bf16 %v1376_v46, %v1372_v39  ;;  %v1412_v39 = vld [vmem:[%s10723_s1 + $0x2b40] sm:$0xff] }
 0x293   :  { %5351 = vmatpush1.bf16.msra.mxu1 %v5350_v56  ;;  %4569 = vmatprep.subr.bf16.mxu0 %v4568_v57  ;;  %v5370_v56 = vpack.c.bf16 %v1378_v25, %v1374_v47  ;;  %v4588_v57 = vpack.c.bf16 %v1385_v52, %v1381_v48  ;;  %v1416_v46 = vld [vmem:[%s10723_s1 + $0x2b60] sm:$0xff]  ;;  %v1414_v47 = vld [vmem:[%s10723_s1 + $0x2b50] sm:$0xff]  ;;  %v1421_v48 = vld [vmem:[%s10723_s1 + $0x2b88] sm:$0xff] }
 0x294   :  { %5353 = vmatprep.subr.bf16.mxu1 %v5352_v59  ;;  %v5372_v59 = vpack.c.bf16 %v1387_v54, %v1383_v53  ;;  %v1418_v25 = vld [vmem:[%s10723_s1 + $0x2b70] sm:$0xff]  ;;  %v1425_v52 = vld [vmem:[%s10723_s1 + $0x2ba8] sm:$0xff]  ;;  %v1423_v53 = vld [vmem:[%s10723_s1 + $0x2b98] sm:$0xff] }
 0x295   :  { %v1427_v54 = vld [vmem:[%s10723_s1 + $0x2bb8] sm:$0xff] }
 0x296   :  { %4571 = vmatpush1.bf16.msra.mxu0 %v4570_v4  ;;  %v4590_v4 = vpack.c.bf16 %v1384_v24, %v1380_v58  ;;  %v1420_v58 = vld [vmem:[%s10723_s1 + $0x2b80] sm:$0xff] }
 0x297   :  { %5355 = vmatpush1.bf16.msra.mxu1 %v5354_v5  ;;  %4573 = vmatprep.subr.bf16.mxu0 %v4572_v6  ;;  %v5374_v5 = vpack.c.bf16 %v1386_v60, %v1382_v40  ;;  %v4592_v6 = vpack.c.bf16 %v1393_v63, %v1389_v23  ;;  %v1424_v24 = vld [vmem:[%s10723_s1 + $0x2ba0] sm:$0xff]  ;;  %v1422_v40 = vld [vmem:[%s10723_s1 + $0x2b90] sm:$0xff]  ;;  %v1429_v23 = vld [vmem:[%s10723_s1 + $0x2bc8] sm:$0xff] }
 0x298   :  { %5357 = vmatprep.subr.bf16.mxu1 %v5356_v38  ;;  %v5376_v38 = vpack.c.bf16 %v1395_v3, %v1391_v0  ;;  %v1426_v60 = vld [vmem:[%s10723_s1 + $0x2bb0] sm:$0xff]  ;;  %v1433_v63 = vld [vmem:[%s10723_s1 + $0x2be8] sm:$0xff]  ;;  %v1431_v0 = vld [vmem:[%s10723_s1 + $0x2bd8] sm:$0xff] }
 0x299   :  { %v1435_v3 = vld [vmem:[%s10723_s1 + $0x2bf8] sm:$0xff] }
 0x29a   :  { %4575 = vmatpush1.bf16.msra.mxu0 %v4574_v17  ;;  %v4594_v17 = vpack.c.bf16 %v1392_v7, %v1388_v51  ;;  %v1428_v51 = vld [vmem:[%s10723_s1 + $0x2bc0] sm:$0xff] }
 0x29b   :  { %5359 = vmatpush1.bf16.msra.mxu1 %v5358_v18  ;;  %4577 = vmatprep.subr.bf16.mxu0 %v4576_v19  ;;  %v5378_v18 = vpack.c.bf16 %v1394_v45, %v1390_v8  ;;  %v4596_v19 = vpack.c.bf16 %v1401_v14, %v1397_v9  ;;  %v1432_v7 = vld [vmem:[%s10723_s1 + $0x2be0] sm:$0xff]  ;;  %v1430_v8 = vld [vmem:[%s10723_s1 + $0x2bd0] sm:$0xff]  ;;  %v1437_v9 = vld [vmem:[%s10723_s1 + $0x2c08] sm:$0xff] }
 0x29c   :  { %5361 = vmatprep.subr.bf16.mxu1 %v5360_v22  ;;  %v5380_v22 = vpack.c.bf16 %v1403_v16, %v1399_v15  ;;  %v1434_v45 = vld [vmem:[%s10723_s1 + $0x2bf0] sm:$0xff]  ;;  %v1441_v14 = vld [vmem:[%s10723_s1 + $0x2c28] sm:$0xff]  ;;  %v1710_v15 = vcombine.high %v9630_v2, %v9630_v2  ;;  %v1439_v16 = vld [vmem:[%s10723_s1 + $0x2c18] sm:$0xff] }
 0x29d   :  { %v1440_v2 = vld [vmem:[%s10723_s1 + $0x2c20] sm:$0xff] }
 0x29e   :  { %4579 = vmatpush1.bf16.msra.mxu0 %v4578_v30  ;;  %v4598_v30 = vpack.c.bf16 %v1400_v50, %v1396_v20  ;;  %v4616_v20 = vpack.c.bf16 %v1441_v14, %v1437_v9  ;;  %v1436_v50 = vld [vmem:[%s10723_s1 + $0x2c00] sm:$0xff]  ;;  %v1477_v9 = vld [vmem:[%s10723_s1 + $0x2d48] sm:$0xff] }
 0x29f   :  { %5363 = vmatpush1.bf16.msra.mxu1 %v5362_v31  ;;  %4581 = vmatprep.subr.bf16.mxu0 %v4580_v32  ;;  %v5382_v31 = vpack.c.bf16 %v1402_v49, %v1398_v21  ;;  %v4600_v32 = vpack.c.bf16 %v1409_v27, %v1405_v26  ;;  %v1438_v21 = vld [vmem:[%s10723_s1 + $0x2c10] sm:$0xff]  ;;  %v1445_v26 = vld [vmem:[%s10723_s1 + $0x2c48] sm:$0xff] }
 0x2a0   :  { %5365 = vmatprep.subr.bf16.mxu1 %v5364_v35  ;;  %v5384_v35 = vpack.c.bf16 %v1411_v29, %v1407_v28  ;;  %v1442_v49 = vld [vmem:[%s10723_s1 + $0x2c30] sm:$0xff]  ;;  %v1449_v27 = vld [vmem:[%s10723_s1 + $0x2c68] sm:$0xff]  ;;  %v10045_v28 = vrot.slane %v1710_v15, %v5941_v11  ;;  %v1447_v29 = vld [vmem:[%s10723_s1 + $0x2c58] sm:$0xff] }
 0x2a1   :  { %v1448_v11 = vld [vmem:[%s10723_s1 + $0x2c60] sm:$0xff]  ;;  %v1481_v14 = vld [vmem:[%s10723_s1 + $0x2d68] sm:$0xff]  ;;  %v1479_v15 = vld [vmem:[%s10723_s1 + $0x2d58] sm:$0xff] }
 0x2a2   :  { %4583 = vmatpush1.bf16.msra.mxu0 %v4582_v42  ;;  %v4602_v42 = vpack.c.bf16 %v1408_v13, %v1404_v33  ;;  %v4620_v33 = vpack.c.bf16 %v1449_v27, %v1445_v26  ;;  %v1444_v13 = vld [vmem:[%s10723_s1 + $0x2c40] sm:$0xff]  ;;  %v1489_v26 = vld [vmem:[%s10723_s1 + $0x2da8] sm:$0xff]  ;;  %v1487_v27 = vld [vmem:[%s10723_s1 + $0x2d98] sm:$0xff] }
 0x2a3   :  { %5367 = vmatpush1.bf16.msra.mxu1 %v5366_v43  ;;  %4585 = vmatprep.subr.bf16.mxu0 %v4584_v44  ;;  %v5386_v43 = vpack.c.bf16 %v1410_v1, %v1406_v34  ;;  %v4604_v44 = vpack.c.bf16 %v1417_v36, %v1413_v62  ;;  %v1446_v34 = vld [vmem:[%s10723_s1 + $0x2c50] sm:$0xff]  ;;  %v1453_v62 = vld [vmem:[%s10723_s1 + $0x2c88] sm:$0xff] }
 0x2a4   :  { %5369 = vmatprep.subr.bf16.mxu1 %v5368_v12  ;;  %v5388_v12 = vpack.c.bf16 %v1419_v41, %v1415_v37  ;;  %v1450_v1 = vld [vmem:[%s10723_s1 + $0x2c70] sm:$0xff]  ;;  %v1457_v36 = vld [vmem:[%s10723_s1 + $0x2ca8] sm:$0xff]  ;;  %v1726_v37 = vcombine.high %v10045_v28, %v10045_v28  ;;  %v1455_v41 = vld [vmem:[%s10723_s1 + $0x2c98] sm:$0xff] }
 0x2a6   :  { %4587 = vmatpush1.bf16.msra.mxu0 %v4586_v55  ;;  %v4606_v55 = vpack.c.bf16 %v1416_v46, %v1412_v39  ;;  %v4624_v39 = vpack.c.bf16 %v1457_v36, %v1453_v62  ;;  %v1452_v46 = vld [vmem:[%s10723_s1 + $0x2c80] sm:$0xff]  ;;  %v1497_v62 = vld [vmem:[%s10723_s1 + $0x2de8] sm:$0xff]  ;;  %v1495_v36 = vld [vmem:[%s10723_s1 + $0x2dd8] sm:$0xff] }
 0x2a7   :  { %5371 = vmatpush1.bf16.msra.mxu1 %v5370_v56  ;;  %4589 = vmatprep.subr.bf16.mxu0 %v4588_v57  ;;  %v5390_v56 = vpack.c.bf16 %v1418_v25, %v1414_v47  ;;  %v4608_v57 = vpack.c.bf16 %v1425_v52, %v1421_v48  ;;  %v1456_v47 = vld [vmem:[%s10723_s1 + $0x2ca0] sm:$0xff]  ;;  %v1461_v48 = vld [vmem:[%s10723_s1 + $0x2cc8] sm:$0xff] }
 0x2a8   :  { %5373 = vmatprep.subr.bf16.mxu1 %v5372_v59  ;;  %v5392_v59 = vpack.c.bf16 %v1427_v54, %v1423_v53  ;;  %v1465_v52 = vld [vmem:[%s10723_s1 + $0x2ce8] sm:$0xff]  ;;  %v1463_v53 = vld [vmem:[%s10723_s1 + $0x2cd8] sm:$0xff] }
 0x2a9   :  { %v1467_v54 = vld [vmem:[%s10723_s1 + $0x2cf8] sm:$0xff] }
 0x2aa   :  { %4591 = vmatpush1.bf16.msra.mxu0 %v4590_v4  ;;  %v4610_v4 = vpack.c.bf16 %v1424_v24, %v1420_v58  ;;  %v1460_v58 = vld [vmem:[%s10723_s1 + $0x2cc0] sm:$0xff] }
 0x2ab   :  { %5375 = vmatpush1.bf16.msra.mxu1 %v5374_v5  ;;  %4593 = vmatprep.subr.bf16.mxu0 %v4592_v6  ;;  %v5394_v5 = vpack.c.bf16 %v1426_v60, %v1422_v40  ;;  %v4612_v6 = vpack.c.bf16 %v1433_v63, %v1429_v23  ;;  %v1464_v24 = vld [vmem:[%s10723_s1 + $0x2ce0] sm:$0xff]  ;;  %v1462_v40 = vld [vmem:[%s10723_s1 + $0x2cd0] sm:$0xff]  ;;  %v1469_v23 = vld [vmem:[%s10723_s1 + $0x2d08] sm:$0xff] }
 0x2ac   :  { %5377 = vmatprep.subr.bf16.mxu1 %v5376_v38  ;;  %v5396_v38 = vpack.c.bf16 %v1435_v3, %v1431_v0  ;;  %v1466_v60 = vld [vmem:[%s10723_s1 + $0x2cf0] sm:$0xff]  ;;  %v1473_v63 = vld [vmem:[%s10723_s1 + $0x2d28] sm:$0xff]  ;;  %v1471_v0 = vld [vmem:[%s10723_s1 + $0x2d18] sm:$0xff] }
 0x2ad   :  { %v1475_v3 = vld [vmem:[%s10723_s1 + $0x2d38] sm:$0xff] }
 0x2ae   :  { %4595 = vmatpush1.bf16.msra.mxu0 %v4594_v17  ;;  %v1443_v17 = vld [vmem:[%s10723_s1 + $0x2c38] sm:$0xff] }
 0x2af   :  { %5379 = vmatpush1.bf16.msra.mxu1 %v5378_v18  ;;  %4597 = vmatprep.subr.bf16.mxu0 %v4596_v19  ;;  %v4614_v18 = vpack.c.bf16 %v1432_v7, %v1428_v51  ;;  %v5398_v19 = vpack.c.bf16 %v1434_v45, %v1430_v8  ;;  %v1468_v51 = vld [vmem:[%s10723_s1 + $0x2d00] sm:$0xff]  ;;  %v1470_v8 = vld [vmem:[%s10723_s1 + $0x2d10] sm:$0xff] }
 0x2b0   :  { %5381 = vmatprep.subr.bf16.mxu1 %v5380_v22  ;;  %v5400_v22 = vpack.c.bf16 %v1443_v17, %v1439_v16  ;;  %v1472_v7 = vld [vmem:[%s10723_s1 + $0x2d20] sm:$0xff]  ;;  %v1474_v45 = vld [vmem:[%s10723_s1 + $0x2d30] sm:$0xff]  ;;  %v1483_v16 = vld [vmem:[%s10723_s1 + $0x2d78] sm:$0xff] }
 0x2b1   :  { %v4634_v17 = vpack.c.bf16 %v1472_v7, %v1468_v51  ;;  %v1510_v51 = vld [vmem:[%s10723_s1 + $0x2e50] sm:$0xff] }
 0x2b2   :  { %4599 = vmatpush1.bf16.msra.mxu0 %v4598_v30  ;;  %v1451_v30 = vld [vmem:[%s10723_s1 + $0x2c78] sm:$0xff] }
 0x2b3   :  { %5383 = vmatpush1.bf16.msra.mxu1 %v5382_v31  ;;  %4601 = vmatprep.subr.bf16.mxu0 %v4600_v32  ;;  %v4618_v31 = vpack.c.bf16 %v1440_v2, %v1436_v50  ;;  %v5402_v32 = vpack.c.bf16 %v1442_v49, %v1438_v21  ;;  %v1480_v50 = vld [vmem:[%s10723_s1 + $0x2d60] sm:$0xff]  ;;  %v1478_v2 = vld [vmem:[%s10723_s1 + $0x2d50] sm:$0xff]  ;;  %v5420_v21 = vpack.c.bf16 %v1483_v16, %v1479_v15  ;;  %v1485_v49 = vld [vmem:[%s10723_s1 + $0x2d88] sm:$0xff] }
 0x2b4   :  { %5385 = vmatprep.subr.bf16.mxu1 %v5384_v35  ;;  %v5404_v35 = vpack.c.bf16 %v1451_v30, %v1447_v29  ;;  %v1491_v29 = vld [vmem:[%s10723_s1 + $0x2db8] sm:$0xff] }
 0x2b6   :  { %4603 = vmatpush1.bf16.msra.mxu0 %v4602_v42  ;;  %v1459_v42 = vld [vmem:[%s10723_s1 + $0x2cb8] sm:$0xff] }
 0x2b7   :  { %5387 = vmatpush1.bf16.msra.mxu1 %v5386_v43  ;;  %4605 = vmatprep.subr.bf16.mxu0 %v4604_v44  ;;  %v4622_v43 = vpack.c.bf16 %v1448_v11, %v1444_v13  ;;  %v5406_v44 = vpack.c.bf16 %v1450_v1, %v1446_v34  ;;  %v5408_v25 = vpack.c.bf16 %v1459_v42, %v1455_v41  ;;  %v1488_v13 = vld [vmem:[%s10723_s1 + $0x2da0] sm:$0xff]  ;;  %v1486_v11 = vld [vmem:[%s10723_s1 + $0x2d90] sm:$0xff]  ;;  %v1493_v1 = vld [vmem:[%s10723_s1 + $0x2dc8] sm:$0xff] }
 0x2b8   :  { %5389 = vmatprep.subr.bf16.mxu1 %v5388_v12  ;;  %v1454_v12 = vld [vmem:[%s10723_s1 + $0x2c90] sm:$0xff]  ;;  %v5424_v34 = vpack.c.bf16 %v1491_v29, %v1487_v27 }
 0x2ba   :  { %4607 = vmatpush1.bf16.msra.mxu0 %v4606_v55  ;;  %v4626_v55 = vpack.c.bf16 %v1456_v47, %v1452_v46  ;;  %v1494_v46 = vld [vmem:[%s10723_s1 + $0x2dd0] sm:$0xff] }
 0x2bb   :  { %5391 = vmatpush1.bf16.msra.mxu1 %v5390_v56  ;;  %4609 = vmatprep.subr.bf16.mxu0 %v4608_v57  ;;  %v4628_v57 = vpack.c.bf16 %v1465_v52, %v1461_v48  ;;  %v1503_v48 = vld [vmem:[%s10723_s1 + $0x2e18] sm:$0xff] }
 0x2bc   :  { %5393 = vmatprep.subr.bf16.mxu1 %v5392_v59  ;;  %v5412_v59 = vpack.c.bf16 %v1467_v54, %v1463_v53  ;;  %v1507_v52 = vld [vmem:[%s10723_s1 + $0x2e38] sm:$0xff] }
 0x2be   :  { %4611 = vmatpush1.bf16.msra.mxu0 %v4610_v4  ;;  %v4630_v4 = vpack.c.bf16 %v1464_v24, %v1460_v58  ;;  %v1502_v58 = vld [vmem:[%s10723_s1 + $0x2e10] sm:$0xff]  ;;  %v5432_v24 = vpack.c.bf16 %v1507_v52, %v1503_v48 }
 0x2bf   :  { %5395 = vmatpush1.bf16.msra.mxu1 %v5394_v5  ;;  %4613 = vmatprep.subr.bf16.mxu0 %v4612_v6  ;;  %v5414_v5 = vpack.c.bf16 %v1466_v60, %v1462_v40  ;;  %v4632_v6 = vpack.c.bf16 %v1473_v63, %v1469_v23  ;;  %v1506_v40 = vld [vmem:[%s10723_s1 + $0x2e30] sm:$0xff]  ;;  %v1513_v60 = vld [vmem:[%s10723_s1 + $0x2e68] sm:$0xff]  ;;  %v1511_v23 = vld [vmem:[%s10723_s1 + $0x2e58] sm:$0xff] }
 0x2c0   :  { %5397 = vmatprep.subr.bf16.mxu1 %v5396_v38  ;;  %v5416_v38 = vpack.c.bf16 %v1475_v3, %v1471_v0  ;;  %v1515_v63 = vld [vmem:[%s10723_s1 + $0x2e78] sm:$0xff]  ;;  %v5434_v3 = vpack.c.bf16 %v1506_v40, %v1502_v58  ;;  %v1546_v58 = vld [vmem:[%s10723_s1 + $0x2f70] sm:$0xff]  ;;  %v1553_v40 = vld [vmem:[%s10723_s1 + $0x2fa8] sm:$0xff] }
 0x2c1   :  { %v5436_v7 = vpack.c.bf16 %v1515_v63, %v1511_v23 }
 0x2c2   :  { %4615 = vmatpush1.bf16.msra.mxu0 %v4614_v18  ;;  %v5418_v18 = vpack.c.bf16 %v1474_v45, %v1470_v8  ;;  %v1514_v8 = vld [vmem:[%s10723_s1 + $0x2e70] sm:$0xff]  ;;  %v1521_v45 = vld [vmem:[%s10723_s1 + $0x2ea8] sm:$0xff] }
 0x2c3   :  { %5399 = vmatpush1.bf16.msra.mxu1 %v5398_v19  ;;  %4617 = vmatprep.subr.bf16.mxu0 %v4616_v20  ;;  %v4636_v19 = vpack.c.bf16 %v1481_v14, %v1477_v9  ;;  %v1476_v20 = vld [vmem:[%s10723_s1 + $0x2d40] sm:$0xff]  ;;  %v1519_v9 = vld [vmem:[%s10723_s1 + $0x2e98] sm:$0xff]  ;;  %v5438_v16 = vpack.c.bf16 %v1514_v8, %v1510_v51  ;;  %v1554_v51 = vld [vmem:[%s10723_s1 + $0x2fb0] sm:$0xff] }
 0x2c4   :  { %5401 = vmatprep.subr.bf16.mxu1 %v5400_v22  ;;  %v1482_v22 = vld [vmem:[%s10723_s1 + $0x2d70] sm:$0xff]  ;;  %v4638_v30 = vpack.c.bf16 %v1480_v50, %v1476_v20  ;;  %v1523_v14 = vld [vmem:[%s10723_s1 + $0x2eb8] sm:$0xff]  ;;  %v1561_v8 = vld [vmem:[%s10723_s1 + $0x2fe8] sm:$0xff] }
 0x2c5   :  { %2536 = vmatmul.mubr.f32.vlgmr.msra.gmra.mrb[0].mxu0 %v9652_v10  ;;  %v1518_v20 = vld [vmem:[%s10723_s1 + $0x2e90] sm:$0xff]  ;;  %v5440_v50 = vpack.c.bf16 %v1523_v14, %v1519_v9 }
 0x2c6   :  { %4619 = vmatpush1.bf16.msra.mxu0 %v4618_v31  ;;  %3459 = vmatmul.mubr.f32.vlgmr.msra.gmra.mrb[0].mxu1 %v9652_v10  ;;  %v1458_v10 = vld [vmem:[%s10723_s1 + $0x2cb0] sm:$0xff]  ;;  %v5422_v31 = vpack.c.bf16 %v1482_v22, %v1478_v2  ;;  %v1529_v22 = vld [vmem:[%s10723_s1 + $0x2ee8] sm:$0xff] }
 0x2c7   :  { %5403 = vmatpush1.bf16.msra.mxu1 %v5402_v32  ;;  %4621 = vmatprep.subr.bf16.mxu0 %v4620_v33  ;;  %v5410_v56 = vpack.c.bf16 %v1458_v10, %v1454_v12  ;;  %v4640_v32 = vpack.c.bf16 %v1489_v26, %v1485_v49  ;;  %v1484_v33 = vld [vmem:[%s10723_s1 + $0x2d80] sm:$0xff]  ;;  %v1498_v12 = vld [vmem:[%s10723_s1 + $0x2df0] sm:$0xff]  ;;  %v1505_v10 = vld [vmem:[%s10723_s1 + $0x2e28] sm:$0xff] }
 0x2c8   :  { %5405 = vmatprep.subr.bf16.mxu1 %v5404_v35  ;;  %2606 = vmatprep.mubr.f32.mxu0 %v1726_v37  ;;  %v1490_v35 = vld [vmem:[%s10723_s1 + $0x2db0] sm:$0xff]  ;;  %v4642_v41 = vpack.c.bf16 %v1488_v13, %v1484_v33  ;;  %v5430_v54 = vpack.c.bf16 %v1498_v12, %v1494_v46  ;;  %v1527_v49 = vld [vmem:[%s10723_s1 + $0x2ed8] sm:$0xff]  ;;  %v1545_v12 = vld [vmem:[%s10723_s1 + $0x2f68] sm:$0xff] }
 0x2c9   :  { %3529 = vmatprep.mubr.f32.mxu1 %v1726_v37  ;;  %v1499_v37 = vld [vmem:[%s10723_s1 + $0x2df8] sm:$0xff]  ;;  %v5426_v42 = vpack.c.bf16 %v1490_v35, %v1486_v11  ;;  %v1522_v2 = vld [vmem:[%s10723_s1 + $0x2eb0] sm:$0xff]  ;;  %v1537_v35 = vld [vmem:[%s10723_s1 + $0x2f28] sm:$0xff] }
 0x2ca   :  { %4623 = vmatpush1.bf16.msra.mxu0 %v4622_v43  ;;  %v4644_v43 = vpack.c.bf16 %v1497_v62, %v1493_v1  ;;  %v5428_v47 = vpack.c.bf16 %v1499_v37, %v1495_v36  ;;  %v1531_v26 = vld [vmem:[%s10723_s1 + $0x2ef8] sm:$0xff]  ;;  %v5442_v29 = vpack.c.bf16 %v1522_v2, %v1518_v20  ;;  %v1526_v33 = vld [vmem:[%s10723_s1 + $0x2ed0] sm:$0xff]  ;;  %v1569_v2 = vld [vmem:[%s10723_s1 + $0x3028] sm:$0xff] }
 0x2cb   :  { %5407 = vmatpush1.bf16.msra.mxu1 %v5406_v44  ;;  %4625 = vmatprep.subr.bf16.mxu0 %v4624_v39  ;;  %v1492_v44 = vld [vmem:[%s10723_s1 + $0x2dc0] sm:$0xff]  ;;  %v5444_v13 = vpack.c.bf16 %v1531_v26, %v1527_v49  ;;  %v1530_v11 = vld [vmem:[%s10723_s1 + $0x2ef0] sm:$0xff]  ;;  %v1535_v1 = vld [vmem:[%s10723_s1 + $0x2f18] sm:$0xff] }
 0x2cc   :  { %5409 = vmatprep.subr.bf16.mxu1 %v5408_v25  ;;  %v1496_v39 = vld [vmem:[%s10723_s1 + $0x2de0] sm:$0xff]  ;;  %v1501_v25 = vld [vmem:[%s10723_s1 + $0x2e08] sm:$0xff]  ;;  %v1539_v62 = vld [vmem:[%s10723_s1 + $0x2f38] sm:$0xff]  ;;  %v5446_v37 = vpack.c.bf16 %v1530_v11, %v1526_v33 }
 0x2cd   :  { %v4646_v53 = vpack.c.bf16 %v1496_v39, %v1492_v44  ;;  %v1534_v44 = vld [vmem:[%s10723_s1 + $0x2f10] sm:$0xff]  ;;  %v5448_v39 = vpack.c.bf16 %v1539_v62, %v1535_v1  ;;  %v1577_v11 = vld [vmem:[%s10723_s1 + $0x3068] sm:$0xff] }
 0x2ce   :  { %4627 = vmatpush1.bf16.msra.mxu0 %v4626_v55  ;;  %v4648_v55 = vpack.c.bf16 %v1505_v10, %v1501_v25  ;;  %v1538_v46 = vld [vmem:[%s10723_s1 + $0x2f30] sm:$0xff]  ;;  %v1543_v25 = vld [vmem:[%s10723_s1 + $0x2f58] sm:$0xff] }
 0x2cf   :  { %5411 = vmatpush1.bf16.msra.mxu1 %v5410_v56  ;;  %4629 = vmatprep.subr.bf16.mxu0 %v4628_v57  ;;  %v1500_v56 = vld [vmem:[%s10723_s1 + $0x2e00] sm:$0xff]  ;;  %v1547_v10 = vld [vmem:[%s10723_s1 + $0x2f78] sm:$0xff]  ;;  %v5450_v52 = vpack.c.bf16 %v1538_v46, %v1534_v44  ;;  %v1562_v20 = vld [vmem:[%s10723_s1 + $0x2ff0] sm:$0xff] }
 0x2d0   :  { %5413 = vmatprep.subr.bf16.mxu1 %v5412_v59  ;;  %v1504_v57 = vld [vmem:[%s10723_s1 + $0x2e20] sm:$0xff]  ;;  %v1509_v59 = vld [vmem:[%s10723_s1 + $0x2e48] sm:$0xff]  ;;  %v1570_v33 = vld [vmem:[%s10723_s1 + $0x3030] sm:$0xff] }
 0x2d1   :  { %v4650_v0 = vpack.c.bf16 %v1504_v57, %v1500_v56  ;;  %v1542_v56 = vld [vmem:[%s10723_s1 + $0x2f50] sm:$0xff]  ;;  %v5452_v57 = vpack.c.bf16 %v1547_v10, %v1543_v25  ;;  %v1585_v46 = vld [vmem:[%s10723_s1 + $0x30a8] sm:$0xff] }
 0x2d2   :  { %4631 = vmatpush1.bf16.msra.mxu0 %v4630_v4  ;;  %v4652_v4 = vpack.c.bf16 %v1513_v60, %v1509_v59  ;;  %v1551_v59 = vld [vmem:[%s10723_s1 + $0x2f98] sm:$0xff]  ;;  %v5454_v63 = vpack.c.bf16 %v1546_v58, %v1542_v56  ;;  %v1578_v44 = vld [vmem:[%s10723_s1 + $0x3070] sm:$0xff]  ;;  %v1589_v56 = vld [vmem:[%s10723_s1 + $0x30c8] sm:$0xff]  ;;  %v5630_v58 = vmov 0.0  }
 0x2d3   :  { %5415 = vmatpush1.bf16.msra.mxu1 %v5414_v5  ;;  %4633 = vmatprep.subr.bf16.mxu0 %v4632_v6  ;;  %v1508_v5 = vld [vmem:[%s10723_s1 + $0x2e40] sm:$0xff]  ;;  %v1555_v60 = vld [vmem:[%s10723_s1 + $0x2fb8] sm:$0xff] }
 0x2d4   :  { %5417 = vmatprep.subr.bf16.mxu1 %v5416_v38  ;;  %v1512_v6 = vld [vmem:[%s10723_s1 + $0x2e60] sm:$0xff]  ;;  %v1517_v38 = vld [vmem:[%s10723_s1 + $0x2e88] sm:$0xff] }
 0x2d5   :  { %v4654_v15 = vpack.c.bf16 %v1512_v6, %v1508_v5  ;;  %v1550_v5 = vld [vmem:[%s10723_s1 + $0x2f90] sm:$0xff]  ;;  %v5456_v6 = vpack.c.bf16 %v1555_v60, %v1551_v59 }
 0x2d6   :  { %4635 = vmatpush1.bf16.msra.mxu0 %v4634_v17  ;;  %v4656_v17 = vpack.c.bf16 %v1521_v45, %v1517_v38  ;;  %v1559_v38 = vld [vmem:[%s10723_s1 + $0x2fd8] sm:$0xff]  ;;  %v5458_v14 = vpack.c.bf16 %v1554_v51, %v1550_v5  ;;  %v1594_v5 = vld [vmem:[%s10723_s1 + $0x30f0] sm:$0xff]  ;;  %v3628_v51 = vld [vmem:[%s10725_s3 + $0x88] sm:$0xff] }
 0x2d7   :  { %5419 = vmatpush1.bf16.msra.mxu1 %v5418_v18  ;;  %4637 = vmatprep.subr.bf16.mxu0 %v4636_v19  ;;  %v1516_v18 = vld [vmem:[%s10723_s1 + $0x2e80] sm:$0xff]  ;;  %v1563_v45 = vld [vmem:[%s10723_s1 + $0x2ff8] sm:$0xff] }
 0x2d8   :  { %5421 = vmatprep.subr.bf16.mxu1 %v5420_v21  ;;  %v1520_v19 = vld [vmem:[%s10723_s1 + $0x2ea0] sm:$0xff]  ;;  %v1525_v21 = vld [vmem:[%s10723_s1 + $0x2ec8] sm:$0xff] }
 0x2d9   :  { %v4658_v27 = vpack.c.bf16 %v1520_v19, %v1516_v18  ;;  %v1558_v18 = vld [vmem:[%s10723_s1 + $0x2fd0] sm:$0xff]  ;;  %v5460_v19 = vpack.c.bf16 %v1563_v45, %v1559_v38 }
 0x2da   :  { %4639 = vmatpush1.bf16.msra.mxu0 %v4638_v30  ;;  %v4660_v30 = vpack.c.bf16 %v1529_v22, %v1525_v21  ;;  %v1567_v21 = vld [vmem:[%s10723_s1 + $0x3018] sm:$0xff]  ;;  %v5462_v26 = vpack.c.bf16 %v1562_v20, %v1558_v18  ;;  %v3644_v18 = vld [vmem:[%s10725_s3 + $0x108] sm:$0xff] }
 0x2db   :  { %5423 = vmatpush1.bf16.msra.mxu1 %v5422_v31  ;;  %4641 = vmatprep.subr.bf16.mxu0 %v4640_v32  ;;  %v1524_v31 = vld [vmem:[%s10723_s1 + $0x2ec0] sm:$0xff]  ;;  %v1571_v22 = vld [vmem:[%s10723_s1 + $0x3038] sm:$0xff] }
 0x2dc   :  { %5425 = vmatprep.subr.bf16.mxu1 %v5424_v34  ;;  %v1528_v32 = vld [vmem:[%s10723_s1 + $0x2ee0] sm:$0xff]  ;;  %v1533_v34 = vld [vmem:[%s10723_s1 + $0x2f08] sm:$0xff]  ;;  %v3630_v20 = vld [vmem:[%s10725_s3 + $0x98] sm:$0xff] }
 0x2dd   :  { %v4662_v36 = vpack.c.bf16 %v1528_v32, %v1524_v31  ;;  %v1566_v31 = vld [vmem:[%s10723_s1 + $0x3010] sm:$0xff]  ;;  %v5464_v32 = vpack.c.bf16 %v1571_v22, %v1567_v21 }
 0x2de   :  { %4643 = vmatpush1.bf16.msra.mxu0 %v4642_v41  ;;  %v4664_v41 = vpack.c.bf16 %v1537_v35, %v1533_v34  ;;  %v1575_v34 = vld [vmem:[%s10723_s1 + $0x3058] sm:$0xff]  ;;  %v5466_v62 = vpack.c.bf16 %v1570_v33, %v1566_v31  ;;  %v3838_v21 = vld.sshfl [vmem:[%s10722_s0 + $0x30] sm:$0x3 pattern:$0x76325410]  ;;  %v3631_v33 = vld [vmem:[%s10725_s3 + $0xa0] sm:$0xff] }
 0x2df   :  { %5427 = vmatpush1.bf16.msra.mxu1 %v5426_v42  ;;  %4645 = vmatprep.subr.bf16.mxu0 %v4644_v43  ;;  %v1532_v42 = vld [vmem:[%s10723_s1 + $0x2f00] sm:$0xff]  ;;  %v1579_v35 = vld [vmem:[%s10723_s1 + $0x3078] sm:$0xff] }
 0x2e0   :  { %5429 = vmatprep.subr.bf16.mxu1 %v5428_v47  ;;  %v1536_v43 = vld [vmem:[%s10723_s1 + $0x2f20] sm:$0xff]  ;;  %v1541_v47 = vld [vmem:[%s10723_s1 + $0x2f48] sm:$0xff] }
 0x2e1   :  { %v4666_v48 = vpack.c.bf16 %v1536_v43, %v1532_v42  ;;  %v1574_v42 = vld [vmem:[%s10723_s1 + $0x3050] sm:$0xff]  ;;  %v5468_v43 = vpack.c.bf16 %v1579_v35, %v1575_v34  ;;  %v3664_v34 = vld [vmem:[%s10725_s3 + $0x1a8] sm:$0xff] }
 0x2e2   :  { %4647 = vmatpush1.bf16.msra.mxu0 %v4646_v53  ;;  %v4668_v53 = vpack.c.bf16 %v1545_v12, %v1541_v47  ;;  %v1583_v47 = vld [vmem:[%s10723_s1 + $0x3098] sm:$0xff]  ;;  %v5470_v10 = vpack.c.bf16 %v1578_v44, %v1574_v42  ;;  %v3633_v44 = vld [vmem:[%s10725_s3 + $0xb0] sm:$0xff] }
 0x2e3   :  { %5431 = vmatpush1.bf16.msra.mxu1 %v5430_v54  ;;  %4649 = vmatprep.subr.bf16.mxu0 %v4648_v55  ;;  %v1540_v54 = vld [vmem:[%s10723_s1 + $0x2f40] sm:$0xff]  ;;  %v1587_v12 = vld [vmem:[%s10723_s1 + $0x30b8] sm:$0xff] }
 0x2e4   :  { %5433 = vmatprep.subr.bf16.mxu1 %v5432_v24  ;;  %v1544_v55 = vld [vmem:[%s10723_s1 + $0x2f60] sm:$0xff]  ;;  %v1549_v24 = vld [vmem:[%s10723_s1 + $0x2f88] sm:$0xff] }
 0x2e5   :  { %v4670_v23 = vpack.c.bf16 %v1544_v55, %v1540_v54  ;;  %v1582_v54 = vld [vmem:[%s10723_s1 + $0x3090] sm:$0xff]  ;;  %v5472_v55 = vpack.c.bf16 %v1587_v12, %v1583_v47  ;;  %v3666_v47 = vld [vmem:[%s10725_s3 + $0x1b8] sm:$0xff] }
 0x2e6   :  { %4651 = vmatpush1.bf16.msra.mxu0 %v4650_v0  ;;  %v4672_v0 = vpack.c.bf16 %v1553_v40, %v1549_v24  ;;  %v1591_v24 = vld [vmem:[%s10723_s1 + $0x30d8] sm:$0xff] }
 0x2e7   :  { %5435 = vmatpush1.bf16.msra.mxu1 %v5434_v3  ;;  %4653 = vmatprep.subr.bf16.mxu0 %v4652_v4  ;;  %v1548_v3 = vld [vmem:[%s10723_s1 + $0x2f80] sm:$0xff]  ;;  %v1595_v40 = vld [vmem:[%s10723_s1 + $0x30f8] sm:$0xff] }
 0x2e8   :  { %5437 = vmatprep.subr.bf16.mxu1 %v5436_v7  ;;  %v1552_v4 = vld [vmem:[%s10723_s1 + $0x2fa0] sm:$0xff]  ;;  %v1557_v7 = vld [vmem:[%s10723_s1 + $0x2fc8] sm:$0xff] }
 0x2e9   :  { %v4674_v9 = vpack.c.bf16 %v1552_v4, %v1548_v3  ;;  %v1590_v3 = vld [vmem:[%s10723_s1 + $0x30d0] sm:$0xff]  ;;  %v5476_v4 = vpack.c.bf16 %v1595_v40, %v1591_v24 }
 0x2ea   :  { %4655 = vmatpush1.bf16.msra.mxu0 %v4654_v15  ;;  %v4676_v15 = vpack.c.bf16 %v1561_v8, %v1557_v7  ;;  %v3659_v7 = vld [vmem:[%s10725_s3 + $0x180] sm:$0xff]  ;;  %v3660_v8 = vld [vmem:[%s10725_s3 + $0x188] sm:$0xff]  ;;  %v5478_v45 = vpack.c.bf16 %v1594_v5, %v1590_v3  ;;  %v3638_v5 = vld [vmem:[%s10725_s3 + $0xd8] sm:$0xff] }
 0x2eb   :  { %5439 = vmatpush1.bf16.msra.mxu1 %v5438_v16  ;;  %4657 = vmatprep.subr.bf16.mxu0 %v4656_v17  ;;  %v1556_v16 = vld [vmem:[%s10723_s1 + $0x2fc0] sm:$0xff]  ;;  %v3652_v3 = vld [vmem:[%s10725_s3 + $0x148] sm:$0xff] }
 0x2ec   :  { %5441 = vmatprep.subr.bf16.mxu1 %v5440_v50  ;;  %v1560_v17 = vld [vmem:[%s10723_s1 + $0x2fe0] sm:$0xff]  ;;  %v1565_v50 = vld [vmem:[%s10723_s1 + $0x3008] sm:$0xff] }
 0x2ed   :  { %v4678_v49 = vpack.c.bf16 %v1560_v17, %v1556_v16  ;;  %v3643_v16 = vld [vmem:[%s10725_s3 + $0x100] sm:$0xff]  ;;  %v5512_v17 = vpack.c.bf16 %v3660_v8, %v3659_v7 }
 0x2ee   :  { %4659 = vmatpush1.bf16.msra.mxu0 %v4658_v27  ;;  %v4680_v27 = vpack.c.bf16 %v1569_v2, %v1565_v50  ;;  %v3661_v50 = vld [vmem:[%s10725_s3 + $0x190] sm:$0xff]  ;;  %v3662_v2 = vld [vmem:[%s10725_s3 + $0x198] sm:$0xff] }
 0x2ef   :  { %5443 = vmatpush1.bf16.msra.mxu1 %v5442_v29  ;;  %4661 = vmatprep.subr.bf16.mxu0 %v4660_v30  ;;  %v1564_v29 = vld [vmem:[%s10723_s1 + $0x3000] sm:$0xff]  ;;  %v5516_v31 = vpack.c.bf16 %v3662_v2, %v3661_v50 }
 0x2f0   :  { %5445 = vmatprep.subr.bf16.mxu1 %v5444_v13  ;;  %v1568_v30 = vld [vmem:[%s10723_s1 + $0x3020] sm:$0xff]  ;;  %v1573_v13 = vld [vmem:[%s10723_s1 + $0x3048] sm:$0xff] }
 0x2f1   :  { %v4682_v1 = vpack.c.bf16 %v1568_v30, %v1564_v29  ;;  %v3614_v29 = vld [vmem:[%s10725_s3 + $0x18] sm:$0xff]  ;;  %v3645_v30 = vld [vmem:[%s10725_s3 + $0x110] sm:$0xff] }
 0x2f2   :  { %4663 = vmatpush1.bf16.msra.mxu0 %v4662_v36  ;;  %v4684_v36 = vpack.c.bf16 %v1577_v11, %v1573_v13  ;;  %v3632_v13 = vld [vmem:[%s10725_s3 + $0xa8] sm:$0xff]  ;;  %v3663_v11 = vld [vmem:[%s10725_s3 + $0x1a0] sm:$0xff] }
 0x2f3   :  { %5447 = vmatpush1.bf16.msra.mxu1 %v5446_v37  ;;  %4665 = vmatprep.subr.bf16.mxu0 %v4664_v41  ;;  %v1572_v37 = vld [vmem:[%s10723_s1 + $0x3040] sm:$0xff]  ;;  %v5520_v42 = vpack.c.bf16 %v3664_v34, %v3663_v11  ;;  %v3674_v34 = vld [vmem:[%s10725_s3 + $0x1f8] sm:$0xff] }
 0x2f4   :  { %5449 = vmatprep.subr.bf16.mxu1 %v5448_v39  ;;  %v1576_v41 = vld [vmem:[%s10723_s1 + $0x3060] sm:$0xff]  ;;  %v1581_v39 = vld [vmem:[%s10723_s1 + $0x3088] sm:$0xff] }
 0x2f5   :  { %v4686_v25 = vpack.c.bf16 %v1576_v41, %v1572_v37  ;;  %v3616_v37 = vld [vmem:[%s10725_s3 + $0x28] sm:$0xff]  ;;  %v3647_v41 = vld [vmem:[%s10725_s3 + $0x120] sm:$0xff] }
 0x2f6   :  { %4667 = vmatpush1.bf16.msra.mxu0 %v4666_v48  ;;  %v4688_v48 = vpack.c.bf16 %v1585_v46, %v1581_v39  ;;  %v3634_v39 = vld [vmem:[%s10725_s3 + $0xb8] sm:$0xff]  ;;  %v3665_v46 = vld [vmem:[%s10725_s3 + $0x1b0] sm:$0xff] }
 0x2f7   :  { %5451 = vmatpush1.bf16.msra.mxu1 %v5450_v52  ;;  %4669 = vmatprep.subr.bf16.mxu0 %v4668_v53  ;;  %v1580_v52 = vld [vmem:[%s10723_s1 + $0x3080] sm:$0xff] }
 0x2f8   :  { %5453 = vmatprep.subr.bf16.mxu1 %v5452_v57  ;;  %v1584_v53 = vld [vmem:[%s10723_s1 + $0x30a0] sm:$0xff]  ;;  %v1593_v57 = vld [vmem:[%s10723_s1 + $0x30e8] sm:$0xff] }
 0x2f9   :  { %v4690_v59 = vpack.c.bf16 %v1584_v53, %v1580_v52  ;;  %v3618_v52 = vld [vmem:[%s10725_s3 + $0x38] sm:$0xff]  ;;  %v3649_v53 = vld [vmem:[%s10725_s3 + $0x130] sm:$0xff] }
 0x2fa   :  { %4671 = vmatpush1.bf16.msra.mxu0 %v4670_v23  ;;  %v4692_v23 = vpack.c.bf16 %v1593_v57, %v1589_v56  ;;  %v3636_v56 = vld [vmem:[%s10725_s3 + $0xc8] sm:$0xff]  ;;  %v3667_v57 = vld [vmem:[%s10725_s3 + $0x1c0] sm:$0xff] }
 0x2fb   :  { %5455 = vmatpush1.bf16.msra.mxu1 %v5454_v63  ;;  %4673 = vmatprep.subr.bf16.mxu0 %v4672_v0  ;;  %v1588_v63 = vld [vmem:[%s10723_s1 + $0x30c0] sm:$0xff] }
 0x2fc   :  { %5457 = vmatprep.subr.bf16.mxu1 %v5456_v6  ;;  %v1592_v0 = vld [vmem:[%s10723_s1 + $0x30e0] sm:$0xff] }
 0x2fd   :  { %v3627_v6 = vld [vmem:[%s10725_s3 + $0x80] sm:$0xff]  ;;  %v4694_v38 = vpack.c.bf16 %v1592_v0, %v1588_v63 }
 0x2fe   :  { %4675 = vmatpush1.bf16.msra.mxu0 %v4674_v9  ;;  %v5480_v9 = vpack.c.bf16 %v3628_v51, %v3627_v6  ;;  %v3651_v63 = vld [vmem:[%s10725_s3 + $0x140] sm:$0xff]  ;;  %v3669_v6 = vld [vmem:[%s10725_s3 + $0x1d0] sm:$0xff]  ;;  %v3670_v51 = vld [vmem:[%s10725_s3 + $0x1d8] sm:$0xff] }
 0x2ff   :  { %5459 = vmatpush1.bf16.msra.mxu1 %v5458_v14  ;;  %4677 = vmatprep.subr.bf16.mxu0 %v4676_v15  ;;  %v3611_v14 = vld [vmem:[%s10725_s3] sm:$0xff]  ;;  %v3612_v15 = vld [vmem:[%s10725_s3 + $0x8] sm:$0xff]  ;;  %v5530_v8 = vpack.c.bf16 %v3652_v3, %v3651_v63 }
 0x300   :  { %5461 = vmatprep.subr.bf16.mxu1 %v5460_v19  ;;  %v3629_v19 = vld [vmem:[%s10725_s3 + $0x90] sm:$0xff]  ;;  %v5482_v22 = vpack.c.bf16 %v3612_v15, %v3611_v14  ;;  %v5532_v15 = vpack.c.bf16 %v3670_v51, %v3669_v6  ;;  %v3841_v63 = vld [vmem:[%s10726_s4] ss:$0 sm:$0xff] }
 0x301   :  { %v3653_v14 = vld [vmem:[%s10725_s3 + $0x150] sm:$0xff] }
 0x302   :  { %4679 = vmatpush1.bf16.msra.mxu0 %v4678_v49  ;;  %v5514_v49 = vpack.c.bf16 %v3644_v18, %v3643_v16  ;;  %v3654_v16 = vld [vmem:[%s10725_s3 + $0x158] sm:$0xff]  ;;  %v3640_v18 = vld [vmem:[%s10725_s3 + $0xe8] sm:$0xff] }
 0x303   :  { %5463 = vmatpush1.bf16.msra.mxu1 %v5462_v26  ;;  %4681 = vmatprep.subr.bf16.mxu0 %v4680_v27  ;;  %v5484_v26 = vpack.c.bf16 %v3630_v20, %v3629_v19  ;;  %v3613_v27 = vld [vmem:[%s10725_s3 + $0x10] sm:$0xff]  ;;  %v3671_v19 = vld [vmem:[%s10725_s3 + $0x1e0] sm:$0xff]  ;;  %v3672_v20 = vld [vmem:[%s10725_s3 + $0x1e8] sm:$0xff]  ;;  %v5534_v2 = vpack.c.bf16 %v3654_v16, %v3653_v14 }
 0x304   :  { %5465 = vmatprep.subr.bf16.mxu1 %v5464_v32  ;;  %v3646_v32 = vld [vmem:[%s10725_s3 + $0x118] sm:$0xff]  ;;  %v5486_v35 = vpack.c.bf16 %v3614_v29, %v3613_v27  ;;  %v3655_v27 = vld [vmem:[%s10725_s3 + $0x160] sm:$0xff] }
 0x305   :  { %2607 = vmatmul.mubr.f32.vlgmr.msra.gmra.mrb[0].mxu0 %v10045_v28 }
 0x306   :  { %4683 = vmatpush1.bf16.msra.mxu0 %v4682_v1  ;;  %3530 = vmatmul.mubr.f32.vlgmr.msra.gmra.mrb[0].mxu1 %v10045_v28  ;;  %v1586_v28 = vld [vmem:[%s10723_s1 + $0x30b0] sm:$0xff]  ;;  %v5518_v1 = vpack.c.bf16 %v3646_v32, %v3645_v30  ;;  %v3656_v30 = vld [vmem:[%s10725_s3 + $0x168] sm:$0xff] }
 0x307   :  { %5467 = vmatpush1.bf16.msra.mxu1 %v5466_v62  ;;  %4685 = vmatprep.subr.bf16.mxu0 %v4684_v36  ;;  %v5474_v60 = vpack.c.bf16 %v1586_v28, %v1582_v54  ;;  %v5488_v62 = vpack.c.bf16 %v3632_v13, %v3631_v33  ;;  %v3615_v36 = vld [vmem:[%s10725_s3 + $0x20] sm:$0xff]  ;;  %v5524_v54 = vpack.c.bf16 %v3666_v47, %v3665_v46  ;;  %v3641_v32 = vld [vmem:[%s10725_s3 + $0xf0] sm:$0xff]  ;;  %v3642_v33 = vld [vmem:[%s10725_s3 + $0xf8] sm:$0xff]  ;;  %v1604_v46 = vsub.s32 1, %v5914_v61 }
 0x308   :  { %5469 = vmatprep.subr.bf16.mxu1 %v5468_v43  ;;  %2677 = vmatprep.mubr.f32.mxu0 %v5630_v58  ;;  %v3648_v43 = vld [vmem:[%s10725_s3 + $0x128] sm:$0xff]  ;;  %v5490_v12 = vpack.c.bf16 %v3616_v37, %v3615_v36  ;;  %v3635_v28 = vld [vmem:[%s10725_s3 + $0xc0] sm:$0xff]  ;;  %v3673_v13 = vld [vmem:[%s10725_s3 + $0x1f0] sm:$0xff]  ;;  %v5508_v11 = vpack.c.bf16 %v3642_v33, %v3641_v32  ;;  %v1612_v47 = vsub.s32 3, %v5914_v61 }
 0x309   :  { %3600 = vmatprep.mubr.f32.mxu1 %v5630_v58  ;;  %v3668_v58 = vld [vmem:[%s10725_s3 + $0x1c8] sm:$0xff]  ;;  %v3657_v37 = vld [vmem:[%s10725_s3 + $0x170] sm:$0xff] }
 0x30a   :  { %4687 = vmatpush1.bf16.msra.mxu0 %v4686_v25  ;;  %v5522_v25 = vpack.c.bf16 %v3648_v43, %v3647_v41  ;;  %v5528_v0 = vpack.c.bf16 %v3668_v58, %v3667_v57  ;;  %v3658_v41 = vld [vmem:[%s10725_s3 + $0x178] sm:$0xff]  ;;  %v1600_v43 = vsub.s32 0, %v5914_v61 }
 0x30b   :  { %5471 = vmatpush1.bf16.msra.mxu1 %v5470_v10  ;;  %4689 = vmatprep.subr.bf16.mxu0 %v4688_v48  ;;  %v5492_v10 = vpack.c.bf16 %v3634_v39, %v3633_v44  ;;  %v3617_v48 = vld [vmem:[%s10725_s3 + $0x30] sm:$0xff]  ;;  %v1596_v44 = vld [vmem:[%s10724_s2] sm:$0xf]  ;;  %v1608_v39 = vsub.s32 2, %v5914_v61 }
 0x30c   :  { %5473 = vmatprep.subr.bf16.mxu1 %v5472_v55  ;;  %v3650_v55 = vld [vmem:[%s10725_s3 + $0x138] sm:$0xff]  ;;  %v5494_v24 = vpack.c.bf16 %v3618_v52, %v3617_v48  ;;  %v1613_v48 = vrot.slane %v1596_v44, %v1612_v47 }
 0x30d   :  { %v5526_v40 = vpack.c.bf16 %v3650_v55, %v3649_v53 }
 0x30e   :  { %4691 = vmatpush1.bf16.msra.mxu0 %v4690_v59  ;;  %v5496_v59 = vpack.c.bf16 %v3636_v56, %v3635_v28 }
 0x30f   :  { %5475 = vmatpush1.bf16.msra.mxu1 %v5474_v60  ;;  %4693 = vmatprep.subr.bf16.mxu0 %v4692_v23  ;;  %v3619_v60 = vld [vmem:[%s10725_s3 + $0x40] sm:$0xff]  ;;  %v3620_v23 = vld [vmem:[%s10725_s3 + $0x48] sm:$0xff] }
 0x310   :  { %5477 = vmatprep.subr.bf16.mxu1 %v5476_v4  ;;  %v3637_v4 = vld [vmem:[%s10725_s3 + $0xd0] sm:$0xff]  ;;  %v5498_v7 = vpack.c.bf16 %v3620_v23, %v3619_v60 }
 0x312   :  { %4695 = vmatpush1.bf16.msra.mxu0 %v4694_v38  ;;  %v5500_v38 = vpack.c.bf16 %v3638_v5, %v3637_v4 }
 0x313   :  { %5479 = vmatpush1.bf16.msra.mxu1 %v5478_v45  ;;  %5481 = vmatprep.subr.bf16.mxu0 %v5480_v9  ;;  %v3621_v45 = vld [vmem:[%s10725_s3 + $0x50] sm:$0xff]  ;;  %v3622_v9 = vld [vmem:[%s10725_s3 + $0x58] sm:$0xff] }
 0x314   :  { %5513 = vmatprep.subr.bf16.mxu1 %v5512_v17  ;;  %v3639_v17 = vld [vmem:[%s10725_s3 + $0xe0] sm:$0xff]  ;;  %v5502_v50 = vpack.c.bf16 %v3622_v9, %v3621_v45 }
 0x315   :  { %3839 = vmatmul.mubr.msk.f32.vlgmr.msra.gmra.mrb[0].mxu0 %vm1758_vm0, %v3838_v21 }
 0x316   :  { %3840 = vmatmul.mubr.msk.f32.vlgmr.msra.gmra.mrb[0].mxu1 %vm1758_vm0, %v3838_v21  ;;  %5483 = vmatpush3.bf16.msra.mxu0 %v5482_v22  ;;  %v5504_v21 = vpack.c.bf16 %v3640_v18, %v3639_v17  ;;  %v5536_v22 = vpack.c.bf16 %v3672_v20, %v3671_v19 }
 0x317   :  { %5515 = vmatpush3.bf16.msra.mxu1 %v5514_v49  ;;  %5485 = vmatprep.subr.bf16.mxu0 %v5484_v26  ;;  %v3623_v49 = vld [vmem:[%s10725_s3 + $0x60] sm:$0xff]  ;;  %v3624_v26 = vld [vmem:[%s10725_s3 + $0x68] sm:$0xff] }
 0x318   :  { %5517 = vmatprep.subr.bf16.mxu1 %v5516_v31  ;;  %v5506_v29 = vpack.c.bf16 %v3624_v26, %v3623_v49  ;;  %v5538_v31 = vpack.c.bf16 %v3656_v30, %v3655_v27 }
 0x31a   :  { %5487 = vmatpush3.bf16.msra.mxu0 %v5486_v35  ;;  %v3625_v35 = vld [vmem:[%s10725_s3 + $0x70] sm:$0xff] }
 0x31b   :  { %5519 = vmatpush3.bf16.msra.mxu1 %v5518_v1  ;;  %5489 = vmatprep.subr.bf16.mxu0 %v5488_v62  ;;  %v3626_v1 = vld [vmem:[%s10725_s3 + $0x78] sm:$0xff]  ;;  %v5540_v62 = vpack.c.bf16 %v3674_v34, %v3673_v13 }
 0x31c   :  { %5521 = vmatprep.subr.bf16.mxu1 %v5520_v42  ;;  %v5510_v36 = vpack.c.bf16 %v3626_v1, %v3625_v35  ;;  %v5542_v42 = vpack.c.bf16 %v3658_v41, %v3657_v37 }
 0x31e   :  { %5491 = vmatpush3.bf16.msra.mxu0 %v5490_v12  ;;  %v1601_v12 = vrot.slane %v1596_v44, %v1600_v43 }
 0x31f   :  { %5523 = vmatpush3.bf16.msra.mxu1 %v5522_v25  ;;  %5493 = vmatprep.subr.bf16.mxu0 %v5492_v10  ;;  %v1609_v25 = vrot.slane %v1596_v44, %v1608_v39  ;;  %v1605_v10 = vrot.slane %v1596_v44, %v1604_v46 }
 0x320   :  { %5525 = vmatprep.subr.bf16.mxu1 %v5524_v54 }
 0x322   :  { %5495 = vmatpush3.bf16.msra.mxu0 %v5494_v24 }
 0x323   :  { %5527 = vmatpush3.bf16.msra.mxu1 %v5526_v40  ;;  %5497 = vmatprep.subr.bf16.mxu0 %v5496_v59 }
 0x324   :  { %5529 = vmatprep.subr.bf16.mxu1 %v5528_v0 }
 0x326   :  { %5499 = vmatpush3.bf16.msra.mxu0 %v5498_v7 }
 0x327   :  { %5531 = vmatpush3.bf16.msra.mxu1 %v5530_v8  ;;  %5501 = vmatprep.subr.bf16.mxu0 %v5500_v38 }
 0x328   :  { %5533 = vmatprep.subr.bf16.mxu1 %v5532_v15 }
 0x32a   :  { %5503 = vmatpush3.bf16.msra.mxu0 %v5502_v50 }
 0x32b   :  { %5535 = vmatpush3.bf16.msra.mxu1 %v5534_v2  ;;  %5505 = vmatprep.subr.bf16.mxu0 %v5504_v21 }
 0x32c   :  { %5537 = vmatprep.subr.bf16.mxu1 %v5536_v22 }
 0x32e   :  { %5507 = vmatpush3.bf16.msra.mxu0 %v5506_v29 }
 0x32f   :  { %5539 = vmatpush3.bf16.msra.mxu1 %v5538_v31  ;;  %5509 = vmatprep.subr.bf16.mxu0 %v5508_v11 }
 0x330   :  { %5541 = vmatprep.subr.bf16.mxu1 %v5540_v62 }
 0x332   :  { %5511 = vmatpush3.bf16.msra.mxu0 %v5510_v36 }
 0x333   :  { %5543 = vmatpush3.bf16.msra.mxu1 %v5542_v42 }
 0x3e8   :  { %v2679_v52 = vpop.f32.mrb[0].mxu0 }
 0x3e9   :  { %v5544_v53 = vadd.f32 %v2679_v52, %v1601_v12  ;;  %v3602_v54 = vpop.f32.mrb[0].mxu1  ;;  %v2681_v55 = vpop.f32.mrb[1].mxu0 }
 0x3ea   :  { %v5546_v28 = vadd.f32 %v3602_v54, %v1609_v25  ;;  %v5545_v56 = vadd.f32 %v2681_v55, %v1605_v10  ;;  %v3604_v57 = vpop.f32.mrb[1].mxu1 }
 0x3eb   :  { %v5547_v58 = vadd.f32 %v3604_v57, %v1613_v48  ;;  %v3607_v40 = vmax.f32 %v5544_v53, 0.0 }
 0x3ec   :  { %v3608_v24 = vmax.f32 %v5545_v56, 0.0  ;;  %v3609_v60 = vmax.f32 %v5546_v28, 0.0 }
 0x3ed   :  { %v3610_v59 = vmax.f32 %v5547_v58, 0.0 }
 0x3ee   :  { %3746 = vmatprep.mubr.f32.mxu0 %v3608_v24 }
 0x3ef   :  { %3816 = vmatprep.mubr.f32.mxu1 %v3610_v59  ;;  %3747 = vmatmul.mubr.f32.vlgmr.msra.gmra.mrb[2].mxu0 %v3607_v40 }
 0x3f0   :  { %3817 = vmatmul.mubr.f32.vlgmr.msra.gmra.mrb[2].mxu1 %v3609_v60 }
 0x4c2   :  { %v3874_v61 = vpop.f32.mrb[2].mxu0 }
 0x4c3   :  { %v3909_v23 = vpop.f32.mrb[2].mxu1  ;;  %v3875_v0 = vpop.f32.mrb[3].mxu0 }
 0x4c4   :  { %v3876_v3 = vadd.f32 %v3875_v0, %v3874_v61  ;;  %v3910_v4 = vpop.f32.mrb[3].mxu1 }
 0x4c5   :  { %v3911_v5 = vadd.f32 %v3910_v4, %v3909_v23 }
 0x4c6   :  { %v3749_v6 = vadd.f32 %v3876_v3, %v3841_v63 }
 0x4c8   :  { %v3819_v51 = vadd.f32 %v3911_v5, %v3749_v6 }
 0x4ca   :  { %3823 = vst.msk [vmem:[#allocation2] sm:$0x3] %vm3822_vm1, %v3819_v51 }
 0x4cb   :  { %5616 = shalt.err (!%p5613_p4)
}
 0x4cc   :  { %s5617_s18 = scalar_lea.hbm %s10727_s5, 32 }
 0x4cd   :  { %p5618_p5 = scmp.ne.s32.totalorder %s10727_s5, %s5617_s18  ;;  %p5621_p6 = scmp.lt.u32.totalorder %s5617_s18, %s10727_s5 }
 0x4cf   :  { %p5623_p7 = pnand %p5621_p6, %p5618_p5 }
 0x4d1   :  { %5626 = shalt.err (!%p5623_p7)
}
 0x4d2   :  { %3833 = dma.vmem_to_hbm [thread:$0]  %s3831_s15, 32, %s10727_s5, [#allocation3]  }
 0x4d3   :  { %5627 = dma.done.wait [#allocation3], 32  }
 0x4d4   :  { %5628 = vsyncadd [#allocation3], 4294967264 }
 0x4d5   :  { %3837 = vsyncpa [#allocation3], 1 }

</bundles_post_ra>
